<compile_context>
chip_gen: v5e
topology: v5e:2x2
jax: 0.10.0
libtpu: 0.0.40
codegen_flags: <defaults>
</compile_context>

<pallas_src>
import functools

import jax
import jax.numpy as jnp
from jax import lax
from jax.experimental import pallas as pl
from jax.experimental.pallas import tpu as pltpu  # noqa: F401

# ------------------------- dopri5 (RK45) tableau ---------------------------
A21 = 1.0 / 5.0
A31, A32 = 3.0 / 40.0, 9.0 / 40.0
A41, A42, A43 = 44.0 / 45.0, -56.0 / 15.0, 32.0 / 9.0
A51, A52, A53, A54 = 19372.0 / 6561.0, -25360.0 / 2187.0, 64448.0 / 6561.0, -212.0 / 729.0
A61, A62, A63, A64, A65 = (
    9017.0 / 3168.0,
    -355.0 / 33.0,
    46732.0 / 5247.0,
    49.0 / 176.0,
    -5103.0 / 18656.0,
)
B1, B3, B4, B5, B6 = 35.0 / 384.0, 500.0 / 1113.0, 125.0 / 192.0, -2187.0 / 6784.0, 11.0 / 84.0

NUM_STEPS = 16          # fixed-step dopri5 over t in [0, 1]
DT = 1.0 / NUM_STEPS    # exact in binary (2^-4)

# dt folded into the tableau at Python level (constant folding).
DTA21 = DT * A21
DTA31, DTA32 = DT * A31, DT * A32
DTA41, DTA42, DTA43 = DT * A41, DT * A42, DT * A43
DTA51, DTA52, DTA53, DTA54 = DT * A51, DT * A52, DT * A53, DT * A54
DTA61, DTA62, DTA63, DTA64, DTA65 = DT * A61, DT * A62, DT * A63, DT * A64, DT * A65
DTB1, DTB3, DTB4, DTB5, DTB6 = DT * B1, DT * B3, DT * B4, DT * B5, DT * B6


def _ffjord_kernel(x_ref, w_ref, b_ref, y_ref, *, num_chains):
    """Integrates dx/dt = tanh(x @ W_eff + b_eff) from t=0 to t=1 (fixed-step dopri5)."""
    w_eff = w_ref[...]                                   # (D, D), collapsed in wrapper
    b_eff = b_ref[...]                                   # (1, D)

    bsz = x_ref.shape[0]
    rows = bsz // num_chains

    # Hoist the bias broadcast out of the loop body (traced once, reused).
    b_full = jnp.broadcast_to(b_eff, (rows, b_eff.shape[-1]))

    def ode_func(y):
        # MLP.forward(t, y) collapsed: tanh(y @ W_eff + b_eff)   (t unused)
        return jnp.tanh(jnp.dot(y, w_eff, preferred_element_type=jnp.float32) + b_full)

    # Independent batch sub-chains: rows are independent under the ODE, so
    # each chain is its own dependency chain -> scheduler interleaves them.
    chains = tuple(
        x_ref[c * rows:(c + 1) * rows, :].astype(jnp.float32) for c in range(num_chains)
    )

    def rk45_step(_, ys):
        k1 = [ode_func(y) for y in ys]
        # Incremental accumulation of the final combine (shorter live ranges;
        # the VPU adds slot into MXU-drain / EUP dead cycles).
        acc = [y + DTB1 * k for y, k in zip(ys, k1)]
        k2 = [ode_func(y + DTA21 * a) for y, a in zip(ys, k1)]
        k3 = [ode_func(y + (DTA31 * a + DTA32 * b)) for y, a, b in zip(ys, k1, k2)]
        acc = [s + DTB3 * k for s, k in zip(acc, k3)]
        k4 = [ode_func(y + (DTA41 * a + DTA42 * b + DTA43 * c))
              for y, a, b, c in zip(ys, k1, k2, k3)]
        acc = [s + DTB4 * k for s, k in zip(acc, k4)]
        k5 = [ode_func(y + (DTA51 * a + DTA52 * b + DTA53 * c + DTA54 * d))
              for y, a, b, c, d in zip(ys, k1, k2, k3, k4)]
        acc = [s + DTB5 * k for s, k in zip(acc, k5)]
        k6 = [ode_func(y + (DTA61 * a + DTA62 * b + DTA63 * c + DTA64 * d + DTA65 * e))
              for y, a, b, c, d, e in zip(ys, k1, k2, k3, k4, k5)]
        return tuple(s + DTB6 * k for s, k in zip(acc, k6))

    # Static trip count -> fully unroll so the LLO scheduler sees all stages
    # of all chains in one basic block.
    chains = lax.fori_loop(0, NUM_STEPS, rk45_step, chains, unroll=True)

    for c in range(num_chains):
        y_ref[c * rows:(c + 1) * rows, :] = chains[c].astype(y_ref.dtype)


def ffjord_forward(x, params, *, num_chains=2):
    """Returns (out0, out1) == (x at t=0, x at t=1), matching FFJORDModel.forward."""
    w1, b1, w2, b2, w3, b3 = params
    B, D = x.shape

    # Collapse the activation-free Linear stack once at the JAX level (fused by
    # XLA, never recomputed inside the kernel):
    #   W_eff = (W1 @ W2) @ W3 ,  b_eff = (b1 @ W2 + b2) @ W3 + b3
    # Valid because tanh is applied only after fc3 and the odefunc ignores t.
    w_eff = jnp.dot(jnp.dot(w1, w2), w3)                 # (D, D)
    b_eff = jnp.dot(jnp.dot(b1, w2) + b2, w3) + b3       # (1, D)

    if B % num_chains != 0 or B < num_chains:
        num_chains = 1

    full = lambda shape: pl.BlockSpec(shape, lambda: tuple(0 for _ in shape))

    # TODO(synk): at production batch sizes, switch to a batch-on-lanes (D, B)
    # layout (lane-dense VPU/EUP ops + unmasked stores) and add a "parallel"
    # batch grid axis with constant index_maps for W_eff/b_eff (2nd TC on
    # v7x); at B=8 a grid / transpose is pure overhead.
    y1 = pl.pallas_call(
        functools.partial(_ffjord_kernel, num_chains=num_chains),
        out_shape=jax.ShapeDtypeStruct((B, D), x.dtype),
        grid=(),
        in_specs=[
            full((B, D)),   # x
            full((D, D)),   # W_eff
            full((1, D)),   # b_eff
        ],
        out_specs=full((B, D)),
    )(x, w_eff, b_eff)

    out0 = x  # solution at t=0 is the input itself
    return out0, y1


def init_params(key, input_dim, hidden_dim, output_dim):
    """Deterministic nn.Linear-style init: U(-1/sqrt(fan_in), 1/sqrt(fan_in))."""
    ks = jax.random.split(key, 6)

    def linear(kw, kb, fan_in, fan_out):
        bound = 1.0 / jnp.sqrt(jnp.float32(fan_in))
        w = jax.random.uniform(kw, (fan_in, fan_out), jnp.float32, -bound, bound)
        b = jax.random.uniform(kb, (1, fan_out), jnp.float32, -bound, bound)
        return w, b

    w1, b1 = linear(ks[0], ks[1], input_dim, hidden_dim)
    w2, b2 = linear(ks[2], ks[3], hidden_dim, hidden_dim)
    w3, b3 = linear(ks[4], ks[5], hidden_dim, output_dim)
    return (w1, b1, w2, b2, w3, b3)


if __name__ == "__main__":
    # For an ODE, output_dim must equal input_dim.
    B, D, H = 8, 16, 32

    key = jax.random.PRNGKey(0)
    kx, kp = jax.random.split(key)
    x = jax.random.normal(kx, (B, D), dtype=jnp.float32)
    params = init_params(kp, input_dim=D, hidden_dim=H, output_dim=D)

    out0, out1 = jax.jit(functools.partial(ffjord_forward, params=params))(x)
    jax.block_until_ready((out0, out1))

    # Pure-JAX fixed-step dopri5 reference (original 3-matmul MLP form, no
    # weight collapse, no dt folding, single batch chain).
    w1, b1, w2, b2, w3, b3 = params

    def f(y):
        return jnp.tanh(((y @ w1 + b1) @ w2 + b2) @ w3 + b3)

    def ref_step(_, y):
        dt = 1.0 / NUM_STEPS
        k1 = f(y)
        k2 = f(y + dt * (A21 * k1))
        k3 = f(y + dt * (A31 * k1 + A32 * k2))
        k4 = f(y + dt * (A41 * k1 + A42 * k2 + A43 * k3))
        k5 = f(y + dt * (A51 * k1 + A52 * k2 + A53 * k3 + A54 * k4))
        k6 = f(y + dt * (A61 * k1 + A62 * k2 + A63 * k3 + A64 * k4 + A65 * k5))
        return y + dt * (B1 * k1 + B3 * k3 + B4 * k4 + B5 * k5 + B6 * k6)

    y_ref = lax.fori_loop(0, NUM_STEPS, ref_step, x)

    assert out0.shape == (B, D) and out1.shape == (B, D)
    assert jnp.allclose(out0, x)
    # Tolerance accounts for fp re-association from the weight collapse,
    # dt folding, and incremental RK-combine accumulation.
    assert jnp.allclose(out1, y_ref, atol=1e-4, rtol=1e-4)
    print("KERNEL_OK")
</pallas_src>

<mosaic_0001>
module attributes {stable_mosaic.version = 11 : i64} {
  func.func @_ffjord_kernel(%arg0: memref<8x16xf32, #tpu.memory_space<vmem>>, %arg1: memref<16x16xf32, #tpu.memory_space<vmem>>, %arg2: memref<1x16xf32, #tpu.memory_space<vmem>>, %arg3: memref<8x16xf32, #tpu.memory_space<vmem>>) attributes {dimension_semantics = [], scalar_prefetch = 0 : i64, scratch_operands = 0 : i64, tpu.core_type = #tpu.core_type<tc>} {
    %c0 = arith.constant 0 : index
    %c0_0 = arith.constant 0 : index
    %0 = vector.load %arg1[%c0, %c0_0] : memref<16x16xf32, #tpu.memory_space<vmem>>, vector<16x16xf32>
    %c0_1 = arith.constant 0 : index
    %c0_2 = arith.constant 0 : index
    %1 = vector.load %arg2[%c0_1, %c0_2] : memref<1x16xf32, #tpu.memory_space<vmem>>, vector<1x16xf32>
    %2 = vector.shape_cast %1 : vector<1x16xf32> to vector<1x16xf32>
    %3 = vector.broadcast %2 : vector<1x16xf32> to vector<4x16xf32>
    %c0_3 = arith.constant 0 : index
    %c0_4 = arith.constant 0 : index
    %4 = vector.load %arg0[%c0_3, %c0_4] : memref<8x16xf32, #tpu.memory_space<vmem>>, vector<4x16xf32>
    %c4 = arith.constant 4 : index
    %c0_5 = arith.constant 0 : index
    %5 = vector.load %arg0[%c4, %c0_5] : memref<8x16xf32, #tpu.memory_space<vmem>>, vector<4x16xf32>
    %c0_i32 = arith.constant 0 : i32
    %cst = arith.constant dense<0.000000e+00> : vector<4x16xf32>
    %6 = tpu.matmul %4, %0, %cst {dimension_numbers = #tpu.dot_dimension_numbers<[1], [0], [0], [1], [0, 0, 1, 1], [], []>} : vector<4x16xf32>, vector<16x16xf32>, vector<4x16xf32> -> vector<4x16xf32>
    %7 = arith.addf %6, %3 : vector<4x16xf32>
    %8 = math.tanh %7 : vector<4x16xf32>
    %cst_6 = arith.constant dense<0.000000e+00> : vector<4x16xf32>
    %9 = tpu.matmul %5, %0, %cst_6 {dimension_numbers = #tpu.dot_dimension_numbers<[1], [0], [0], [1], [0, 0, 1, 1], [], []>} : vector<4x16xf32>, vector<16x16xf32>, vector<4x16xf32> -> vector<4x16xf32>
    %10 = arith.addf %9, %3 : vector<4x16xf32>
    %11 = math.tanh %10 : vector<4x16xf32>
    %cst_7 = arith.constant 0.00569661474 : f32
    %12 = vector.broadcast %cst_7 : f32 to vector<4x16xf32>
    %13 = arith.mulf %12, %8 : vector<4x16xf32>
    %14 = arith.addf %4, %13 : vector<4x16xf32>
    %cst_8 = arith.constant 0.00569661474 : f32
    %15 = vector.broadcast %cst_8 : f32 to vector<4x16xf32>
    %16 = arith.mulf %15, %11 : vector<4x16xf32>
    %17 = arith.addf %5, %16 : vector<4x16xf32>
    %cst_9 = arith.constant 1.250000e-02 : f32
    %18 = vector.broadcast %cst_9 : f32 to vector<4x16xf32>
    %19 = arith.mulf %18, %8 : vector<4x16xf32>
    %20 = arith.addf %4, %19 : vector<4x16xf32>
    %cst_10 = arith.constant dense<0.000000e+00> : vector<4x16xf32>
    %21 = tpu.matmul %20, %0, %cst_10 {dimension_numbers = #tpu.dot_dimension_numbers<[1], [0], [0], [1], [0, 0, 1, 1], [], []>} : vector<4x16xf32>, vector<16x16xf32>, vector<4x16xf32> -> vector<4x16xf32>
    %22 = arith.addf %21, %3 : vector<4x16xf32>
    %23 = math.tanh %22 : vector<4x16xf32>
    %cst_11 = arith.constant 1.250000e-02 : f32
    %24 = vector.broadcast %cst_11 : f32 to vector<4x16xf32>
    %25 = arith.mulf %24, %11 : vector<4x16xf32>
    %26 = arith.addf %5, %25 : vector<4x16xf32>
    %cst_12 = arith.constant dense<0.000000e+00> : vector<4x16xf32>
    %27 = tpu.matmul %26, %0, %cst_12 {dimension_numbers = #tpu.dot_dimension_numbers<[1], [0], [0], [1], [0, 0, 1, 1], [], []>} : vector<4x16xf32>, vector<16x16xf32>, vector<4x16xf32> -> vector<4x16xf32>
    %28 = arith.addf %27, %3 : vector<4x16xf32>
    %29 = math.tanh %28 : vector<4x16xf32>
    %cst_13 = arith.constant 4.687500e-03 : f32
    %30 = vector.broadcast %cst_13 : f32 to vector<4x16xf32>
    %31 = arith.mulf %30, %8 : vector<4x16xf32>
    %cst_14 = arith.constant 1.406250e-02 : f32
    %32 = vector.broadcast %cst_14 : f32 to vector<4x16xf32>
    %33 = arith.mulf %32, %23 : vector<4x16xf32>
    %34 = arith.addf %31, %33 : vector<4x16xf32>
    %35 = arith.addf %4, %34 : vector<4x16xf32>
    %cst_15 = arith.constant dense<0.000000e+00> : vector<4x16xf32>
    %36 = tpu.matmul %35, %0, %cst_15 {dimension_numbers = #tpu.dot_dimension_numbers<[1], [0], [0], [1], [0, 0, 1, 1], [], []>} : vector<4x16xf32>, vector<16x16xf32>, vector<4x16xf32> -> vector<4x16xf32>
    %37 = arith.addf %36, %3 : vector<4x16xf32>
    %38 = math.tanh %37 : vector<4x16xf32>
    %cst_16 = arith.constant 4.687500e-03 : f32
    %39 = vector.broadcast %cst_16 : f32 to vector<4x16xf32>
    %40 = arith.mulf %39, %11 : vector<4x16xf32>
    %cst_17 = arith.constant 1.406250e-02 : f32
    %41 = vector.broadcast %cst_17 : f32 to vector<4x16xf32>
    %42 = arith.mulf %41, %29 : vector<4x16xf32>
    %43 = arith.addf %40, %42 : vector<4x16xf32>
    %44 = arith.addf %5, %43 : vector<4x16xf32>
    %cst_18 = arith.constant dense<0.000000e+00> : vector<4x16xf32>
    %45 = tpu.matmul %44, %0, %cst_18 {dimension_numbers = #tpu.dot_dimension_numbers<[1], [0], [0], [1], [0, 0, 1, 1], [], []>} : vector<4x16xf32>, vector<16x16xf32>, vector<4x16xf32> -> vector<4x16xf32>
    %46 = arith.addf %45, %3 : vector<4x16xf32>
    %47 = math.tanh %46 : vector<4x16xf32>
    %cst_19 = arith.constant 0.028077269 : f32
    %48 = vector.broadcast %cst_19 : f32 to vector<4x16xf32>
    %49 = arith.mulf %48, %38 : vector<4x16xf32>
    %50 = arith.addf %14, %49 : vector<4x16xf32>
    %cst_20 = arith.constant 0.028077269 : f32
    %51 = vector.broadcast %cst_20 : f32 to vector<4x16xf32>
    %52 = arith.mulf %51, %47 : vector<4x16xf32>
    %53 = arith.addf %17, %52 : vector<4x16xf32>
    %cst_21 = arith.constant 0.0611111112 : f32
    %54 = vector.broadcast %cst_21 : f32 to vector<4x16xf32>
    %55 = arith.mulf %54, %8 : vector<4x16xf32>
    %cst_22 = arith.constant -0.233333334 : f32
    %56 = vector.broadcast %cst_22 : f32 to vector<4x16xf32>
    %57 = arith.mulf %56, %23 : vector<4x16xf32>
    %58 = arith.addf %55, %57 : vector<4x16xf32>
    %cst_23 = arith.constant 0.222222224 : f32
    %59 = vector.broadcast %cst_23 : f32 to vector<4x16xf32>
    %60 = arith.mulf %59, %38 : vector<4x16xf32>
    %61 = arith.addf %58, %60 : vector<4x16xf32>
    %62 = arith.addf %4, %61 : vector<4x16xf32>
    %cst_24 = arith.constant dense<0.000000e+00> : vector<4x16xf32>
    %63 = tpu.matmul %62, %0, %cst_24 {dimension_numbers = #tpu.dot_dimension_numbers<[1], [0], [0], [1], [0, 0, 1, 1], [], []>} : vector<4x16xf32>, vector<16x16xf32>, vector<4x16xf32> -> vector<4x16xf32>
    %64 = arith.addf %63, %3 : vector<4x16xf32>
    %65 = math.tanh %64 : vector<4x16xf32>
    %cst_25 = arith.constant 0.0611111112 : f32
    %66 = vector.broadcast %cst_25 : f32 to vector<4x16xf32>
    %67 = arith.mulf %66, %11 : vector<4x16xf32>
    %cst_26 = arith.constant -0.233333334 : f32
    %68 = vector.broadcast %cst_26 : f32 to vector<4x16xf32>
    %69 = arith.mulf %68, %29 : vector<4x16xf32>
    %70 = arith.addf %67, %69 : vector<4x16xf32>
    %cst_27 = arith.constant 0.222222224 : f32
    %71 = vector.broadcast %cst_27 : f32 to vector<4x16xf32>
    %72 = arith.mulf %71, %47 : vector<4x16xf32>
    %73 = arith.addf %70, %72 : vector<4x16xf32>
    %74 = arith.addf %5, %73 : vector<4x16xf32>
    %cst_28 = arith.constant dense<0.000000e+00> : vector<4x16xf32>
    %75 = tpu.matmul %74, %0, %cst_28 {dimension_numbers = #tpu.dot_dimension_numbers<[1], [0], [0], [1], [0, 0, 1, 1], [], []>} : vector<4x16xf32>, vector<16x16xf32>, vector<4x16xf32> -> vector<4x16xf32>
    %76 = arith.addf %75, %3 : vector<4x16xf32>
    %77 = math.tanh %76 : vector<4x16xf32>
    %cst_29 = arith.constant 0.0406901054 : f32
    %78 = vector.broadcast %cst_29 : f32 to vector<4x16xf32>
    %79 = arith.mulf %78, %65 : vector<4x16xf32>
    %80 = arith.addf %50, %79 : vector<4x16xf32>
    %cst_30 = arith.constant 0.0406901054 : f32
    %81 = vector.broadcast %cst_30 : f32 to vector<4x16xf32>
    %82 = arith.mulf %81, %77 : vector<4x16xf32>
    %83 = arith.addf %53, %82 : vector<4x16xf32>
    %cst_31 = arith.constant 0.184537411 : f32
    %84 = vector.broadcast %cst_31 : f32 to vector<4x16xf32>
    %85 = arith.mulf %84, %8 : vector<4x16xf32>
    %cst_32 = arith.constant -0.724737107 : f32
    %86 = vector.broadcast %cst_32 : f32 to vector<4x16xf32>
    %87 = arith.mulf %86, %23 : vector<4x16xf32>
    %88 = arith.addf %85, %87 : vector<4x16xf32>
    %cst_33 = arith.constant 0.613930821 : f32
    %89 = vector.broadcast %cst_33 : f32 to vector<4x16xf32>
    %90 = arith.mulf %89, %38 : vector<4x16xf32>
    %91 = arith.addf %88, %90 : vector<4x16xf32>
    %cst_34 = arith.constant -0.0181755833 : f32
    %92 = vector.broadcast %cst_34 : f32 to vector<4x16xf32>
    %93 = arith.mulf %92, %65 : vector<4x16xf32>
    %94 = arith.addf %91, %93 : vector<4x16xf32>
    %95 = arith.addf %4, %94 : vector<4x16xf32>
    %cst_35 = arith.constant dense<0.000000e+00> : vector<4x16xf32>
    %96 = tpu.matmul %95, %0, %cst_35 {dimension_numbers = #tpu.dot_dimension_numbers<[1], [0], [0], [1], [0, 0, 1, 1], [], []>} : vector<4x16xf32>, vector<16x16xf32>, vector<4x16xf32> -> vector<4x16xf32>
    %97 = arith.addf %96, %3 : vector<4x16xf32>
    %98 = math.tanh %97 : vector<4x16xf32>
    %cst_36 = arith.constant 0.184537411 : f32
    %99 = vector.broadcast %cst_36 : f32 to vector<4x16xf32>
    %100 = arith.mulf %99, %11 : vector<4x16xf32>
    %cst_37 = arith.constant -0.724737107 : f32
    %101 = vector.broadcast %cst_37 : f32 to vector<4x16xf32>
    %102 = arith.mulf %101, %29 : vector<4x16xf32>
    %103 = arith.addf %100, %102 : vector<4x16xf32>
    %cst_38 = arith.constant 0.613930821 : f32
    %104 = vector.broadcast %cst_38 : f32 to vector<4x16xf32>
    %105 = arith.mulf %104, %47 : vector<4x16xf32>
    %106 = arith.addf %103, %105 : vector<4x16xf32>
    %cst_39 = arith.constant -0.0181755833 : f32
    %107 = vector.broadcast %cst_39 : f32 to vector<4x16xf32>
    %108 = arith.mulf %107, %77 : vector<4x16xf32>
    %109 = arith.addf %106, %108 : vector<4x16xf32>
    %110 = arith.addf %5, %109 : vector<4x16xf32>
    %cst_40 = arith.constant dense<0.000000e+00> : vector<4x16xf32>
    %111 = tpu.matmul %110, %0, %cst_40 {dimension_numbers = #tpu.dot_dimension_numbers<[1], [0], [0], [1], [0, 0, 1, 1], [], []>} : vector<4x16xf32>, vector<16x16xf32>, vector<4x16xf32> -> vector<4x16xf32>
    %112 = arith.addf %111, %3 : vector<4x16xf32>
    %113 = math.tanh %112 : vector<4x16xf32>
    %cst_41 = arith.constant -0.020148512 : f32
    %114 = vector.broadcast %cst_41 : f32 to vector<4x16xf32>
    %115 = arith.mulf %114, %98 : vector<4x16xf32>
    %116 = arith.addf %80, %115 : vector<4x16xf32>
    %cst_42 = arith.constant -0.020148512 : f32
    %117 = vector.broadcast %cst_42 : f32 to vector<4x16xf32>
    %118 = arith.mulf %117, %113 : vector<4x16xf32>
    %119 = arith.addf %83, %118 : vector<4x16xf32>
    %cst_43 = arith.constant 0.177892208 : f32
    %120 = vector.broadcast %cst_43 : f32 to vector<4x16xf32>
    %121 = arith.mulf %120, %8 : vector<4x16xf32>
    %cst_44 = arith.constant -0.672348499 : f32
    %122 = vector.broadcast %cst_44 : f32 to vector<4x16xf32>
    %123 = arith.mulf %122, %23 : vector<4x16xf32>
    %124 = arith.addf %121, %123 : vector<4x16xf32>
    %cst_45 = arith.constant 0.556651413 : f32
    %125 = vector.broadcast %cst_45 : f32 to vector<4x16xf32>
    %126 = arith.mulf %125, %38 : vector<4x16xf32>
    %127 = arith.addf %124, %126 : vector<4x16xf32>
    %cst_46 = arith.constant 0.0174005684 : f32
    %128 = vector.broadcast %cst_46 : f32 to vector<4x16xf32>
    %129 = arith.mulf %128, %65 : vector<4x16xf32>
    %130 = arith.addf %127, %129 : vector<4x16xf32>
    %cst_47 = arith.constant -0.0170957074 : f32
    %131 = vector.broadcast %cst_47 : f32 to vector<4x16xf32>
    %132 = arith.mulf %131, %98 : vector<4x16xf32>
    %133 = arith.addf %130, %132 : vector<4x16xf32>
    %134 = arith.addf %4, %133 : vector<4x16xf32>
    %cst_48 = arith.constant dense<0.000000e+00> : vector<4x16xf32>
    %135 = tpu.matmul %134, %0, %cst_48 {dimension_numbers = #tpu.dot_dimension_numbers<[1], [0], [0], [1], [0, 0, 1, 1], [], []>} : vector<4x16xf32>, vector<16x16xf32>, vector<4x16xf32> -> vector<4x16xf32>
    %136 = arith.addf %135, %3 : vector<4x16xf32>
    %137 = math.tanh %136 : vector<4x16xf32>
    %cst_49 = arith.constant 0.177892208 : f32
    %138 = vector.broadcast %cst_49 : f32 to vector<4x16xf32>
    %139 = arith.mulf %138, %11 : vector<4x16xf32>
    %cst_50 = arith.constant -0.672348499 : f32
    %140 = vector.broadcast %cst_50 : f32 to vector<4x16xf32>
    %141 = arith.mulf %140, %29 : vector<4x16xf32>
    %142 = arith.addf %139, %141 : vector<4x16xf32>
    %cst_51 = arith.constant 0.556651413 : f32
    %143 = vector.broadcast %cst_51 : f32 to vector<4x16xf32>
    %144 = arith.mulf %143, %47 : vector<4x16xf32>
    %145 = arith.addf %142, %144 : vector<4x16xf32>
    %cst_52 = arith.constant 0.0174005684 : f32
    %146 = vector.broadcast %cst_52 : f32 to vector<4x16xf32>
    %147 = arith.mulf %146, %77 : vector<4x16xf32>
    %148 = arith.addf %145, %147 : vector<4x16xf32>
    %cst_53 = arith.constant -0.0170957074 : f32
    %149 = vector.broadcast %cst_53 : f32 to vector<4x16xf32>
    %150 = arith.mulf %149, %113 : vector<4x16xf32>
    %151 = arith.addf %148, %150 : vector<4x16xf32>
    %152 = arith.addf %5, %151 : vector<4x16xf32>
    %cst_54 = arith.constant dense<0.000000e+00> : vector<4x16xf32>
    %153 = tpu.matmul %152, %0, %cst_54 {dimension_numbers = #tpu.dot_dimension_numbers<[1], [0], [0], [1], [0, 0, 1, 1], [], []>} : vector<4x16xf32>, vector<16x16xf32>, vector<4x16xf32> -> vector<4x16xf32>
    %154 = arith.addf %153, %3 : vector<4x16xf32>
    %155 = math.tanh %154 : vector<4x16xf32>
    %cst_55 = arith.constant 0.00818452425 : f32
    %156 = vector.broadcast %cst_55 : f32 to vector<4x16xf32>
    %157 = arith.mulf %156, %137 : vector<4x16xf32>
    %158 = arith.addf %116, %157 : vector<4x16xf32>
    %cst_56 = arith.constant 0.00818452425 : f32
    %159 = vector.broadcast %cst_56 : f32 to vector<4x16xf32>
    %160 = arith.mulf %159, %155 : vector<4x16xf32>
    %161 = arith.addf %119, %160 : vector<4x16xf32>
    %c1_i32 = arith.constant 1 : i32
    %cst_57 = arith.constant dense<0.000000e+00> : vector<4x16xf32>
    %162 = tpu.matmul %158, %0, %cst_57 {dimension_numbers = #tpu.dot_dimension_numbers<[1], [0], [0], [1], [0, 0, 1, 1], [], []>} : vector<4x16xf32>, vector<16x16xf32>, vector<4x16xf32> -> vector<4x16xf32>
    %163 = arith.addf %162, %3 : vector<4x16xf32>
    %164 = math.tanh %163 : vector<4x16xf32>
    %cst_58 = arith.constant dense<0.000000e+00> : vector<4x16xf32>
    %165 = tpu.matmul %161, %0, %cst_58 {dimension_numbers = #tpu.dot_dimension_numbers<[1], [0], [0], [1], [0, 0, 1, 1], [], []>} : vector<4x16xf32>, vector<16x16xf32>, vector<4x16xf32> -> vector<4x16xf32>
    %166 = arith.addf %165, %3 : vector<4x16xf32>
    %167 = math.tanh %166 : vector<4x16xf32>
    %cst_59 = arith.constant 0.00569661474 : f32
    %168 = vector.broadcast %cst_59 : f32 to vector<4x16xf32>
    %169 = arith.mulf %168, %164 : vector<4x16xf32>
    %170 = arith.addf %158, %169 : vector<4x16xf32>
    %cst_60 = arith.constant 0.00569661474 : f32
    %171 = vector.broadcast %cst_60 : f32 to vector<4x16xf32>
    %172 = arith.mulf %171, %167 : vector<4x16xf32>
    %173 = arith.addf %161, %172 : vector<4x16xf32>
    %cst_61 = arith.constant 1.250000e-02 : f32
    %174 = vector.broadcast %cst_61 : f32 to vector<4x16xf32>
    %175 = arith.mulf %174, %164 : vector<4x16xf32>
    %176 = arith.addf %158, %175 : vector<4x16xf32>
    %cst_62 = arith.constant dense<0.000000e+00> : vector<4x16xf32>
    %177 = tpu.matmul %176, %0, %cst_62 {dimension_numbers = #tpu.dot_dimension_numbers<[1], [0], [0], [1], [0, 0, 1, 1], [], []>} : vector<4x16xf32>, vector<16x16xf32>, vector<4x16xf32> -> vector<4x16xf32>
    %178 = arith.addf %177, %3 : vector<4x16xf32>
    %179 = math.tanh %178 : vector<4x16xf32>
    %cst_63 = arith.constant 1.250000e-02 : f32
    %180 = vector.broadcast %cst_63 : f32 to vector<4x16xf32>
    %181 = arith.mulf %180, %167 : vector<4x16xf32>
    %182 = arith.addf %161, %181 : vector<4x16xf32>
    %cst_64 = arith.constant dense<0.000000e+00> : vector<4x16xf32>
    %183 = tpu.matmul %182, %0, %cst_64 {dimension_numbers = #tpu.dot_dimension_numbers<[1], [0], [0], [1], [0, 0, 1, 1], [], []>} : vector<4x16xf32>, vector<16x16xf32>, vector<4x16xf32> -> vector<4x16xf32>
    %184 = arith.addf %183, %3 : vector<4x16xf32>
    %185 = math.tanh %184 : vector<4x16xf32>
    %cst_65 = arith.constant 4.687500e-03 : f32
    %186 = vector.broadcast %cst_65 : f32 to vector<4x16xf32>
    %187 = arith.mulf %186, %164 : vector<4x16xf32>
    %cst_66 = arith.constant 1.406250e-02 : f32
    %188 = vector.broadcast %cst_66 : f32 to vector<4x16xf32>
    %189 = arith.mulf %188, %179 : vector<4x16xf32>
    %190 = arith.addf %187, %189 : vector<4x16xf32>
    %191 = arith.addf %158, %190 : vector<4x16xf32>
    %cst_67 = arith.constant dense<0.000000e+00> : vector<4x16xf32>
    %192 = tpu.matmul %191, %0, %cst_67 {dimension_numbers = #tpu.dot_dimension_numbers<[1], [0], [0], [1], [0, 0, 1, 1], [], []>} : vector<4x16xf32>, vector<16x16xf32>, vector<4x16xf32> -> vector<4x16xf32>
    %193 = arith.addf %192, %3 : vector<4x16xf32>
    %194 = math.tanh %193 : vector<4x16xf32>
    %cst_68 = arith.constant 4.687500e-03 : f32
    %195 = vector.broadcast %cst_68 : f32 to vector<4x16xf32>
    %196 = arith.mulf %195, %167 : vector<4x16xf32>
    %cst_69 = arith.constant 1.406250e-02 : f32
    %197 = vector.broadcast %cst_69 : f32 to vector<4x16xf32>
    %198 = arith.mulf %197, %185 : vector<4x16xf32>
    %199 = arith.addf %196, %198 : vector<4x16xf32>
    %200 = arith.addf %161, %199 : vector<4x16xf32>
    %cst_70 = arith.constant dense<0.000000e+00> : vector<4x16xf32>
    %201 = tpu.matmul %200, %0, %cst_70 {dimension_numbers = #tpu.dot_dimension_numbers<[1], [0], [0], [1], [0, 0, 1, 1], [], []>} : vector<4x16xf32>, vector<16x16xf32>, vector<4x16xf32> -> vector<4x16xf32>
    %202 = arith.addf %201, %3 : vector<4x16xf32>
    %203 = math.tanh %202 : vector<4x16xf32>
    %cst_71 = arith.constant 0.028077269 : f32
    %204 = vector.broadcast %cst_71 : f32 to vector<4x16xf32>
    %205 = arith.mulf %204, %194 : vector<4x16xf32>
    %206 = arith.addf %170, %205 : vector<4x16xf32>
    %cst_72 = arith.constant 0.028077269 : f32
    %207 = vector.broadcast %cst_72 : f32 to vector<4x16xf32>
    %208 = arith.mulf %207, %203 : vector<4x16xf32>
    %209 = arith.addf %173, %208 : vector<4x16xf32>
    %cst_73 = arith.constant 0.0611111112 : f32
    %210 = vector.broadcast %cst_73 : f32 to vector<4x16xf32>
    %211 = arith.mulf %210, %164 : vector<4x16xf32>
    %cst_74 = arith.constant -0.233333334 : f32
    %212 = vector.broadcast %cst_74 : f32 to vector<4x16xf32>
    %213 = arith.mulf %212, %179 : vector<4x16xf32>
    %214 = arith.addf %211, %213 : vector<4x16xf32>
    %cst_75 = arith.constant 0.222222224 : f32
    %215 = vector.broadcast %cst_75 : f32 to vector<4x16xf32>
    %216 = arith.mulf %215, %194 : vector<4x16xf32>
    %217 = arith.addf %214, %216 : vector<4x16xf32>
    %218 = arith.addf %158, %217 : vector<4x16xf32>
    %cst_76 = arith.constant dense<0.000000e+00> : vector<4x16xf32>
    %219 = tpu.matmul %218, %0, %cst_76 {dimension_numbers = #tpu.dot_dimension_numbers<[1], [0], [0], [1], [0, 0, 1, 1], [], []>} : vector<4x16xf32>, vector<16x16xf32>, vector<4x16xf32> -> vector<4x16xf32>
    %220 = arith.addf %219, %3 : vector<4x16xf32>
    %221 = math.tanh %220 : vector<4x16xf32>
    %cst_77 = arith.constant 0.0611111112 : f32
    %222 = vector.broadcast %cst_77 : f32 to vector<4x16xf32>
    %223 = arith.mulf %222, %167 : vector<4x16xf32>
    %cst_78 = arith.constant -0.233333334 : f32
    %224 = vector.broadcast %cst_78 : f32 to vector<4x16xf32>
    %225 = arith.mulf %224, %185 : vector<4x16xf32>
    %226 = arith.addf %223, %225 : vector<4x16xf32>
    %cst_79 = arith.constant 0.222222224 : f32
    %227 = vector.broadcast %cst_79 : f32 to vector<4x16xf32>
    %228 = arith.mulf %227, %203 : vector<4x16xf32>
    %229 = arith.addf %226, %228 : vector<4x16xf32>
    %230 = arith.addf %161, %229 : vector<4x16xf32>
    %cst_80 = arith.constant dense<0.000000e+00> : vector<4x16xf32>
    %231 = tpu.matmul %230, %0, %cst_80 {dimension_numbers = #tpu.dot_dimension_numbers<[1], [0], [0], [1], [0, 0, 1, 1], [], []>} : vector<4x16xf32>, vector<16x16xf32>, vector<4x16xf32> -> vector<4x16xf32>
    %232 = arith.addf %231, %3 : vector<4x16xf32>
    %233 = math.tanh %232 : vector<4x16xf32>
    %cst_81 = arith.constant 0.0406901054 : f32
    %234 = vector.broadcast %cst_81 : f32 to vector<4x16xf32>
    %235 = arith.mulf %234, %221 : vector<4x16xf32>
    %236 = arith.addf %206, %235 : vector<4x16xf32>
    %cst_82 = arith.constant 0.0406901054 : f32
    %237 = vector.broadcast %cst_82 : f32 to vector<4x16xf32>
    %238 = arith.mulf %237, %233 : vector<4x16xf32>
    %239 = arith.addf %209, %238 : vector<4x16xf32>
    %cst_83 = arith.constant 0.184537411 : f32
    %240 = vector.broadcast %cst_83 : f32 to vector<4x16xf32>
    %241 = arith.mulf %240, %164 : vector<4x16xf32>
    %cst_84 = arith.constant -0.724737107 : f32
    %242 = vector.broadcast %cst_84 : f32 to vector<4x16xf32>
    %243 = arith.mulf %242, %179 : vector<4x16xf32>
    %244 = arith.addf %241, %243 : vector<4x16xf32>
    %cst_85 = arith.constant 0.613930821 : f32
    %245 = vector.broadcast %cst_85 : f32 to vector<4x16xf32>
    %246 = arith.mulf %245, %194 : vector<4x16xf32>
    %247 = arith.addf %244, %246 : vector<4x16xf32>
    %cst_86 = arith.constant -0.0181755833 : f32
    %248 = vector.broadcast %cst_86 : f32 to vector<4x16xf32>
    %249 = arith.mulf %248, %221 : vector<4x16xf32>
    %250 = arith.addf %247, %249 : vector<4x16xf32>
    %251 = arith.addf %158, %250 : vector<4x16xf32>
    %cst_87 = arith.constant dense<0.000000e+00> : vector<4x16xf32>
    %252 = tpu.matmul %251, %0, %cst_87 {dimension_numbers = #tpu.dot_dimension_numbers<[1], [0], [0], [1], [0, 0, 1, 1], [], []>} : vector<4x16xf32>, vector<16x16xf32>, vector<4x16xf32> -> vector<4x16xf32>
    %253 = arith.addf %252, %3 : vector<4x16xf32>
    %254 = math.tanh %253 : vector<4x16xf32>
    %cst_88 = arith.constant 0.184537411 : f32
    %255 = vector.broadcast %cst_88 : f32 to vector<4x16xf32>
    %256 = arith.mulf %255, %167 : vector<4x16xf32>
    %cst_89 = arith.constant -0.724737107 : f32
    %257 = vector.broadcast %cst_89 : f32 to vector<4x16xf32>
    %258 = arith.mulf %257, %185 : vector<4x16xf32>
    %259 = arith.addf %256, %258 : vector<4x16xf32>
    %cst_90 = arith.constant 0.613930821 : f32
    %260 = vector.broadcast %cst_90 : f32 to vector<4x16xf32>
    %261 = arith.mulf %260, %203 : vector<4x16xf32>
    %262 = arith.addf %259, %261 : vector<4x16xf32>
    %cst_91 = arith.constant -0.0181755833 : f32
    %263 = vector.broadcast %cst_91 : f32 to vector<4x16xf32>
    %264 = arith.mulf %263, %233 : vector<4x16xf32>
    %265 = arith.addf %262, %264 : vector<4x16xf32>
    %266 = arith.addf %161, %265 : vector<4x16xf32>
    %cst_92 = arith.constant dense<0.000000e+00> : vector<4x16xf32>
    %267 = tpu.matmul %266, %0, %cst_92 {dimension_numbers = #tpu.dot_dimension_numbers<[1], [0], [0], [1], [0, 0, 1, 1], [], []>} : vector<4x16xf32>, vector<16x16xf32>, vector<4x16xf32> -> vector<4x16xf32>
    %268 = arith.addf %267, %3 : vector<4x16xf32>
    %269 = math.tanh %268 : vector<4x16xf32>
    %cst_93 = arith.constant -0.020148512 : f32
    %270 = vector.broadcast %cst_93 : f32 to vector<4x16xf32>
    %271 = arith.mulf %270, %254 : vector<4x16xf32>
    %272 = arith.addf %236, %271 : vector<4x16xf32>
    %cst_94 = arith.constant -0.020148512 : f32
    %273 = vector.broadcast %cst_94 : f32 to vector<4x16xf32>
    %274 = arith.mulf %273, %269 : vector<4x16xf32>
    %275 = arith.addf %239, %274 : vector<4x16xf32>
    %cst_95 = arith.constant 0.177892208 : f32
    %276 = vector.broadcast %cst_95 : f32 to vector<4x16xf32>
    %277 = arith.mulf %276, %164 : vector<4x16xf32>
    %cst_96 = arith.constant -0.672348499 : f32
    %278 = vector.broadcast %cst_96 : f32 to vector<4x16xf32>
    %279 = arith.mulf %278, %179 : vector<4x16xf32>
    %280 = arith.addf %277, %279 : vector<4x16xf32>
    %cst_97 = arith.constant 0.556651413 : f32
    %281 = vector.broadcast %cst_97 : f32 to vector<4x16xf32>
    %282 = arith.mulf %281, %194 : vector<4x16xf32>
    %283 = arith.addf %280, %282 : vector<4x16xf32>
    %cst_98 = arith.constant 0.0174005684 : f32
    %284 = vector.broadcast %cst_98 : f32 to vector<4x16xf32>
    %285 = arith.mulf %284, %221 : vector<4x16xf32>
    %286 = arith.addf %283, %285 : vector<4x16xf32>
    %cst_99 = arith.constant -0.0170957074 : f32
    %287 = vector.broadcast %cst_99 : f32 to vector<4x16xf32>
    %288 = arith.mulf %287, %254 : vector<4x16xf32>
    %289 = arith.addf %286, %288 : vector<4x16xf32>
    %290 = arith.addf %158, %289 : vector<4x16xf32>
    %cst_100 = arith.constant dense<0.000000e+00> : vector<4x16xf32>
    %291 = tpu.matmul %290, %0, %cst_100 {dimension_numbers = #tpu.dot_dimension_numbers<[1], [0], [0], [1], [0, 0, 1, 1], [], []>} : vector<4x16xf32>, vector<16x16xf32>, vector<4x16xf32> -> vector<4x16xf32>
    %292 = arith.addf %291, %3 : vector<4x16xf32>
    %293 = math.tanh %292 : vector<4x16xf32>
    %cst_101 = arith.constant 0.177892208 : f32
    %294 = vector.broadcast %cst_101 : f32 to vector<4x16xf32>
    %295 = arith.mulf %294, %167 : vector<4x16xf32>
    %cst_102 = arith.constant -0.672348499 : f32
    %296 = vector.broadcast %cst_102 : f32 to vector<4x16xf32>
    %297 = arith.mulf %296, %185 : vector<4x16xf32>
    %298 = arith.addf %295, %297 : vector<4x16xf32>
    %cst_103 = arith.constant 0.556651413 : f32
    %299 = vector.broadcast %cst_103 : f32 to vector<4x16xf32>
    %300 = arith.mulf %299, %203 : vector<4x16xf32>
    %301 = arith.addf %298, %300 : vector<4x16xf32>
    %cst_104 = arith.constant 0.0174005684 : f32
    %302 = vector.broadcast %cst_104 : f32 to vector<4x16xf32>
    %303 = arith.mulf %302, %233 : vector<4x16xf32>
    %304 = arith.addf %301, %303 : vector<4x16xf32>
    %cst_105 = arith.constant -0.0170957074 : f32
    %305 = vector.broadcast %cst_105 : f32 to vector<4x16xf32>
    %306 = arith.mulf %305, %269 : vector<4x16xf32>
    %307 = arith.addf %304, %306 : vector<4x16xf32>
    %308 = arith.addf %161, %307 : vector<4x16xf32>
    %cst_106 = arith.constant dense<0.000000e+00> : vector<4x16xf32>
    %309 = tpu.matmul %308, %0, %cst_106 {dimension_numbers = #tpu.dot_dimension_numbers<[1], [0], [0], [1], [0, 0, 1, 1], [], []>} : vector<4x16xf32>, vector<16x16xf32>, vector<4x16xf32> -> vector<4x16xf32>
    %310 = arith.addf %309, %3 : vector<4x16xf32>
    %311 = math.tanh %310 : vector<4x16xf32>
    %cst_107 = arith.constant 0.00818452425 : f32
    %312 = vector.broadcast %cst_107 : f32 to vector<4x16xf32>
    %313 = arith.mulf %312, %293 : vector<4x16xf32>
    %314 = arith.addf %272, %313 : vector<4x16xf32>
    %cst_108 = arith.constant 0.00818452425 : f32
    %315 = vector.broadcast %cst_108 : f32 to vector<4x16xf32>
    %316 = arith.mulf %315, %311 : vector<4x16xf32>
    %317 = arith.addf %275, %316 : vector<4x16xf32>
    %c2_i32 = arith.constant 2 : i32
    %cst_109 = arith.constant dense<0.000000e+00> : vector<4x16xf32>
    %318 = tpu.matmul %314, %0, %cst_109 {dimension_numbers = #tpu.dot_dimension_numbers<[1], [0], [0], [1], [0, 0, 1, 1], [], []>} : vector<4x16xf32>, vector<16x16xf32>, vector<4x16xf32> -> vector<4x16xf32>
    %319 = arith.addf %318, %3 : vector<4x16xf32>
    %320 = math.tanh %319 : vector<4x16xf32>
    %cst_110 = arith.constant dense<0.000000e+00> : vector<4x16xf32>
    %321 = tpu.matmul %317, %0, %cst_110 {dimension_numbers = #tpu.dot_dimension_numbers<[1], [0], [0], [1], [0, 0, 1, 1], [], []>} : vector<4x16xf32>, vector<16x16xf32>, vector<4x16xf32> -> vector<4x16xf32>
    %322 = arith.addf %321, %3 : vector<4x16xf32>
    %323 = math.tanh %322 : vector<4x16xf32>
    %cst_111 = arith.constant 0.00569661474 : f32
    %324 = vector.broadcast %cst_111 : f32 to vector<4x16xf32>
    %325 = arith.mulf %324, %320 : vector<4x16xf32>
    %326 = arith.addf %314, %325 : vector<4x16xf32>
    %cst_112 = arith.constant 0.00569661474 : f32
    %327 = vector.broadcast %cst_112 : f32 to vector<4x16xf32>
    %328 = arith.mulf %327, %323 : vector<4x16xf32>
    %329 = arith.addf %317, %328 : vector<4x16xf32>
    %cst_113 = arith.constant 1.250000e-02 : f32
    %330 = vector.broadcast %cst_113 : f32 to vector<4x16xf32>
    %331 = arith.mulf %330, %320 : vector<4x16xf32>
    %332 = arith.addf %314, %331 : vector<4x16xf32>
    %cst_114 = arith.constant dense<0.000000e+00> : vector<4x16xf32>
    %333 = tpu.matmul %332, %0, %cst_114 {dimension_numbers = #tpu.dot_dimension_numbers<[1], [0], [0], [1], [0, 0, 1, 1], [], []>} : vector<4x16xf32>, vector<16x16xf32>, vector<4x16xf32> -> vector<4x16xf32>
    %334 = arith.addf %333, %3 : vector<4x16xf32>
    %335 = math.tanh %334 : vector<4x16xf32>
    %cst_115 = arith.constant 1.250000e-02 : f32
    %336 = vector.broadcast %cst_115 : f32 to vector<4x16xf32>
    %337 = arith.mulf %336, %323 : vector<4x16xf32>
    %338 = arith.addf %317, %337 : vector<4x16xf32>
    %cst_116 = arith.constant dense<0.000000e+00> : vector<4x16xf32>
    %339 = tpu.matmul %338, %0, %cst_116 {dimension_numbers = #tpu.dot_dimension_numbers<[1], [0], [0], [1], [0, 0, 1, 1], [], []>} : vector<4x16xf32>, vector<16x16xf32>, vector<4x16xf32> -> vector<4x16xf32>
    %340 = arith.addf %339, %3 : vector<4x16xf32>
    %341 = math.tanh %340 : vector<4x16xf32>
    %cst_117 = arith.constant 4.687500e-03 : f32
    %342 = vector.broadcast %cst_117 : f32 to vector<4x16xf32>
    %343 = arith.mulf %342, %320 : vector<4x16xf32>
    %cst_118 = arith.constant 1.406250e-02 : f32
    %344 = vector.broadcast %cst_118 : f32 to vector<4x16xf32>
    %345 = arith.mulf %344, %335 : vector<4x16xf32>
    %346 = arith.addf %343, %345 : vector<4x16xf32>
    %347 = arith.addf %314, %346 : vector<4x16xf32>
    %cst_119 = arith.constant dense<0.000000e+00> : vector<4x16xf32>
    %348 = tpu.matmul %347, %0, %cst_119 {dimension_numbers = #tpu.dot_dimension_numbers<[1], [0], [0], [1], [0, 0, 1, 1], [], []>} : vector<4x16xf32>, vector<16x16xf32>, vector<4x16xf32> -> vector<4x16xf32>
    %349 = arith.addf %348, %3 : vector<4x16xf32>
    %350 = math.tanh %349 : vector<4x16xf32>
    %cst_120 = arith.constant 4.687500e-03 : f32
    %351 = vector.broadcast %cst_120 : f32 to vector<4x16xf32>
    %352 = arith.mulf %351, %323 : vector<4x16xf32>
    %cst_121 = arith.constant 1.406250e-02 : f32
    %353 = vector.broadcast %cst_121 : f32 to vector<4x16xf32>
    %354 = arith.mulf %353, %341 : vector<4x16xf32>
    %355 = arith.addf %352, %354 : vector<4x16xf32>
    %356 = arith.addf %317, %355 : vector<4x16xf32>
    %cst_122 = arith.constant dense<0.000000e+00> : vector<4x16xf32>
    %357 = tpu.matmul %356, %0, %cst_122 {dimension_numbers = #tpu.dot_dimension_numbers<[1], [0], [0], [1], [0, 0, 1, 1], [], []>} : vector<4x16xf32>, vector<16x16xf32>, vector<4x16xf32> -> vector<4x16xf32>
    %358 = arith.addf %357, %3 : vector<4x16xf32>
    %359 = math.tanh %358 : vector<4x16xf32>
    %cst_123 = arith.constant 0.028077269 : f32
    %360 = vector.broadcast %cst_123 : f32 to vector<4x16xf32>
    %361 = arith.mulf %360, %350 : vector<4x16xf32>
    %362 = arith.addf %326, %361 : vector<4x16xf32>
    %cst_124 = arith.constant 0.028077269 : f32
    %363 = vector.broadcast %cst_124 : f32 to vector<4x16xf32>
    %364 = arith.mulf %363, %359 : vector<4x16xf32>
    %365 = arith.addf %329, %364 : vector<4x16xf32>
    %cst_125 = arith.constant 0.0611111112 : f32
    %366 = vector.broadcast %cst_125 : f32 to vector<4x16xf32>
    %367 = arith.mulf %366, %320 : vector<4x16xf32>
    %cst_126 = arith.constant -0.233333334 : f32
    %368 = vector.broadcast %cst_126 : f32 to vector<4x16xf32>
    %369 = arith.mulf %368, %335 : vector<4x16xf32>
    %370 = arith.addf %367, %369 : vector<4x16xf32>
    %cst_127 = arith.constant 0.222222224 : f32
    %371 = vector.broadcast %cst_127 : f32 to vector<4x16xf32>
    %372 = arith.mulf %371, %350 : vector<4x16xf32>
    %373 = arith.addf %370, %372 : vector<4x16xf32>
    %374 = arith.addf %314, %373 : vector<4x16xf32>
    %cst_128 = arith.constant dense<0.000000e+00> : vector<4x16xf32>
    %375 = tpu.matmul %374, %0, %cst_128 {dimension_numbers = #tpu.dot_dimension_numbers<[1], [0], [0], [1], [0, 0, 1, 1], [], []>} : vector<4x16xf32>, vector<16x16xf32>, vector<4x16xf32> -> vector<4x16xf32>
    %376 = arith.addf %375, %3 : vector<4x16xf32>
    %377 = math.tanh %376 : vector<4x16xf32>
    %cst_129 = arith.constant 0.0611111112 : f32
    %378 = vector.broadcast %cst_129 : f32 to vector<4x16xf32>
    %379 = arith.mulf %378, %323 : vector<4x16xf32>
    %cst_130 = arith.constant -0.233333334 : f32
    %380 = vector.broadcast %cst_130 : f32 to vector<4x16xf32>
    %381 = arith.mulf %380, %341 : vector<4x16xf32>
    %382 = arith.addf %379, %381 : vector<4x16xf32>
    %cst_131 = arith.constant 0.222222224 : f32
    %383 = vector.broadcast %cst_131 : f32 to vector<4x16xf32>
    %384 = arith.mulf %383, %359 : vector<4x16xf32>
    %385 = arith.addf %382, %384 : vector<4x16xf32>
    %386 = arith.addf %317, %385 : vector<4x16xf32>
    %cst_132 = arith.constant dense<0.000000e+00> : vector<4x16xf32>
    %387 = tpu.matmul %386, %0, %cst_132 {dimension_numbers = #tpu.dot_dimension_numbers<[1], [0], [0], [1], [0, 0, 1, 1], [], []>} : vector<4x16xf32>, vector<16x16xf32>, vector<4x16xf32> -> vector<4x16xf32>
    %388 = arith.addf %387, %3 : vector<4x16xf32>
    %389 = math.tanh %388 : vector<4x16xf32>
    %cst_133 = arith.constant 0.0406901054 : f32
    %390 = vector.broadcast %cst_133 : f32 to vector<4x16xf32>
    %391 = arith.mulf %390, %377 : vector<4x16xf32>
    %392 = arith.addf %362, %391 : vector<4x16xf32>
    %cst_134 = arith.constant 0.0406901054 : f32
    %393 = vector.broadcast %cst_134 : f32 to vector<4x16xf32>
    %394 = arith.mulf %393, %389 : vector<4x16xf32>
    %395 = arith.addf %365, %394 : vector<4x16xf32>
    %cst_135 = arith.constant 0.184537411 : f32
    %396 = vector.broadcast %cst_135 : f32 to vector<4x16xf32>
    %397 = arith.mulf %396, %320 : vector<4x16xf32>
    %cst_136 = arith.constant -0.724737107 : f32
    %398 = vector.broadcast %cst_136 : f32 to vector<4x16xf32>
    %399 = arith.mulf %398, %335 : vector<4x16xf32>
    %400 = arith.addf %397, %399 : vector<4x16xf32>
    %cst_137 = arith.constant 0.613930821 : f32
    %401 = vector.broadcast %cst_137 : f32 to vector<4x16xf32>
    %402 = arith.mulf %401, %350 : vector<4x16xf32>
    %403 = arith.addf %400, %402 : vector<4x16xf32>
    %cst_138 = arith.constant -0.0181755833 : f32
    %404 = vector.broadcast %cst_138 : f32 to vector<4x16xf32>
    %405 = arith.mulf %404, %377 : vector<4x16xf32>
    %406 = arith.addf %403, %405 : vector<4x16xf32>
    %407 = arith.addf %314, %406 : vector<4x16xf32>
    %cst_139 = arith.constant dense<0.000000e+00> : vector<4x16xf32>
    %408 = tpu.matmul %407, %0, %cst_139 {dimension_numbers = #tpu.dot_dimension_numbers<[1], [0], [0], [1], [0, 0, 1, 1], [], []>} : vector<4x16xf32>, vector<16x16xf32>, vector<4x16xf32> -> vector<4x16xf32>
    %409 = arith.addf %408, %3 : vector<4x16xf32>
    %410 = math.tanh %409 : vector<4x16xf32>
    %cst_140 = arith.constant 0.184537411 : f32
    %411 = vector.broadcast %cst_140 : f32 to vector<4x16xf32>
    %412 = arith.mulf %411, %323 : vector<4x16xf32>
    %cst_141 = arith.constant -0.724737107 : f32
    %413 = vector.broadcast %cst_141 : f32 to vector<4x16xf32>
    %414 = arith.mulf %413, %341 : vector<4x16xf32>
    %415 = arith.addf %412, %414 : vector<4x16xf32>
    %cst_142 = arith.constant 0.613930821 : f32
    %416 = vector.broadcast %cst_142 : f32 to vector<4x16xf32>
    %417 = arith.mulf %416, %359 : vector<4x16xf32>
    %418 = arith.addf %415, %417 : vector<4x16xf32>
    %cst_143 = arith.constant -0.0181755833 : f32
    %419 = vector.broadcast %cst_143 : f32 to vector<4x16xf32>
    %420 = arith.mulf %419, %389 : vector<4x16xf32>
    %421 = arith.addf %418, %420 : vector<4x16xf32>
    %422 = arith.addf %317, %421 : vector<4x16xf32>
    %cst_144 = arith.constant dense<0.000000e+00> : vector<4x16xf32>
    %423 = tpu.matmul %422, %0, %cst_144 {dimension_numbers = #tpu.dot_dimension_numbers<[1], [0], [0], [1], [0, 0, 1, 1], [], []>} : vector<4x16xf32>, vector<16x16xf32>, vector<4x16xf32> -> vector<4x16xf32>
    %424 = arith.addf %423, %3 : vector<4x16xf32>
    %425 = math.tanh %424 : vector<4x16xf32>
    %cst_145 = arith.constant -0.020148512 : f32
    %426 = vector.broadcast %cst_145 : f32 to vector<4x16xf32>
    %427 = arith.mulf %426, %410 : vector<4x16xf32>
    %428 = arith.addf %392, %427 : vector<4x16xf32>
    %cst_146 = arith.constant -0.020148512 : f32
    %429 = vector.broadcast %cst_146 : f32 to vector<4x16xf32>
    %430 = arith.mulf %429, %425 : vector<4x16xf32>
    %431 = arith.addf %395, %430 : vector<4x16xf32>
    %cst_147 = arith.constant 0.177892208 : f32
    %432 = vector.broadcast %cst_147 : f32 to vector<4x16xf32>
    %433 = arith.mulf %432, %320 : vector<4x16xf32>
    %cst_148 = arith.constant -0.672348499 : f32
    %434 = vector.broadcast %cst_148 : f32 to vector<4x16xf32>
    %435 = arith.mulf %434, %335 : vector<4x16xf32>
    %436 = arith.addf %433, %435 : vector<4x16xf32>
    %cst_149 = arith.constant 0.556651413 : f32
    %437 = vector.broadcast %cst_149 : f32 to vector<4x16xf32>
    %438 = arith.mulf %437, %350 : vector<4x16xf32>
    %439 = arith.addf %436, %438 : vector<4x16xf32>
    %cst_150 = arith.constant 0.0174005684 : f32
    %440 = vector.broadcast %cst_150 : f32 to vector<4x16xf32>
    %441 = arith.mulf %440, %377 : vector<4x16xf32>
    %442 = arith.addf %439, %441 : vector<4x16xf32>
    %cst_151 = arith.constant -0.0170957074 : f32
    %443 = vector.broadcast %cst_151 : f32 to vector<4x16xf32>
    %444 = arith.mulf %443, %410 : vector<4x16xf32>
    %445 = arith.addf %442, %444 : vector<4x16xf32>
    %446 = arith.addf %314, %445 : vector<4x16xf32>
    %cst_152 = arith.constant dense<0.000000e+00> : vector<4x16xf32>
    %447 = tpu.matmul %446, %0, %cst_152 {dimension_numbers = #tpu.dot_dimension_numbers<[1], [0], [0], [1], [0, 0, 1, 1], [], []>} : vector<4x16xf32>, vector<16x16xf32>, vector<4x16xf32> -> vector<4x16xf32>
    %448 = arith.addf %447, %3 : vector<4x16xf32>
    %449 = math.tanh %448 : vector<4x16xf32>
    %cst_153 = arith.constant 0.177892208 : f32
    %450 = vector.broadcast %cst_153 : f32 to vector<4x16xf32>
    %451 = arith.mulf %450, %323 : vector<4x16xf32>
    %cst_154 = arith.constant -0.672348499 : f32
    %452 = vector.broadcast %cst_154 : f32 to vector<4x16xf32>
    %453 = arith.mulf %452, %341 : vector<4x16xf32>
    %454 = arith.addf %451, %453 : vector<4x16xf32>
    %cst_155 = arith.constant 0.556651413 : f32
    %455 = vector.broadcast %cst_155 : f32 to vector<4x16xf32>
    %456 = arith.mulf %455, %359 : vector<4x16xf32>
    %457 = arith.addf %454, %456 : vector<4x16xf32>
    %cst_156 = arith.constant 0.0174005684 : f32
    %458 = vector.broadcast %cst_156 : f32 to vector<4x16xf32>
    %459 = arith.mulf %458, %389 : vector<4x16xf32>
    %460 = arith.addf %457, %459 : vector<4x16xf32>
    %cst_157 = arith.constant -0.0170957074 : f32
    %461 = vector.broadcast %cst_157 : f32 to vector<4x16xf32>
    %462 = arith.mulf %461, %425 : vector<4x16xf32>
    %463 = arith.addf %460, %462 : vector<4x16xf32>
    %464 = arith.addf %317, %463 : vector<4x16xf32>
    %cst_158 = arith.constant dense<0.000000e+00> : vector<4x16xf32>
    %465 = tpu.matmul %464, %0, %cst_158 {dimension_numbers = #tpu.dot_dimension_numbers<[1], [0], [0], [1], [0, 0, 1, 1], [], []>} : vector<4x16xf32>, vector<16x16xf32>, vector<4x16xf32> -> vector<4x16xf32>
    %466 = arith.addf %465, %3 : vector<4x16xf32>
    %467 = math.tanh %466 : vector<4x16xf32>
    %cst_159 = arith.constant 0.00818452425 : f32
    %468 = vector.broadcast %cst_159 : f32 to vector<4x16xf32>
    %469 = arith.mulf %468, %449 : vector<4x16xf32>
    %470 = arith.addf %428, %469 : vector<4x16xf32>
    %cst_160 = arith.constant 0.00818452425 : f32
    %471 = vector.broadcast %cst_160 : f32 to vector<4x16xf32>
    %472 = arith.mulf %471, %467 : vector<4x16xf32>
    %473 = arith.addf %431, %472 : vector<4x16xf32>
    %c3_i32 = arith.constant 3 : i32
    %cst_161 = arith.constant dense<0.000000e+00> : vector<4x16xf32>
    %474 = tpu.matmul %470, %0, %cst_161 {dimension_numbers = #tpu.dot_dimension_numbers<[1], [0], [0], [1], [0, 0, 1, 1], [], []>} : vector<4x16xf32>, vector<16x16xf32>, vector<4x16xf32> -> vector<4x16xf32>
    %475 = arith.addf %474, %3 : vector<4x16xf32>
    %476 = math.tanh %475 : vector<4x16xf32>
    %cst_162 = arith.constant dense<0.000000e+00> : vector<4x16xf32>
    %477 = tpu.matmul %473, %0, %cst_162 {dimension_numbers = #tpu.dot_dimension_numbers<[1], [0], [0], [1], [0, 0, 1, 1], [], []>} : vector<4x16xf32>, vector<16x16xf32>, vector<4x16xf32> -> vector<4x16xf32>
    %478 = arith.addf %477, %3 : vector<4x16xf32>
    %479 = math.tanh %478 : vector<4x16xf32>
    %cst_163 = arith.constant 0.00569661474 : f32
    %480 = vector.broadcast %cst_163 : f32 to vector<4x16xf32>
    %481 = arith.mulf %480, %476 : vector<4x16xf32>
    %482 = arith.addf %470, %481 : vector<4x16xf32>
    %cst_164 = arith.constant 0.00569661474 : f32
    %483 = vector.broadcast %cst_164 : f32 to vector<4x16xf32>
    %484 = arith.mulf %483, %479 : vector<4x16xf32>
    %485 = arith.addf %473, %484 : vector<4x16xf32>
    %cst_165 = arith.constant 1.250000e-02 : f32
    %486 = vector.broadcast %cst_165 : f32 to vector<4x16xf32>
    %487 = arith.mulf %486, %476 : vector<4x16xf32>
    %488 = arith.addf %470, %487 : vector<4x16xf32>
    %cst_166 = arith.constant dense<0.000000e+00> : vector<4x16xf32>
    %489 = tpu.matmul %488, %0, %cst_166 {dimension_numbers = #tpu.dot_dimension_numbers<[1], [0], [0], [1], [0, 0, 1, 1], [], []>} : vector<4x16xf32>, vector<16x16xf32>, vector<4x16xf32> -> vector<4x16xf32>
    %490 = arith.addf %489, %3 : vector<4x16xf32>
    %491 = math.tanh %490 : vector<4x16xf32>
    %cst_167 = arith.constant 1.250000e-02 : f32
    %492 = vector.broadcast %cst_167 : f32 to vector<4x16xf32>
    %493 = arith.mulf %492, %479 : vector<4x16xf32>
    %494 = arith.addf %473, %493 : vector<4x16xf32>
    %cst_168 = arith.constant dense<0.000000e+00> : vector<4x16xf32>
    %495 = tpu.matmul %494, %0, %cst_168 {dimension_numbers = #tpu.dot_dimension_numbers<[1], [0], [0], [1], [0, 0, 1, 1], [], []>} : vector<4x16xf32>, vector<16x16xf32>, vector<4x16xf32> -> vector<4x16xf32>
    %496 = arith.addf %495, %3 : vector<4x16xf32>
    %497 = math.tanh %496 : vector<4x16xf32>
    %cst_169 = arith.constant 4.687500e-03 : f32
    %498 = vector.broadcast %cst_169 : f32 to vector<4x16xf32>
    %499 = arith.mulf %498, %476 : vector<4x16xf32>
    %cst_170 = arith.constant 1.406250e-02 : f32
    %500 = vector.broadcast %cst_170 : f32 to vector<4x16xf32>
    %501 = arith.mulf %500, %491 : vector<4x16xf32>
    %502 = arith.addf %499, %501 : vector<4x16xf32>
    %503 = arith.addf %470, %502 : vector<4x16xf32>
    %cst_171 = arith.constant dense<0.000000e+00> : vector<4x16xf32>
    %504 = tpu.matmul %503, %0, %cst_171 {dimension_numbers = #tpu.dot_dimension_numbers<[1], [0], [0], [1], [0, 0, 1, 1], [], []>} : vector<4x16xf32>, vector<16x16xf32>, vector<4x16xf32> -> vector<4x16xf32>
    %505 = arith.addf %504, %3 : vector<4x16xf32>
    %506 = math.tanh %505 : vector<4x16xf32>
    %cst_172 = arith.constant 4.687500e-03 : f32
    %507 = vector.broadcast %cst_172 : f32 to vector<4x16xf32>
    %508 = arith.mulf %507, %479 : vector<4x16xf32>
    %cst_173 = arith.constant 1.406250e-02 : f32
    %509 = vector.broadcast %cst_173 : f32 to vector<4x16xf32>
    %510 = arith.mulf %509, %497 : vector<4x16xf32>
    %511 = arith.addf %508, %510 : vector<4x16xf32>
    %512 = arith.addf %473, %511 : vector<4x16xf32>
    %cst_174 = arith.constant dense<0.000000e+00> : vector<4x16xf32>
    %513 = tpu.matmul %512, %0, %cst_174 {dimension_numbers = #tpu.dot_dimension_numbers<[1], [0], [0], [1], [0, 0, 1, 1], [], []>} : vector<4x16xf32>, vector<16x16xf32>, vector<4x16xf32> -> vector<4x16xf32>
    %514 = arith.addf %513, %3 : vector<4x16xf32>
    %515 = math.tanh %514 : vector<4x16xf32>
    %cst_175 = arith.constant 0.028077269 : f32
    %516 = vector.broadcast %cst_175 : f32 to vector<4x16xf32>
    %517 = arith.mulf %516, %506 : vector<4x16xf32>
    %518 = arith.addf %482, %517 : vector<4x16xf32>
    %cst_176 = arith.constant 0.028077269 : f32
    %519 = vector.broadcast %cst_176 : f32 to vector<4x16xf32>
    %520 = arith.mulf %519, %515 : vector<4x16xf32>
    %521 = arith.addf %485, %520 : vector<4x16xf32>
    %cst_177 = arith.constant 0.0611111112 : f32
    %522 = vector.broadcast %cst_177 : f32 to vector<4x16xf32>
    %523 = arith.mulf %522, %476 : vector<4x16xf32>
    %cst_178 = arith.constant -0.233333334 : f32
    %524 = vector.broadcast %cst_178 : f32 to vector<4x16xf32>
    %525 = arith.mulf %524, %491 : vector<4x16xf32>
    %526 = arith.addf %523, %525 : vector<4x16xf32>
    %cst_179 = arith.constant 0.222222224 : f32
    %527 = vector.broadcast %cst_179 : f32 to vector<4x16xf32>
    %528 = arith.mulf %527, %506 : vector<4x16xf32>
    %529 = arith.addf %526, %528 : vector<4x16xf32>
    %530 = arith.addf %470, %529 : vector<4x16xf32>
    %cst_180 = arith.constant dense<0.000000e+00> : vector<4x16xf32>
    %531 = tpu.matmul %530, %0, %cst_180 {dimension_numbers = #tpu.dot_dimension_numbers<[1], [0], [0], [1], [0, 0, 1, 1], [], []>} : vector<4x16xf32>, vector<16x16xf32>, vector<4x16xf32> -> vector<4x16xf32>
    %532 = arith.addf %531, %3 : vector<4x16xf32>
    %533 = math.tanh %532 : vector<4x16xf32>
    %cst_181 = arith.constant 0.0611111112 : f32
    %534 = vector.broadcast %cst_181 : f32 to vector<4x16xf32>
    %535 = arith.mulf %534, %479 : vector<4x16xf32>
    %cst_182 = arith.constant -0.233333334 : f32
    %536 = vector.broadcast %cst_182 : f32 to vector<4x16xf32>
    %537 = arith.mulf %536, %497 : vector<4x16xf32>
    %538 = arith.addf %535, %537 : vector<4x16xf32>
    %cst_183 = arith.constant 0.222222224 : f32
    %539 = vector.broadcast %cst_183 : f32 to vector<4x16xf32>
    %540 = arith.mulf %539, %515 : vector<4x16xf32>
    %541 = arith.addf %538, %540 : vector<4x16xf32>
    %542 = arith.addf %473, %541 : vector<4x16xf32>
    %cst_184 = arith.constant dense<0.000000e+00> : vector<4x16xf32>
    %543 = tpu.matmul %542, %0, %cst_184 {dimension_numbers = #tpu.dot_dimension_numbers<[1], [0], [0], [1], [0, 0, 1, 1], [], []>} : vector<4x16xf32>, vector<16x16xf32>, vector<4x16xf32> -> vector<4x16xf32>
    %544 = arith.addf %543, %3 : vector<4x16xf32>
    %545 = math.tanh %544 : vector<4x16xf32>
    %cst_185 = arith.constant 0.0406901054 : f32
    %546 = vector.broadcast %cst_185 : f32 to vector<4x16xf32>
    %547 = arith.mulf %546, %533 : vector<4x16xf32>
    %548 = arith.addf %518, %547 : vector<4x16xf32>
    %cst_186 = arith.constant 0.0406901054 : f32
    %549 = vector.broadcast %cst_186 : f32 to vector<4x16xf32>
    %550 = arith.mulf %549, %545 : vector<4x16xf32>
    %551 = arith.addf %521, %550 : vector<4x16xf32>
    %cst_187 = arith.constant 0.184537411 : f32
    %552 = vector.broadcast %cst_187 : f32 to vector<4x16xf32>
    %553 = arith.mulf %552, %476 : vector<4x16xf32>
    %cst_188 = arith.constant -0.724737107 : f32
    %554 = vector.broadcast %cst_188 : f32 to vector<4x16xf32>
    %555 = arith.mulf %554, %491 : vector<4x16xf32>
    %556 = arith.addf %553, %555 : vector<4x16xf32>
    %cst_189 = arith.constant 0.613930821 : f32
    %557 = vector.broadcast %cst_189 : f32 to vector<4x16xf32>
    %558 = arith.mulf %557, %506 : vector<4x16xf32>
    %559 = arith.addf %556, %558 : vector<4x16xf32>
    %cst_190 = arith.constant -0.0181755833 : f32
    %560 = vector.broadcast %cst_190 : f32 to vector<4x16xf32>
    %561 = arith.mulf %560, %533 : vector<4x16xf32>
    %562 = arith.addf %559, %561 : vector<4x16xf32>
    %563 = arith.addf %470, %562 : vector<4x16xf32>
    %cst_191 = arith.constant dense<0.000000e+00> : vector<4x16xf32>
    %564 = tpu.matmul %563, %0, %cst_191 {dimension_numbers = #tpu.dot_dimension_numbers<[1], [0], [0], [1], [0, 0, 1, 1], [], []>} : vector<4x16xf32>, vector<16x16xf32>, vector<4x16xf32> -> vector<4x16xf32>
    %565 = arith.addf %564, %3 : vector<4x16xf32>
    %566 = math.tanh %565 : vector<4x16xf32>
    %cst_192 = arith.constant 0.184537411 : f32
    %567 = vector.broadcast %cst_192 : f32 to vector<4x16xf32>
    %568 = arith.mulf %567, %479 : vector<4x16xf32>
    %cst_193 = arith.constant -0.724737107 : f32
    %569 = vector.broadcast %cst_193 : f32 to vector<4x16xf32>
    %570 = arith.mulf %569, %497 : vector<4x16xf32>
    %571 = arith.addf %568, %570 : vector<4x16xf32>
    %cst_194 = arith.constant 0.613930821 : f32
    %572 = vector.broadcast %cst_194 : f32 to vector<4x16xf32>
    %573 = arith.mulf %572, %515 : vector<4x16xf32>
    %574 = arith.addf %571, %573 : vector<4x16xf32>
    %cst_195 = arith.constant -0.0181755833 : f32
    %575 = vector.broadcast %cst_195 : f32 to vector<4x16xf32>
    %576 = arith.mulf %575, %545 : vector<4x16xf32>
    %577 = arith.addf %574, %576 : vector<4x16xf32>
    %578 = arith.addf %473, %577 : vector<4x16xf32>
    %cst_196 = arith.constant dense<0.000000e+00> : vector<4x16xf32>
    %579 = tpu.matmul %578, %0, %cst_196 {dimension_numbers = #tpu.dot_dimension_numbers<[1], [0], [0], [1], [0, 0, 1, 1], [], []>} : vector<4x16xf32>, vector<16x16xf32>, vector<4x16xf32> -> vector<4x16xf32>
    %580 = arith.addf %579, %3 : vector<4x16xf32>
    %581 = math.tanh %580 : vector<4x16xf32>
    %cst_197 = arith.constant -0.020148512 : f32
    %582 = vector.broadcast %cst_197 : f32 to vector<4x16xf32>
    %583 = arith.mulf %582, %566 : vector<4x16xf32>
    %584 = arith.addf %548, %583 : vector<4x16xf32>
    %cst_198 = arith.constant -0.020148512 : f32
    %585 = vector.broadcast %cst_198 : f32 to vector<4x16xf32>
    %586 = arith.mulf %585, %581 : vector<4x16xf32>
    %587 = arith.addf %551, %586 : vector<4x16xf32>
    %cst_199 = arith.constant 0.177892208 : f32
    %588 = vector.broadcast %cst_199 : f32 to vector<4x16xf32>
    %589 = arith.mulf %588, %476 : vector<4x16xf32>
    %cst_200 = arith.constant -0.672348499 : f32
    %590 = vector.broadcast %cst_200 : f32 to vector<4x16xf32>
    %591 = arith.mulf %590, %491 : vector<4x16xf32>
    %592 = arith.addf %589, %591 : vector<4x16xf32>
    %cst_201 = arith.constant 0.556651413 : f32
    %593 = vector.broadcast %cst_201 : f32 to vector<4x16xf32>
    %594 = arith.mulf %593, %506 : vector<4x16xf32>
    %595 = arith.addf %592, %594 : vector<4x16xf32>
    %cst_202 = arith.constant 0.0174005684 : f32
    %596 = vector.broadcast %cst_202 : f32 to vector<4x16xf32>
    %597 = arith.mulf %596, %533 : vector<4x16xf32>
    %598 = arith.addf %595, %597 : vector<4x16xf32>
    %cst_203 = arith.constant -0.0170957074 : f32
    %599 = vector.broadcast %cst_203 : f32 to vector<4x16xf32>
    %600 = arith.mulf %599, %566 : vector<4x16xf32>
    %601 = arith.addf %598, %600 : vector<4x16xf32>
    %602 = arith.addf %470, %601 : vector<4x16xf32>
    %cst_204 = arith.constant dense<0.000000e+00> : vector<4x16xf32>
    %603 = tpu.matmul %602, %0, %cst_204 {dimension_numbers = #tpu.dot_dimension_numbers<[1], [0], [0], [1], [0, 0, 1, 1], [], []>} : vector<4x16xf32>, vector<16x16xf32>, vector<4x16xf32> -> vector<4x16xf32>
    %604 = arith.addf %603, %3 : vector<4x16xf32>
    %605 = math.tanh %604 : vector<4x16xf32>
    %cst_205 = arith.constant 0.177892208 : f32
    %606 = vector.broadcast %cst_205 : f32 to vector<4x16xf32>
    %607 = arith.mulf %606, %479 : vector<4x16xf32>
    %cst_206 = arith.constant -0.672348499 : f32
    %608 = vector.broadcast %cst_206 : f32 to vector<4x16xf32>
    %609 = arith.mulf %608, %497 : vector<4x16xf32>
    %610 = arith.addf %607, %609 : vector<4x16xf32>
    %cst_207 = arith.constant 0.556651413 : f32
    %611 = vector.broadcast %cst_207 : f32 to vector<4x16xf32>
    %612 = arith.mulf %611, %515 : vector<4x16xf32>
    %613 = arith.addf %610, %612 : vector<4x16xf32>
    %cst_208 = arith.constant 0.0174005684 : f32
    %614 = vector.broadcast %cst_208 : f32 to vector<4x16xf32>
    %615 = arith.mulf %614, %545 : vector<4x16xf32>
    %616 = arith.addf %613, %615 : vector<4x16xf32>
    %cst_209 = arith.constant -0.0170957074 : f32
    %617 = vector.broadcast %cst_209 : f32 to vector<4x16xf32>
    %618 = arith.mulf %617, %581 : vector<4x16xf32>
    %619 = arith.addf %616, %618 : vector<4x16xf32>
    %620 = arith.addf %473, %619 : vector<4x16xf32>
    %cst_210 = arith.constant dense<0.000000e+00> : vector<4x16xf32>
    %621 = tpu.matmul %620, %0, %cst_210 {dimension_numbers = #tpu.dot_dimension_numbers<[1], [0], [0], [1], [0, 0, 1, 1], [], []>} : vector<4x16xf32>, vector<16x16xf32>, vector<4x16xf32> -> vector<4x16xf32>
    %622 = arith.addf %621, %3 : vector<4x16xf32>
    %623 = math.tanh %622 : vector<4x16xf32>
    %cst_211 = arith.constant 0.00818452425 : f32
    %624 = vector.broadcast %cst_211 : f32 to vector<4x16xf32>
    %625 = arith.mulf %624, %605 : vector<4x16xf32>
    %626 = arith.addf %584, %625 : vector<4x16xf32>
    %cst_212 = arith.constant 0.00818452425 : f32
    %627 = vector.broadcast %cst_212 : f32 to vector<4x16xf32>
    %628 = arith.mulf %627, %623 : vector<4x16xf32>
    %629 = arith.addf %587, %628 : vector<4x16xf32>
    %c4_i32 = arith.constant 4 : i32
    %cst_213 = arith.constant dense<0.000000e+00> : vector<4x16xf32>
    %630 = tpu.matmul %626, %0, %cst_213 {dimension_numbers = #tpu.dot_dimension_numbers<[1], [0], [0], [1], [0, 0, 1, 1], [], []>} : vector<4x16xf32>, vector<16x16xf32>, vector<4x16xf32> -> vector<4x16xf32>
    %631 = arith.addf %630, %3 : vector<4x16xf32>
    %632 = math.tanh %631 : vector<4x16xf32>
    %cst_214 = arith.constant dense<0.000000e+00> : vector<4x16xf32>
    %633 = tpu.matmul %629, %0, %cst_214 {dimension_numbers = #tpu.dot_dimension_numbers<[1], [0], [0], [1], [0, 0, 1, 1], [], []>} : vector<4x16xf32>, vector<16x16xf32>, vector<4x16xf32> -> vector<4x16xf32>
    %634 = arith.addf %633, %3 : vector<4x16xf32>
    %635 = math.tanh %634 : vector<4x16xf32>
    %cst_215 = arith.constant 0.00569661474 : f32
    %636 = vector.broadcast %cst_215 : f32 to vector<4x16xf32>
    %637 = arith.mulf %636, %632 : vector<4x16xf32>
    %638 = arith.addf %626, %637 : vector<4x16xf32>
    %cst_216 = arith.constant 0.00569661474 : f32
    %639 = vector.broadcast %cst_216 : f32 to vector<4x16xf32>
    %640 = arith.mulf %639, %635 : vector<4x16xf32>
    %641 = arith.addf %629, %640 : vector<4x16xf32>
    %cst_217 = arith.constant 1.250000e-02 : f32
    %642 = vector.broadcast %cst_217 : f32 to vector<4x16xf32>
    %643 = arith.mulf %642, %632 : vector<4x16xf32>
    %644 = arith.addf %626, %643 : vector<4x16xf32>
    %cst_218 = arith.constant dense<0.000000e+00> : vector<4x16xf32>
    %645 = tpu.matmul %644, %0, %cst_218 {dimension_numbers = #tpu.dot_dimension_numbers<[1], [0], [0], [1], [0, 0, 1, 1], [], []>} : vector<4x16xf32>, vector<16x16xf32>, vector<4x16xf32> -> vector<4x16xf32>
    %646 = arith.addf %645, %3 : vector<4x16xf32>
    %647 = math.tanh %646 : vector<4x16xf32>
    %cst_219 = arith.constant 1.250000e-02 : f32
    %648 = vector.broadcast %cst_219 : f32 to vector<4x16xf32>
    %649 = arith.mulf %648, %635 : vector<4x16xf32>
    %650 = arith.addf %629, %649 : vector<4x16xf32>
    %cst_220 = arith.constant dense<0.000000e+00> : vector<4x16xf32>
    %651 = tpu.matmul %650, %0, %cst_220 {dimension_numbers = #tpu.dot_dimension_numbers<[1], [0], [0], [1], [0, 0, 1, 1], [], []>} : vector<4x16xf32>, vector<16x16xf32>, vector<4x16xf32> -> vector<4x16xf32>
    %652 = arith.addf %651, %3 : vector<4x16xf32>
    %653 = math.tanh %652 : vector<4x16xf32>
    %cst_221 = arith.constant 4.687500e-03 : f32
    %654 = vector.broadcast %cst_221 : f32 to vector<4x16xf32>
    %655 = arith.mulf %654, %632 : vector<4x16xf32>
    %cst_222 = arith.constant 1.406250e-02 : f32
    %656 = vector.broadcast %cst_222 : f32 to vector<4x16xf32>
    %657 = arith.mulf %656, %647 : vector<4x16xf32>
    %658 = arith.addf %655, %657 : vector<4x16xf32>
    %659 = arith.addf %626, %658 : vector<4x16xf32>
    %cst_223 = arith.constant dense<0.000000e+00> : vector<4x16xf32>
    %660 = tpu.matmul %659, %0, %cst_223 {dimension_numbers = #tpu.dot_dimension_numbers<[1], [0], [0], [1], [0, 0, 1, 1], [], []>} : vector<4x16xf32>, vector<16x16xf32>, vector<4x16xf32> -> vector<4x16xf32>
    %661 = arith.addf %660, %3 : vector<4x16xf32>
    %662 = math.tanh %661 : vector<4x16xf32>
    %cst_224 = arith.constant 4.687500e-03 : f32
    %663 = vector.broadcast %cst_224 : f32 to vector<4x16xf32>
    %664 = arith.mulf %663, %635 : vector<4x16xf32>
    %cst_225 = arith.constant 1.406250e-02 : f32
    %665 = vector.broadcast %cst_225 : f32 to vector<4x16xf32>
    %666 = arith.mulf %665, %653 : vector<4x16xf32>
    %667 = arith.addf %664, %666 : vector<4x16xf32>
    %668 = arith.addf %629, %667 : vector<4x16xf32>
    %cst_226 = arith.constant dense<0.000000e+00> : vector<4x16xf32>
    %669 = tpu.matmul %668, %0, %cst_226 {dimension_numbers = #tpu.dot_dimension_numbers<[1], [0], [0], [1], [0, 0, 1, 1], [], []>} : vector<4x16xf32>, vector<16x16xf32>, vector<4x16xf32> -> vector<4x16xf32>
    %670 = arith.addf %669, %3 : vector<4x16xf32>
    %671 = math.tanh %670 : vector<4x16xf32>
    %cst_227 = arith.constant 0.028077269 : f32
    %672 = vector.broadcast %cst_227 : f32 to vector<4x16xf32>
    %673 = arith.mulf %672, %662 : vector<4x16xf32>
    %674 = arith.addf %638, %673 : vector<4x16xf32>
    %cst_228 = arith.constant 0.028077269 : f32
    %675 = vector.broadcast %cst_228 : f32 to vector<4x16xf32>
    %676 = arith.mulf %675, %671 : vector<4x16xf32>
    %677 = arith.addf %641, %676 : vector<4x16xf32>
    %cst_229 = arith.constant 0.0611111112 : f32
    %678 = vector.broadcast %cst_229 : f32 to vector<4x16xf32>
    %679 = arith.mulf %678, %632 : vector<4x16xf32>
    %cst_230 = arith.constant -0.233333334 : f32
    %680 = vector.broadcast %cst_230 : f32 to vector<4x16xf32>
    %681 = arith.mulf %680, %647 : vector<4x16xf32>
    %682 = arith.addf %679, %681 : vector<4x16xf32>
    %cst_231 = arith.constant 0.222222224 : f32
    %683 = vector.broadcast %cst_231 : f32 to vector<4x16xf32>
    %684 = arith.mulf %683, %662 : vector<4x16xf32>
    %685 = arith.addf %682, %684 : vector<4x16xf32>
    %686 = arith.addf %626, %685 : vector<4x16xf32>
    %cst_232 = arith.constant dense<0.000000e+00> : vector<4x16xf32>
    %687 = tpu.matmul %686, %0, %cst_232 {dimension_numbers = #tpu.dot_dimension_numbers<[1], [0], [0], [1], [0, 0, 1, 1], [], []>} : vector<4x16xf32>, vector<16x16xf32>, vector<4x16xf32> -> vector<4x16xf32>
    %688 = arith.addf %687, %3 : vector<4x16xf32>
    %689 = math.tanh %688 : vector<4x16xf32>
    %cst_233 = arith.constant 0.0611111112 : f32
    %690 = vector.broadcast %cst_233 : f32 to vector<4x16xf32>
    %691 = arith.mulf %690, %635 : vector<4x16xf32>
    %cst_234 = arith.constant -0.233333334 : f32
    %692 = vector.broadcast %cst_234 : f32 to vector<4x16xf32>
    %693 = arith.mulf %692, %653 : vector<4x16xf32>
    %694 = arith.addf %691, %693 : vector<4x16xf32>
    %cst_235 = arith.constant 0.222222224 : f32
    %695 = vector.broadcast %cst_235 : f32 to vector<4x16xf32>
    %696 = arith.mulf %695, %671 : vector<4x16xf32>
    %697 = arith.addf %694, %696 : vector<4x16xf32>
    %698 = arith.addf %629, %697 : vector<4x16xf32>
    %cst_236 = arith.constant dense<0.000000e+00> : vector<4x16xf32>
    %699 = tpu.matmul %698, %0, %cst_236 {dimension_numbers = #tpu.dot_dimension_numbers<[1], [0], [0], [1], [0, 0, 1, 1], [], []>} : vector<4x16xf32>, vector<16x16xf32>, vector<4x16xf32> -> vector<4x16xf32>
    %700 = arith.addf %699, %3 : vector<4x16xf32>
    %701 = math.tanh %700 : vector<4x16xf32>
    %cst_237 = arith.constant 0.0406901054 : f32
    %702 = vector.broadcast %cst_237 : f32 to vector<4x16xf32>
    %703 = arith.mulf %702, %689 : vector<4x16xf32>
    %704 = arith.addf %674, %703 : vector<4x16xf32>
    %cst_238 = arith.constant 0.0406901054 : f32
    %705 = vector.broadcast %cst_238 : f32 to vector<4x16xf32>
    %706 = arith.mulf %705, %701 : vector<4x16xf32>
    %707 = arith.addf %677, %706 : vector<4x16xf32>
    %cst_239 = arith.constant 0.184537411 : f32
    %708 = vector.broadcast %cst_239 : f32 to vector<4x16xf32>
    %709 = arith.mulf %708, %632 : vector<4x16xf32>
    %cst_240 = arith.constant -0.724737107 : f32
    %710 = vector.broadcast %cst_240 : f32 to vector<4x16xf32>
    %711 = arith.mulf %710, %647 : vector<4x16xf32>
    %712 = arith.addf %709, %711 : vector<4x16xf32>
    %cst_241 = arith.constant 0.613930821 : f32
    %713 = vector.broadcast %cst_241 : f32 to vector<4x16xf32>
    %714 = arith.mulf %713, %662 : vector<4x16xf32>
    %715 = arith.addf %712, %714 : vector<4x16xf32>
    %cst_242 = arith.constant -0.0181755833 : f32
    %716 = vector.broadcast %cst_242 : f32 to vector<4x16xf32>
    %717 = arith.mulf %716, %689 : vector<4x16xf32>
    %718 = arith.addf %715, %717 : vector<4x16xf32>
    %719 = arith.addf %626, %718 : vector<4x16xf32>
    %cst_243 = arith.constant dense<0.000000e+00> : vector<4x16xf32>
    %720 = tpu.matmul %719, %0, %cst_243 {dimension_numbers = #tpu.dot_dimension_numbers<[1], [0], [0], [1], [0, 0, 1, 1], [], []>} : vector<4x16xf32>, vector<16x16xf32>, vector<4x16xf32> -> vector<4x16xf32>
    %721 = arith.addf %720, %3 : vector<4x16xf32>
    %722 = math.tanh %721 : vector<4x16xf32>
    %cst_244 = arith.constant 0.184537411 : f32
    %723 = vector.broadcast %cst_244 : f32 to vector<4x16xf32>
    %724 = arith.mulf %723, %635 : vector<4x16xf32>
    %cst_245 = arith.constant -0.724737107 : f32
    %725 = vector.broadcast %cst_245 : f32 to vector<4x16xf32>
    %726 = arith.mulf %725, %653 : vector<4x16xf32>
    %727 = arith.addf %724, %726 : vector<4x16xf32>
    %cst_246 = arith.constant 0.613930821 : f32
    %728 = vector.broadcast %cst_246 : f32 to vector<4x16xf32>
    %729 = arith.mulf %728, %671 : vector<4x16xf32>
    %730 = arith.addf %727, %729 : vector<4x16xf32>
    %cst_247 = arith.constant -0.0181755833 : f32
    %731 = vector.broadcast %cst_247 : f32 to vector<4x16xf32>
    %732 = arith.mulf %731, %701 : vector<4x16xf32>
    %733 = arith.addf %730, %732 : vector<4x16xf32>
    %734 = arith.addf %629, %733 : vector<4x16xf32>
    %cst_248 = arith.constant dense<0.000000e+00> : vector<4x16xf32>
    %735 = tpu.matmul %734, %0, %cst_248 {dimension_numbers = #tpu.dot_dimension_numbers<[1], [0], [0], [1], [0, 0, 1, 1], [], []>} : vector<4x16xf32>, vector<16x16xf32>, vector<4x16xf32> -> vector<4x16xf32>
    %736 = arith.addf %735, %3 : vector<4x16xf32>
    %737 = math.tanh %736 : vector<4x16xf32>
    %cst_249 = arith.constant -0.020148512 : f32
    %738 = vector.broadcast %cst_249 : f32 to vector<4x16xf32>
    %739 = arith.mulf %738, %722 : vector<4x16xf32>
    %740 = arith.addf %704, %739 : vector<4x16xf32>
    %cst_250 = arith.constant -0.020148512 : f32
    %741 = vector.broadcast %cst_250 : f32 to vector<4x16xf32>
    %742 = arith.mulf %741, %737 : vector<4x16xf32>
    %743 = arith.addf %707, %742 : vector<4x16xf32>
    %cst_251 = arith.constant 0.177892208 : f32
    %744 = vector.broadcast %cst_251 : f32 to vector<4x16xf32>
    %745 = arith.mulf %744, %632 : vector<4x16xf32>
    %cst_252 = arith.constant -0.672348499 : f32
    %746 = vector.broadcast %cst_252 : f32 to vector<4x16xf32>
    %747 = arith.mulf %746, %647 : vector<4x16xf32>
    %748 = arith.addf %745, %747 : vector<4x16xf32>
    %cst_253 = arith.constant 0.556651413 : f32
    %749 = vector.broadcast %cst_253 : f32 to vector<4x16xf32>
    %750 = arith.mulf %749, %662 : vector<4x16xf32>
    %751 = arith.addf %748, %750 : vector<4x16xf32>
    %cst_254 = arith.constant 0.0174005684 : f32
    %752 = vector.broadcast %cst_254 : f32 to vector<4x16xf32>
    %753 = arith.mulf %752, %689 : vector<4x16xf32>
    %754 = arith.addf %751, %753 : vector<4x16xf32>
    %cst_255 = arith.constant -0.0170957074 : f32
    %755 = vector.broadcast %cst_255 : f32 to vector<4x16xf32>
    %756 = arith.mulf %755, %722 : vector<4x16xf32>
    %757 = arith.addf %754, %756 : vector<4x16xf32>
    %758 = arith.addf %626, %757 : vector<4x16xf32>
    %cst_256 = arith.constant dense<0.000000e+00> : vector<4x16xf32>
    %759 = tpu.matmul %758, %0, %cst_256 {dimension_numbers = #tpu.dot_dimension_numbers<[1], [0], [0], [1], [0, 0, 1, 1], [], []>} : vector<4x16xf32>, vector<16x16xf32>, vector<4x16xf32> -> vector<4x16xf32>
    %760 = arith.addf %759, %3 : vector<4x16xf32>
    %761 = math.tanh %760 : vector<4x16xf32>
    %cst_257 = arith.constant 0.177892208 : f32
    %762 = vector.broadcast %cst_257 : f32 to vector<4x16xf32>
    %763 = arith.mulf %762, %635 : vector<4x16xf32>
    %cst_258 = arith.constant -0.672348499 : f32
    %764 = vector.broadcast %cst_258 : f32 to vector<4x16xf32>
    %765 = arith.mulf %764, %653 : vector<4x16xf32>
    %766 = arith.addf %763, %765 : vector<4x16xf32>
    %cst_259 = arith.constant 0.556651413 : f32
    %767 = vector.broadcast %cst_259 : f32 to vector<4x16xf32>
    %768 = arith.mulf %767, %671 : vector<4x16xf32>
    %769 = arith.addf %766, %768 : vector<4x16xf32>
    %cst_260 = arith.constant 0.0174005684 : f32
    %770 = vector.broadcast %cst_260 : f32 to vector<4x16xf32>
    %771 = arith.mulf %770, %701 : vector<4x16xf32>
    %772 = arith.addf %769, %771 : vector<4x16xf32>
    %cst_261 = arith.constant -0.0170957074 : f32
    %773 = vector.broadcast %cst_261 : f32 to vector<4x16xf32>
    %774 = arith.mulf %773, %737 : vector<4x16xf32>
    %775 = arith.addf %772, %774 : vector<4x16xf32>
    %776 = arith.addf %629, %775 : vector<4x16xf32>
    %cst_262 = arith.constant dense<0.000000e+00> : vector<4x16xf32>
    %777 = tpu.matmul %776, %0, %cst_262 {dimension_numbers = #tpu.dot_dimension_numbers<[1], [0], [0], [1], [0, 0, 1, 1], [], []>} : vector<4x16xf32>, vector<16x16xf32>, vector<4x16xf32> -> vector<4x16xf32>
    %778 = arith.addf %777, %3 : vector<4x16xf32>
    %779 = math.tanh %778 : vector<4x16xf32>
    %cst_263 = arith.constant 0.00818452425 : f32
    %780 = vector.broadcast %cst_263 : f32 to vector<4x16xf32>
    %781 = arith.mulf %780, %761 : vector<4x16xf32>
    %782 = arith.addf %740, %781 : vector<4x16xf32>
    %cst_264 = arith.constant 0.00818452425 : f32
    %783 = vector.broadcast %cst_264 : f32 to vector<4x16xf32>
    %784 = arith.mulf %783, %779 : vector<4x16xf32>
    %785 = arith.addf %743, %784 : vector<4x16xf32>
    %c5_i32 = arith.constant 5 : i32
    %cst_265 = arith.constant dense<0.000000e+00> : vector<4x16xf32>
    %786 = tpu.matmul %782, %0, %cst_265 {dimension_numbers = #tpu.dot_dimension_numbers<[1], [0], [0], [1], [0, 0, 1, 1], [], []>} : vector<4x16xf32>, vector<16x16xf32>, vector<4x16xf32> -> vector<4x16xf32>
    %787 = arith.addf %786, %3 : vector<4x16xf32>
    %788 = math.tanh %787 : vector<4x16xf32>
    %cst_266 = arith.constant dense<0.000000e+00> : vector<4x16xf32>
    %789 = tpu.matmul %785, %0, %cst_266 {dimension_numbers = #tpu.dot_dimension_numbers<[1], [0], [0], [1], [0, 0, 1, 1], [], []>} : vector<4x16xf32>, vector<16x16xf32>, vector<4x16xf32> -> vector<4x16xf32>
    %790 = arith.addf %789, %3 : vector<4x16xf32>
    %791 = math.tanh %790 : vector<4x16xf32>
    %cst_267 = arith.constant 0.00569661474 : f32
    %792 = vector.broadcast %cst_267 : f32 to vector<4x16xf32>
    %793 = arith.mulf %792, %788 : vector<4x16xf32>
    %794 = arith.addf %782, %793 : vector<4x16xf32>
    %cst_268 = arith.constant 0.00569661474 : f32
    %795 = vector.broadcast %cst_268 : f32 to vector<4x16xf32>
    %796 = arith.mulf %795, %791 : vector<4x16xf32>
    %797 = arith.addf %785, %796 : vector<4x16xf32>
    %cst_269 = arith.constant 1.250000e-02 : f32
    %798 = vector.broadcast %cst_269 : f32 to vector<4x16xf32>
    %799 = arith.mulf %798, %788 : vector<4x16xf32>
    %800 = arith.addf %782, %799 : vector<4x16xf32>
    %cst_270 = arith.constant dense<0.000000e+00> : vector<4x16xf32>
    %801 = tpu.matmul %800, %0, %cst_270 {dimension_numbers = #tpu.dot_dimension_numbers<[1], [0], [0], [1], [0, 0, 1, 1], [], []>} : vector<4x16xf32>, vector<16x16xf32>, vector<4x16xf32> -> vector<4x16xf32>
    %802 = arith.addf %801, %3 : vector<4x16xf32>
    %803 = math.tanh %802 : vector<4x16xf32>
    %cst_271 = arith.constant 1.250000e-02 : f32
    %804 = vector.broadcast %cst_271 : f32 to vector<4x16xf32>
    %805 = arith.mulf %804, %791 : vector<4x16xf32>
    %806 = arith.addf %785, %805 : vector<4x16xf32>
    %cst_272 = arith.constant dense<0.000000e+00> : vector<4x16xf32>
    %807 = tpu.matmul %806, %0, %cst_272 {dimension_numbers = #tpu.dot_dimension_numbers<[1], [0], [0], [1], [0, 0, 1, 1], [], []>} : vector<4x16xf32>, vector<16x16xf32>, vector<4x16xf32> -> vector<4x16xf32>
    %808 = arith.addf %807, %3 : vector<4x16xf32>
    %809 = math.tanh %808 : vector<4x16xf32>
    %cst_273 = arith.constant 4.687500e-03 : f32
    %810 = vector.broadcast %cst_273 : f32 to vector<4x16xf32>
    %811 = arith.mulf %810, %788 : vector<4x16xf32>
    %cst_274 = arith.constant 1.406250e-02 : f32
    %812 = vector.broadcast %cst_274 : f32 to vector<4x16xf32>
    %813 = arith.mulf %812, %803 : vector<4x16xf32>
    %814 = arith.addf %811, %813 : vector<4x16xf32>
    %815 = arith.addf %782, %814 : vector<4x16xf32>
    %cst_275 = arith.constant dense<0.000000e+00> : vector<4x16xf32>
    %816 = tpu.matmul %815, %0, %cst_275 {dimension_numbers = #tpu.dot_dimension_numbers<[1], [0], [0], [1], [0, 0, 1, 1], [], []>} : vector<4x16xf32>, vector<16x16xf32>, vector<4x16xf32> -> vector<4x16xf32>
    %817 = arith.addf %816, %3 : vector<4x16xf32>
    %818 = math.tanh %817 : vector<4x16xf32>
    %cst_276 = arith.constant 4.687500e-03 : f32
    %819 = vector.broadcast %cst_276 : f32 to vector<4x16xf32>
    %820 = arith.mulf %819, %791 : vector<4x16xf32>
    %cst_277 = arith.constant 1.406250e-02 : f32
    %821 = vector.broadcast %cst_277 : f32 to vector<4x16xf32>
    %822 = arith.mulf %821, %809 : vector<4x16xf32>
    %823 = arith.addf %820, %822 : vector<4x16xf32>
    %824 = arith.addf %785, %823 : vector<4x16xf32>
    %cst_278 = arith.constant dense<0.000000e+00> : vector<4x16xf32>
    %825 = tpu.matmul %824, %0, %cst_278 {dimension_numbers = #tpu.dot_dimension_numbers<[1], [0], [0], [1], [0, 0, 1, 1], [], []>} : vector<4x16xf32>, vector<16x16xf32>, vector<4x16xf32> -> vector<4x16xf32>
    %826 = arith.addf %825, %3 : vector<4x16xf32>
    %827 = math.tanh %826 : vector<4x16xf32>
    %cst_279 = arith.constant 0.028077269 : f32
    %828 = vector.broadcast %cst_279 : f32 to vector<4x16xf32>
    %829 = arith.mulf %828, %818 : vector<4x16xf32>
    %830 = arith.addf %794, %829 : vector<4x16xf32>
    %cst_280 = arith.constant 0.028077269 : f32
    %831 = vector.broadcast %cst_280 : f32 to vector<4x16xf32>
    %832 = arith.mulf %831, %827 : vector<4x16xf32>
    %833 = arith.addf %797, %832 : vector<4x16xf32>
    %cst_281 = arith.constant 0.0611111112 : f32
    %834 = vector.broadcast %cst_281 : f32 to vector<4x16xf32>
    %835 = arith.mulf %834, %788 : vector<4x16xf32>
    %cst_282 = arith.constant -0.233333334 : f32
    %836 = vector.broadcast %cst_282 : f32 to vector<4x16xf32>
    %837 = arith.mulf %836, %803 : vector<4x16xf32>
    %838 = arith.addf %835, %837 : vector<4x16xf32>
    %cst_283 = arith.constant 0.222222224 : f32
    %839 = vector.broadcast %cst_283 : f32 to vector<4x16xf32>
    %840 = arith.mulf %839, %818 : vector<4x16xf32>
    %841 = arith.addf %838, %840 : vector<4x16xf32>
    %842 = arith.addf %782, %841 : vector<4x16xf32>
    %cst_284 = arith.constant dense<0.000000e+00> : vector<4x16xf32>
    %843 = tpu.matmul %842, %0, %cst_284 {dimension_numbers = #tpu.dot_dimension_numbers<[1], [0], [0], [1], [0, 0, 1, 1], [], []>} : vector<4x16xf32>, vector<16x16xf32>, vector<4x16xf32> -> vector<4x16xf32>
    %844 = arith.addf %843, %3 : vector<4x16xf32>
    %845 = math.tanh %844 : vector<4x16xf32>
    %cst_285 = arith.constant 0.0611111112 : f32
    %846 = vector.broadcast %cst_285 : f32 to vector<4x16xf32>
    %847 = arith.mulf %846, %791 : vector<4x16xf32>
    %cst_286 = arith.constant -0.233333334 : f32
    %848 = vector.broadcast %cst_286 : f32 to vector<4x16xf32>
    %849 = arith.mulf %848, %809 : vector<4x16xf32>
    %850 = arith.addf %847, %849 : vector<4x16xf32>
    %cst_287 = arith.constant 0.222222224 : f32
    %851 = vector.broadcast %cst_287 : f32 to vector<4x16xf32>
    %852 = arith.mulf %851, %827 : vector<4x16xf32>
    %853 = arith.addf %850, %852 : vector<4x16xf32>
    %854 = arith.addf %785, %853 : vector<4x16xf32>
    %cst_288 = arith.constant dense<0.000000e+00> : vector<4x16xf32>
    %855 = tpu.matmul %854, %0, %cst_288 {dimension_numbers = #tpu.dot_dimension_numbers<[1], [0], [0], [1], [0, 0, 1, 1], [], []>} : vector<4x16xf32>, vector<16x16xf32>, vector<4x16xf32> -> vector<4x16xf32>
    %856 = arith.addf %855, %3 : vector<4x16xf32>
    %857 = math.tanh %856 : vector<4x16xf32>
    %cst_289 = arith.constant 0.0406901054 : f32
    %858 = vector.broadcast %cst_289 : f32 to vector<4x16xf32>
    %859 = arith.mulf %858, %845 : vector<4x16xf32>
    %860 = arith.addf %830, %859 : vector<4x16xf32>
    %cst_290 = arith.constant 0.0406901054 : f32
    %861 = vector.broadcast %cst_290 : f32 to vector<4x16xf32>
    %862 = arith.mulf %861, %857 : vector<4x16xf32>
    %863 = arith.addf %833, %862 : vector<4x16xf32>
    %cst_291 = arith.constant 0.184537411 : f32
    %864 = vector.broadcast %cst_291 : f32 to vector<4x16xf32>
    %865 = arith.mulf %864, %788 : vector<4x16xf32>
    %cst_292 = arith.constant -0.724737107 : f32
    %866 = vector.broadcast %cst_292 : f32 to vector<4x16xf32>
    %867 = arith.mulf %866, %803 : vector<4x16xf32>
    %868 = arith.addf %865, %867 : vector<4x16xf32>
    %cst_293 = arith.constant 0.613930821 : f32
    %869 = vector.broadcast %cst_293 : f32 to vector<4x16xf32>
    %870 = arith.mulf %869, %818 : vector<4x16xf32>
    %871 = arith.addf %868, %870 : vector<4x16xf32>
    %cst_294 = arith.constant -0.0181755833 : f32
    %872 = vector.broadcast %cst_294 : f32 to vector<4x16xf32>
    %873 = arith.mulf %872, %845 : vector<4x16xf32>
    %874 = arith.addf %871, %873 : vector<4x16xf32>
    %875 = arith.addf %782, %874 : vector<4x16xf32>
    %cst_295 = arith.constant dense<0.000000e+00> : vector<4x16xf32>
    %876 = tpu.matmul %875, %0, %cst_295 {dimension_numbers = #tpu.dot_dimension_numbers<[1], [0], [0], [1], [0, 0, 1, 1], [], []>} : vector<4x16xf32>, vector<16x16xf32>, vector<4x16xf32> -> vector<4x16xf32>
    %877 = arith.addf %876, %3 : vector<4x16xf32>
    %878 = math.tanh %877 : vector<4x16xf32>
    %cst_296 = arith.constant 0.184537411 : f32
    %879 = vector.broadcast %cst_296 : f32 to vector<4x16xf32>
    %880 = arith.mulf %879, %791 : vector<4x16xf32>
    %cst_297 = arith.constant -0.724737107 : f32
    %881 = vector.broadcast %cst_297 : f32 to vector<4x16xf32>
    %882 = arith.mulf %881, %809 : vector<4x16xf32>
    %883 = arith.addf %880, %882 : vector<4x16xf32>
    %cst_298 = arith.constant 0.613930821 : f32
    %884 = vector.broadcast %cst_298 : f32 to vector<4x16xf32>
    %885 = arith.mulf %884, %827 : vector<4x16xf32>
    %886 = arith.addf %883, %885 : vector<4x16xf32>
    %cst_299 = arith.constant -0.0181755833 : f32
    %887 = vector.broadcast %cst_299 : f32 to vector<4x16xf32>
    %888 = arith.mulf %887, %857 : vector<4x16xf32>
    %889 = arith.addf %886, %888 : vector<4x16xf32>
    %890 = arith.addf %785, %889 : vector<4x16xf32>
    %cst_300 = arith.constant dense<0.000000e+00> : vector<4x16xf32>
    %891 = tpu.matmul %890, %0, %cst_300 {dimension_numbers = #tpu.dot_dimension_numbers<[1], [0], [0], [1], [0, 0, 1, 1], [], []>} : vector<4x16xf32>, vector<16x16xf32>, vector<4x16xf32> -> vector<4x16xf32>
    %892 = arith.addf %891, %3 : vector<4x16xf32>
    %893 = math.tanh %892 : vector<4x16xf32>
    %cst_301 = arith.constant -0.020148512 : f32
    %894 = vector.broadcast %cst_301 : f32 to vector<4x16xf32>
    %895 = arith.mulf %894, %878 : vector<4x16xf32>
    %896 = arith.addf %860, %895 : vector<4x16xf32>
    %cst_302 = arith.constant -0.020148512 : f32
    %897 = vector.broadcast %cst_302 : f32 to vector<4x16xf32>
    %898 = arith.mulf %897, %893 : vector<4x16xf32>
    %899 = arith.addf %863, %898 : vector<4x16xf32>
    %cst_303 = arith.constant 0.177892208 : f32
    %900 = vector.broadcast %cst_303 : f32 to vector<4x16xf32>
    %901 = arith.mulf %900, %788 : vector<4x16xf32>
    %cst_304 = arith.constant -0.672348499 : f32
    %902 = vector.broadcast %cst_304 : f32 to vector<4x16xf32>
    %903 = arith.mulf %902, %803 : vector<4x16xf32>
    %904 = arith.addf %901, %903 : vector<4x16xf32>
    %cst_305 = arith.constant 0.556651413 : f32
    %905 = vector.broadcast %cst_305 : f32 to vector<4x16xf32>
    %906 = arith.mulf %905, %818 : vector<4x16xf32>
    %907 = arith.addf %904, %906 : vector<4x16xf32>
    %cst_306 = arith.constant 0.0174005684 : f32
    %908 = vector.broadcast %cst_306 : f32 to vector<4x16xf32>
    %909 = arith.mulf %908, %845 : vector<4x16xf32>
    %910 = arith.addf %907, %909 : vector<4x16xf32>
    %cst_307 = arith.constant -0.0170957074 : f32
    %911 = vector.broadcast %cst_307 : f32 to vector<4x16xf32>
    %912 = arith.mulf %911, %878 : vector<4x16xf32>
    %913 = arith.addf %910, %912 : vector<4x16xf32>
    %914 = arith.addf %782, %913 : vector<4x16xf32>
    %cst_308 = arith.constant dense<0.000000e+00> : vector<4x16xf32>
    %915 = tpu.matmul %914, %0, %cst_308 {dimension_numbers = #tpu.dot_dimension_numbers<[1], [0], [0], [1], [0, 0, 1, 1], [], []>} : vector<4x16xf32>, vector<16x16xf32>, vector<4x16xf32> -> vector<4x16xf32>
    %916 = arith.addf %915, %3 : vector<4x16xf32>
    %917 = math.tanh %916 : vector<4x16xf32>
    %cst_309 = arith.constant 0.177892208 : f32
    %918 = vector.broadcast %cst_309 : f32 to vector<4x16xf32>
    %919 = arith.mulf %918, %791 : vector<4x16xf32>
    %cst_310 = arith.constant -0.672348499 : f32
    %920 = vector.broadcast %cst_310 : f32 to vector<4x16xf32>
    %921 = arith.mulf %920, %809 : vector<4x16xf32>
    %922 = arith.addf %919, %921 : vector<4x16xf32>
    %cst_311 = arith.constant 0.556651413 : f32
    %923 = vector.broadcast %cst_311 : f32 to vector<4x16xf32>
    %924 = arith.mulf %923, %827 : vector<4x16xf32>
    %925 = arith.addf %922, %924 : vector<4x16xf32>
    %cst_312 = arith.constant 0.0174005684 : f32
    %926 = vector.broadcast %cst_312 : f32 to vector<4x16xf32>
    %927 = arith.mulf %926, %857 : vector<4x16xf32>
    %928 = arith.addf %925, %927 : vector<4x16xf32>
    %cst_313 = arith.constant -0.0170957074 : f32
    %929 = vector.broadcast %cst_313 : f32 to vector<4x16xf32>
    %930 = arith.mulf %929, %893 : vector<4x16xf32>
    %931 = arith.addf %928, %930 : vector<4x16xf32>
    %932 = arith.addf %785, %931 : vector<4x16xf32>
    %cst_314 = arith.constant dense<0.000000e+00> : vector<4x16xf32>
    %933 = tpu.matmul %932, %0, %cst_314 {dimension_numbers = #tpu.dot_dimension_numbers<[1], [0], [0], [1], [0, 0, 1, 1], [], []>} : vector<4x16xf32>, vector<16x16xf32>, vector<4x16xf32> -> vector<4x16xf32>
    %934 = arith.addf %933, %3 : vector<4x16xf32>
    %935 = math.tanh %934 : vector<4x16xf32>
    %cst_315 = arith.constant 0.00818452425 : f32
    %936 = vector.broadcast %cst_315 : f32 to vector<4x16xf32>
    %937 = arith.mulf %936, %917 : vector<4x16xf32>
    %938 = arith.addf %896, %937 : vector<4x16xf32>
    %cst_316 = arith.constant 0.00818452425 : f32
    %939 = vector.broadcast %cst_316 : f32 to vector<4x16xf32>
    %940 = arith.mulf %939, %935 : vector<4x16xf32>
    %941 = arith.addf %899, %940 : vector<4x16xf32>
    %c6_i32 = arith.constant 6 : i32
    %cst_317 = arith.constant dense<0.000000e+00> : vector<4x16xf32>
    %942 = tpu.matmul %938, %0, %cst_317 {dimension_numbers = #tpu.dot_dimension_numbers<[1], [0], [0], [1], [0, 0, 1, 1], [], []>} : vector<4x16xf32>, vector<16x16xf32>, vector<4x16xf32> -> vector<4x16xf32>
    %943 = arith.addf %942, %3 : vector<4x16xf32>
    %944 = math.tanh %943 : vector<4x16xf32>
    %cst_318 = arith.constant dense<0.000000e+00> : vector<4x16xf32>
    %945 = tpu.matmul %941, %0, %cst_318 {dimension_numbers = #tpu.dot_dimension_numbers<[1], [0], [0], [1], [0, 0, 1, 1], [], []>} : vector<4x16xf32>, vector<16x16xf32>, vector<4x16xf32> -> vector<4x16xf32>
    %946 = arith.addf %945, %3 : vector<4x16xf32>
    %947 = math.tanh %946 : vector<4x16xf32>
    %cst_319 = arith.constant 0.00569661474 : f32
    %948 = vector.broadcast %cst_319 : f32 to vector<4x16xf32>
    %949 = arith.mulf %948, %944 : vector<4x16xf32>
    %950 = arith.addf %938, %949 : vector<4x16xf32>
    %cst_320 = arith.constant 0.00569661474 : f32
    %951 = vector.broadcast %cst_320 : f32 to vector<4x16xf32>
    %952 = arith.mulf %951, %947 : vector<4x16xf32>
    %953 = arith.addf %941, %952 : vector<4x16xf32>
    %cst_321 = arith.constant 1.250000e-02 : f32
    %954 = vector.broadcast %cst_321 : f32 to vector<4x16xf32>
    %955 = arith.mulf %954, %944 : vector<4x16xf32>
    %956 = arith.addf %938, %955 : vector<4x16xf32>
    %cst_322 = arith.constant dense<0.000000e+00> : vector<4x16xf32>
    %957 = tpu.matmul %956, %0, %cst_322 {dimension_numbers = #tpu.dot_dimension_numbers<[1], [0], [0], [1], [0, 0, 1, 1], [], []>} : vector<4x16xf32>, vector<16x16xf32>, vector<4x16xf32> -> vector<4x16xf32>
    %958 = arith.addf %957, %3 : vector<4x16xf32>
    %959 = math.tanh %958 : vector<4x16xf32>
    %cst_323 = arith.constant 1.250000e-02 : f32
    %960 = vector.broadcast %cst_323 : f32 to vector<4x16xf32>
    %961 = arith.mulf %960, %947 : vector<4x16xf32>
    %962 = arith.addf %941, %961 : vector<4x16xf32>
    %cst_324 = arith.constant dense<0.000000e+00> : vector<4x16xf32>
    %963 = tpu.matmul %962, %0, %cst_324 {dimension_numbers = #tpu.dot_dimension_numbers<[1], [0], [0], [1], [0, 0, 1, 1], [], []>} : vector<4x16xf32>, vector<16x16xf32>, vector<4x16xf32> -> vector<4x16xf32>
    %964 = arith.addf %963, %3 : vector<4x16xf32>
    %965 = math.tanh %964 : vector<4x16xf32>
    %cst_325 = arith.constant 4.687500e-03 : f32
    %966 = vector.broadcast %cst_325 : f32 to vector<4x16xf32>
    %967 = arith.mulf %966, %944 : vector<4x16xf32>
    %cst_326 = arith.constant 1.406250e-02 : f32
    %968 = vector.broadcast %cst_326 : f32 to vector<4x16xf32>
    %969 = arith.mulf %968, %959 : vector<4x16xf32>
    %970 = arith.addf %967, %969 : vector<4x16xf32>
    %971 = arith.addf %938, %970 : vector<4x16xf32>
    %cst_327 = arith.constant dense<0.000000e+00> : vector<4x16xf32>
    %972 = tpu.matmul %971, %0, %cst_327 {dimension_numbers = #tpu.dot_dimension_numbers<[1], [0], [0], [1], [0, 0, 1, 1], [], []>} : vector<4x16xf32>, vector<16x16xf32>, vector<4x16xf32> -> vector<4x16xf32>
    %973 = arith.addf %972, %3 : vector<4x16xf32>
    %974 = math.tanh %973 : vector<4x16xf32>
    %cst_328 = arith.constant 4.687500e-03 : f32
    %975 = vector.broadcast %cst_328 : f32 to vector<4x16xf32>
    %976 = arith.mulf %975, %947 : vector<4x16xf32>
    %cst_329 = arith.constant 1.406250e-02 : f32
    %977 = vector.broadcast %cst_329 : f32 to vector<4x16xf32>
    %978 = arith.mulf %977, %965 : vector<4x16xf32>
    %979 = arith.addf %976, %978 : vector<4x16xf32>
    %980 = arith.addf %941, %979 : vector<4x16xf32>
    %cst_330 = arith.constant dense<0.000000e+00> : vector<4x16xf32>
    %981 = tpu.matmul %980, %0, %cst_330 {dimension_numbers = #tpu.dot_dimension_numbers<[1], [0], [0], [1], [0, 0, 1, 1], [], []>} : vector<4x16xf32>, vector<16x16xf32>, vector<4x16xf32> -> vector<4x16xf32>
    %982 = arith.addf %981, %3 : vector<4x16xf32>
    %983 = math.tanh %982 : vector<4x16xf32>
    %cst_331 = arith.constant 0.028077269 : f32
    %984 = vector.broadcast %cst_331 : f32 to vector<4x16xf32>
    %985 = arith.mulf %984, %974 : vector<4x16xf32>
    %986 = arith.addf %950, %985 : vector<4x16xf32>
    %cst_332 = arith.constant 0.028077269 : f32
    %987 = vector.broadcast %cst_332 : f32 to vector<4x16xf32>
    %988 = arith.mulf %987, %983 : vector<4x16xf32>
    %989 = arith.addf %953, %988 : vector<4x16xf32>
    %cst_333 = arith.constant 0.0611111112 : f32
    %990 = vector.broadcast %cst_333 : f32 to vector<4x16xf32>
    %991 = arith.mulf %990, %944 : vector<4x16xf32>
    %cst_334 = arith.constant -0.233333334 : f32
    %992 = vector.broadcast %cst_334 : f32 to vector<4x16xf32>
    %993 = arith.mulf %992, %959 : vector<4x16xf32>
    %994 = arith.addf %991, %993 : vector<4x16xf32>
    %cst_335 = arith.constant 0.222222224 : f32
    %995 = vector.broadcast %cst_335 : f32 to vector<4x16xf32>
    %996 = arith.mulf %995, %974 : vector<4x16xf32>
    %997 = arith.addf %994, %996 : vector<4x16xf32>
    %998 = arith.addf %938, %997 : vector<4x16xf32>
    %cst_336 = arith.constant dense<0.000000e+00> : vector<4x16xf32>
    %999 = tpu.matmul %998, %0, %cst_336 {dimension_numbers = #tpu.dot_dimension_numbers<[1], [0], [0], [1], [0, 0, 1, 1], [], []>} : vector<4x16xf32>, vector<16x16xf32>, vector<4x16xf32> -> vector<4x16xf32>
    %1000 = arith.addf %999, %3 : vector<4x16xf32>
    %1001 = math.tanh %1000 : vector<4x16xf32>
    %cst_337 = arith.constant 0.0611111112 : f32
    %1002 = vector.broadcast %cst_337 : f32 to vector<4x16xf32>
    %1003 = arith.mulf %1002, %947 : vector<4x16xf32>
    %cst_338 = arith.constant -0.233333334 : f32
    %1004 = vector.broadcast %cst_338 : f32 to vector<4x16xf32>
    %1005 = arith.mulf %1004, %965 : vector<4x16xf32>
    %1006 = arith.addf %1003, %1005 : vector<4x16xf32>
    %cst_339 = arith.constant 0.222222224 : f32
    %1007 = vector.broadcast %cst_339 : f32 to vector<4x16xf32>
    %1008 = arith.mulf %1007, %983 : vector<4x16xf32>
    %1009 = arith.addf %1006, %1008 : vector<4x16xf32>
    %1010 = arith.addf %941, %1009 : vector<4x16xf32>
    %cst_340 = arith.constant dense<0.000000e+00> : vector<4x16xf32>
    %1011 = tpu.matmul %1010, %0, %cst_340 {dimension_numbers = #tpu.dot_dimension_numbers<[1], [0], [0], [1], [0, 0, 1, 1], [], []>} : vector<4x16xf32>, vector<16x16xf32>, vector<4x16xf32> -> vector<4x16xf32>
    %1012 = arith.addf %1011, %3 : vector<4x16xf32>
    %1013 = math.tanh %1012 : vector<4x16xf32>
    %cst_341 = arith.constant 0.0406901054 : f32
    %1014 = vector.broadcast %cst_341 : f32 to vector<4x16xf32>
    %1015 = arith.mulf %1014, %1001 : vector<4x16xf32>
    %1016 = arith.addf %986, %1015 : vector<4x16xf32>
    %cst_342 = arith.constant 0.0406901054 : f32
    %1017 = vector.broadcast %cst_342 : f32 to vector<4x16xf32>
    %1018 = arith.mulf %1017, %1013 : vector<4x16xf32>
    %1019 = arith.addf %989, %1018 : vector<4x16xf32>
    %cst_343 = arith.constant 0.184537411 : f32
    %1020 = vector.broadcast %cst_343 : f32 to vector<4x16xf32>
    %1021 = arith.mulf %1020, %944 : vector<4x16xf32>
    %cst_344 = arith.constant -0.724737107 : f32
    %1022 = vector.broadcast %cst_344 : f32 to vector<4x16xf32>
    %1023 = arith.mulf %1022, %959 : vector<4x16xf32>
    %1024 = arith.addf %1021, %1023 : vector<4x16xf32>
    %cst_345 = arith.constant 0.613930821 : f32
    %1025 = vector.broadcast %cst_345 : f32 to vector<4x16xf32>
    %1026 = arith.mulf %1025, %974 : vector<4x16xf32>
    %1027 = arith.addf %1024, %1026 : vector<4x16xf32>
    %cst_346 = arith.constant -0.0181755833 : f32
    %1028 = vector.broadcast %cst_346 : f32 to vector<4x16xf32>
    %1029 = arith.mulf %1028, %1001 : vector<4x16xf32>
    %1030 = arith.addf %1027, %1029 : vector<4x16xf32>
    %1031 = arith.addf %938, %1030 : vector<4x16xf32>
    %cst_347 = arith.constant dense<0.000000e+00> : vector<4x16xf32>
    %1032 = tpu.matmul %1031, %0, %cst_347 {dimension_numbers = #tpu.dot_dimension_numbers<[1], [0], [0], [1], [0, 0, 1, 1], [], []>} : vector<4x16xf32>, vector<16x16xf32>, vector<4x16xf32> -> vector<4x16xf32>
    %1033 = arith.addf %1032, %3 : vector<4x16xf32>
    %1034 = math.tanh %1033 : vector<4x16xf32>
    %cst_348 = arith.constant 0.184537411 : f32
    %1035 = vector.broadcast %cst_348 : f32 to vector<4x16xf32>
    %1036 = arith.mulf %1035, %947 : vector<4x16xf32>
    %cst_349 = arith.constant -0.724737107 : f32
    %1037 = vector.broadcast %cst_349 : f32 to vector<4x16xf32>
    %1038 = arith.mulf %1037, %965 : vector<4x16xf32>
    %1039 = arith.addf %1036, %1038 : vector<4x16xf32>
    %cst_350 = arith.constant 0.613930821 : f32
    %1040 = vector.broadcast %cst_350 : f32 to vector<4x16xf32>
    %1041 = arith.mulf %1040, %983 : vector<4x16xf32>
    %1042 = arith.addf %1039, %1041 : vector<4x16xf32>
    %cst_351 = arith.constant -0.0181755833 : f32
    %1043 = vector.broadcast %cst_351 : f32 to vector<4x16xf32>
    %1044 = arith.mulf %1043, %1013 : vector<4x16xf32>
    %1045 = arith.addf %1042, %1044 : vector<4x16xf32>
    %1046 = arith.addf %941, %1045 : vector<4x16xf32>
    %cst_352 = arith.constant dense<0.000000e+00> : vector<4x16xf32>
    %1047 = tpu.matmul %1046, %0, %cst_352 {dimension_numbers = #tpu.dot_dimension_numbers<[1], [0], [0], [1], [0, 0, 1, 1], [], []>} : vector<4x16xf32>, vector<16x16xf32>, vector<4x16xf32> -> vector<4x16xf32>
    %1048 = arith.addf %1047, %3 : vector<4x16xf32>
    %1049 = math.tanh %1048 : vector<4x16xf32>
    %cst_353 = arith.constant -0.020148512 : f32
    %1050 = vector.broadcast %cst_353 : f32 to vector<4x16xf32>
    %1051 = arith.mulf %1050, %1034 : vector<4x16xf32>
    %1052 = arith.addf %1016, %1051 : vector<4x16xf32>
    %cst_354 = arith.constant -0.020148512 : f32
    %1053 = vector.broadcast %cst_354 : f32 to vector<4x16xf32>
    %1054 = arith.mulf %1053, %1049 : vector<4x16xf32>
    %1055 = arith.addf %1019, %1054 : vector<4x16xf32>
    %cst_355 = arith.constant 0.177892208 : f32
    %1056 = vector.broadcast %cst_355 : f32 to vector<4x16xf32>
    %1057 = arith.mulf %1056, %944 : vector<4x16xf32>
    %cst_356 = arith.constant -0.672348499 : f32
    %1058 = vector.broadcast %cst_356 : f32 to vector<4x16xf32>
    %1059 = arith.mulf %1058, %959 : vector<4x16xf32>
    %1060 = arith.addf %1057, %1059 : vector<4x16xf32>
    %cst_357 = arith.constant 0.556651413 : f32
    %1061 = vector.broadcast %cst_357 : f32 to vector<4x16xf32>
    %1062 = arith.mulf %1061, %974 : vector<4x16xf32>
    %1063 = arith.addf %1060, %1062 : vector<4x16xf32>
    %cst_358 = arith.constant 0.0174005684 : f32
    %1064 = vector.broadcast %cst_358 : f32 to vector<4x16xf32>
    %1065 = arith.mulf %1064, %1001 : vector<4x16xf32>
    %1066 = arith.addf %1063, %1065 : vector<4x16xf32>
    %cst_359 = arith.constant -0.0170957074 : f32
    %1067 = vector.broadcast %cst_359 : f32 to vector<4x16xf32>
    %1068 = arith.mulf %1067, %1034 : vector<4x16xf32>
    %1069 = arith.addf %1066, %1068 : vector<4x16xf32>
    %1070 = arith.addf %938, %1069 : vector<4x16xf32>
    %cst_360 = arith.constant dense<0.000000e+00> : vector<4x16xf32>
    %1071 = tpu.matmul %1070, %0, %cst_360 {dimension_numbers = #tpu.dot_dimension_numbers<[1], [0], [0], [1], [0, 0, 1, 1], [], []>} : vector<4x16xf32>, vector<16x16xf32>, vector<4x16xf32> -> vector<4x16xf32>
    %1072 = arith.addf %1071, %3 : vector<4x16xf32>
    %1073 = math.tanh %1072 : vector<4x16xf32>
    %cst_361 = arith.constant 0.177892208 : f32
    %1074 = vector.broadcast %cst_361 : f32 to vector<4x16xf32>
    %1075 = arith.mulf %1074, %947 : vector<4x16xf32>
    %cst_362 = arith.constant -0.672348499 : f32
    %1076 = vector.broadcast %cst_362 : f32 to vector<4x16xf32>
    %1077 = arith.mulf %1076, %965 : vector<4x16xf32>
    %1078 = arith.addf %1075, %1077 : vector<4x16xf32>
    %cst_363 = arith.constant 0.556651413 : f32
    %1079 = vector.broadcast %cst_363 : f32 to vector<4x16xf32>
    %1080 = arith.mulf %1079, %983 : vector<4x16xf32>
    %1081 = arith.addf %1078, %1080 : vector<4x16xf32>
    %cst_364 = arith.constant 0.0174005684 : f32
    %1082 = vector.broadcast %cst_364 : f32 to vector<4x16xf32>
    %1083 = arith.mulf %1082, %1013 : vector<4x16xf32>
    %1084 = arith.addf %1081, %1083 : vector<4x16xf32>
    %cst_365 = arith.constant -0.0170957074 : f32
    %1085 = vector.broadcast %cst_365 : f32 to vector<4x16xf32>
    %1086 = arith.mulf %1085, %1049 : vector<4x16xf32>
    %1087 = arith.addf %1084, %1086 : vector<4x16xf32>
    %1088 = arith.addf %941, %1087 : vector<4x16xf32>
    %cst_366 = arith.constant dense<0.000000e+00> : vector<4x16xf32>
    %1089 = tpu.matmul %1088, %0, %cst_366 {dimension_numbers = #tpu.dot_dimension_numbers<[1], [0], [0], [1], [0, 0, 1, 1], [], []>} : vector<4x16xf32>, vector<16x16xf32>, vector<4x16xf32> -> vector<4x16xf32>
    %1090 = arith.addf %1089, %3 : vector<4x16xf32>
    %1091 = math.tanh %1090 : vector<4x16xf32>
    %cst_367 = arith.constant 0.00818452425 : f32
    %1092 = vector.broadcast %cst_367 : f32 to vector<4x16xf32>
    %1093 = arith.mulf %1092, %1073 : vector<4x16xf32>
    %1094 = arith.addf %1052, %1093 : vector<4x16xf32>
    %cst_368 = arith.constant 0.00818452425 : f32
    %1095 = vector.broadcast %cst_368 : f32 to vector<4x16xf32>
    %1096 = arith.mulf %1095, %1091 : vector<4x16xf32>
    %1097 = arith.addf %1055, %1096 : vector<4x16xf32>
    %c7_i32 = arith.constant 7 : i32
    %cst_369 = arith.constant dense<0.000000e+00> : vector<4x16xf32>
    %1098 = tpu.matmul %1094, %0, %cst_369 {dimension_numbers = #tpu.dot_dimension_numbers<[1], [0], [0], [1], [0, 0, 1, 1], [], []>} : vector<4x16xf32>, vector<16x16xf32>, vector<4x16xf32> -> vector<4x16xf32>
    %1099 = arith.addf %1098, %3 : vector<4x16xf32>
    %1100 = math.tanh %1099 : vector<4x16xf32>
    %cst_370 = arith.constant dense<0.000000e+00> : vector<4x16xf32>
    %1101 = tpu.matmul %1097, %0, %cst_370 {dimension_numbers = #tpu.dot_dimension_numbers<[1], [0], [0], [1], [0, 0, 1, 1], [], []>} : vector<4x16xf32>, vector<16x16xf32>, vector<4x16xf32> -> vector<4x16xf32>
    %1102 = arith.addf %1101, %3 : vector<4x16xf32>
    %1103 = math.tanh %1102 : vector<4x16xf32>
    %cst_371 = arith.constant 0.00569661474 : f32
    %1104 = vector.broadcast %cst_371 : f32 to vector<4x16xf32>
    %1105 = arith.mulf %1104, %1100 : vector<4x16xf32>
    %1106 = arith.addf %1094, %1105 : vector<4x16xf32>
    %cst_372 = arith.constant 0.00569661474 : f32
    %1107 = vector.broadcast %cst_372 : f32 to vector<4x16xf32>
    %1108 = arith.mulf %1107, %1103 : vector<4x16xf32>
    %1109 = arith.addf %1097, %1108 : vector<4x16xf32>
    %cst_373 = arith.constant 1.250000e-02 : f32
    %1110 = vector.broadcast %cst_373 : f32 to vector<4x16xf32>
    %1111 = arith.mulf %1110, %1100 : vector<4x16xf32>
    %1112 = arith.addf %1094, %1111 : vector<4x16xf32>
    %cst_374 = arith.constant dense<0.000000e+00> : vector<4x16xf32>
    %1113 = tpu.matmul %1112, %0, %cst_374 {dimension_numbers = #tpu.dot_dimension_numbers<[1], [0], [0], [1], [0, 0, 1, 1], [], []>} : vector<4x16xf32>, vector<16x16xf32>, vector<4x16xf32> -> vector<4x16xf32>
    %1114 = arith.addf %1113, %3 : vector<4x16xf32>
    %1115 = math.tanh %1114 : vector<4x16xf32>
    %cst_375 = arith.constant 1.250000e-02 : f32
    %1116 = vector.broadcast %cst_375 : f32 to vector<4x16xf32>
    %1117 = arith.mulf %1116, %1103 : vector<4x16xf32>
    %1118 = arith.addf %1097, %1117 : vector<4x16xf32>
    %cst_376 = arith.constant dense<0.000000e+00> : vector<4x16xf32>
    %1119 = tpu.matmul %1118, %0, %cst_376 {dimension_numbers = #tpu.dot_dimension_numbers<[1], [0], [0], [1], [0, 0, 1, 1], [], []>} : vector<4x16xf32>, vector<16x16xf32>, vector<4x16xf32> -> vector<4x16xf32>
    %1120 = arith.addf %1119, %3 : vector<4x16xf32>
    %1121 = math.tanh %1120 : vector<4x16xf32>
    %cst_377 = arith.constant 4.687500e-03 : f32
    %1122 = vector.broadcast %cst_377 : f32 to vector<4x16xf32>
    %1123 = arith.mulf %1122, %1100 : vector<4x16xf32>
    %cst_378 = arith.constant 1.406250e-02 : f32
    %1124 = vector.broadcast %cst_378 : f32 to vector<4x16xf32>
    %1125 = arith.mulf %1124, %1115 : vector<4x16xf32>
    %1126 = arith.addf %1123, %1125 : vector<4x16xf32>
    %1127 = arith.addf %1094, %1126 : vector<4x16xf32>
    %cst_379 = arith.constant dense<0.000000e+00> : vector<4x16xf32>
    %1128 = tpu.matmul %1127, %0, %cst_379 {dimension_numbers = #tpu.dot_dimension_numbers<[1], [0], [0], [1], [0, 0, 1, 1], [], []>} : vector<4x16xf32>, vector<16x16xf32>, vector<4x16xf32> -> vector<4x16xf32>
    %1129 = arith.addf %1128, %3 : vector<4x16xf32>
    %1130 = math.tanh %1129 : vector<4x16xf32>
    %cst_380 = arith.constant 4.687500e-03 : f32
    %1131 = vector.broadcast %cst_380 : f32 to vector<4x16xf32>
    %1132 = arith.mulf %1131, %1103 : vector<4x16xf32>
    %cst_381 = arith.constant 1.406250e-02 : f32
    %1133 = vector.broadcast %cst_381 : f32 to vector<4x16xf32>
    %1134 = arith.mulf %1133, %1121 : vector<4x16xf32>
    %1135 = arith.addf %1132, %1134 : vector<4x16xf32>
    %1136 = arith.addf %1097, %1135 : vector<4x16xf32>
    %cst_382 = arith.constant dense<0.000000e+00> : vector<4x16xf32>
    %1137 = tpu.matmul %1136, %0, %cst_382 {dimension_numbers = #tpu.dot_dimension_numbers<[1], [0], [0], [1], [0, 0, 1, 1], [], []>} : vector<4x16xf32>, vector<16x16xf32>, vector<4x16xf32> -> vector<4x16xf32>
    %1138 = arith.addf %1137, %3 : vector<4x16xf32>
    %1139 = math.tanh %1138 : vector<4x16xf32>
    %cst_383 = arith.constant 0.028077269 : f32
    %1140 = vector.broadcast %cst_383 : f32 to vector<4x16xf32>
    %1141 = arith.mulf %1140, %1130 : vector<4x16xf32>
    %1142 = arith.addf %1106, %1141 : vector<4x16xf32>
    %cst_384 = arith.constant 0.028077269 : f32
    %1143 = vector.broadcast %cst_384 : f32 to vector<4x16xf32>
    %1144 = arith.mulf %1143, %1139 : vector<4x16xf32>
    %1145 = arith.addf %1109, %1144 : vector<4x16xf32>
    %cst_385 = arith.constant 0.0611111112 : f32
    %1146 = vector.broadcast %cst_385 : f32 to vector<4x16xf32>
    %1147 = arith.mulf %1146, %1100 : vector<4x16xf32>
    %cst_386 = arith.constant -0.233333334 : f32
    %1148 = vector.broadcast %cst_386 : f32 to vector<4x16xf32>
    %1149 = arith.mulf %1148, %1115 : vector<4x16xf32>
    %1150 = arith.addf %1147, %1149 : vector<4x16xf32>
    %cst_387 = arith.constant 0.222222224 : f32
    %1151 = vector.broadcast %cst_387 : f32 to vector<4x16xf32>
    %1152 = arith.mulf %1151, %1130 : vector<4x16xf32>
    %1153 = arith.addf %1150, %1152 : vector<4x16xf32>
    %1154 = arith.addf %1094, %1153 : vector<4x16xf32>
    %cst_388 = arith.constant dense<0.000000e+00> : vector<4x16xf32>
    %1155 = tpu.matmul %1154, %0, %cst_388 {dimension_numbers = #tpu.dot_dimension_numbers<[1], [0], [0], [1], [0, 0, 1, 1], [], []>} : vector<4x16xf32>, vector<16x16xf32>, vector<4x16xf32> -> vector<4x16xf32>
    %1156 = arith.addf %1155, %3 : vector<4x16xf32>
    %1157 = math.tanh %1156 : vector<4x16xf32>
    %cst_389 = arith.constant 0.0611111112 : f32
    %1158 = vector.broadcast %cst_389 : f32 to vector<4x16xf32>
    %1159 = arith.mulf %1158, %1103 : vector<4x16xf32>
    %cst_390 = arith.constant -0.233333334 : f32
    %1160 = vector.broadcast %cst_390 : f32 to vector<4x16xf32>
    %1161 = arith.mulf %1160, %1121 : vector<4x16xf32>
    %1162 = arith.addf %1159, %1161 : vector<4x16xf32>
    %cst_391 = arith.constant 0.222222224 : f32
    %1163 = vector.broadcast %cst_391 : f32 to vector<4x16xf32>
    %1164 = arith.mulf %1163, %1139 : vector<4x16xf32>
    %1165 = arith.addf %1162, %1164 : vector<4x16xf32>
    %1166 = arith.addf %1097, %1165 : vector<4x16xf32>
    %cst_392 = arith.constant dense<0.000000e+00> : vector<4x16xf32>
    %1167 = tpu.matmul %1166, %0, %cst_392 {dimension_numbers = #tpu.dot_dimension_numbers<[1], [0], [0], [1], [0, 0, 1, 1], [], []>} : vector<4x16xf32>, vector<16x16xf32>, vector<4x16xf32> -> vector<4x16xf32>
    %1168 = arith.addf %1167, %3 : vector<4x16xf32>
    %1169 = math.tanh %1168 : vector<4x16xf32>
    %cst_393 = arith.constant 0.0406901054 : f32
    %1170 = vector.broadcast %cst_393 : f32 to vector<4x16xf32>
    %1171 = arith.mulf %1170, %1157 : vector<4x16xf32>
    %1172 = arith.addf %1142, %1171 : vector<4x16xf32>
    %cst_394 = arith.constant 0.0406901054 : f32
    %1173 = vector.broadcast %cst_394 : f32 to vector<4x16xf32>
    %1174 = arith.mulf %1173, %1169 : vector<4x16xf32>
    %1175 = arith.addf %1145, %1174 : vector<4x16xf32>
    %cst_395 = arith.constant 0.184537411 : f32
    %1176 = vector.broadcast %cst_395 : f32 to vector<4x16xf32>
    %1177 = arith.mulf %1176, %1100 : vector<4x16xf32>
    %cst_396 = arith.constant -0.724737107 : f32
    %1178 = vector.broadcast %cst_396 : f32 to vector<4x16xf32>
    %1179 = arith.mulf %1178, %1115 : vector<4x16xf32>
    %1180 = arith.addf %1177, %1179 : vector<4x16xf32>
    %cst_397 = arith.constant 0.613930821 : f32
    %1181 = vector.broadcast %cst_397 : f32 to vector<4x16xf32>
    %1182 = arith.mulf %1181, %1130 : vector<4x16xf32>
    %1183 = arith.addf %1180, %1182 : vector<4x16xf32>
    %cst_398 = arith.constant -0.0181755833 : f32
    %1184 = vector.broadcast %cst_398 : f32 to vector<4x16xf32>
    %1185 = arith.mulf %1184, %1157 : vector<4x16xf32>
    %1186 = arith.addf %1183, %1185 : vector<4x16xf32>
    %1187 = arith.addf %1094, %1186 : vector<4x16xf32>
    %cst_399 = arith.constant dense<0.000000e+00> : vector<4x16xf32>
    %1188 = tpu.matmul %1187, %0, %cst_399 {dimension_numbers = #tpu.dot_dimension_numbers<[1], [0], [0], [1], [0, 0, 1, 1], [], []>} : vector<4x16xf32>, vector<16x16xf32>, vector<4x16xf32> -> vector<4x16xf32>
    %1189 = arith.addf %1188, %3 : vector<4x16xf32>
    %1190 = math.tanh %1189 : vector<4x16xf32>
    %cst_400 = arith.constant 0.184537411 : f32
    %1191 = vector.broadcast %cst_400 : f32 to vector<4x16xf32>
    %1192 = arith.mulf %1191, %1103 : vector<4x16xf32>
    %cst_401 = arith.constant -0.724737107 : f32
    %1193 = vector.broadcast %cst_401 : f32 to vector<4x16xf32>
    %1194 = arith.mulf %1193, %1121 : vector<4x16xf32>
    %1195 = arith.addf %1192, %1194 : vector<4x16xf32>
    %cst_402 = arith.constant 0.613930821 : f32
    %1196 = vector.broadcast %cst_402 : f32 to vector<4x16xf32>
    %1197 = arith.mulf %1196, %1139 : vector<4x16xf32>
    %1198 = arith.addf %1195, %1197 : vector<4x16xf32>
    %cst_403 = arith.constant -0.0181755833 : f32
    %1199 = vector.broadcast %cst_403 : f32 to vector<4x16xf32>
    %1200 = arith.mulf %1199, %1169 : vector<4x16xf32>
    %1201 = arith.addf %1198, %1200 : vector<4x16xf32>
    %1202 = arith.addf %1097, %1201 : vector<4x16xf32>
    %cst_404 = arith.constant dense<0.000000e+00> : vector<4x16xf32>
    %1203 = tpu.matmul %1202, %0, %cst_404 {dimension_numbers = #tpu.dot_dimension_numbers<[1], [0], [0], [1], [0, 0, 1, 1], [], []>} : vector<4x16xf32>, vector<16x16xf32>, vector<4x16xf32> -> vector<4x16xf32>
    %1204 = arith.addf %1203, %3 : vector<4x16xf32>
    %1205 = math.tanh %1204 : vector<4x16xf32>
    %cst_405 = arith.constant -0.020148512 : f32
    %1206 = vector.broadcast %cst_405 : f32 to vector<4x16xf32>
    %1207 = arith.mulf %1206, %1190 : vector<4x16xf32>
    %1208 = arith.addf %1172, %1207 : vector<4x16xf32>
    %cst_406 = arith.constant -0.020148512 : f32
    %1209 = vector.broadcast %cst_406 : f32 to vector<4x16xf32>
    %1210 = arith.mulf %1209, %1205 : vector<4x16xf32>
    %1211 = arith.addf %1175, %1210 : vector<4x16xf32>
    %cst_407 = arith.constant 0.177892208 : f32
    %1212 = vector.broadcast %cst_407 : f32 to vector<4x16xf32>
    %1213 = arith.mulf %1212, %1100 : vector<4x16xf32>
    %cst_408 = arith.constant -0.672348499 : f32
    %1214 = vector.broadcast %cst_408 : f32 to vector<4x16xf32>
    %1215 = arith.mulf %1214, %1115 : vector<4x16xf32>
    %1216 = arith.addf %1213, %1215 : vector<4x16xf32>
    %cst_409 = arith.constant 0.556651413 : f32
    %1217 = vector.broadcast %cst_409 : f32 to vector<4x16xf32>
    %1218 = arith.mulf %1217, %1130 : vector<4x16xf32>
    %1219 = arith.addf %1216, %1218 : vector<4x16xf32>
    %cst_410 = arith.constant 0.0174005684 : f32
    %1220 = vector.broadcast %cst_410 : f32 to vector<4x16xf32>
    %1221 = arith.mulf %1220, %1157 : vector<4x16xf32>
    %1222 = arith.addf %1219, %1221 : vector<4x16xf32>
    %cst_411 = arith.constant -0.0170957074 : f32
    %1223 = vector.broadcast %cst_411 : f32 to vector<4x16xf32>
    %1224 = arith.mulf %1223, %1190 : vector<4x16xf32>
    %1225 = arith.addf %1222, %1224 : vector<4x16xf32>
    %1226 = arith.addf %1094, %1225 : vector<4x16xf32>
    %cst_412 = arith.constant dense<0.000000e+00> : vector<4x16xf32>
    %1227 = tpu.matmul %1226, %0, %cst_412 {dimension_numbers = #tpu.dot_dimension_numbers<[1], [0], [0], [1], [0, 0, 1, 1], [], []>} : vector<4x16xf32>, vector<16x16xf32>, vector<4x16xf32> -> vector<4x16xf32>
    %1228 = arith.addf %1227, %3 : vector<4x16xf32>
    %1229 = math.tanh %1228 : vector<4x16xf32>
    %cst_413 = arith.constant 0.177892208 : f32
    %1230 = vector.broadcast %cst_413 : f32 to vector<4x16xf32>
    %1231 = arith.mulf %1230, %1103 : vector<4x16xf32>
    %cst_414 = arith.constant -0.672348499 : f32
    %1232 = vector.broadcast %cst_414 : f32 to vector<4x16xf32>
    %1233 = arith.mulf %1232, %1121 : vector<4x16xf32>
    %1234 = arith.addf %1231, %1233 : vector<4x16xf32>
    %cst_415 = arith.constant 0.556651413 : f32
    %1235 = vector.broadcast %cst_415 : f32 to vector<4x16xf32>
    %1236 = arith.mulf %1235, %1139 : vector<4x16xf32>
    %1237 = arith.addf %1234, %1236 : vector<4x16xf32>
    %cst_416 = arith.constant 0.0174005684 : f32
    %1238 = vector.broadcast %cst_416 : f32 to vector<4x16xf32>
    %1239 = arith.mulf %1238, %1169 : vector<4x16xf32>
    %1240 = arith.addf %1237, %1239 : vector<4x16xf32>
    %cst_417 = arith.constant -0.0170957074 : f32
    %1241 = vector.broadcast %cst_417 : f32 to vector<4x16xf32>
    %1242 = arith.mulf %1241, %1205 : vector<4x16xf32>
    %1243 = arith.addf %1240, %1242 : vector<4x16xf32>
    %1244 = arith.addf %1097, %1243 : vector<4x16xf32>
    %cst_418 = arith.constant dense<0.000000e+00> : vector<4x16xf32>
    %1245 = tpu.matmul %1244, %0, %cst_418 {dimension_numbers = #tpu.dot_dimension_numbers<[1], [0], [0], [1], [0, 0, 1, 1], [], []>} : vector<4x16xf32>, vector<16x16xf32>, vector<4x16xf32> -> vector<4x16xf32>
    %1246 = arith.addf %1245, %3 : vector<4x16xf32>
    %1247 = math.tanh %1246 : vector<4x16xf32>
    %cst_419 = arith.constant 0.00818452425 : f32
    %1248 = vector.broadcast %cst_419 : f32 to vector<4x16xf32>
    %1249 = arith.mulf %1248, %1229 : vector<4x16xf32>
    %1250 = arith.addf %1208, %1249 : vector<4x16xf32>
    %cst_420 = arith.constant 0.00818452425 : f32
    %1251 = vector.broadcast %cst_420 : f32 to vector<4x16xf32>
    %1252 = arith.mulf %1251, %1247 : vector<4x16xf32>
    %1253 = arith.addf %1211, %1252 : vector<4x16xf32>
    %c8_i32 = arith.constant 8 : i32
    %cst_421 = arith.constant dense<0.000000e+00> : vector<4x16xf32>
    %1254 = tpu.matmul %1250, %0, %cst_421 {dimension_numbers = #tpu.dot_dimension_numbers<[1], [0], [0], [1], [0, 0, 1, 1], [], []>} : vector<4x16xf32>, vector<16x16xf32>, vector<4x16xf32> -> vector<4x16xf32>
    %1255 = arith.addf %1254, %3 : vector<4x16xf32>
    %1256 = math.tanh %1255 : vector<4x16xf32>
    %cst_422 = arith.constant dense<0.000000e+00> : vector<4x16xf32>
    %1257 = tpu.matmul %1253, %0, %cst_422 {dimension_numbers = #tpu.dot_dimension_numbers<[1], [0], [0], [1], [0, 0, 1, 1], [], []>} : vector<4x16xf32>, vector<16x16xf32>, vector<4x16xf32> -> vector<4x16xf32>
    %1258 = arith.addf %1257, %3 : vector<4x16xf32>
    %1259 = math.tanh %1258 : vector<4x16xf32>
    %cst_423 = arith.constant 0.00569661474 : f32
    %1260 = vector.broadcast %cst_423 : f32 to vector<4x16xf32>
    %1261 = arith.mulf %1260, %1256 : vector<4x16xf32>
    %1262 = arith.addf %1250, %1261 : vector<4x16xf32>
    %cst_424 = arith.constant 0.00569661474 : f32
    %1263 = vector.broadcast %cst_424 : f32 to vector<4x16xf32>
    %1264 = arith.mulf %1263, %1259 : vector<4x16xf32>
    %1265 = arith.addf %1253, %1264 : vector<4x16xf32>
    %cst_425 = arith.constant 1.250000e-02 : f32
    %1266 = vector.broadcast %cst_425 : f32 to vector<4x16xf32>
    %1267 = arith.mulf %1266, %1256 : vector<4x16xf32>
    %1268 = arith.addf %1250, %1267 : vector<4x16xf32>
    %cst_426 = arith.constant dense<0.000000e+00> : vector<4x16xf32>
    %1269 = tpu.matmul %1268, %0, %cst_426 {dimension_numbers = #tpu.dot_dimension_numbers<[1], [0], [0], [1], [0, 0, 1, 1], [], []>} : vector<4x16xf32>, vector<16x16xf32>, vector<4x16xf32> -> vector<4x16xf32>
    %1270 = arith.addf %1269, %3 : vector<4x16xf32>
    %1271 = math.tanh %1270 : vector<4x16xf32>
    %cst_427 = arith.constant 1.250000e-02 : f32
    %1272 = vector.broadcast %cst_427 : f32 to vector<4x16xf32>
    %1273 = arith.mulf %1272, %1259 : vector<4x16xf32>
    %1274 = arith.addf %1253, %1273 : vector<4x16xf32>
    %cst_428 = arith.constant dense<0.000000e+00> : vector<4x16xf32>
    %1275 = tpu.matmul %1274, %0, %cst_428 {dimension_numbers = #tpu.dot_dimension_numbers<[1], [0], [0], [1], [0, 0, 1, 1], [], []>} : vector<4x16xf32>, vector<16x16xf32>, vector<4x16xf32> -> vector<4x16xf32>
    %1276 = arith.addf %1275, %3 : vector<4x16xf32>
    %1277 = math.tanh %1276 : vector<4x16xf32>
    %cst_429 = arith.constant 4.687500e-03 : f32
    %1278 = vector.broadcast %cst_429 : f32 to vector<4x16xf32>
    %1279 = arith.mulf %1278, %1256 : vector<4x16xf32>
    %cst_430 = arith.constant 1.406250e-02 : f32
    %1280 = vector.broadcast %cst_430 : f32 to vector<4x16xf32>
    %1281 = arith.mulf %1280, %1271 : vector<4x16xf32>
    %1282 = arith.addf %1279, %1281 : vector<4x16xf32>
    %1283 = arith.addf %1250, %1282 : vector<4x16xf32>
    %cst_431 = arith.constant dense<0.000000e+00> : vector<4x16xf32>
    %1284 = tpu.matmul %1283, %0, %cst_431 {dimension_numbers = #tpu.dot_dimension_numbers<[1], [0], [0], [1], [0, 0, 1, 1], [], []>} : vector<4x16xf32>, vector<16x16xf32>, vector<4x16xf32> -> vector<4x16xf32>
    %1285 = arith.addf %1284, %3 : vector<4x16xf32>
    %1286 = math.tanh %1285 : vector<4x16xf32>
    %cst_432 = arith.constant 4.687500e-03 : f32
    %1287 = vector.broadcast %cst_432 : f32 to vector<4x16xf32>
    %1288 = arith.mulf %1287, %1259 : vector<4x16xf32>
    %cst_433 = arith.constant 1.406250e-02 : f32
    %1289 = vector.broadcast %cst_433 : f32 to vector<4x16xf32>
    %1290 = arith.mulf %1289, %1277 : vector<4x16xf32>
    %1291 = arith.addf %1288, %1290 : vector<4x16xf32>
    %1292 = arith.addf %1253, %1291 : vector<4x16xf32>
    %cst_434 = arith.constant dense<0.000000e+00> : vector<4x16xf32>
    %1293 = tpu.matmul %1292, %0, %cst_434 {dimension_numbers = #tpu.dot_dimension_numbers<[1], [0], [0], [1], [0, 0, 1, 1], [], []>} : vector<4x16xf32>, vector<16x16xf32>, vector<4x16xf32> -> vector<4x16xf32>
    %1294 = arith.addf %1293, %3 : vector<4x16xf32>
    %1295 = math.tanh %1294 : vector<4x16xf32>
    %cst_435 = arith.constant 0.028077269 : f32
    %1296 = vector.broadcast %cst_435 : f32 to vector<4x16xf32>
    %1297 = arith.mulf %1296, %1286 : vector<4x16xf32>
    %1298 = arith.addf %1262, %1297 : vector<4x16xf32>
    %cst_436 = arith.constant 0.028077269 : f32
    %1299 = vector.broadcast %cst_436 : f32 to vector<4x16xf32>
    %1300 = arith.mulf %1299, %1295 : vector<4x16xf32>
    %1301 = arith.addf %1265, %1300 : vector<4x16xf32>
    %cst_437 = arith.constant 0.0611111112 : f32
    %1302 = vector.broadcast %cst_437 : f32 to vector<4x16xf32>
    %1303 = arith.mulf %1302, %1256 : vector<4x16xf32>
    %cst_438 = arith.constant -0.233333334 : f32
    %1304 = vector.broadcast %cst_438 : f32 to vector<4x16xf32>
    %1305 = arith.mulf %1304, %1271 : vector<4x16xf32>
    %1306 = arith.addf %1303, %1305 : vector<4x16xf32>
    %cst_439 = arith.constant 0.222222224 : f32
    %1307 = vector.broadcast %cst_439 : f32 to vector<4x16xf32>
    %1308 = arith.mulf %1307, %1286 : vector<4x16xf32>
    %1309 = arith.addf %1306, %1308 : vector<4x16xf32>
    %1310 = arith.addf %1250, %1309 : vector<4x16xf32>
    %cst_440 = arith.constant dense<0.000000e+00> : vector<4x16xf32>
    %1311 = tpu.matmul %1310, %0, %cst_440 {dimension_numbers = #tpu.dot_dimension_numbers<[1], [0], [0], [1], [0, 0, 1, 1], [], []>} : vector<4x16xf32>, vector<16x16xf32>, vector<4x16xf32> -> vector<4x16xf32>
    %1312 = arith.addf %1311, %3 : vector<4x16xf32>
    %1313 = math.tanh %1312 : vector<4x16xf32>
    %cst_441 = arith.constant 0.0611111112 : f32
    %1314 = vector.broadcast %cst_441 : f32 to vector<4x16xf32>
    %1315 = arith.mulf %1314, %1259 : vector<4x16xf32>
    %cst_442 = arith.constant -0.233333334 : f32
    %1316 = vector.broadcast %cst_442 : f32 to vector<4x16xf32>
    %1317 = arith.mulf %1316, %1277 : vector<4x16xf32>
    %1318 = arith.addf %1315, %1317 : vector<4x16xf32>
    %cst_443 = arith.constant 0.222222224 : f32
    %1319 = vector.broadcast %cst_443 : f32 to vector<4x16xf32>
    %1320 = arith.mulf %1319, %1295 : vector<4x16xf32>
    %1321 = arith.addf %1318, %1320 : vector<4x16xf32>
    %1322 = arith.addf %1253, %1321 : vector<4x16xf32>
    %cst_444 = arith.constant dense<0.000000e+00> : vector<4x16xf32>
    %1323 = tpu.matmul %1322, %0, %cst_444 {dimension_numbers = #tpu.dot_dimension_numbers<[1], [0], [0], [1], [0, 0, 1, 1], [], []>} : vector<4x16xf32>, vector<16x16xf32>, vector<4x16xf32> -> vector<4x16xf32>
    %1324 = arith.addf %1323, %3 : vector<4x16xf32>
    %1325 = math.tanh %1324 : vector<4x16xf32>
    %cst_445 = arith.constant 0.0406901054 : f32
    %1326 = vector.broadcast %cst_445 : f32 to vector<4x16xf32>
    %1327 = arith.mulf %1326, %1313 : vector<4x16xf32>
    %1328 = arith.addf %1298, %1327 : vector<4x16xf32>
    %cst_446 = arith.constant 0.0406901054 : f32
    %1329 = vector.broadcast %cst_446 : f32 to vector<4x16xf32>
    %1330 = arith.mulf %1329, %1325 : vector<4x16xf32>
    %1331 = arith.addf %1301, %1330 : vector<4x16xf32>
    %cst_447 = arith.constant 0.184537411 : f32
    %1332 = vector.broadcast %cst_447 : f32 to vector<4x16xf32>
    %1333 = arith.mulf %1332, %1256 : vector<4x16xf32>
    %cst_448 = arith.constant -0.724737107 : f32
    %1334 = vector.broadcast %cst_448 : f32 to vector<4x16xf32>
    %1335 = arith.mulf %1334, %1271 : vector<4x16xf32>
    %1336 = arith.addf %1333, %1335 : vector<4x16xf32>
    %cst_449 = arith.constant 0.613930821 : f32
    %1337 = vector.broadcast %cst_449 : f32 to vector<4x16xf32>
    %1338 = arith.mulf %1337, %1286 : vector<4x16xf32>
    %1339 = arith.addf %1336, %1338 : vector<4x16xf32>
    %cst_450 = arith.constant -0.0181755833 : f32
    %1340 = vector.broadcast %cst_450 : f32 to vector<4x16xf32>
    %1341 = arith.mulf %1340, %1313 : vector<4x16xf32>
    %1342 = arith.addf %1339, %1341 : vector<4x16xf32>
    %1343 = arith.addf %1250, %1342 : vector<4x16xf32>
    %cst_451 = arith.constant dense<0.000000e+00> : vector<4x16xf32>
    %1344 = tpu.matmul %1343, %0, %cst_451 {dimension_numbers = #tpu.dot_dimension_numbers<[1], [0], [0], [1], [0, 0, 1, 1], [], []>} : vector<4x16xf32>, vector<16x16xf32>, vector<4x16xf32> -> vector<4x16xf32>
    %1345 = arith.addf %1344, %3 : vector<4x16xf32>
    %1346 = math.tanh %1345 : vector<4x16xf32>
    %cst_452 = arith.constant 0.184537411 : f32
    %1347 = vector.broadcast %cst_452 : f32 to vector<4x16xf32>
    %1348 = arith.mulf %1347, %1259 : vector<4x16xf32>
    %cst_453 = arith.constant -0.724737107 : f32
    %1349 = vector.broadcast %cst_453 : f32 to vector<4x16xf32>
    %1350 = arith.mulf %1349, %1277 : vector<4x16xf32>
    %1351 = arith.addf %1348, %1350 : vector<4x16xf32>
    %cst_454 = arith.constant 0.613930821 : f32
    %1352 = vector.broadcast %cst_454 : f32 to vector<4x16xf32>
    %1353 = arith.mulf %1352, %1295 : vector<4x16xf32>
    %1354 = arith.addf %1351, %1353 : vector<4x16xf32>
    %cst_455 = arith.constant -0.0181755833 : f32
    %1355 = vector.broadcast %cst_455 : f32 to vector<4x16xf32>
    %1356 = arith.mulf %1355, %1325 : vector<4x16xf32>
    %1357 = arith.addf %1354, %1356 : vector<4x16xf32>
    %1358 = arith.addf %1253, %1357 : vector<4x16xf32>
    %cst_456 = arith.constant dense<0.000000e+00> : vector<4x16xf32>
    %1359 = tpu.matmul %1358, %0, %cst_456 {dimension_numbers = #tpu.dot_dimension_numbers<[1], [0], [0], [1], [0, 0, 1, 1], [], []>} : vector<4x16xf32>, vector<16x16xf32>, vector<4x16xf32> -> vector<4x16xf32>
    %1360 = arith.addf %1359, %3 : vector<4x16xf32>
    %1361 = math.tanh %1360 : vector<4x16xf32>
    %cst_457 = arith.constant -0.020148512 : f32
    %1362 = vector.broadcast %cst_457 : f32 to vector<4x16xf32>
    %1363 = arith.mulf %1362, %1346 : vector<4x16xf32>
    %1364 = arith.addf %1328, %1363 : vector<4x16xf32>
    %cst_458 = arith.constant -0.020148512 : f32
    %1365 = vector.broadcast %cst_458 : f32 to vector<4x16xf32>
    %1366 = arith.mulf %1365, %1361 : vector<4x16xf32>
    %1367 = arith.addf %1331, %1366 : vector<4x16xf32>
    %cst_459 = arith.constant 0.177892208 : f32
    %1368 = vector.broadcast %cst_459 : f32 to vector<4x16xf32>
    %1369 = arith.mulf %1368, %1256 : vector<4x16xf32>
    %cst_460 = arith.constant -0.672348499 : f32
    %1370 = vector.broadcast %cst_460 : f32 to vector<4x16xf32>
    %1371 = arith.mulf %1370, %1271 : vector<4x16xf32>
    %1372 = arith.addf %1369, %1371 : vector<4x16xf32>
    %cst_461 = arith.constant 0.556651413 : f32
    %1373 = vector.broadcast %cst_461 : f32 to vector<4x16xf32>
    %1374 = arith.mulf %1373, %1286 : vector<4x16xf32>
    %1375 = arith.addf %1372, %1374 : vector<4x16xf32>
    %cst_462 = arith.constant 0.0174005684 : f32
    %1376 = vector.broadcast %cst_462 : f32 to vector<4x16xf32>
    %1377 = arith.mulf %1376, %1313 : vector<4x16xf32>
    %1378 = arith.addf %1375, %1377 : vector<4x16xf32>
    %cst_463 = arith.constant -0.0170957074 : f32
    %1379 = vector.broadcast %cst_463 : f32 to vector<4x16xf32>
    %1380 = arith.mulf %1379, %1346 : vector<4x16xf32>
    %1381 = arith.addf %1378, %1380 : vector<4x16xf32>
    %1382 = arith.addf %1250, %1381 : vector<4x16xf32>
    %cst_464 = arith.constant dense<0.000000e+00> : vector<4x16xf32>
    %1383 = tpu.matmul %1382, %0, %cst_464 {dimension_numbers = #tpu.dot_dimension_numbers<[1], [0], [0], [1], [0, 0, 1, 1], [], []>} : vector<4x16xf32>, vector<16x16xf32>, vector<4x16xf32> -> vector<4x16xf32>
    %1384 = arith.addf %1383, %3 : vector<4x16xf32>
    %1385 = math.tanh %1384 : vector<4x16xf32>
    %cst_465 = arith.constant 0.177892208 : f32
    %1386 = vector.broadcast %cst_465 : f32 to vector<4x16xf32>
    %1387 = arith.mulf %1386, %1259 : vector<4x16xf32>
    %cst_466 = arith.constant -0.672348499 : f32
    %1388 = vector.broadcast %cst_466 : f32 to vector<4x16xf32>
    %1389 = arith.mulf %1388, %1277 : vector<4x16xf32>
    %1390 = arith.addf %1387, %1389 : vector<4x16xf32>
    %cst_467 = arith.constant 0.556651413 : f32
    %1391 = vector.broadcast %cst_467 : f32 to vector<4x16xf32>
    %1392 = arith.mulf %1391, %1295 : vector<4x16xf32>
    %1393 = arith.addf %1390, %1392 : vector<4x16xf32>
    %cst_468 = arith.constant 0.0174005684 : f32
    %1394 = vector.broadcast %cst_468 : f32 to vector<4x16xf32>
    %1395 = arith.mulf %1394, %1325 : vector<4x16xf32>
    %1396 = arith.addf %1393, %1395 : vector<4x16xf32>
    %cst_469 = arith.constant -0.0170957074 : f32
    %1397 = vector.broadcast %cst_469 : f32 to vector<4x16xf32>
    %1398 = arith.mulf %1397, %1361 : vector<4x16xf32>
    %1399 = arith.addf %1396, %1398 : vector<4x16xf32>
    %1400 = arith.addf %1253, %1399 : vector<4x16xf32>
    %cst_470 = arith.constant dense<0.000000e+00> : vector<4x16xf32>
    %1401 = tpu.matmul %1400, %0, %cst_470 {dimension_numbers = #tpu.dot_dimension_numbers<[1], [0], [0], [1], [0, 0, 1, 1], [], []>} : vector<4x16xf32>, vector<16x16xf32>, vector<4x16xf32> -> vector<4x16xf32>
    %1402 = arith.addf %1401, %3 : vector<4x16xf32>
    %1403 = math.tanh %1402 : vector<4x16xf32>
    %cst_471 = arith.constant 0.00818452425 : f32
    %1404 = vector.broadcast %cst_471 : f32 to vector<4x16xf32>
    %1405 = arith.mulf %1404, %1385 : vector<4x16xf32>
    %1406 = arith.addf %1364, %1405 : vector<4x16xf32>
    %cst_472 = arith.constant 0.00818452425 : f32
    %1407 = vector.broadcast %cst_472 : f32 to vector<4x16xf32>
    %1408 = arith.mulf %1407, %1403 : vector<4x16xf32>
    %1409 = arith.addf %1367, %1408 : vector<4x16xf32>
    %c9_i32 = arith.constant 9 : i32
    %cst_473 = arith.constant dense<0.000000e+00> : vector<4x16xf32>
    %1410 = tpu.matmul %1406, %0, %cst_473 {dimension_numbers = #tpu.dot_dimension_numbers<[1], [0], [0], [1], [0, 0, 1, 1], [], []>} : vector<4x16xf32>, vector<16x16xf32>, vector<4x16xf32> -> vector<4x16xf32>
    %1411 = arith.addf %1410, %3 : vector<4x16xf32>
    %1412 = math.tanh %1411 : vector<4x16xf32>
    %cst_474 = arith.constant dense<0.000000e+00> : vector<4x16xf32>
    %1413 = tpu.matmul %1409, %0, %cst_474 {dimension_numbers = #tpu.dot_dimension_numbers<[1], [0], [0], [1], [0, 0, 1, 1], [], []>} : vector<4x16xf32>, vector<16x16xf32>, vector<4x16xf32> -> vector<4x16xf32>
    %1414 = arith.addf %1413, %3 : vector<4x16xf32>
    %1415 = math.tanh %1414 : vector<4x16xf32>
    %cst_475 = arith.constant 0.00569661474 : f32
    %1416 = vector.broadcast %cst_475 : f32 to vector<4x16xf32>
    %1417 = arith.mulf %1416, %1412 : vector<4x16xf32>
    %1418 = arith.addf %1406, %1417 : vector<4x16xf32>
    %cst_476 = arith.constant 0.00569661474 : f32
    %1419 = vector.broadcast %cst_476 : f32 to vector<4x16xf32>
    %1420 = arith.mulf %1419, %1415 : vector<4x16xf32>
    %1421 = arith.addf %1409, %1420 : vector<4x16xf32>
    %cst_477 = arith.constant 1.250000e-02 : f32
    %1422 = vector.broadcast %cst_477 : f32 to vector<4x16xf32>
    %1423 = arith.mulf %1422, %1412 : vector<4x16xf32>
    %1424 = arith.addf %1406, %1423 : vector<4x16xf32>
    %cst_478 = arith.constant dense<0.000000e+00> : vector<4x16xf32>
    %1425 = tpu.matmul %1424, %0, %cst_478 {dimension_numbers = #tpu.dot_dimension_numbers<[1], [0], [0], [1], [0, 0, 1, 1], [], []>} : vector<4x16xf32>, vector<16x16xf32>, vector<4x16xf32> -> vector<4x16xf32>
    %1426 = arith.addf %1425, %3 : vector<4x16xf32>
    %1427 = math.tanh %1426 : vector<4x16xf32>
    %cst_479 = arith.constant 1.250000e-02 : f32
    %1428 = vector.broadcast %cst_479 : f32 to vector<4x16xf32>
    %1429 = arith.mulf %1428, %1415 : vector<4x16xf32>
    %1430 = arith.addf %1409, %1429 : vector<4x16xf32>
    %cst_480 = arith.constant dense<0.000000e+00> : vector<4x16xf32>
    %1431 = tpu.matmul %1430, %0, %cst_480 {dimension_numbers = #tpu.dot_dimension_numbers<[1], [0], [0], [1], [0, 0, 1, 1], [], []>} : vector<4x16xf32>, vector<16x16xf32>, vector<4x16xf32> -> vector<4x16xf32>
    %1432 = arith.addf %1431, %3 : vector<4x16xf32>
    %1433 = math.tanh %1432 : vector<4x16xf32>
    %cst_481 = arith.constant 4.687500e-03 : f32
    %1434 = vector.broadcast %cst_481 : f32 to vector<4x16xf32>
    %1435 = arith.mulf %1434, %1412 : vector<4x16xf32>
    %cst_482 = arith.constant 1.406250e-02 : f32
    %1436 = vector.broadcast %cst_482 : f32 to vector<4x16xf32>
    %1437 = arith.mulf %1436, %1427 : vector<4x16xf32>
    %1438 = arith.addf %1435, %1437 : vector<4x16xf32>
    %1439 = arith.addf %1406, %1438 : vector<4x16xf32>
    %cst_483 = arith.constant dense<0.000000e+00> : vector<4x16xf32>
    %1440 = tpu.matmul %1439, %0, %cst_483 {dimension_numbers = #tpu.dot_dimension_numbers<[1], [0], [0], [1], [0, 0, 1, 1], [], []>} : vector<4x16xf32>, vector<16x16xf32>, vector<4x16xf32> -> vector<4x16xf32>
    %1441 = arith.addf %1440, %3 : vector<4x16xf32>
    %1442 = math.tanh %1441 : vector<4x16xf32>
    %cst_484 = arith.constant 4.687500e-03 : f32
    %1443 = vector.broadcast %cst_484 : f32 to vector<4x16xf32>
    %1444 = arith.mulf %1443, %1415 : vector<4x16xf32>
    %cst_485 = arith.constant 1.406250e-02 : f32
    %1445 = vector.broadcast %cst_485 : f32 to vector<4x16xf32>
    %1446 = arith.mulf %1445, %1433 : vector<4x16xf32>
    %1447 = arith.addf %1444, %1446 : vector<4x16xf32>
    %1448 = arith.addf %1409, %1447 : vector<4x16xf32>
    %cst_486 = arith.constant dense<0.000000e+00> : vector<4x16xf32>
    %1449 = tpu.matmul %1448, %0, %cst_486 {dimension_numbers = #tpu.dot_dimension_numbers<[1], [0], [0], [1], [0, 0, 1, 1], [], []>} : vector<4x16xf32>, vector<16x16xf32>, vector<4x16xf32> -> vector<4x16xf32>
    %1450 = arith.addf %1449, %3 : vector<4x16xf32>
    %1451 = math.tanh %1450 : vector<4x16xf32>
    %cst_487 = arith.constant 0.028077269 : f32
    %1452 = vector.broadcast %cst_487 : f32 to vector<4x16xf32>
    %1453 = arith.mulf %1452, %1442 : vector<4x16xf32>
    %1454 = arith.addf %1418, %1453 : vector<4x16xf32>
    %cst_488 = arith.constant 0.028077269 : f32
    %1455 = vector.broadcast %cst_488 : f32 to vector<4x16xf32>
    %1456 = arith.mulf %1455, %1451 : vector<4x16xf32>
    %1457 = arith.addf %1421, %1456 : vector<4x16xf32>
    %cst_489 = arith.constant 0.0611111112 : f32
    %1458 = vector.broadcast %cst_489 : f32 to vector<4x16xf32>
    %1459 = arith.mulf %1458, %1412 : vector<4x16xf32>
    %cst_490 = arith.constant -0.233333334 : f32
    %1460 = vector.broadcast %cst_490 : f32 to vector<4x16xf32>
    %1461 = arith.mulf %1460, %1427 : vector<4x16xf32>
    %1462 = arith.addf %1459, %1461 : vector<4x16xf32>
    %cst_491 = arith.constant 0.222222224 : f32
    %1463 = vector.broadcast %cst_491 : f32 to vector<4x16xf32>
    %1464 = arith.mulf %1463, %1442 : vector<4x16xf32>
    %1465 = arith.addf %1462, %1464 : vector<4x16xf32>
    %1466 = arith.addf %1406, %1465 : vector<4x16xf32>
    %cst_492 = arith.constant dense<0.000000e+00> : vector<4x16xf32>
    %1467 = tpu.matmul %1466, %0, %cst_492 {dimension_numbers = #tpu.dot_dimension_numbers<[1], [0], [0], [1], [0, 0, 1, 1], [], []>} : vector<4x16xf32>, vector<16x16xf32>, vector<4x16xf32> -> vector<4x16xf32>
    %1468 = arith.addf %1467, %3 : vector<4x16xf32>
    %1469 = math.tanh %1468 : vector<4x16xf32>
    %cst_493 = arith.constant 0.0611111112 : f32
    %1470 = vector.broadcast %cst_493 : f32 to vector<4x16xf32>
    %1471 = arith.mulf %1470, %1415 : vector<4x16xf32>
    %cst_494 = arith.constant -0.233333334 : f32
    %1472 = vector.broadcast %cst_494 : f32 to vector<4x16xf32>
    %1473 = arith.mulf %1472, %1433 : vector<4x16xf32>
    %1474 = arith.addf %1471, %1473 : vector<4x16xf32>
    %cst_495 = arith.constant 0.222222224 : f32
    %1475 = vector.broadcast %cst_495 : f32 to vector<4x16xf32>
    %1476 = arith.mulf %1475, %1451 : vector<4x16xf32>
    %1477 = arith.addf %1474, %1476 : vector<4x16xf32>
    %1478 = arith.addf %1409, %1477 : vector<4x16xf32>
    %cst_496 = arith.constant dense<0.000000e+00> : vector<4x16xf32>
    %1479 = tpu.matmul %1478, %0, %cst_496 {dimension_numbers = #tpu.dot_dimension_numbers<[1], [0], [0], [1], [0, 0, 1, 1], [], []>} : vector<4x16xf32>, vector<16x16xf32>, vector<4x16xf32> -> vector<4x16xf32>
    %1480 = arith.addf %1479, %3 : vector<4x16xf32>
    %1481 = math.tanh %1480 : vector<4x16xf32>
    %cst_497 = arith.constant 0.0406901054 : f32
    %1482 = vector.broadcast %cst_497 : f32 to vector<4x16xf32>
    %1483 = arith.mulf %1482, %1469 : vector<4x16xf32>
    %1484 = arith.addf %1454, %1483 : vector<4x16xf32>
    %cst_498 = arith.constant 0.0406901054 : f32
    %1485 = vector.broadcast %cst_498 : f32 to vector<4x16xf32>
    %1486 = arith.mulf %1485, %1481 : vector<4x16xf32>
    %1487 = arith.addf %1457, %1486 : vector<4x16xf32>
    %cst_499 = arith.constant 0.184537411 : f32
    %1488 = vector.broadcast %cst_499 : f32 to vector<4x16xf32>
    %1489 = arith.mulf %1488, %1412 : vector<4x16xf32>
    %cst_500 = arith.constant -0.724737107 : f32
    %1490 = vector.broadcast %cst_500 : f32 to vector<4x16xf32>
    %1491 = arith.mulf %1490, %1427 : vector<4x16xf32>
    %1492 = arith.addf %1489, %1491 : vector<4x16xf32>
    %cst_501 = arith.constant 0.613930821 : f32
    %1493 = vector.broadcast %cst_501 : f32 to vector<4x16xf32>
    %1494 = arith.mulf %1493, %1442 : vector<4x16xf32>
    %1495 = arith.addf %1492, %1494 : vector<4x16xf32>
    %cst_502 = arith.constant -0.0181755833 : f32
    %1496 = vector.broadcast %cst_502 : f32 to vector<4x16xf32>
    %1497 = arith.mulf %1496, %1469 : vector<4x16xf32>
    %1498 = arith.addf %1495, %1497 : vector<4x16xf32>
    %1499 = arith.addf %1406, %1498 : vector<4x16xf32>
    %cst_503 = arith.constant dense<0.000000e+00> : vector<4x16xf32>
    %1500 = tpu.matmul %1499, %0, %cst_503 {dimension_numbers = #tpu.dot_dimension_numbers<[1], [0], [0], [1], [0, 0, 1, 1], [], []>} : vector<4x16xf32>, vector<16x16xf32>, vector<4x16xf32> -> vector<4x16xf32>
    %1501 = arith.addf %1500, %3 : vector<4x16xf32>
    %1502 = math.tanh %1501 : vector<4x16xf32>
    %cst_504 = arith.constant 0.184537411 : f32
    %1503 = vector.broadcast %cst_504 : f32 to vector<4x16xf32>
    %1504 = arith.mulf %1503, %1415 : vector<4x16xf32>
    %cst_505 = arith.constant -0.724737107 : f32
    %1505 = vector.broadcast %cst_505 : f32 to vector<4x16xf32>
    %1506 = arith.mulf %1505, %1433 : vector<4x16xf32>
    %1507 = arith.addf %1504, %1506 : vector<4x16xf32>
    %cst_506 = arith.constant 0.613930821 : f32
    %1508 = vector.broadcast %cst_506 : f32 to vector<4x16xf32>
    %1509 = arith.mulf %1508, %1451 : vector<4x16xf32>
    %1510 = arith.addf %1507, %1509 : vector<4x16xf32>
    %cst_507 = arith.constant -0.0181755833 : f32
    %1511 = vector.broadcast %cst_507 : f32 to vector<4x16xf32>
    %1512 = arith.mulf %1511, %1481 : vector<4x16xf32>
    %1513 = arith.addf %1510, %1512 : vector<4x16xf32>
    %1514 = arith.addf %1409, %1513 : vector<4x16xf32>
    %cst_508 = arith.constant dense<0.000000e+00> : vector<4x16xf32>
    %1515 = tpu.matmul %1514, %0, %cst_508 {dimension_numbers = #tpu.dot_dimension_numbers<[1], [0], [0], [1], [0, 0, 1, 1], [], []>} : vector<4x16xf32>, vector<16x16xf32>, vector<4x16xf32> -> vector<4x16xf32>
    %1516 = arith.addf %1515, %3 : vector<4x16xf32>
    %1517 = math.tanh %1516 : vector<4x16xf32>
    %cst_509 = arith.constant -0.020148512 : f32
    %1518 = vector.broadcast %cst_509 : f32 to vector<4x16xf32>
    %1519 = arith.mulf %1518, %1502 : vector<4x16xf32>
    %1520 = arith.addf %1484, %1519 : vector<4x16xf32>
    %cst_510 = arith.constant -0.020148512 : f32
    %1521 = vector.broadcast %cst_510 : f32 to vector<4x16xf32>
    %1522 = arith.mulf %1521, %1517 : vector<4x16xf32>
    %1523 = arith.addf %1487, %1522 : vector<4x16xf32>
    %cst_511 = arith.constant 0.177892208 : f32
    %1524 = vector.broadcast %cst_511 : f32 to vector<4x16xf32>
    %1525 = arith.mulf %1524, %1412 : vector<4x16xf32>
    %cst_512 = arith.constant -0.672348499 : f32
    %1526 = vector.broadcast %cst_512 : f32 to vector<4x16xf32>
    %1527 = arith.mulf %1526, %1427 : vector<4x16xf32>
    %1528 = arith.addf %1525, %1527 : vector<4x16xf32>
    %cst_513 = arith.constant 0.556651413 : f32
    %1529 = vector.broadcast %cst_513 : f32 to vector<4x16xf32>
    %1530 = arith.mulf %1529, %1442 : vector<4x16xf32>
    %1531 = arith.addf %1528, %1530 : vector<4x16xf32>
    %cst_514 = arith.constant 0.0174005684 : f32
    %1532 = vector.broadcast %cst_514 : f32 to vector<4x16xf32>
    %1533 = arith.mulf %1532, %1469 : vector<4x16xf32>
    %1534 = arith.addf %1531, %1533 : vector<4x16xf32>
    %cst_515 = arith.constant -0.0170957074 : f32
    %1535 = vector.broadcast %cst_515 : f32 to vector<4x16xf32>
    %1536 = arith.mulf %1535, %1502 : vector<4x16xf32>
    %1537 = arith.addf %1534, %1536 : vector<4x16xf32>
    %1538 = arith.addf %1406, %1537 : vector<4x16xf32>
    %cst_516 = arith.constant dense<0.000000e+00> : vector<4x16xf32>
    %1539 = tpu.matmul %1538, %0, %cst_516 {dimension_numbers = #tpu.dot_dimension_numbers<[1], [0], [0], [1], [0, 0, 1, 1], [], []>} : vector<4x16xf32>, vector<16x16xf32>, vector<4x16xf32> -> vector<4x16xf32>
    %1540 = arith.addf %1539, %3 : vector<4x16xf32>
    %1541 = math.tanh %1540 : vector<4x16xf32>
    %cst_517 = arith.constant 0.177892208 : f32
    %1542 = vector.broadcast %cst_517 : f32 to vector<4x16xf32>
    %1543 = arith.mulf %1542, %1415 : vector<4x16xf32>
    %cst_518 = arith.constant -0.672348499 : f32
    %1544 = vector.broadcast %cst_518 : f32 to vector<4x16xf32>
    %1545 = arith.mulf %1544, %1433 : vector<4x16xf32>
    %1546 = arith.addf %1543, %1545 : vector<4x16xf32>
    %cst_519 = arith.constant 0.556651413 : f32
    %1547 = vector.broadcast %cst_519 : f32 to vector<4x16xf32>
    %1548 = arith.mulf %1547, %1451 : vector<4x16xf32>
    %1549 = arith.addf %1546, %1548 : vector<4x16xf32>
    %cst_520 = arith.constant 0.0174005684 : f32
    %1550 = vector.broadcast %cst_520 : f32 to vector<4x16xf32>
    %1551 = arith.mulf %1550, %1481 : vector<4x16xf32>
    %1552 = arith.addf %1549, %1551 : vector<4x16xf32>
    %cst_521 = arith.constant -0.0170957074 : f32
    %1553 = vector.broadcast %cst_521 : f32 to vector<4x16xf32>
    %1554 = arith.mulf %1553, %1517 : vector<4x16xf32>
    %1555 = arith.addf %1552, %1554 : vector<4x16xf32>
    %1556 = arith.addf %1409, %1555 : vector<4x16xf32>
    %cst_522 = arith.constant dense<0.000000e+00> : vector<4x16xf32>
    %1557 = tpu.matmul %1556, %0, %cst_522 {dimension_numbers = #tpu.dot_dimension_numbers<[1], [0], [0], [1], [0, 0, 1, 1], [], []>} : vector<4x16xf32>, vector<16x16xf32>, vector<4x16xf32> -> vector<4x16xf32>
    %1558 = arith.addf %1557, %3 : vector<4x16xf32>
    %1559 = math.tanh %1558 : vector<4x16xf32>
    %cst_523 = arith.constant 0.00818452425 : f32
    %1560 = vector.broadcast %cst_523 : f32 to vector<4x16xf32>
    %1561 = arith.mulf %1560, %1541 : vector<4x16xf32>
    %1562 = arith.addf %1520, %1561 : vector<4x16xf32>
    %cst_524 = arith.constant 0.00818452425 : f32
    %1563 = vector.broadcast %cst_524 : f32 to vector<4x16xf32>
    %1564 = arith.mulf %1563, %1559 : vector<4x16xf32>
    %1565 = arith.addf %1523, %1564 : vector<4x16xf32>
    %c10_i32 = arith.constant 10 : i32
    %cst_525 = arith.constant dense<0.000000e+00> : vector<4x16xf32>
    %1566 = tpu.matmul %1562, %0, %cst_525 {dimension_numbers = #tpu.dot_dimension_numbers<[1], [0], [0], [1], [0, 0, 1, 1], [], []>} : vector<4x16xf32>, vector<16x16xf32>, vector<4x16xf32> -> vector<4x16xf32>
    %1567 = arith.addf %1566, %3 : vector<4x16xf32>
    %1568 = math.tanh %1567 : vector<4x16xf32>
    %cst_526 = arith.constant dense<0.000000e+00> : vector<4x16xf32>
    %1569 = tpu.matmul %1565, %0, %cst_526 {dimension_numbers = #tpu.dot_dimension_numbers<[1], [0], [0], [1], [0, 0, 1, 1], [], []>} : vector<4x16xf32>, vector<16x16xf32>, vector<4x16xf32> -> vector<4x16xf32>
    %1570 = arith.addf %1569, %3 : vector<4x16xf32>
    %1571 = math.tanh %1570 : vector<4x16xf32>
    %cst_527 = arith.constant 0.00569661474 : f32
    %1572 = vector.broadcast %cst_527 : f32 to vector<4x16xf32>
    %1573 = arith.mulf %1572, %1568 : vector<4x16xf32>
    %1574 = arith.addf %1562, %1573 : vector<4x16xf32>
    %cst_528 = arith.constant 0.00569661474 : f32
    %1575 = vector.broadcast %cst_528 : f32 to vector<4x16xf32>
    %1576 = arith.mulf %1575, %1571 : vector<4x16xf32>
    %1577 = arith.addf %1565, %1576 : vector<4x16xf32>
    %cst_529 = arith.constant 1.250000e-02 : f32
    %1578 = vector.broadcast %cst_529 : f32 to vector<4x16xf32>
    %1579 = arith.mulf %1578, %1568 : vector<4x16xf32>
    %1580 = arith.addf %1562, %1579 : vector<4x16xf32>
    %cst_530 = arith.constant dense<0.000000e+00> : vector<4x16xf32>
    %1581 = tpu.matmul %1580, %0, %cst_530 {dimension_numbers = #tpu.dot_dimension_numbers<[1], [0], [0], [1], [0, 0, 1, 1], [], []>} : vector<4x16xf32>, vector<16x16xf32>, vector<4x16xf32> -> vector<4x16xf32>
    %1582 = arith.addf %1581, %3 : vector<4x16xf32>
    %1583 = math.tanh %1582 : vector<4x16xf32>
    %cst_531 = arith.constant 1.250000e-02 : f32
    %1584 = vector.broadcast %cst_531 : f32 to vector<4x16xf32>
    %1585 = arith.mulf %1584, %1571 : vector<4x16xf32>
    %1586 = arith.addf %1565, %1585 : vector<4x16xf32>
    %cst_532 = arith.constant dense<0.000000e+00> : vector<4x16xf32>
    %1587 = tpu.matmul %1586, %0, %cst_532 {dimension_numbers = #tpu.dot_dimension_numbers<[1], [0], [0], [1], [0, 0, 1, 1], [], []>} : vector<4x16xf32>, vector<16x16xf32>, vector<4x16xf32> -> vector<4x16xf32>
    %1588 = arith.addf %1587, %3 : vector<4x16xf32>
    %1589 = math.tanh %1588 : vector<4x16xf32>
    %cst_533 = arith.constant 4.687500e-03 : f32
    %1590 = vector.broadcast %cst_533 : f32 to vector<4x16xf32>
    %1591 = arith.mulf %1590, %1568 : vector<4x16xf32>
    %cst_534 = arith.constant 1.406250e-02 : f32
    %1592 = vector.broadcast %cst_534 : f32 to vector<4x16xf32>
    %1593 = arith.mulf %1592, %1583 : vector<4x16xf32>
    %1594 = arith.addf %1591, %1593 : vector<4x16xf32>
    %1595 = arith.addf %1562, %1594 : vector<4x16xf32>
    %cst_535 = arith.constant dense<0.000000e+00> : vector<4x16xf32>
    %1596 = tpu.matmul %1595, %0, %cst_535 {dimension_numbers = #tpu.dot_dimension_numbers<[1], [0], [0], [1], [0, 0, 1, 1], [], []>} : vector<4x16xf32>, vector<16x16xf32>, vector<4x16xf32> -> vector<4x16xf32>
    %1597 = arith.addf %1596, %3 : vector<4x16xf32>
    %1598 = math.tanh %1597 : vector<4x16xf32>
    %cst_536 = arith.constant 4.687500e-03 : f32
    %1599 = vector.broadcast %cst_536 : f32 to vector<4x16xf32>
    %1600 = arith.mulf %1599, %1571 : vector<4x16xf32>
    %cst_537 = arith.constant 1.406250e-02 : f32
    %1601 = vector.broadcast %cst_537 : f32 to vector<4x16xf32>
    %1602 = arith.mulf %1601, %1589 : vector<4x16xf32>
    %1603 = arith.addf %1600, %1602 : vector<4x16xf32>
    %1604 = arith.addf %1565, %1603 : vector<4x16xf32>
    %cst_538 = arith.constant dense<0.000000e+00> : vector<4x16xf32>
    %1605 = tpu.matmul %1604, %0, %cst_538 {dimension_numbers = #tpu.dot_dimension_numbers<[1], [0], [0], [1], [0, 0, 1, 1], [], []>} : vector<4x16xf32>, vector<16x16xf32>, vector<4x16xf32> -> vector<4x16xf32>
    %1606 = arith.addf %1605, %3 : vector<4x16xf32>
    %1607 = math.tanh %1606 : vector<4x16xf32>
    %cst_539 = arith.constant 0.028077269 : f32
    %1608 = vector.broadcast %cst_539 : f32 to vector<4x16xf32>
    %1609 = arith.mulf %1608, %1598 : vector<4x16xf32>
    %1610 = arith.addf %1574, %1609 : vector<4x16xf32>
    %cst_540 = arith.constant 0.028077269 : f32
    %1611 = vector.broadcast %cst_540 : f32 to vector<4x16xf32>
    %1612 = arith.mulf %1611, %1607 : vector<4x16xf32>
    %1613 = arith.addf %1577, %1612 : vector<4x16xf32>
    %cst_541 = arith.constant 0.0611111112 : f32
    %1614 = vector.broadcast %cst_541 : f32 to vector<4x16xf32>
    %1615 = arith.mulf %1614, %1568 : vector<4x16xf32>
    %cst_542 = arith.constant -0.233333334 : f32
    %1616 = vector.broadcast %cst_542 : f32 to vector<4x16xf32>
    %1617 = arith.mulf %1616, %1583 : vector<4x16xf32>
    %1618 = arith.addf %1615, %1617 : vector<4x16xf32>
    %cst_543 = arith.constant 0.222222224 : f32
    %1619 = vector.broadcast %cst_543 : f32 to vector<4x16xf32>
    %1620 = arith.mulf %1619, %1598 : vector<4x16xf32>
    %1621 = arith.addf %1618, %1620 : vector<4x16xf32>
    %1622 = arith.addf %1562, %1621 : vector<4x16xf32>
    %cst_544 = arith.constant dense<0.000000e+00> : vector<4x16xf32>
    %1623 = tpu.matmul %1622, %0, %cst_544 {dimension_numbers = #tpu.dot_dimension_numbers<[1], [0], [0], [1], [0, 0, 1, 1], [], []>} : vector<4x16xf32>, vector<16x16xf32>, vector<4x16xf32> -> vector<4x16xf32>
    %1624 = arith.addf %1623, %3 : vector<4x16xf32>
    %1625 = math.tanh %1624 : vector<4x16xf32>
    %cst_545 = arith.constant 0.0611111112 : f32
    %1626 = vector.broadcast %cst_545 : f32 to vector<4x16xf32>
    %1627 = arith.mulf %1626, %1571 : vector<4x16xf32>
    %cst_546 = arith.constant -0.233333334 : f32
    %1628 = vector.broadcast %cst_546 : f32 to vector<4x16xf32>
    %1629 = arith.mulf %1628, %1589 : vector<4x16xf32>
    %1630 = arith.addf %1627, %1629 : vector<4x16xf32>
    %cst_547 = arith.constant 0.222222224 : f32
    %1631 = vector.broadcast %cst_547 : f32 to vector<4x16xf32>
    %1632 = arith.mulf %1631, %1607 : vector<4x16xf32>
    %1633 = arith.addf %1630, %1632 : vector<4x16xf32>
    %1634 = arith.addf %1565, %1633 : vector<4x16xf32>
    %cst_548 = arith.constant dense<0.000000e+00> : vector<4x16xf32>
    %1635 = tpu.matmul %1634, %0, %cst_548 {dimension_numbers = #tpu.dot_dimension_numbers<[1], [0], [0], [1], [0, 0, 1, 1], [], []>} : vector<4x16xf32>, vector<16x16xf32>, vector<4x16xf32> -> vector<4x16xf32>
    %1636 = arith.addf %1635, %3 : vector<4x16xf32>
    %1637 = math.tanh %1636 : vector<4x16xf32>
    %cst_549 = arith.constant 0.0406901054 : f32
    %1638 = vector.broadcast %cst_549 : f32 to vector<4x16xf32>
    %1639 = arith.mulf %1638, %1625 : vector<4x16xf32>
    %1640 = arith.addf %1610, %1639 : vector<4x16xf32>
    %cst_550 = arith.constant 0.0406901054 : f32
    %1641 = vector.broadcast %cst_550 : f32 to vector<4x16xf32>
    %1642 = arith.mulf %1641, %1637 : vector<4x16xf32>
    %1643 = arith.addf %1613, %1642 : vector<4x16xf32>
    %cst_551 = arith.constant 0.184537411 : f32
    %1644 = vector.broadcast %cst_551 : f32 to vector<4x16xf32>
    %1645 = arith.mulf %1644, %1568 : vector<4x16xf32>
    %cst_552 = arith.constant -0.724737107 : f32
    %1646 = vector.broadcast %cst_552 : f32 to vector<4x16xf32>
    %1647 = arith.mulf %1646, %1583 : vector<4x16xf32>
    %1648 = arith.addf %1645, %1647 : vector<4x16xf32>
    %cst_553 = arith.constant 0.613930821 : f32
    %1649 = vector.broadcast %cst_553 : f32 to vector<4x16xf32>
    %1650 = arith.mulf %1649, %1598 : vector<4x16xf32>
    %1651 = arith.addf %1648, %1650 : vector<4x16xf32>
    %cst_554 = arith.constant -0.0181755833 : f32
    %1652 = vector.broadcast %cst_554 : f32 to vector<4x16xf32>
    %1653 = arith.mulf %1652, %1625 : vector<4x16xf32>
    %1654 = arith.addf %1651, %1653 : vector<4x16xf32>
    %1655 = arith.addf %1562, %1654 : vector<4x16xf32>
    %cst_555 = arith.constant dense<0.000000e+00> : vector<4x16xf32>
    %1656 = tpu.matmul %1655, %0, %cst_555 {dimension_numbers = #tpu.dot_dimension_numbers<[1], [0], [0], [1], [0, 0, 1, 1], [], []>} : vector<4x16xf32>, vector<16x16xf32>, vector<4x16xf32> -> vector<4x16xf32>
    %1657 = arith.addf %1656, %3 : vector<4x16xf32>
    %1658 = math.tanh %1657 : vector<4x16xf32>
    %cst_556 = arith.constant 0.184537411 : f32
    %1659 = vector.broadcast %cst_556 : f32 to vector<4x16xf32>
    %1660 = arith.mulf %1659, %1571 : vector<4x16xf32>
    %cst_557 = arith.constant -0.724737107 : f32
    %1661 = vector.broadcast %cst_557 : f32 to vector<4x16xf32>
    %1662 = arith.mulf %1661, %1589 : vector<4x16xf32>
    %1663 = arith.addf %1660, %1662 : vector<4x16xf32>
    %cst_558 = arith.constant 0.613930821 : f32
    %1664 = vector.broadcast %cst_558 : f32 to vector<4x16xf32>
    %1665 = arith.mulf %1664, %1607 : vector<4x16xf32>
    %1666 = arith.addf %1663, %1665 : vector<4x16xf32>
    %cst_559 = arith.constant -0.0181755833 : f32
    %1667 = vector.broadcast %cst_559 : f32 to vector<4x16xf32>
    %1668 = arith.mulf %1667, %1637 : vector<4x16xf32>
    %1669 = arith.addf %1666, %1668 : vector<4x16xf32>
    %1670 = arith.addf %1565, %1669 : vector<4x16xf32>
    %cst_560 = arith.constant dense<0.000000e+00> : vector<4x16xf32>
    %1671 = tpu.matmul %1670, %0, %cst_560 {dimension_numbers = #tpu.dot_dimension_numbers<[1], [0], [0], [1], [0, 0, 1, 1], [], []>} : vector<4x16xf32>, vector<16x16xf32>, vector<4x16xf32> -> vector<4x16xf32>
    %1672 = arith.addf %1671, %3 : vector<4x16xf32>
    %1673 = math.tanh %1672 : vector<4x16xf32>
    %cst_561 = arith.constant -0.020148512 : f32
    %1674 = vector.broadcast %cst_561 : f32 to vector<4x16xf32>
    %1675 = arith.mulf %1674, %1658 : vector<4x16xf32>
    %1676 = arith.addf %1640, %1675 : vector<4x16xf32>
    %cst_562 = arith.constant -0.020148512 : f32
    %1677 = vector.broadcast %cst_562 : f32 to vector<4x16xf32>
    %1678 = arith.mulf %1677, %1673 : vector<4x16xf32>
    %1679 = arith.addf %1643, %1678 : vector<4x16xf32>
    %cst_563 = arith.constant 0.177892208 : f32
    %1680 = vector.broadcast %cst_563 : f32 to vector<4x16xf32>
    %1681 = arith.mulf %1680, %1568 : vector<4x16xf32>
    %cst_564 = arith.constant -0.672348499 : f32
    %1682 = vector.broadcast %cst_564 : f32 to vector<4x16xf32>
    %1683 = arith.mulf %1682, %1583 : vector<4x16xf32>
    %1684 = arith.addf %1681, %1683 : vector<4x16xf32>
    %cst_565 = arith.constant 0.556651413 : f32
    %1685 = vector.broadcast %cst_565 : f32 to vector<4x16xf32>
    %1686 = arith.mulf %1685, %1598 : vector<4x16xf32>
    %1687 = arith.addf %1684, %1686 : vector<4x16xf32>
    %cst_566 = arith.constant 0.0174005684 : f32
    %1688 = vector.broadcast %cst_566 : f32 to vector<4x16xf32>
    %1689 = arith.mulf %1688, %1625 : vector<4x16xf32>
    %1690 = arith.addf %1687, %1689 : vector<4x16xf32>
    %cst_567 = arith.constant -0.0170957074 : f32
    %1691 = vector.broadcast %cst_567 : f32 to vector<4x16xf32>
    %1692 = arith.mulf %1691, %1658 : vector<4x16xf32>
    %1693 = arith.addf %1690, %1692 : vector<4x16xf32>
    %1694 = arith.addf %1562, %1693 : vector<4x16xf32>
    %cst_568 = arith.constant dense<0.000000e+00> : vector<4x16xf32>
    %1695 = tpu.matmul %1694, %0, %cst_568 {dimension_numbers = #tpu.dot_dimension_numbers<[1], [0], [0], [1], [0, 0, 1, 1], [], []>} : vector<4x16xf32>, vector<16x16xf32>, vector<4x16xf32> -> vector<4x16xf32>
    %1696 = arith.addf %1695, %3 : vector<4x16xf32>
    %1697 = math.tanh %1696 : vector<4x16xf32>
    %cst_569 = arith.constant 0.177892208 : f32
    %1698 = vector.broadcast %cst_569 : f32 to vector<4x16xf32>
    %1699 = arith.mulf %1698, %1571 : vector<4x16xf32>
    %cst_570 = arith.constant -0.672348499 : f32
    %1700 = vector.broadcast %cst_570 : f32 to vector<4x16xf32>
    %1701 = arith.mulf %1700, %1589 : vector<4x16xf32>
    %1702 = arith.addf %1699, %1701 : vector<4x16xf32>
    %cst_571 = arith.constant 0.556651413 : f32
    %1703 = vector.broadcast %cst_571 : f32 to vector<4x16xf32>
    %1704 = arith.mulf %1703, %1607 : vector<4x16xf32>
    %1705 = arith.addf %1702, %1704 : vector<4x16xf32>
    %cst_572 = arith.constant 0.0174005684 : f32
    %1706 = vector.broadcast %cst_572 : f32 to vector<4x16xf32>
    %1707 = arith.mulf %1706, %1637 : vector<4x16xf32>
    %1708 = arith.addf %1705, %1707 : vector<4x16xf32>
    %cst_573 = arith.constant -0.0170957074 : f32
    %1709 = vector.broadcast %cst_573 : f32 to vector<4x16xf32>
    %1710 = arith.mulf %1709, %1673 : vector<4x16xf32>
    %1711 = arith.addf %1708, %1710 : vector<4x16xf32>
    %1712 = arith.addf %1565, %1711 : vector<4x16xf32>
    %cst_574 = arith.constant dense<0.000000e+00> : vector<4x16xf32>
    %1713 = tpu.matmul %1712, %0, %cst_574 {dimension_numbers = #tpu.dot_dimension_numbers<[1], [0], [0], [1], [0, 0, 1, 1], [], []>} : vector<4x16xf32>, vector<16x16xf32>, vector<4x16xf32> -> vector<4x16xf32>
    %1714 = arith.addf %1713, %3 : vector<4x16xf32>
    %1715 = math.tanh %1714 : vector<4x16xf32>
    %cst_575 = arith.constant 0.00818452425 : f32
    %1716 = vector.broadcast %cst_575 : f32 to vector<4x16xf32>
    %1717 = arith.mulf %1716, %1697 : vector<4x16xf32>
    %1718 = arith.addf %1676, %1717 : vector<4x16xf32>
    %cst_576 = arith.constant 0.00818452425 : f32
    %1719 = vector.broadcast %cst_576 : f32 to vector<4x16xf32>
    %1720 = arith.mulf %1719, %1715 : vector<4x16xf32>
    %1721 = arith.addf %1679, %1720 : vector<4x16xf32>
    %c11_i32 = arith.constant 11 : i32
    %cst_577 = arith.constant dense<0.000000e+00> : vector<4x16xf32>
    %1722 = tpu.matmul %1718, %0, %cst_577 {dimension_numbers = #tpu.dot_dimension_numbers<[1], [0], [0], [1], [0, 0, 1, 1], [], []>} : vector<4x16xf32>, vector<16x16xf32>, vector<4x16xf32> -> vector<4x16xf32>
    %1723 = arith.addf %1722, %3 : vector<4x16xf32>
    %1724 = math.tanh %1723 : vector<4x16xf32>
    %cst_578 = arith.constant dense<0.000000e+00> : vector<4x16xf32>
    %1725 = tpu.matmul %1721, %0, %cst_578 {dimension_numbers = #tpu.dot_dimension_numbers<[1], [0], [0], [1], [0, 0, 1, 1], [], []>} : vector<4x16xf32>, vector<16x16xf32>, vector<4x16xf32> -> vector<4x16xf32>
    %1726 = arith.addf %1725, %3 : vector<4x16xf32>
    %1727 = math.tanh %1726 : vector<4x16xf32>
    %cst_579 = arith.constant 0.00569661474 : f32
    %1728 = vector.broadcast %cst_579 : f32 to vector<4x16xf32>
    %1729 = arith.mulf %1728, %1724 : vector<4x16xf32>
    %1730 = arith.addf %1718, %1729 : vector<4x16xf32>
    %cst_580 = arith.constant 0.00569661474 : f32
    %1731 = vector.broadcast %cst_580 : f32 to vector<4x16xf32>
    %1732 = arith.mulf %1731, %1727 : vector<4x16xf32>
    %1733 = arith.addf %1721, %1732 : vector<4x16xf32>
    %cst_581 = arith.constant 1.250000e-02 : f32
    %1734 = vector.broadcast %cst_581 : f32 to vector<4x16xf32>
    %1735 = arith.mulf %1734, %1724 : vector<4x16xf32>
    %1736 = arith.addf %1718, %1735 : vector<4x16xf32>
    %cst_582 = arith.constant dense<0.000000e+00> : vector<4x16xf32>
    %1737 = tpu.matmul %1736, %0, %cst_582 {dimension_numbers = #tpu.dot_dimension_numbers<[1], [0], [0], [1], [0, 0, 1, 1], [], []>} : vector<4x16xf32>, vector<16x16xf32>, vector<4x16xf32> -> vector<4x16xf32>
    %1738 = arith.addf %1737, %3 : vector<4x16xf32>
    %1739 = math.tanh %1738 : vector<4x16xf32>
    %cst_583 = arith.constant 1.250000e-02 : f32
    %1740 = vector.broadcast %cst_583 : f32 to vector<4x16xf32>
    %1741 = arith.mulf %1740, %1727 : vector<4x16xf32>
    %1742 = arith.addf %1721, %1741 : vector<4x16xf32>
    %cst_584 = arith.constant dense<0.000000e+00> : vector<4x16xf32>
    %1743 = tpu.matmul %1742, %0, %cst_584 {dimension_numbers = #tpu.dot_dimension_numbers<[1], [0], [0], [1], [0, 0, 1, 1], [], []>} : vector<4x16xf32>, vector<16x16xf32>, vector<4x16xf32> -> vector<4x16xf32>
    %1744 = arith.addf %1743, %3 : vector<4x16xf32>
    %1745 = math.tanh %1744 : vector<4x16xf32>
    %cst_585 = arith.constant 4.687500e-03 : f32
    %1746 = vector.broadcast %cst_585 : f32 to vector<4x16xf32>
    %1747 = arith.mulf %1746, %1724 : vector<4x16xf32>
    %cst_586 = arith.constant 1.406250e-02 : f32
    %1748 = vector.broadcast %cst_586 : f32 to vector<4x16xf32>
    %1749 = arith.mulf %1748, %1739 : vector<4x16xf32>
    %1750 = arith.addf %1747, %1749 : vector<4x16xf32>
    %1751 = arith.addf %1718, %1750 : vector<4x16xf32>
    %cst_587 = arith.constant dense<0.000000e+00> : vector<4x16xf32>
    %1752 = tpu.matmul %1751, %0, %cst_587 {dimension_numbers = #tpu.dot_dimension_numbers<[1], [0], [0], [1], [0, 0, 1, 1], [], []>} : vector<4x16xf32>, vector<16x16xf32>, vector<4x16xf32> -> vector<4x16xf32>
    %1753 = arith.addf %1752, %3 : vector<4x16xf32>
    %1754 = math.tanh %1753 : vector<4x16xf32>
    %cst_588 = arith.constant 4.687500e-03 : f32
    %1755 = vector.broadcast %cst_588 : f32 to vector<4x16xf32>
    %1756 = arith.mulf %1755, %1727 : vector<4x16xf32>
    %cst_589 = arith.constant 1.406250e-02 : f32
    %1757 = vector.broadcast %cst_589 : f32 to vector<4x16xf32>
    %1758 = arith.mulf %1757, %1745 : vector<4x16xf32>
    %1759 = arith.addf %1756, %1758 : vector<4x16xf32>
    %1760 = arith.addf %1721, %1759 : vector<4x16xf32>
    %cst_590 = arith.constant dense<0.000000e+00> : vector<4x16xf32>
    %1761 = tpu.matmul %1760, %0, %cst_590 {dimension_numbers = #tpu.dot_dimension_numbers<[1], [0], [0], [1], [0, 0, 1, 1], [], []>} : vector<4x16xf32>, vector<16x16xf32>, vector<4x16xf32> -> vector<4x16xf32>
    %1762 = arith.addf %1761, %3 : vector<4x16xf32>
    %1763 = math.tanh %1762 : vector<4x16xf32>
    %cst_591 = arith.constant 0.028077269 : f32
    %1764 = vector.broadcast %cst_591 : f32 to vector<4x16xf32>
    %1765 = arith.mulf %1764, %1754 : vector<4x16xf32>
    %1766 = arith.addf %1730, %1765 : vector<4x16xf32>
    %cst_592 = arith.constant 0.028077269 : f32
    %1767 = vector.broadcast %cst_592 : f32 to vector<4x16xf32>
    %1768 = arith.mulf %1767, %1763 : vector<4x16xf32>
    %1769 = arith.addf %1733, %1768 : vector<4x16xf32>
    %cst_593 = arith.constant 0.0611111112 : f32
    %1770 = vector.broadcast %cst_593 : f32 to vector<4x16xf32>
    %1771 = arith.mulf %1770, %1724 : vector<4x16xf32>
    %cst_594 = arith.constant -0.233333334 : f32
    %1772 = vector.broadcast %cst_594 : f32 to vector<4x16xf32>
    %1773 = arith.mulf %1772, %1739 : vector<4x16xf32>
    %1774 = arith.addf %1771, %1773 : vector<4x16xf32>
    %cst_595 = arith.constant 0.222222224 : f32
    %1775 = vector.broadcast %cst_595 : f32 to vector<4x16xf32>
    %1776 = arith.mulf %1775, %1754 : vector<4x16xf32>
    %1777 = arith.addf %1774, %1776 : vector<4x16xf32>
    %1778 = arith.addf %1718, %1777 : vector<4x16xf32>
    %cst_596 = arith.constant dense<0.000000e+00> : vector<4x16xf32>
    %1779 = tpu.matmul %1778, %0, %cst_596 {dimension_numbers = #tpu.dot_dimension_numbers<[1], [0], [0], [1], [0, 0, 1, 1], [], []>} : vector<4x16xf32>, vector<16x16xf32>, vector<4x16xf32> -> vector<4x16xf32>
    %1780 = arith.addf %1779, %3 : vector<4x16xf32>
    %1781 = math.tanh %1780 : vector<4x16xf32>
    %cst_597 = arith.constant 0.0611111112 : f32
    %1782 = vector.broadcast %cst_597 : f32 to vector<4x16xf32>
    %1783 = arith.mulf %1782, %1727 : vector<4x16xf32>
    %cst_598 = arith.constant -0.233333334 : f32
    %1784 = vector.broadcast %cst_598 : f32 to vector<4x16xf32>
    %1785 = arith.mulf %1784, %1745 : vector<4x16xf32>
    %1786 = arith.addf %1783, %1785 : vector<4x16xf32>
    %cst_599 = arith.constant 0.222222224 : f32
    %1787 = vector.broadcast %cst_599 : f32 to vector<4x16xf32>
    %1788 = arith.mulf %1787, %1763 : vector<4x16xf32>
    %1789 = arith.addf %1786, %1788 : vector<4x16xf32>
    %1790 = arith.addf %1721, %1789 : vector<4x16xf32>
    %cst_600 = arith.constant dense<0.000000e+00> : vector<4x16xf32>
    %1791 = tpu.matmul %1790, %0, %cst_600 {dimension_numbers = #tpu.dot_dimension_numbers<[1], [0], [0], [1], [0, 0, 1, 1], [], []>} : vector<4x16xf32>, vector<16x16xf32>, vector<4x16xf32> -> vector<4x16xf32>
    %1792 = arith.addf %1791, %3 : vector<4x16xf32>
    %1793 = math.tanh %1792 : vector<4x16xf32>
    %cst_601 = arith.constant 0.0406901054 : f32
    %1794 = vector.broadcast %cst_601 : f32 to vector<4x16xf32>
    %1795 = arith.mulf %1794, %1781 : vector<4x16xf32>
    %1796 = arith.addf %1766, %1795 : vector<4x16xf32>
    %cst_602 = arith.constant 0.0406901054 : f32
    %1797 = vector.broadcast %cst_602 : f32 to vector<4x16xf32>
    %1798 = arith.mulf %1797, %1793 : vector<4x16xf32>
    %1799 = arith.addf %1769, %1798 : vector<4x16xf32>
    %cst_603 = arith.constant 0.184537411 : f32
    %1800 = vector.broadcast %cst_603 : f32 to vector<4x16xf32>
    %1801 = arith.mulf %1800, %1724 : vector<4x16xf32>
    %cst_604 = arith.constant -0.724737107 : f32
    %1802 = vector.broadcast %cst_604 : f32 to vector<4x16xf32>
    %1803 = arith.mulf %1802, %1739 : vector<4x16xf32>
    %1804 = arith.addf %1801, %1803 : vector<4x16xf32>
    %cst_605 = arith.constant 0.613930821 : f32
    %1805 = vector.broadcast %cst_605 : f32 to vector<4x16xf32>
    %1806 = arith.mulf %1805, %1754 : vector<4x16xf32>
    %1807 = arith.addf %1804, %1806 : vector<4x16xf32>
    %cst_606 = arith.constant -0.0181755833 : f32
    %1808 = vector.broadcast %cst_606 : f32 to vector<4x16xf32>
    %1809 = arith.mulf %1808, %1781 : vector<4x16xf32>
    %1810 = arith.addf %1807, %1809 : vector<4x16xf32>
    %1811 = arith.addf %1718, %1810 : vector<4x16xf32>
    %cst_607 = arith.constant dense<0.000000e+00> : vector<4x16xf32>
    %1812 = tpu.matmul %1811, %0, %cst_607 {dimension_numbers = #tpu.dot_dimension_numbers<[1], [0], [0], [1], [0, 0, 1, 1], [], []>} : vector<4x16xf32>, vector<16x16xf32>, vector<4x16xf32> -> vector<4x16xf32>
    %1813 = arith.addf %1812, %3 : vector<4x16xf32>
    %1814 = math.tanh %1813 : vector<4x16xf32>
    %cst_608 = arith.constant 0.184537411 : f32
    %1815 = vector.broadcast %cst_608 : f32 to vector<4x16xf32>
    %1816 = arith.mulf %1815, %1727 : vector<4x16xf32>
    %cst_609 = arith.constant -0.724737107 : f32
    %1817 = vector.broadcast %cst_609 : f32 to vector<4x16xf32>
    %1818 = arith.mulf %1817, %1745 : vector<4x16xf32>
    %1819 = arith.addf %1816, %1818 : vector<4x16xf32>
    %cst_610 = arith.constant 0.613930821 : f32
    %1820 = vector.broadcast %cst_610 : f32 to vector<4x16xf32>
    %1821 = arith.mulf %1820, %1763 : vector<4x16xf32>
    %1822 = arith.addf %1819, %1821 : vector<4x16xf32>
    %cst_611 = arith.constant -0.0181755833 : f32
    %1823 = vector.broadcast %cst_611 : f32 to vector<4x16xf32>
    %1824 = arith.mulf %1823, %1793 : vector<4x16xf32>
    %1825 = arith.addf %1822, %1824 : vector<4x16xf32>
    %1826 = arith.addf %1721, %1825 : vector<4x16xf32>
    %cst_612 = arith.constant dense<0.000000e+00> : vector<4x16xf32>
    %1827 = tpu.matmul %1826, %0, %cst_612 {dimension_numbers = #tpu.dot_dimension_numbers<[1], [0], [0], [1], [0, 0, 1, 1], [], []>} : vector<4x16xf32>, vector<16x16xf32>, vector<4x16xf32> -> vector<4x16xf32>
    %1828 = arith.addf %1827, %3 : vector<4x16xf32>
    %1829 = math.tanh %1828 : vector<4x16xf32>
    %cst_613 = arith.constant -0.020148512 : f32
    %1830 = vector.broadcast %cst_613 : f32 to vector<4x16xf32>
    %1831 = arith.mulf %1830, %1814 : vector<4x16xf32>
    %1832 = arith.addf %1796, %1831 : vector<4x16xf32>
    %cst_614 = arith.constant -0.020148512 : f32
    %1833 = vector.broadcast %cst_614 : f32 to vector<4x16xf32>
    %1834 = arith.mulf %1833, %1829 : vector<4x16xf32>
    %1835 = arith.addf %1799, %1834 : vector<4x16xf32>
    %cst_615 = arith.constant 0.177892208 : f32
    %1836 = vector.broadcast %cst_615 : f32 to vector<4x16xf32>
    %1837 = arith.mulf %1836, %1724 : vector<4x16xf32>
    %cst_616 = arith.constant -0.672348499 : f32
    %1838 = vector.broadcast %cst_616 : f32 to vector<4x16xf32>
    %1839 = arith.mulf %1838, %1739 : vector<4x16xf32>
    %1840 = arith.addf %1837, %1839 : vector<4x16xf32>
    %cst_617 = arith.constant 0.556651413 : f32
    %1841 = vector.broadcast %cst_617 : f32 to vector<4x16xf32>
    %1842 = arith.mulf %1841, %1754 : vector<4x16xf32>
    %1843 = arith.addf %1840, %1842 : vector<4x16xf32>
    %cst_618 = arith.constant 0.0174005684 : f32
    %1844 = vector.broadcast %cst_618 : f32 to vector<4x16xf32>
    %1845 = arith.mulf %1844, %1781 : vector<4x16xf32>
    %1846 = arith.addf %1843, %1845 : vector<4x16xf32>
    %cst_619 = arith.constant -0.0170957074 : f32
    %1847 = vector.broadcast %cst_619 : f32 to vector<4x16xf32>
    %1848 = arith.mulf %1847, %1814 : vector<4x16xf32>
    %1849 = arith.addf %1846, %1848 : vector<4x16xf32>
    %1850 = arith.addf %1718, %1849 : vector<4x16xf32>
    %cst_620 = arith.constant dense<0.000000e+00> : vector<4x16xf32>
    %1851 = tpu.matmul %1850, %0, %cst_620 {dimension_numbers = #tpu.dot_dimension_numbers<[1], [0], [0], [1], [0, 0, 1, 1], [], []>} : vector<4x16xf32>, vector<16x16xf32>, vector<4x16xf32> -> vector<4x16xf32>
    %1852 = arith.addf %1851, %3 : vector<4x16xf32>
    %1853 = math.tanh %1852 : vector<4x16xf32>
    %cst_621 = arith.constant 0.177892208 : f32
    %1854 = vector.broadcast %cst_621 : f32 to vector<4x16xf32>
    %1855 = arith.mulf %1854, %1727 : vector<4x16xf32>
    %cst_622 = arith.constant -0.672348499 : f32
    %1856 = vector.broadcast %cst_622 : f32 to vector<4x16xf32>
    %1857 = arith.mulf %1856, %1745 : vector<4x16xf32>
    %1858 = arith.addf %1855, %1857 : vector<4x16xf32>
    %cst_623 = arith.constant 0.556651413 : f32
    %1859 = vector.broadcast %cst_623 : f32 to vector<4x16xf32>
    %1860 = arith.mulf %1859, %1763 : vector<4x16xf32>
    %1861 = arith.addf %1858, %1860 : vector<4x16xf32>
    %cst_624 = arith.constant 0.0174005684 : f32
    %1862 = vector.broadcast %cst_624 : f32 to vector<4x16xf32>
    %1863 = arith.mulf %1862, %1793 : vector<4x16xf32>
    %1864 = arith.addf %1861, %1863 : vector<4x16xf32>
    %cst_625 = arith.constant -0.0170957074 : f32
    %1865 = vector.broadcast %cst_625 : f32 to vector<4x16xf32>
    %1866 = arith.mulf %1865, %1829 : vector<4x16xf32>
    %1867 = arith.addf %1864, %1866 : vector<4x16xf32>
    %1868 = arith.addf %1721, %1867 : vector<4x16xf32>
    %cst_626 = arith.constant dense<0.000000e+00> : vector<4x16xf32>
    %1869 = tpu.matmul %1868, %0, %cst_626 {dimension_numbers = #tpu.dot_dimension_numbers<[1], [0], [0], [1], [0, 0, 1, 1], [], []>} : vector<4x16xf32>, vector<16x16xf32>, vector<4x16xf32> -> vector<4x16xf32>
    %1870 = arith.addf %1869, %3 : vector<4x16xf32>
    %1871 = math.tanh %1870 : vector<4x16xf32>
    %cst_627 = arith.constant 0.00818452425 : f32
    %1872 = vector.broadcast %cst_627 : f32 to vector<4x16xf32>
    %1873 = arith.mulf %1872, %1853 : vector<4x16xf32>
    %1874 = arith.addf %1832, %1873 : vector<4x16xf32>
    %cst_628 = arith.constant 0.00818452425 : f32
    %1875 = vector.broadcast %cst_628 : f32 to vector<4x16xf32>
    %1876 = arith.mulf %1875, %1871 : vector<4x16xf32>
    %1877 = arith.addf %1835, %1876 : vector<4x16xf32>
    %c12_i32 = arith.constant 12 : i32
    %cst_629 = arith.constant dense<0.000000e+00> : vector<4x16xf32>
    %1878 = tpu.matmul %1874, %0, %cst_629 {dimension_numbers = #tpu.dot_dimension_numbers<[1], [0], [0], [1], [0, 0, 1, 1], [], []>} : vector<4x16xf32>, vector<16x16xf32>, vector<4x16xf32> -> vector<4x16xf32>
    %1879 = arith.addf %1878, %3 : vector<4x16xf32>
    %1880 = math.tanh %1879 : vector<4x16xf32>
    %cst_630 = arith.constant dense<0.000000e+00> : vector<4x16xf32>
    %1881 = tpu.matmul %1877, %0, %cst_630 {dimension_numbers = #tpu.dot_dimension_numbers<[1], [0], [0], [1], [0, 0, 1, 1], [], []>} : vector<4x16xf32>, vector<16x16xf32>, vector<4x16xf32> -> vector<4x16xf32>
    %1882 = arith.addf %1881, %3 : vector<4x16xf32>
    %1883 = math.tanh %1882 : vector<4x16xf32>
    %cst_631 = arith.constant 0.00569661474 : f32
    %1884 = vector.broadcast %cst_631 : f32 to vector<4x16xf32>
    %1885 = arith.mulf %1884, %1880 : vector<4x16xf32>
    %1886 = arith.addf %1874, %1885 : vector<4x16xf32>
    %cst_632 = arith.constant 0.00569661474 : f32
    %1887 = vector.broadcast %cst_632 : f32 to vector<4x16xf32>
    %1888 = arith.mulf %1887, %1883 : vector<4x16xf32>
    %1889 = arith.addf %1877, %1888 : vector<4x16xf32>
    %cst_633 = arith.constant 1.250000e-02 : f32
    %1890 = vector.broadcast %cst_633 : f32 to vector<4x16xf32>
    %1891 = arith.mulf %1890, %1880 : vector<4x16xf32>
    %1892 = arith.addf %1874, %1891 : vector<4x16xf32>
    %cst_634 = arith.constant dense<0.000000e+00> : vector<4x16xf32>
    %1893 = tpu.matmul %1892, %0, %cst_634 {dimension_numbers = #tpu.dot_dimension_numbers<[1], [0], [0], [1], [0, 0, 1, 1], [], []>} : vector<4x16xf32>, vector<16x16xf32>, vector<4x16xf32> -> vector<4x16xf32>
    %1894 = arith.addf %1893, %3 : vector<4x16xf32>
    %1895 = math.tanh %1894 : vector<4x16xf32>
    %cst_635 = arith.constant 1.250000e-02 : f32
    %1896 = vector.broadcast %cst_635 : f32 to vector<4x16xf32>
    %1897 = arith.mulf %1896, %1883 : vector<4x16xf32>
    %1898 = arith.addf %1877, %1897 : vector<4x16xf32>
    %cst_636 = arith.constant dense<0.000000e+00> : vector<4x16xf32>
    %1899 = tpu.matmul %1898, %0, %cst_636 {dimension_numbers = #tpu.dot_dimension_numbers<[1], [0], [0], [1], [0, 0, 1, 1], [], []>} : vector<4x16xf32>, vector<16x16xf32>, vector<4x16xf32> -> vector<4x16xf32>
    %1900 = arith.addf %1899, %3 : vector<4x16xf32>
    %1901 = math.tanh %1900 : vector<4x16xf32>
    %cst_637 = arith.constant 4.687500e-03 : f32
    %1902 = vector.broadcast %cst_637 : f32 to vector<4x16xf32>
    %1903 = arith.mulf %1902, %1880 : vector<4x16xf32>
    %cst_638 = arith.constant 1.406250e-02 : f32
    %1904 = vector.broadcast %cst_638 : f32 to vector<4x16xf32>
    %1905 = arith.mulf %1904, %1895 : vector<4x16xf32>
    %1906 = arith.addf %1903, %1905 : vector<4x16xf32>
    %1907 = arith.addf %1874, %1906 : vector<4x16xf32>
    %cst_639 = arith.constant dense<0.000000e+00> : vector<4x16xf32>
    %1908 = tpu.matmul %1907, %0, %cst_639 {dimension_numbers = #tpu.dot_dimension_numbers<[1], [0], [0], [1], [0, 0, 1, 1], [], []>} : vector<4x16xf32>, vector<16x16xf32>, vector<4x16xf32> -> vector<4x16xf32>
    %1909 = arith.addf %1908, %3 : vector<4x16xf32>
    %1910 = math.tanh %1909 : vector<4x16xf32>
    %cst_640 = arith.constant 4.687500e-03 : f32
    %1911 = vector.broadcast %cst_640 : f32 to vector<4x16xf32>
    %1912 = arith.mulf %1911, %1883 : vector<4x16xf32>
    %cst_641 = arith.constant 1.406250e-02 : f32
    %1913 = vector.broadcast %cst_641 : f32 to vector<4x16xf32>
    %1914 = arith.mulf %1913, %1901 : vector<4x16xf32>
    %1915 = arith.addf %1912, %1914 : vector<4x16xf32>
    %1916 = arith.addf %1877, %1915 : vector<4x16xf32>
    %cst_642 = arith.constant dense<0.000000e+00> : vector<4x16xf32>
    %1917 = tpu.matmul %1916, %0, %cst_642 {dimension_numbers = #tpu.dot_dimension_numbers<[1], [0], [0], [1], [0, 0, 1, 1], [], []>} : vector<4x16xf32>, vector<16x16xf32>, vector<4x16xf32> -> vector<4x16xf32>
    %1918 = arith.addf %1917, %3 : vector<4x16xf32>
    %1919 = math.tanh %1918 : vector<4x16xf32>
    %cst_643 = arith.constant 0.028077269 : f32
    %1920 = vector.broadcast %cst_643 : f32 to vector<4x16xf32>
    %1921 = arith.mulf %1920, %1910 : vector<4x16xf32>
    %1922 = arith.addf %1886, %1921 : vector<4x16xf32>
    %cst_644 = arith.constant 0.028077269 : f32
    %1923 = vector.broadcast %cst_644 : f32 to vector<4x16xf32>
    %1924 = arith.mulf %1923, %1919 : vector<4x16xf32>
    %1925 = arith.addf %1889, %1924 : vector<4x16xf32>
    %cst_645 = arith.constant 0.0611111112 : f32
    %1926 = vector.broadcast %cst_645 : f32 to vector<4x16xf32>
    %1927 = arith.mulf %1926, %1880 : vector<4x16xf32>
    %cst_646 = arith.constant -0.233333334 : f32
    %1928 = vector.broadcast %cst_646 : f32 to vector<4x16xf32>
    %1929 = arith.mulf %1928, %1895 : vector<4x16xf32>
    %1930 = arith.addf %1927, %1929 : vector<4x16xf32>
    %cst_647 = arith.constant 0.222222224 : f32
    %1931 = vector.broadcast %cst_647 : f32 to vector<4x16xf32>
    %1932 = arith.mulf %1931, %1910 : vector<4x16xf32>
    %1933 = arith.addf %1930, %1932 : vector<4x16xf32>
    %1934 = arith.addf %1874, %1933 : vector<4x16xf32>
    %cst_648 = arith.constant dense<0.000000e+00> : vector<4x16xf32>
    %1935 = tpu.matmul %1934, %0, %cst_648 {dimension_numbers = #tpu.dot_dimension_numbers<[1], [0], [0], [1], [0, 0, 1, 1], [], []>} : vector<4x16xf32>, vector<16x16xf32>, vector<4x16xf32> -> vector<4x16xf32>
    %1936 = arith.addf %1935, %3 : vector<4x16xf32>
    %1937 = math.tanh %1936 : vector<4x16xf32>
    %cst_649 = arith.constant 0.0611111112 : f32
    %1938 = vector.broadcast %cst_649 : f32 to vector<4x16xf32>
    %1939 = arith.mulf %1938, %1883 : vector<4x16xf32>
    %cst_650 = arith.constant -0.233333334 : f32
    %1940 = vector.broadcast %cst_650 : f32 to vector<4x16xf32>
    %1941 = arith.mulf %1940, %1901 : vector<4x16xf32>
    %1942 = arith.addf %1939, %1941 : vector<4x16xf32>
    %cst_651 = arith.constant 0.222222224 : f32
    %1943 = vector.broadcast %cst_651 : f32 to vector<4x16xf32>
    %1944 = arith.mulf %1943, %1919 : vector<4x16xf32>
    %1945 = arith.addf %1942, %1944 : vector<4x16xf32>
    %1946 = arith.addf %1877, %1945 : vector<4x16xf32>
    %cst_652 = arith.constant dense<0.000000e+00> : vector<4x16xf32>
    %1947 = tpu.matmul %1946, %0, %cst_652 {dimension_numbers = #tpu.dot_dimension_numbers<[1], [0], [0], [1], [0, 0, 1, 1], [], []>} : vector<4x16xf32>, vector<16x16xf32>, vector<4x16xf32> -> vector<4x16xf32>
    %1948 = arith.addf %1947, %3 : vector<4x16xf32>
    %1949 = math.tanh %1948 : vector<4x16xf32>
    %cst_653 = arith.constant 0.0406901054 : f32
    %1950 = vector.broadcast %cst_653 : f32 to vector<4x16xf32>
    %1951 = arith.mulf %1950, %1937 : vector<4x16xf32>
    %1952 = arith.addf %1922, %1951 : vector<4x16xf32>
    %cst_654 = arith.constant 0.0406901054 : f32
    %1953 = vector.broadcast %cst_654 : f32 to vector<4x16xf32>
    %1954 = arith.mulf %1953, %1949 : vector<4x16xf32>
    %1955 = arith.addf %1925, %1954 : vector<4x16xf32>
    %cst_655 = arith.constant 0.184537411 : f32
    %1956 = vector.broadcast %cst_655 : f32 to vector<4x16xf32>
    %1957 = arith.mulf %1956, %1880 : vector<4x16xf32>
    %cst_656 = arith.constant -0.724737107 : f32
    %1958 = vector.broadcast %cst_656 : f32 to vector<4x16xf32>
    %1959 = arith.mulf %1958, %1895 : vector<4x16xf32>
    %1960 = arith.addf %1957, %1959 : vector<4x16xf32>
    %cst_657 = arith.constant 0.613930821 : f32
    %1961 = vector.broadcast %cst_657 : f32 to vector<4x16xf32>
    %1962 = arith.mulf %1961, %1910 : vector<4x16xf32>
    %1963 = arith.addf %1960, %1962 : vector<4x16xf32>
    %cst_658 = arith.constant -0.0181755833 : f32
    %1964 = vector.broadcast %cst_658 : f32 to vector<4x16xf32>
    %1965 = arith.mulf %1964, %1937 : vector<4x16xf32>
    %1966 = arith.addf %1963, %1965 : vector<4x16xf32>
    %1967 = arith.addf %1874, %1966 : vector<4x16xf32>
    %cst_659 = arith.constant dense<0.000000e+00> : vector<4x16xf32>
    %1968 = tpu.matmul %1967, %0, %cst_659 {dimension_numbers = #tpu.dot_dimension_numbers<[1], [0], [0], [1], [0, 0, 1, 1], [], []>} : vector<4x16xf32>, vector<16x16xf32>, vector<4x16xf32> -> vector<4x16xf32>
    %1969 = arith.addf %1968, %3 : vector<4x16xf32>
    %1970 = math.tanh %1969 : vector<4x16xf32>
    %cst_660 = arith.constant 0.184537411 : f32
    %1971 = vector.broadcast %cst_660 : f32 to vector<4x16xf32>
    %1972 = arith.mulf %1971, %1883 : vector<4x16xf32>
    %cst_661 = arith.constant -0.724737107 : f32
    %1973 = vector.broadcast %cst_661 : f32 to vector<4x16xf32>
    %1974 = arith.mulf %1973, %1901 : vector<4x16xf32>
    %1975 = arith.addf %1972, %1974 : vector<4x16xf32>
    %cst_662 = arith.constant 0.613930821 : f32
    %1976 = vector.broadcast %cst_662 : f32 to vector<4x16xf32>
    %1977 = arith.mulf %1976, %1919 : vector<4x16xf32>
    %1978 = arith.addf %1975, %1977 : vector<4x16xf32>
    %cst_663 = arith.constant -0.0181755833 : f32
    %1979 = vector.broadcast %cst_663 : f32 to vector<4x16xf32>
    %1980 = arith.mulf %1979, %1949 : vector<4x16xf32>
    %1981 = arith.addf %1978, %1980 : vector<4x16xf32>
    %1982 = arith.addf %1877, %1981 : vector<4x16xf32>
    %cst_664 = arith.constant dense<0.000000e+00> : vector<4x16xf32>
    %1983 = tpu.matmul %1982, %0, %cst_664 {dimension_numbers = #tpu.dot_dimension_numbers<[1], [0], [0], [1], [0, 0, 1, 1], [], []>} : vector<4x16xf32>, vector<16x16xf32>, vector<4x16xf32> -> vector<4x16xf32>
    %1984 = arith.addf %1983, %3 : vector<4x16xf32>
    %1985 = math.tanh %1984 : vector<4x16xf32>
    %cst_665 = arith.constant -0.020148512 : f32
    %1986 = vector.broadcast %cst_665 : f32 to vector<4x16xf32>
    %1987 = arith.mulf %1986, %1970 : vector<4x16xf32>
    %1988 = arith.addf %1952, %1987 : vector<4x16xf32>
    %cst_666 = arith.constant -0.020148512 : f32
    %1989 = vector.broadcast %cst_666 : f32 to vector<4x16xf32>
    %1990 = arith.mulf %1989, %1985 : vector<4x16xf32>
    %1991 = arith.addf %1955, %1990 : vector<4x16xf32>
    %cst_667 = arith.constant 0.177892208 : f32
    %1992 = vector.broadcast %cst_667 : f32 to vector<4x16xf32>
    %1993 = arith.mulf %1992, %1880 : vector<4x16xf32>
    %cst_668 = arith.constant -0.672348499 : f32
    %1994 = vector.broadcast %cst_668 : f32 to vector<4x16xf32>
    %1995 = arith.mulf %1994, %1895 : vector<4x16xf32>
    %1996 = arith.addf %1993, %1995 : vector<4x16xf32>
    %cst_669 = arith.constant 0.556651413 : f32
    %1997 = vector.broadcast %cst_669 : f32 to vector<4x16xf32>
    %1998 = arith.mulf %1997, %1910 : vector<4x16xf32>
    %1999 = arith.addf %1996, %1998 : vector<4x16xf32>
    %cst_670 = arith.constant 0.0174005684 : f32
    %2000 = vector.broadcast %cst_670 : f32 to vector<4x16xf32>
    %2001 = arith.mulf %2000, %1937 : vector<4x16xf32>
    %2002 = arith.addf %1999, %2001 : vector<4x16xf32>
    %cst_671 = arith.constant -0.0170957074 : f32
    %2003 = vector.broadcast %cst_671 : f32 to vector<4x16xf32>
    %2004 = arith.mulf %2003, %1970 : vector<4x16xf32>
    %2005 = arith.addf %2002, %2004 : vector<4x16xf32>
    %2006 = arith.addf %1874, %2005 : vector<4x16xf32>
    %cst_672 = arith.constant dense<0.000000e+00> : vector<4x16xf32>
    %2007 = tpu.matmul %2006, %0, %cst_672 {dimension_numbers = #tpu.dot_dimension_numbers<[1], [0], [0], [1], [0, 0, 1, 1], [], []>} : vector<4x16xf32>, vector<16x16xf32>, vector<4x16xf32> -> vector<4x16xf32>
    %2008 = arith.addf %2007, %3 : vector<4x16xf32>
    %2009 = math.tanh %2008 : vector<4x16xf32>
    %cst_673 = arith.constant 0.177892208 : f32
    %2010 = vector.broadcast %cst_673 : f32 to vector<4x16xf32>
    %2011 = arith.mulf %2010, %1883 : vector<4x16xf32>
    %cst_674 = arith.constant -0.672348499 : f32
    %2012 = vector.broadcast %cst_674 : f32 to vector<4x16xf32>
    %2013 = arith.mulf %2012, %1901 : vector<4x16xf32>
    %2014 = arith.addf %2011, %2013 : vector<4x16xf32>
    %cst_675 = arith.constant 0.556651413 : f32
    %2015 = vector.broadcast %cst_675 : f32 to vector<4x16xf32>
    %2016 = arith.mulf %2015, %1919 : vector<4x16xf32>
    %2017 = arith.addf %2014, %2016 : vector<4x16xf32>
    %cst_676 = arith.constant 0.0174005684 : f32
    %2018 = vector.broadcast %cst_676 : f32 to vector<4x16xf32>
    %2019 = arith.mulf %2018, %1949 : vector<4x16xf32>
    %2020 = arith.addf %2017, %2019 : vector<4x16xf32>
    %cst_677 = arith.constant -0.0170957074 : f32
    %2021 = vector.broadcast %cst_677 : f32 to vector<4x16xf32>
    %2022 = arith.mulf %2021, %1985 : vector<4x16xf32>
    %2023 = arith.addf %2020, %2022 : vector<4x16xf32>
    %2024 = arith.addf %1877, %2023 : vector<4x16xf32>
    %cst_678 = arith.constant dense<0.000000e+00> : vector<4x16xf32>
    %2025 = tpu.matmul %2024, %0, %cst_678 {dimension_numbers = #tpu.dot_dimension_numbers<[1], [0], [0], [1], [0, 0, 1, 1], [], []>} : vector<4x16xf32>, vector<16x16xf32>, vector<4x16xf32> -> vector<4x16xf32>
    %2026 = arith.addf %2025, %3 : vector<4x16xf32>
    %2027 = math.tanh %2026 : vector<4x16xf32>
    %cst_679 = arith.constant 0.00818452425 : f32
    %2028 = vector.broadcast %cst_679 : f32 to vector<4x16xf32>
    %2029 = arith.mulf %2028, %2009 : vector<4x16xf32>
    %2030 = arith.addf %1988, %2029 : vector<4x16xf32>
    %cst_680 = arith.constant 0.00818452425 : f32
    %2031 = vector.broadcast %cst_680 : f32 to vector<4x16xf32>
    %2032 = arith.mulf %2031, %2027 : vector<4x16xf32>
    %2033 = arith.addf %1991, %2032 : vector<4x16xf32>
    %c13_i32 = arith.constant 13 : i32
    %cst_681 = arith.constant dense<0.000000e+00> : vector<4x16xf32>
    %2034 = tpu.matmul %2030, %0, %cst_681 {dimension_numbers = #tpu.dot_dimension_numbers<[1], [0], [0], [1], [0, 0, 1, 1], [], []>} : vector<4x16xf32>, vector<16x16xf32>, vector<4x16xf32> -> vector<4x16xf32>
    %2035 = arith.addf %2034, %3 : vector<4x16xf32>
    %2036 = math.tanh %2035 : vector<4x16xf32>
    %cst_682 = arith.constant dense<0.000000e+00> : vector<4x16xf32>
    %2037 = tpu.matmul %2033, %0, %cst_682 {dimension_numbers = #tpu.dot_dimension_numbers<[1], [0], [0], [1], [0, 0, 1, 1], [], []>} : vector<4x16xf32>, vector<16x16xf32>, vector<4x16xf32> -> vector<4x16xf32>
    %2038 = arith.addf %2037, %3 : vector<4x16xf32>
    %2039 = math.tanh %2038 : vector<4x16xf32>
    %cst_683 = arith.constant 0.00569661474 : f32
    %2040 = vector.broadcast %cst_683 : f32 to vector<4x16xf32>
    %2041 = arith.mulf %2040, %2036 : vector<4x16xf32>
    %2042 = arith.addf %2030, %2041 : vector<4x16xf32>
    %cst_684 = arith.constant 0.00569661474 : f32
    %2043 = vector.broadcast %cst_684 : f32 to vector<4x16xf32>
    %2044 = arith.mulf %2043, %2039 : vector<4x16xf32>
    %2045 = arith.addf %2033, %2044 : vector<4x16xf32>
    %cst_685 = arith.constant 1.250000e-02 : f32
    %2046 = vector.broadcast %cst_685 : f32 to vector<4x16xf32>
    %2047 = arith.mulf %2046, %2036 : vector<4x16xf32>
    %2048 = arith.addf %2030, %2047 : vector<4x16xf32>
    %cst_686 = arith.constant dense<0.000000e+00> : vector<4x16xf32>
    %2049 = tpu.matmul %2048, %0, %cst_686 {dimension_numbers = #tpu.dot_dimension_numbers<[1], [0], [0], [1], [0, 0, 1, 1], [], []>} : vector<4x16xf32>, vector<16x16xf32>, vector<4x16xf32> -> vector<4x16xf32>
    %2050 = arith.addf %2049, %3 : vector<4x16xf32>
    %2051 = math.tanh %2050 : vector<4x16xf32>
    %cst_687 = arith.constant 1.250000e-02 : f32
    %2052 = vector.broadcast %cst_687 : f32 to vector<4x16xf32>
    %2053 = arith.mulf %2052, %2039 : vector<4x16xf32>
    %2054 = arith.addf %2033, %2053 : vector<4x16xf32>
    %cst_688 = arith.constant dense<0.000000e+00> : vector<4x16xf32>
    %2055 = tpu.matmul %2054, %0, %cst_688 {dimension_numbers = #tpu.dot_dimension_numbers<[1], [0], [0], [1], [0, 0, 1, 1], [], []>} : vector<4x16xf32>, vector<16x16xf32>, vector<4x16xf32> -> vector<4x16xf32>
    %2056 = arith.addf %2055, %3 : vector<4x16xf32>
    %2057 = math.tanh %2056 : vector<4x16xf32>
    %cst_689 = arith.constant 4.687500e-03 : f32
    %2058 = vector.broadcast %cst_689 : f32 to vector<4x16xf32>
    %2059 = arith.mulf %2058, %2036 : vector<4x16xf32>
    %cst_690 = arith.constant 1.406250e-02 : f32
    %2060 = vector.broadcast %cst_690 : f32 to vector<4x16xf32>
    %2061 = arith.mulf %2060, %2051 : vector<4x16xf32>
    %2062 = arith.addf %2059, %2061 : vector<4x16xf32>
    %2063 = arith.addf %2030, %2062 : vector<4x16xf32>
    %cst_691 = arith.constant dense<0.000000e+00> : vector<4x16xf32>
    %2064 = tpu.matmul %2063, %0, %cst_691 {dimension_numbers = #tpu.dot_dimension_numbers<[1], [0], [0], [1], [0, 0, 1, 1], [], []>} : vector<4x16xf32>, vector<16x16xf32>, vector<4x16xf32> -> vector<4x16xf32>
    %2065 = arith.addf %2064, %3 : vector<4x16xf32>
    %2066 = math.tanh %2065 : vector<4x16xf32>
    %cst_692 = arith.constant 4.687500e-03 : f32
    %2067 = vector.broadcast %cst_692 : f32 to vector<4x16xf32>
    %2068 = arith.mulf %2067, %2039 : vector<4x16xf32>
    %cst_693 = arith.constant 1.406250e-02 : f32
    %2069 = vector.broadcast %cst_693 : f32 to vector<4x16xf32>
    %2070 = arith.mulf %2069, %2057 : vector<4x16xf32>
    %2071 = arith.addf %2068, %2070 : vector<4x16xf32>
    %2072 = arith.addf %2033, %2071 : vector<4x16xf32>
    %cst_694 = arith.constant dense<0.000000e+00> : vector<4x16xf32>
    %2073 = tpu.matmul %2072, %0, %cst_694 {dimension_numbers = #tpu.dot_dimension_numbers<[1], [0], [0], [1], [0, 0, 1, 1], [], []>} : vector<4x16xf32>, vector<16x16xf32>, vector<4x16xf32> -> vector<4x16xf32>
    %2074 = arith.addf %2073, %3 : vector<4x16xf32>
    %2075 = math.tanh %2074 : vector<4x16xf32>
    %cst_695 = arith.constant 0.028077269 : f32
    %2076 = vector.broadcast %cst_695 : f32 to vector<4x16xf32>
    %2077 = arith.mulf %2076, %2066 : vector<4x16xf32>
    %2078 = arith.addf %2042, %2077 : vector<4x16xf32>
    %cst_696 = arith.constant 0.028077269 : f32
    %2079 = vector.broadcast %cst_696 : f32 to vector<4x16xf32>
    %2080 = arith.mulf %2079, %2075 : vector<4x16xf32>
    %2081 = arith.addf %2045, %2080 : vector<4x16xf32>
    %cst_697 = arith.constant 0.0611111112 : f32
    %2082 = vector.broadcast %cst_697 : f32 to vector<4x16xf32>
    %2083 = arith.mulf %2082, %2036 : vector<4x16xf32>
    %cst_698 = arith.constant -0.233333334 : f32
    %2084 = vector.broadcast %cst_698 : f32 to vector<4x16xf32>
    %2085 = arith.mulf %2084, %2051 : vector<4x16xf32>
    %2086 = arith.addf %2083, %2085 : vector<4x16xf32>
    %cst_699 = arith.constant 0.222222224 : f32
    %2087 = vector.broadcast %cst_699 : f32 to vector<4x16xf32>
    %2088 = arith.mulf %2087, %2066 : vector<4x16xf32>
    %2089 = arith.addf %2086, %2088 : vector<4x16xf32>
    %2090 = arith.addf %2030, %2089 : vector<4x16xf32>
    %cst_700 = arith.constant dense<0.000000e+00> : vector<4x16xf32>
    %2091 = tpu.matmul %2090, %0, %cst_700 {dimension_numbers = #tpu.dot_dimension_numbers<[1], [0], [0], [1], [0, 0, 1, 1], [], []>} : vector<4x16xf32>, vector<16x16xf32>, vector<4x16xf32> -> vector<4x16xf32>
    %2092 = arith.addf %2091, %3 : vector<4x16xf32>
    %2093 = math.tanh %2092 : vector<4x16xf32>
    %cst_701 = arith.constant 0.0611111112 : f32
    %2094 = vector.broadcast %cst_701 : f32 to vector<4x16xf32>
    %2095 = arith.mulf %2094, %2039 : vector<4x16xf32>
    %cst_702 = arith.constant -0.233333334 : f32
    %2096 = vector.broadcast %cst_702 : f32 to vector<4x16xf32>
    %2097 = arith.mulf %2096, %2057 : vector<4x16xf32>
    %2098 = arith.addf %2095, %2097 : vector<4x16xf32>
    %cst_703 = arith.constant 0.222222224 : f32
    %2099 = vector.broadcast %cst_703 : f32 to vector<4x16xf32>
    %2100 = arith.mulf %2099, %2075 : vector<4x16xf32>
    %2101 = arith.addf %2098, %2100 : vector<4x16xf32>
    %2102 = arith.addf %2033, %2101 : vector<4x16xf32>
    %cst_704 = arith.constant dense<0.000000e+00> : vector<4x16xf32>
    %2103 = tpu.matmul %2102, %0, %cst_704 {dimension_numbers = #tpu.dot_dimension_numbers<[1], [0], [0], [1], [0, 0, 1, 1], [], []>} : vector<4x16xf32>, vector<16x16xf32>, vector<4x16xf32> -> vector<4x16xf32>
    %2104 = arith.addf %2103, %3 : vector<4x16xf32>
    %2105 = math.tanh %2104 : vector<4x16xf32>
    %cst_705 = arith.constant 0.0406901054 : f32
    %2106 = vector.broadcast %cst_705 : f32 to vector<4x16xf32>
    %2107 = arith.mulf %2106, %2093 : vector<4x16xf32>
    %2108 = arith.addf %2078, %2107 : vector<4x16xf32>
    %cst_706 = arith.constant 0.0406901054 : f32
    %2109 = vector.broadcast %cst_706 : f32 to vector<4x16xf32>
    %2110 = arith.mulf %2109, %2105 : vector<4x16xf32>
    %2111 = arith.addf %2081, %2110 : vector<4x16xf32>
    %cst_707 = arith.constant 0.184537411 : f32
    %2112 = vector.broadcast %cst_707 : f32 to vector<4x16xf32>
    %2113 = arith.mulf %2112, %2036 : vector<4x16xf32>
    %cst_708 = arith.constant -0.724737107 : f32
    %2114 = vector.broadcast %cst_708 : f32 to vector<4x16xf32>
    %2115 = arith.mulf %2114, %2051 : vector<4x16xf32>
    %2116 = arith.addf %2113, %2115 : vector<4x16xf32>
    %cst_709 = arith.constant 0.613930821 : f32
    %2117 = vector.broadcast %cst_709 : f32 to vector<4x16xf32>
    %2118 = arith.mulf %2117, %2066 : vector<4x16xf32>
    %2119 = arith.addf %2116, %2118 : vector<4x16xf32>
    %cst_710 = arith.constant -0.0181755833 : f32
    %2120 = vector.broadcast %cst_710 : f32 to vector<4x16xf32>
    %2121 = arith.mulf %2120, %2093 : vector<4x16xf32>
    %2122 = arith.addf %2119, %2121 : vector<4x16xf32>
    %2123 = arith.addf %2030, %2122 : vector<4x16xf32>
    %cst_711 = arith.constant dense<0.000000e+00> : vector<4x16xf32>
    %2124 = tpu.matmul %2123, %0, %cst_711 {dimension_numbers = #tpu.dot_dimension_numbers<[1], [0], [0], [1], [0, 0, 1, 1], [], []>} : vector<4x16xf32>, vector<16x16xf32>, vector<4x16xf32> -> vector<4x16xf32>
    %2125 = arith.addf %2124, %3 : vector<4x16xf32>
    %2126 = math.tanh %2125 : vector<4x16xf32>
    %cst_712 = arith.constant 0.184537411 : f32
    %2127 = vector.broadcast %cst_712 : f32 to vector<4x16xf32>
    %2128 = arith.mulf %2127, %2039 : vector<4x16xf32>
    %cst_713 = arith.constant -0.724737107 : f32
    %2129 = vector.broadcast %cst_713 : f32 to vector<4x16xf32>
    %2130 = arith.mulf %2129, %2057 : vector<4x16xf32>
    %2131 = arith.addf %2128, %2130 : vector<4x16xf32>
    %cst_714 = arith.constant 0.613930821 : f32
    %2132 = vector.broadcast %cst_714 : f32 to vector<4x16xf32>
    %2133 = arith.mulf %2132, %2075 : vector<4x16xf32>
    %2134 = arith.addf %2131, %2133 : vector<4x16xf32>
    %cst_715 = arith.constant -0.0181755833 : f32
    %2135 = vector.broadcast %cst_715 : f32 to vector<4x16xf32>
    %2136 = arith.mulf %2135, %2105 : vector<4x16xf32>
    %2137 = arith.addf %2134, %2136 : vector<4x16xf32>
    %2138 = arith.addf %2033, %2137 : vector<4x16xf32>
    %cst_716 = arith.constant dense<0.000000e+00> : vector<4x16xf32>
    %2139 = tpu.matmul %2138, %0, %cst_716 {dimension_numbers = #tpu.dot_dimension_numbers<[1], [0], [0], [1], [0, 0, 1, 1], [], []>} : vector<4x16xf32>, vector<16x16xf32>, vector<4x16xf32> -> vector<4x16xf32>
    %2140 = arith.addf %2139, %3 : vector<4x16xf32>
    %2141 = math.tanh %2140 : vector<4x16xf32>
    %cst_717 = arith.constant -0.020148512 : f32
    %2142 = vector.broadcast %cst_717 : f32 to vector<4x16xf32>
    %2143 = arith.mulf %2142, %2126 : vector<4x16xf32>
    %2144 = arith.addf %2108, %2143 : vector<4x16xf32>
    %cst_718 = arith.constant -0.020148512 : f32
    %2145 = vector.broadcast %cst_718 : f32 to vector<4x16xf32>
    %2146 = arith.mulf %2145, %2141 : vector<4x16xf32>
    %2147 = arith.addf %2111, %2146 : vector<4x16xf32>
    %cst_719 = arith.constant 0.177892208 : f32
    %2148 = vector.broadcast %cst_719 : f32 to vector<4x16xf32>
    %2149 = arith.mulf %2148, %2036 : vector<4x16xf32>
    %cst_720 = arith.constant -0.672348499 : f32
    %2150 = vector.broadcast %cst_720 : f32 to vector<4x16xf32>
    %2151 = arith.mulf %2150, %2051 : vector<4x16xf32>
    %2152 = arith.addf %2149, %2151 : vector<4x16xf32>
    %cst_721 = arith.constant 0.556651413 : f32
    %2153 = vector.broadcast %cst_721 : f32 to vector<4x16xf32>
    %2154 = arith.mulf %2153, %2066 : vector<4x16xf32>
    %2155 = arith.addf %2152, %2154 : vector<4x16xf32>
    %cst_722 = arith.constant 0.0174005684 : f32
    %2156 = vector.broadcast %cst_722 : f32 to vector<4x16xf32>
    %2157 = arith.mulf %2156, %2093 : vector<4x16xf32>
    %2158 = arith.addf %2155, %2157 : vector<4x16xf32>
    %cst_723 = arith.constant -0.0170957074 : f32
    %2159 = vector.broadcast %cst_723 : f32 to vector<4x16xf32>
    %2160 = arith.mulf %2159, %2126 : vector<4x16xf32>
    %2161 = arith.addf %2158, %2160 : vector<4x16xf32>
    %2162 = arith.addf %2030, %2161 : vector<4x16xf32>
    %cst_724 = arith.constant dense<0.000000e+00> : vector<4x16xf32>
    %2163 = tpu.matmul %2162, %0, %cst_724 {dimension_numbers = #tpu.dot_dimension_numbers<[1], [0], [0], [1], [0, 0, 1, 1], [], []>} : vector<4x16xf32>, vector<16x16xf32>, vector<4x16xf32> -> vector<4x16xf32>
    %2164 = arith.addf %2163, %3 : vector<4x16xf32>
    %2165 = math.tanh %2164 : vector<4x16xf32>
    %cst_725 = arith.constant 0.177892208 : f32
    %2166 = vector.broadcast %cst_725 : f32 to vector<4x16xf32>
    %2167 = arith.mulf %2166, %2039 : vector<4x16xf32>
    %cst_726 = arith.constant -0.672348499 : f32
    %2168 = vector.broadcast %cst_726 : f32 to vector<4x16xf32>
    %2169 = arith.mulf %2168, %2057 : vector<4x16xf32>
    %2170 = arith.addf %2167, %2169 : vector<4x16xf32>
    %cst_727 = arith.constant 0.556651413 : f32
    %2171 = vector.broadcast %cst_727 : f32 to vector<4x16xf32>
    %2172 = arith.mulf %2171, %2075 : vector<4x16xf32>
    %2173 = arith.addf %2170, %2172 : vector<4x16xf32>
    %cst_728 = arith.constant 0.0174005684 : f32
    %2174 = vector.broadcast %cst_728 : f32 to vector<4x16xf32>
    %2175 = arith.mulf %2174, %2105 : vector<4x16xf32>
    %2176 = arith.addf %2173, %2175 : vector<4x16xf32>
    %cst_729 = arith.constant -0.0170957074 : f32
    %2177 = vector.broadcast %cst_729 : f32 to vector<4x16xf32>
    %2178 = arith.mulf %2177, %2141 : vector<4x16xf32>
    %2179 = arith.addf %2176, %2178 : vector<4x16xf32>
    %2180 = arith.addf %2033, %2179 : vector<4x16xf32>
    %cst_730 = arith.constant dense<0.000000e+00> : vector<4x16xf32>
    %2181 = tpu.matmul %2180, %0, %cst_730 {dimension_numbers = #tpu.dot_dimension_numbers<[1], [0], [0], [1], [0, 0, 1, 1], [], []>} : vector<4x16xf32>, vector<16x16xf32>, vector<4x16xf32> -> vector<4x16xf32>
    %2182 = arith.addf %2181, %3 : vector<4x16xf32>
    %2183 = math.tanh %2182 : vector<4x16xf32>
    %cst_731 = arith.constant 0.00818452425 : f32
    %2184 = vector.broadcast %cst_731 : f32 to vector<4x16xf32>
    %2185 = arith.mulf %2184, %2165 : vector<4x16xf32>
    %2186 = arith.addf %2144, %2185 : vector<4x16xf32>
    %cst_732 = arith.constant 0.00818452425 : f32
    %2187 = vector.broadcast %cst_732 : f32 to vector<4x16xf32>
    %2188 = arith.mulf %2187, %2183 : vector<4x16xf32>
    %2189 = arith.addf %2147, %2188 : vector<4x16xf32>
    %c14_i32 = arith.constant 14 : i32
    %cst_733 = arith.constant dense<0.000000e+00> : vector<4x16xf32>
    %2190 = tpu.matmul %2186, %0, %cst_733 {dimension_numbers = #tpu.dot_dimension_numbers<[1], [0], [0], [1], [0, 0, 1, 1], [], []>} : vector<4x16xf32>, vector<16x16xf32>, vector<4x16xf32> -> vector<4x16xf32>
    %2191 = arith.addf %2190, %3 : vector<4x16xf32>
    %2192 = math.tanh %2191 : vector<4x16xf32>
    %cst_734 = arith.constant dense<0.000000e+00> : vector<4x16xf32>
    %2193 = tpu.matmul %2189, %0, %cst_734 {dimension_numbers = #tpu.dot_dimension_numbers<[1], [0], [0], [1], [0, 0, 1, 1], [], []>} : vector<4x16xf32>, vector<16x16xf32>, vector<4x16xf32> -> vector<4x16xf32>
    %2194 = arith.addf %2193, %3 : vector<4x16xf32>
    %2195 = math.tanh %2194 : vector<4x16xf32>
    %cst_735 = arith.constant 0.00569661474 : f32
    %2196 = vector.broadcast %cst_735 : f32 to vector<4x16xf32>
    %2197 = arith.mulf %2196, %2192 : vector<4x16xf32>
    %2198 = arith.addf %2186, %2197 : vector<4x16xf32>
    %cst_736 = arith.constant 0.00569661474 : f32
    %2199 = vector.broadcast %cst_736 : f32 to vector<4x16xf32>
    %2200 = arith.mulf %2199, %2195 : vector<4x16xf32>
    %2201 = arith.addf %2189, %2200 : vector<4x16xf32>
    %cst_737 = arith.constant 1.250000e-02 : f32
    %2202 = vector.broadcast %cst_737 : f32 to vector<4x16xf32>
    %2203 = arith.mulf %2202, %2192 : vector<4x16xf32>
    %2204 = arith.addf %2186, %2203 : vector<4x16xf32>
    %cst_738 = arith.constant dense<0.000000e+00> : vector<4x16xf32>
    %2205 = tpu.matmul %2204, %0, %cst_738 {dimension_numbers = #tpu.dot_dimension_numbers<[1], [0], [0], [1], [0, 0, 1, 1], [], []>} : vector<4x16xf32>, vector<16x16xf32>, vector<4x16xf32> -> vector<4x16xf32>
    %2206 = arith.addf %2205, %3 : vector<4x16xf32>
    %2207 = math.tanh %2206 : vector<4x16xf32>
    %cst_739 = arith.constant 1.250000e-02 : f32
    %2208 = vector.broadcast %cst_739 : f32 to vector<4x16xf32>
    %2209 = arith.mulf %2208, %2195 : vector<4x16xf32>
    %2210 = arith.addf %2189, %2209 : vector<4x16xf32>
    %cst_740 = arith.constant dense<0.000000e+00> : vector<4x16xf32>
    %2211 = tpu.matmul %2210, %0, %cst_740 {dimension_numbers = #tpu.dot_dimension_numbers<[1], [0], [0], [1], [0, 0, 1, 1], [], []>} : vector<4x16xf32>, vector<16x16xf32>, vector<4x16xf32> -> vector<4x16xf32>
    %2212 = arith.addf %2211, %3 : vector<4x16xf32>
    %2213 = math.tanh %2212 : vector<4x16xf32>
    %cst_741 = arith.constant 4.687500e-03 : f32
    %2214 = vector.broadcast %cst_741 : f32 to vector<4x16xf32>
    %2215 = arith.mulf %2214, %2192 : vector<4x16xf32>
    %cst_742 = arith.constant 1.406250e-02 : f32
    %2216 = vector.broadcast %cst_742 : f32 to vector<4x16xf32>
    %2217 = arith.mulf %2216, %2207 : vector<4x16xf32>
    %2218 = arith.addf %2215, %2217 : vector<4x16xf32>
    %2219 = arith.addf %2186, %2218 : vector<4x16xf32>
    %cst_743 = arith.constant dense<0.000000e+00> : vector<4x16xf32>
    %2220 = tpu.matmul %2219, %0, %cst_743 {dimension_numbers = #tpu.dot_dimension_numbers<[1], [0], [0], [1], [0, 0, 1, 1], [], []>} : vector<4x16xf32>, vector<16x16xf32>, vector<4x16xf32> -> vector<4x16xf32>
    %2221 = arith.addf %2220, %3 : vector<4x16xf32>
    %2222 = math.tanh %2221 : vector<4x16xf32>
    %cst_744 = arith.constant 4.687500e-03 : f32
    %2223 = vector.broadcast %cst_744 : f32 to vector<4x16xf32>
    %2224 = arith.mulf %2223, %2195 : vector<4x16xf32>
    %cst_745 = arith.constant 1.406250e-02 : f32
    %2225 = vector.broadcast %cst_745 : f32 to vector<4x16xf32>
    %2226 = arith.mulf %2225, %2213 : vector<4x16xf32>
    %2227 = arith.addf %2224, %2226 : vector<4x16xf32>
    %2228 = arith.addf %2189, %2227 : vector<4x16xf32>
    %cst_746 = arith.constant dense<0.000000e+00> : vector<4x16xf32>
    %2229 = tpu.matmul %2228, %0, %cst_746 {dimension_numbers = #tpu.dot_dimension_numbers<[1], [0], [0], [1], [0, 0, 1, 1], [], []>} : vector<4x16xf32>, vector<16x16xf32>, vector<4x16xf32> -> vector<4x16xf32>
    %2230 = arith.addf %2229, %3 : vector<4x16xf32>
    %2231 = math.tanh %2230 : vector<4x16xf32>
    %cst_747 = arith.constant 0.028077269 : f32
    %2232 = vector.broadcast %cst_747 : f32 to vector<4x16xf32>
    %2233 = arith.mulf %2232, %2222 : vector<4x16xf32>
    %2234 = arith.addf %2198, %2233 : vector<4x16xf32>
    %cst_748 = arith.constant 0.028077269 : f32
    %2235 = vector.broadcast %cst_748 : f32 to vector<4x16xf32>
    %2236 = arith.mulf %2235, %2231 : vector<4x16xf32>
    %2237 = arith.addf %2201, %2236 : vector<4x16xf32>
    %cst_749 = arith.constant 0.0611111112 : f32
    %2238 = vector.broadcast %cst_749 : f32 to vector<4x16xf32>
    %2239 = arith.mulf %2238, %2192 : vector<4x16xf32>
    %cst_750 = arith.constant -0.233333334 : f32
    %2240 = vector.broadcast %cst_750 : f32 to vector<4x16xf32>
    %2241 = arith.mulf %2240, %2207 : vector<4x16xf32>
    %2242 = arith.addf %2239, %2241 : vector<4x16xf32>
    %cst_751 = arith.constant 0.222222224 : f32
    %2243 = vector.broadcast %cst_751 : f32 to vector<4x16xf32>
    %2244 = arith.mulf %2243, %2222 : vector<4x16xf32>
    %2245 = arith.addf %2242, %2244 : vector<4x16xf32>
    %2246 = arith.addf %2186, %2245 : vector<4x16xf32>
    %cst_752 = arith.constant dense<0.000000e+00> : vector<4x16xf32>
    %2247 = tpu.matmul %2246, %0, %cst_752 {dimension_numbers = #tpu.dot_dimension_numbers<[1], [0], [0], [1], [0, 0, 1, 1], [], []>} : vector<4x16xf32>, vector<16x16xf32>, vector<4x16xf32> -> vector<4x16xf32>
    %2248 = arith.addf %2247, %3 : vector<4x16xf32>
    %2249 = math.tanh %2248 : vector<4x16xf32>
    %cst_753 = arith.constant 0.0611111112 : f32
    %2250 = vector.broadcast %cst_753 : f32 to vector<4x16xf32>
    %2251 = arith.mulf %2250, %2195 : vector<4x16xf32>
    %cst_754 = arith.constant -0.233333334 : f32
    %2252 = vector.broadcast %cst_754 : f32 to vector<4x16xf32>
    %2253 = arith.mulf %2252, %2213 : vector<4x16xf32>
    %2254 = arith.addf %2251, %2253 : vector<4x16xf32>
    %cst_755 = arith.constant 0.222222224 : f32
    %2255 = vector.broadcast %cst_755 : f32 to vector<4x16xf32>
    %2256 = arith.mulf %2255, %2231 : vector<4x16xf32>
    %2257 = arith.addf %2254, %2256 : vector<4x16xf32>
    %2258 = arith.addf %2189, %2257 : vector<4x16xf32>
    %cst_756 = arith.constant dense<0.000000e+00> : vector<4x16xf32>
    %2259 = tpu.matmul %2258, %0, %cst_756 {dimension_numbers = #tpu.dot_dimension_numbers<[1], [0], [0], [1], [0, 0, 1, 1], [], []>} : vector<4x16xf32>, vector<16x16xf32>, vector<4x16xf32> -> vector<4x16xf32>
    %2260 = arith.addf %2259, %3 : vector<4x16xf32>
    %2261 = math.tanh %2260 : vector<4x16xf32>
    %cst_757 = arith.constant 0.0406901054 : f32
    %2262 = vector.broadcast %cst_757 : f32 to vector<4x16xf32>
    %2263 = arith.mulf %2262, %2249 : vector<4x16xf32>
    %2264 = arith.addf %2234, %2263 : vector<4x16xf32>
    %cst_758 = arith.constant 0.0406901054 : f32
    %2265 = vector.broadcast %cst_758 : f32 to vector<4x16xf32>
    %2266 = arith.mulf %2265, %2261 : vector<4x16xf32>
    %2267 = arith.addf %2237, %2266 : vector<4x16xf32>
    %cst_759 = arith.constant 0.184537411 : f32
    %2268 = vector.broadcast %cst_759 : f32 to vector<4x16xf32>
    %2269 = arith.mulf %2268, %2192 : vector<4x16xf32>
    %cst_760 = arith.constant -0.724737107 : f32
    %2270 = vector.broadcast %cst_760 : f32 to vector<4x16xf32>
    %2271 = arith.mulf %2270, %2207 : vector<4x16xf32>
    %2272 = arith.addf %2269, %2271 : vector<4x16xf32>
    %cst_761 = arith.constant 0.613930821 : f32
    %2273 = vector.broadcast %cst_761 : f32 to vector<4x16xf32>
    %2274 = arith.mulf %2273, %2222 : vector<4x16xf32>
    %2275 = arith.addf %2272, %2274 : vector<4x16xf32>
    %cst_762 = arith.constant -0.0181755833 : f32
    %2276 = vector.broadcast %cst_762 : f32 to vector<4x16xf32>
    %2277 = arith.mulf %2276, %2249 : vector<4x16xf32>
    %2278 = arith.addf %2275, %2277 : vector<4x16xf32>
    %2279 = arith.addf %2186, %2278 : vector<4x16xf32>
    %cst_763 = arith.constant dense<0.000000e+00> : vector<4x16xf32>
    %2280 = tpu.matmul %2279, %0, %cst_763 {dimension_numbers = #tpu.dot_dimension_numbers<[1], [0], [0], [1], [0, 0, 1, 1], [], []>} : vector<4x16xf32>, vector<16x16xf32>, vector<4x16xf32> -> vector<4x16xf32>
    %2281 = arith.addf %2280, %3 : vector<4x16xf32>
    %2282 = math.tanh %2281 : vector<4x16xf32>
    %cst_764 = arith.constant 0.184537411 : f32
    %2283 = vector.broadcast %cst_764 : f32 to vector<4x16xf32>
    %2284 = arith.mulf %2283, %2195 : vector<4x16xf32>
    %cst_765 = arith.constant -0.724737107 : f32
    %2285 = vector.broadcast %cst_765 : f32 to vector<4x16xf32>
    %2286 = arith.mulf %2285, %2213 : vector<4x16xf32>
    %2287 = arith.addf %2284, %2286 : vector<4x16xf32>
    %cst_766 = arith.constant 0.613930821 : f32
    %2288 = vector.broadcast %cst_766 : f32 to vector<4x16xf32>
    %2289 = arith.mulf %2288, %2231 : vector<4x16xf32>
    %2290 = arith.addf %2287, %2289 : vector<4x16xf32>
    %cst_767 = arith.constant -0.0181755833 : f32
    %2291 = vector.broadcast %cst_767 : f32 to vector<4x16xf32>
    %2292 = arith.mulf %2291, %2261 : vector<4x16xf32>
    %2293 = arith.addf %2290, %2292 : vector<4x16xf32>
    %2294 = arith.addf %2189, %2293 : vector<4x16xf32>
    %cst_768 = arith.constant dense<0.000000e+00> : vector<4x16xf32>
    %2295 = tpu.matmul %2294, %0, %cst_768 {dimension_numbers = #tpu.dot_dimension_numbers<[1], [0], [0], [1], [0, 0, 1, 1], [], []>} : vector<4x16xf32>, vector<16x16xf32>, vector<4x16xf32> -> vector<4x16xf32>
    %2296 = arith.addf %2295, %3 : vector<4x16xf32>
    %2297 = math.tanh %2296 : vector<4x16xf32>
    %cst_769 = arith.constant -0.020148512 : f32
    %2298 = vector.broadcast %cst_769 : f32 to vector<4x16xf32>
    %2299 = arith.mulf %2298, %2282 : vector<4x16xf32>
    %2300 = arith.addf %2264, %2299 : vector<4x16xf32>
    %cst_770 = arith.constant -0.020148512 : f32
    %2301 = vector.broadcast %cst_770 : f32 to vector<4x16xf32>
    %2302 = arith.mulf %2301, %2297 : vector<4x16xf32>
    %2303 = arith.addf %2267, %2302 : vector<4x16xf32>
    %cst_771 = arith.constant 0.177892208 : f32
    %2304 = vector.broadcast %cst_771 : f32 to vector<4x16xf32>
    %2305 = arith.mulf %2304, %2192 : vector<4x16xf32>
    %cst_772 = arith.constant -0.672348499 : f32
    %2306 = vector.broadcast %cst_772 : f32 to vector<4x16xf32>
    %2307 = arith.mulf %2306, %2207 : vector<4x16xf32>
    %2308 = arith.addf %2305, %2307 : vector<4x16xf32>
    %cst_773 = arith.constant 0.556651413 : f32
    %2309 = vector.broadcast %cst_773 : f32 to vector<4x16xf32>
    %2310 = arith.mulf %2309, %2222 : vector<4x16xf32>
    %2311 = arith.addf %2308, %2310 : vector<4x16xf32>
    %cst_774 = arith.constant 0.0174005684 : f32
    %2312 = vector.broadcast %cst_774 : f32 to vector<4x16xf32>
    %2313 = arith.mulf %2312, %2249 : vector<4x16xf32>
    %2314 = arith.addf %2311, %2313 : vector<4x16xf32>
    %cst_775 = arith.constant -0.0170957074 : f32
    %2315 = vector.broadcast %cst_775 : f32 to vector<4x16xf32>
    %2316 = arith.mulf %2315, %2282 : vector<4x16xf32>
    %2317 = arith.addf %2314, %2316 : vector<4x16xf32>
    %2318 = arith.addf %2186, %2317 : vector<4x16xf32>
    %cst_776 = arith.constant dense<0.000000e+00> : vector<4x16xf32>
    %2319 = tpu.matmul %2318, %0, %cst_776 {dimension_numbers = #tpu.dot_dimension_numbers<[1], [0], [0], [1], [0, 0, 1, 1], [], []>} : vector<4x16xf32>, vector<16x16xf32>, vector<4x16xf32> -> vector<4x16xf32>
    %2320 = arith.addf %2319, %3 : vector<4x16xf32>
    %2321 = math.tanh %2320 : vector<4x16xf32>
    %cst_777 = arith.constant 0.177892208 : f32
    %2322 = vector.broadcast %cst_777 : f32 to vector<4x16xf32>
    %2323 = arith.mulf %2322, %2195 : vector<4x16xf32>
    %cst_778 = arith.constant -0.672348499 : f32
    %2324 = vector.broadcast %cst_778 : f32 to vector<4x16xf32>
    %2325 = arith.mulf %2324, %2213 : vector<4x16xf32>
    %2326 = arith.addf %2323, %2325 : vector<4x16xf32>
    %cst_779 = arith.constant 0.556651413 : f32
    %2327 = vector.broadcast %cst_779 : f32 to vector<4x16xf32>
    %2328 = arith.mulf %2327, %2231 : vector<4x16xf32>
    %2329 = arith.addf %2326, %2328 : vector<4x16xf32>
    %cst_780 = arith.constant 0.0174005684 : f32
    %2330 = vector.broadcast %cst_780 : f32 to vector<4x16xf32>
    %2331 = arith.mulf %2330, %2261 : vector<4x16xf32>
    %2332 = arith.addf %2329, %2331 : vector<4x16xf32>
    %cst_781 = arith.constant -0.0170957074 : f32
    %2333 = vector.broadcast %cst_781 : f32 to vector<4x16xf32>
    %2334 = arith.mulf %2333, %2297 : vector<4x16xf32>
    %2335 = arith.addf %2332, %2334 : vector<4x16xf32>
    %2336 = arith.addf %2189, %2335 : vector<4x16xf32>
    %cst_782 = arith.constant dense<0.000000e+00> : vector<4x16xf32>
    %2337 = tpu.matmul %2336, %0, %cst_782 {dimension_numbers = #tpu.dot_dimension_numbers<[1], [0], [0], [1], [0, 0, 1, 1], [], []>} : vector<4x16xf32>, vector<16x16xf32>, vector<4x16xf32> -> vector<4x16xf32>
    %2338 = arith.addf %2337, %3 : vector<4x16xf32>
    %2339 = math.tanh %2338 : vector<4x16xf32>
    %cst_783 = arith.constant 0.00818452425 : f32
    %2340 = vector.broadcast %cst_783 : f32 to vector<4x16xf32>
    %2341 = arith.mulf %2340, %2321 : vector<4x16xf32>
    %2342 = arith.addf %2300, %2341 : vector<4x16xf32>
    %cst_784 = arith.constant 0.00818452425 : f32
    %2343 = vector.broadcast %cst_784 : f32 to vector<4x16xf32>
    %2344 = arith.mulf %2343, %2339 : vector<4x16xf32>
    %2345 = arith.addf %2303, %2344 : vector<4x16xf32>
    %c15_i32 = arith.constant 15 : i32
    %cst_785 = arith.constant dense<0.000000e+00> : vector<4x16xf32>
    %2346 = tpu.matmul %2342, %0, %cst_785 {dimension_numbers = #tpu.dot_dimension_numbers<[1], [0], [0], [1], [0, 0, 1, 1], [], []>} : vector<4x16xf32>, vector<16x16xf32>, vector<4x16xf32> -> vector<4x16xf32>
    %2347 = arith.addf %2346, %3 : vector<4x16xf32>
    %2348 = math.tanh %2347 : vector<4x16xf32>
    %cst_786 = arith.constant dense<0.000000e+00> : vector<4x16xf32>
    %2349 = tpu.matmul %2345, %0, %cst_786 {dimension_numbers = #tpu.dot_dimension_numbers<[1], [0], [0], [1], [0, 0, 1, 1], [], []>} : vector<4x16xf32>, vector<16x16xf32>, vector<4x16xf32> -> vector<4x16xf32>
    %2350 = arith.addf %2349, %3 : vector<4x16xf32>
    %2351 = math.tanh %2350 : vector<4x16xf32>
    %cst_787 = arith.constant 0.00569661474 : f32
    %2352 = vector.broadcast %cst_787 : f32 to vector<4x16xf32>
    %2353 = arith.mulf %2352, %2348 : vector<4x16xf32>
    %2354 = arith.addf %2342, %2353 : vector<4x16xf32>
    %cst_788 = arith.constant 0.00569661474 : f32
    %2355 = vector.broadcast %cst_788 : f32 to vector<4x16xf32>
    %2356 = arith.mulf %2355, %2351 : vector<4x16xf32>
    %2357 = arith.addf %2345, %2356 : vector<4x16xf32>
    %cst_789 = arith.constant 1.250000e-02 : f32
    %2358 = vector.broadcast %cst_789 : f32 to vector<4x16xf32>
    %2359 = arith.mulf %2358, %2348 : vector<4x16xf32>
    %2360 = arith.addf %2342, %2359 : vector<4x16xf32>
    %cst_790 = arith.constant dense<0.000000e+00> : vector<4x16xf32>
    %2361 = tpu.matmul %2360, %0, %cst_790 {dimension_numbers = #tpu.dot_dimension_numbers<[1], [0], [0], [1], [0, 0, 1, 1], [], []>} : vector<4x16xf32>, vector<16x16xf32>, vector<4x16xf32> -> vector<4x16xf32>
    %2362 = arith.addf %2361, %3 : vector<4x16xf32>
    %2363 = math.tanh %2362 : vector<4x16xf32>
    %cst_791 = arith.constant 1.250000e-02 : f32
    %2364 = vector.broadcast %cst_791 : f32 to vector<4x16xf32>
    %2365 = arith.mulf %2364, %2351 : vector<4x16xf32>
    %2366 = arith.addf %2345, %2365 : vector<4x16xf32>
    %cst_792 = arith.constant dense<0.000000e+00> : vector<4x16xf32>
    %2367 = tpu.matmul %2366, %0, %cst_792 {dimension_numbers = #tpu.dot_dimension_numbers<[1], [0], [0], [1], [0, 0, 1, 1], [], []>} : vector<4x16xf32>, vector<16x16xf32>, vector<4x16xf32> -> vector<4x16xf32>
    %2368 = arith.addf %2367, %3 : vector<4x16xf32>
    %2369 = math.tanh %2368 : vector<4x16xf32>
    %cst_793 = arith.constant 4.687500e-03 : f32
    %2370 = vector.broadcast %cst_793 : f32 to vector<4x16xf32>
    %2371 = arith.mulf %2370, %2348 : vector<4x16xf32>
    %cst_794 = arith.constant 1.406250e-02 : f32
    %2372 = vector.broadcast %cst_794 : f32 to vector<4x16xf32>
    %2373 = arith.mulf %2372, %2363 : vector<4x16xf32>
    %2374 = arith.addf %2371, %2373 : vector<4x16xf32>
    %2375 = arith.addf %2342, %2374 : vector<4x16xf32>
    %cst_795 = arith.constant dense<0.000000e+00> : vector<4x16xf32>
    %2376 = tpu.matmul %2375, %0, %cst_795 {dimension_numbers = #tpu.dot_dimension_numbers<[1], [0], [0], [1], [0, 0, 1, 1], [], []>} : vector<4x16xf32>, vector<16x16xf32>, vector<4x16xf32> -> vector<4x16xf32>
    %2377 = arith.addf %2376, %3 : vector<4x16xf32>
    %2378 = math.tanh %2377 : vector<4x16xf32>
    %cst_796 = arith.constant 4.687500e-03 : f32
    %2379 = vector.broadcast %cst_796 : f32 to vector<4x16xf32>
    %2380 = arith.mulf %2379, %2351 : vector<4x16xf32>
    %cst_797 = arith.constant 1.406250e-02 : f32
    %2381 = vector.broadcast %cst_797 : f32 to vector<4x16xf32>
    %2382 = arith.mulf %2381, %2369 : vector<4x16xf32>
    %2383 = arith.addf %2380, %2382 : vector<4x16xf32>
    %2384 = arith.addf %2345, %2383 : vector<4x16xf32>
    %cst_798 = arith.constant dense<0.000000e+00> : vector<4x16xf32>
    %2385 = tpu.matmul %2384, %0, %cst_798 {dimension_numbers = #tpu.dot_dimension_numbers<[1], [0], [0], [1], [0, 0, 1, 1], [], []>} : vector<4x16xf32>, vector<16x16xf32>, vector<4x16xf32> -> vector<4x16xf32>
    %2386 = arith.addf %2385, %3 : vector<4x16xf32>
    %2387 = math.tanh %2386 : vector<4x16xf32>
    %cst_799 = arith.constant 0.028077269 : f32
    %2388 = vector.broadcast %cst_799 : f32 to vector<4x16xf32>
    %2389 = arith.mulf %2388, %2378 : vector<4x16xf32>
    %2390 = arith.addf %2354, %2389 : vector<4x16xf32>
    %cst_800 = arith.constant 0.028077269 : f32
    %2391 = vector.broadcast %cst_800 : f32 to vector<4x16xf32>
    %2392 = arith.mulf %2391, %2387 : vector<4x16xf32>
    %2393 = arith.addf %2357, %2392 : vector<4x16xf32>
    %cst_801 = arith.constant 0.0611111112 : f32
    %2394 = vector.broadcast %cst_801 : f32 to vector<4x16xf32>
    %2395 = arith.mulf %2394, %2348 : vector<4x16xf32>
    %cst_802 = arith.constant -0.233333334 : f32
    %2396 = vector.broadcast %cst_802 : f32 to vector<4x16xf32>
    %2397 = arith.mulf %2396, %2363 : vector<4x16xf32>
    %2398 = arith.addf %2395, %2397 : vector<4x16xf32>
    %cst_803 = arith.constant 0.222222224 : f32
    %2399 = vector.broadcast %cst_803 : f32 to vector<4x16xf32>
    %2400 = arith.mulf %2399, %2378 : vector<4x16xf32>
    %2401 = arith.addf %2398, %2400 : vector<4x16xf32>
    %2402 = arith.addf %2342, %2401 : vector<4x16xf32>
    %cst_804 = arith.constant dense<0.000000e+00> : vector<4x16xf32>
    %2403 = tpu.matmul %2402, %0, %cst_804 {dimension_numbers = #tpu.dot_dimension_numbers<[1], [0], [0], [1], [0, 0, 1, 1], [], []>} : vector<4x16xf32>, vector<16x16xf32>, vector<4x16xf32> -> vector<4x16xf32>
    %2404 = arith.addf %2403, %3 : vector<4x16xf32>
    %2405 = math.tanh %2404 : vector<4x16xf32>
    %cst_805 = arith.constant 0.0611111112 : f32
    %2406 = vector.broadcast %cst_805 : f32 to vector<4x16xf32>
    %2407 = arith.mulf %2406, %2351 : vector<4x16xf32>
    %cst_806 = arith.constant -0.233333334 : f32
    %2408 = vector.broadcast %cst_806 : f32 to vector<4x16xf32>
    %2409 = arith.mulf %2408, %2369 : vector<4x16xf32>
    %2410 = arith.addf %2407, %2409 : vector<4x16xf32>
    %cst_807 = arith.constant 0.222222224 : f32
    %2411 = vector.broadcast %cst_807 : f32 to vector<4x16xf32>
    %2412 = arith.mulf %2411, %2387 : vector<4x16xf32>
    %2413 = arith.addf %2410, %2412 : vector<4x16xf32>
    %2414 = arith.addf %2345, %2413 : vector<4x16xf32>
    %cst_808 = arith.constant dense<0.000000e+00> : vector<4x16xf32>
    %2415 = tpu.matmul %2414, %0, %cst_808 {dimension_numbers = #tpu.dot_dimension_numbers<[1], [0], [0], [1], [0, 0, 1, 1], [], []>} : vector<4x16xf32>, vector<16x16xf32>, vector<4x16xf32> -> vector<4x16xf32>
    %2416 = arith.addf %2415, %3 : vector<4x16xf32>
    %2417 = math.tanh %2416 : vector<4x16xf32>
    %cst_809 = arith.constant 0.0406901054 : f32
    %2418 = vector.broadcast %cst_809 : f32 to vector<4x16xf32>
    %2419 = arith.mulf %2418, %2405 : vector<4x16xf32>
    %2420 = arith.addf %2390, %2419 : vector<4x16xf32>
    %cst_810 = arith.constant 0.0406901054 : f32
    %2421 = vector.broadcast %cst_810 : f32 to vector<4x16xf32>
    %2422 = arith.mulf %2421, %2417 : vector<4x16xf32>
    %2423 = arith.addf %2393, %2422 : vector<4x16xf32>
    %cst_811 = arith.constant 0.184537411 : f32
    %2424 = vector.broadcast %cst_811 : f32 to vector<4x16xf32>
    %2425 = arith.mulf %2424, %2348 : vector<4x16xf32>
    %cst_812 = arith.constant -0.724737107 : f32
    %2426 = vector.broadcast %cst_812 : f32 to vector<4x16xf32>
    %2427 = arith.mulf %2426, %2363 : vector<4x16xf32>
    %2428 = arith.addf %2425, %2427 : vector<4x16xf32>
    %cst_813 = arith.constant 0.613930821 : f32
    %2429 = vector.broadcast %cst_813 : f32 to vector<4x16xf32>
    %2430 = arith.mulf %2429, %2378 : vector<4x16xf32>
    %2431 = arith.addf %2428, %2430 : vector<4x16xf32>
    %cst_814 = arith.constant -0.0181755833 : f32
    %2432 = vector.broadcast %cst_814 : f32 to vector<4x16xf32>
    %2433 = arith.mulf %2432, %2405 : vector<4x16xf32>
    %2434 = arith.addf %2431, %2433 : vector<4x16xf32>
    %2435 = arith.addf %2342, %2434 : vector<4x16xf32>
    %cst_815 = arith.constant dense<0.000000e+00> : vector<4x16xf32>
    %2436 = tpu.matmul %2435, %0, %cst_815 {dimension_numbers = #tpu.dot_dimension_numbers<[1], [0], [0], [1], [0, 0, 1, 1], [], []>} : vector<4x16xf32>, vector<16x16xf32>, vector<4x16xf32> -> vector<4x16xf32>
    %2437 = arith.addf %2436, %3 : vector<4x16xf32>
    %2438 = math.tanh %2437 : vector<4x16xf32>
    %cst_816 = arith.constant 0.184537411 : f32
    %2439 = vector.broadcast %cst_816 : f32 to vector<4x16xf32>
    %2440 = arith.mulf %2439, %2351 : vector<4x16xf32>
    %cst_817 = arith.constant -0.724737107 : f32
    %2441 = vector.broadcast %cst_817 : f32 to vector<4x16xf32>
    %2442 = arith.mulf %2441, %2369 : vector<4x16xf32>
    %2443 = arith.addf %2440, %2442 : vector<4x16xf32>
    %cst_818 = arith.constant 0.613930821 : f32
    %2444 = vector.broadcast %cst_818 : f32 to vector<4x16xf32>
    %2445 = arith.mulf %2444, %2387 : vector<4x16xf32>
    %2446 = arith.addf %2443, %2445 : vector<4x16xf32>
    %cst_819 = arith.constant -0.0181755833 : f32
    %2447 = vector.broadcast %cst_819 : f32 to vector<4x16xf32>
    %2448 = arith.mulf %2447, %2417 : vector<4x16xf32>
    %2449 = arith.addf %2446, %2448 : vector<4x16xf32>
    %2450 = arith.addf %2345, %2449 : vector<4x16xf32>
    %cst_820 = arith.constant dense<0.000000e+00> : vector<4x16xf32>
    %2451 = tpu.matmul %2450, %0, %cst_820 {dimension_numbers = #tpu.dot_dimension_numbers<[1], [0], [0], [1], [0, 0, 1, 1], [], []>} : vector<4x16xf32>, vector<16x16xf32>, vector<4x16xf32> -> vector<4x16xf32>
    %2452 = arith.addf %2451, %3 : vector<4x16xf32>
    %2453 = math.tanh %2452 : vector<4x16xf32>
    %cst_821 = arith.constant -0.020148512 : f32
    %2454 = vector.broadcast %cst_821 : f32 to vector<4x16xf32>
    %2455 = arith.mulf %2454, %2438 : vector<4x16xf32>
    %2456 = arith.addf %2420, %2455 : vector<4x16xf32>
    %cst_822 = arith.constant -0.020148512 : f32
    %2457 = vector.broadcast %cst_822 : f32 to vector<4x16xf32>
    %2458 = arith.mulf %2457, %2453 : vector<4x16xf32>
    %2459 = arith.addf %2423, %2458 : vector<4x16xf32>
    %cst_823 = arith.constant 0.177892208 : f32
    %2460 = vector.broadcast %cst_823 : f32 to vector<4x16xf32>
    %2461 = arith.mulf %2460, %2348 : vector<4x16xf32>
    %cst_824 = arith.constant -0.672348499 : f32
    %2462 = vector.broadcast %cst_824 : f32 to vector<4x16xf32>
    %2463 = arith.mulf %2462, %2363 : vector<4x16xf32>
    %2464 = arith.addf %2461, %2463 : vector<4x16xf32>
    %cst_825 = arith.constant 0.556651413 : f32
    %2465 = vector.broadcast %cst_825 : f32 to vector<4x16xf32>
    %2466 = arith.mulf %2465, %2378 : vector<4x16xf32>
    %2467 = arith.addf %2464, %2466 : vector<4x16xf32>
    %cst_826 = arith.constant 0.0174005684 : f32
    %2468 = vector.broadcast %cst_826 : f32 to vector<4x16xf32>
    %2469 = arith.mulf %2468, %2405 : vector<4x16xf32>
    %2470 = arith.addf %2467, %2469 : vector<4x16xf32>
    %cst_827 = arith.constant -0.0170957074 : f32
    %2471 = vector.broadcast %cst_827 : f32 to vector<4x16xf32>
    %2472 = arith.mulf %2471, %2438 : vector<4x16xf32>
    %2473 = arith.addf %2470, %2472 : vector<4x16xf32>
    %2474 = arith.addf %2342, %2473 : vector<4x16xf32>
    %cst_828 = arith.constant dense<0.000000e+00> : vector<4x16xf32>
    %2475 = tpu.matmul %2474, %0, %cst_828 {dimension_numbers = #tpu.dot_dimension_numbers<[1], [0], [0], [1], [0, 0, 1, 1], [], []>} : vector<4x16xf32>, vector<16x16xf32>, vector<4x16xf32> -> vector<4x16xf32>
    %2476 = arith.addf %2475, %3 : vector<4x16xf32>
    %2477 = math.tanh %2476 : vector<4x16xf32>
    %cst_829 = arith.constant 0.177892208 : f32
    %2478 = vector.broadcast %cst_829 : f32 to vector<4x16xf32>
    %2479 = arith.mulf %2478, %2351 : vector<4x16xf32>
    %cst_830 = arith.constant -0.672348499 : f32
    %2480 = vector.broadcast %cst_830 : f32 to vector<4x16xf32>
    %2481 = arith.mulf %2480, %2369 : vector<4x16xf32>
    %2482 = arith.addf %2479, %2481 : vector<4x16xf32>
    %cst_831 = arith.constant 0.556651413 : f32
    %2483 = vector.broadcast %cst_831 : f32 to vector<4x16xf32>
    %2484 = arith.mulf %2483, %2387 : vector<4x16xf32>
    %2485 = arith.addf %2482, %2484 : vector<4x16xf32>
    %cst_832 = arith.constant 0.0174005684 : f32
    %2486 = vector.broadcast %cst_832 : f32 to vector<4x16xf32>
    %2487 = arith.mulf %2486, %2417 : vector<4x16xf32>
    %2488 = arith.addf %2485, %2487 : vector<4x16xf32>
    %cst_833 = arith.constant -0.0170957074 : f32
    %2489 = vector.broadcast %cst_833 : f32 to vector<4x16xf32>
    %2490 = arith.mulf %2489, %2453 : vector<4x16xf32>
    %2491 = arith.addf %2488, %2490 : vector<4x16xf32>
    %2492 = arith.addf %2345, %2491 : vector<4x16xf32>
    %cst_834 = arith.constant dense<0.000000e+00> : vector<4x16xf32>
    %2493 = tpu.matmul %2492, %0, %cst_834 {dimension_numbers = #tpu.dot_dimension_numbers<[1], [0], [0], [1], [0, 0, 1, 1], [], []>} : vector<4x16xf32>, vector<16x16xf32>, vector<4x16xf32> -> vector<4x16xf32>
    %2494 = arith.addf %2493, %3 : vector<4x16xf32>
    %2495 = math.tanh %2494 : vector<4x16xf32>
    %cst_835 = arith.constant 0.00818452425 : f32
    %2496 = vector.broadcast %cst_835 : f32 to vector<4x16xf32>
    %2497 = arith.mulf %2496, %2477 : vector<4x16xf32>
    %2498 = arith.addf %2456, %2497 : vector<4x16xf32>
    %cst_836 = arith.constant 0.00818452425 : f32
    %2499 = vector.broadcast %cst_836 : f32 to vector<4x16xf32>
    %2500 = arith.mulf %2499, %2495 : vector<4x16xf32>
    %2501 = arith.addf %2459, %2500 : vector<4x16xf32>
    %c0_837 = arith.constant 0 : index
    %c0_838 = arith.constant 0 : index
    %2502 = vector.load %arg3[%c0_837, %c0_838] : memref<8x16xf32, #tpu.memory_space<vmem>>, vector<4x16xf32>
    tpu.vector_store %arg3[%c0_837, %c0_838], %2498 {strides = array<i32>} : memref<8x16xf32, #tpu.memory_space<vmem>>, vector<4x16xf32>,
    %c4_839 = arith.constant 4 : index
    %c0_840 = arith.constant 0 : index
    %2503 = vector.load %arg3[%c4_839, %c0_840] : memref<8x16xf32, #tpu.memory_space<vmem>>, vector<4x16xf32>
    tpu.vector_store %arg3[%c4_839, %c0_840], %2501 {strides = array<i32>} : memref<8x16xf32, #tpu.memory_space<vmem>>, vector<4x16xf32>,
    return
  }
}

</mosaic_0001>

<bundles_post_ra>
// kernel: ffjord_forward.1
= control target key start
LH: loop header
LB: loop body
LE: loop exit
PB: predicated region body
PF: predicated region fallthrough
CT: control target
= control target key end

     0   :  { %8 = vsyncpa [#allocation3], 0  ;;  %s7770_s0 = inlined_call_operand.hbm [shape: f32[8,16], index: 0, kind: input, shape index: {}]   ;;  %s7771_s1 = inlined_call_operand.hbm [shape: f32[16,16], index: 1, kind: input, shape index: {}]   ;;  %s7772_s2 = inlined_call_operand.vmem [shape: f32[1,16], index: 2, kind: input, shape index: {}]   ;;  %s7773_s3 = inlined_call_operand.hbm [shape: f32[8,16], index: 3, kind: output, shape index: {}]  }
   0x1   :  { %9 = vsyncpa [#allocation6], 0 }
   0x2   :  { %10 = vsyncpa [#allocation4], 0  ;;  %s16_s14 = sshll.u32 %s7770_s0, 4  ;;  %s6635_s15 = smov [#allocation2]   ;;  %s17_s14 = int_to_ptr.hbm [resolvable:$true] %s16_s14 }
   0x3   :  { %s18_s16 = sshll.u32 %s6635_s15, 4  ;;  %s26_s19 = sshll.u32 %s7771_s1, 4  ;;  %s19_s16 = int_to_ptr.vmem [resolvable:$true] %s18_s16  ;;  %s27_s19 = int_to_ptr.hbm [resolvable:$true] %s26_s19 }
   0x4   :  { %21 = dma.hbm_to_vmem [thread:$0]  %s17_s14, 128, %s19_s16, [#allocation3]  }
   0x5   :  { %s6636_s20 = smov [#allocation5]   ;;  %s6637_s22 = smov 128  }
   0x6   :  { %s28_s21 = sshll.u32 %s6636_s20, 4  ;;  %s6638_s23 = smov 8   ;;  %s29_s21 = int_to_ptr.vmem [resolvable:$true] %s28_s21 }
   0x7   :  { %34 = dma.hbm_to_vmem [thread:$0]  %s27_s19, 256, %s29_s21, [#allocation6], %s6637_s22, %s6637_s22, %s6638_s23  }
   0x8   :  { %6629 = dma.done.wait [#allocation3], 128  }
   0x9   :  { %6630 = vsyncadd [#allocation3], 4294967168 }
   0xa   :  { %6631 = dma.done.wait [#allocation6], 256  }
   0xb   :  { %6632 = vsyncadd [#allocation6], 4294967040  ;;  %v6666_v0 = vld [vmem:[#allocation5] sm:$0xff]  ;;  %v6668_v1 = vld [vmem:[#allocation5 + $0x8] sm:$0xff]  ;;  %vm53_vm0 = vcmask 130048   ;;  %s5952_s8 = sshll.u32 %s7773_s3, 4  ;;  %s5953_s8 = int_to_ptr.hbm [resolvable:$true] %s5952_s8 }
   0xc   :  { %71 = vmatpush.msra.mxu0 %v6668_v1  ;;  %95 = vmatpush.msra.mxu1 %v6668_v1  ;;  %v6672_v2 = vld [vmem:[#allocation2] sm:$0xf]  ;;  %v6674_v3 = vld [vmem:[#allocation2 + $0x4] sm:$0xf]  ;;  %vm5942_vm1 = vcmask 125952  }
   0xd   :  { %125 = vmatpush.msra.mxu2 %v6668_v1  ;;  %151 = vmatpush.msra.mxu3 %v6668_v1  ;;  %v6701_v4 = vld [vmem:[%s7772_s2] ss:$0 sm:$0xff] }
   0xe   :  { %72 = vmatpush.msra.mxu0 %v6666_v0  ;;  %96 = vmatpush.msra.mxu1 %v6666_v0 }
   0xf   :  { %5963 = vmatmul.msk.f32.vlgmr.msra.gmra.mxu0 %vm53_vm0, %v6672_v2  ;;  %5964 = vmatmul.msk.f32.vlgmr.msra.gmra.mxu1 %vm53_vm0, %v6674_v3 }
  0x10   :  { %126 = vmatpush.msra.mxu2 %v6666_v0  ;;  %152 = vmatpush.msra.mxu3 %v6666_v0 }
  0x11   :  { %179 = vmatpush.msrb.mxu0 %v6668_v1  ;;  %207 = vmatpush.msrb.mxu1 %v6668_v1 }
  0x12   :  { %241 = vmatpush.msrb.mxu2 %v6668_v1  ;;  %271 = vmatpush.msrb.mxu3 %v6668_v1 }
  0x13   :  { %180 = vmatpush.msrb.mxu0 %v6666_v0  ;;  %208 = vmatpush.msrb.mxu1 %v6666_v0 }
  0x14   :  { %242 = vmatpush.msrb.mxu2 %v6666_v0  ;;  %272 = vmatpush.msrb.mxu3 %v6666_v0 }
  0x15   :  { %307 = vmatpush.msra.mxu0 %v6668_v1  ;;  %339 = vmatpush.msra.mxu1 %v6668_v1 }
  0x17   :  { %308 = vmatpush.msra.mxu0 %v6666_v0  ;;  %340 = vmatpush.msra.mxu1 %v6666_v0 }
  0x8c   :  { %v74_v5 = vpop.f32.mrf.mxu0  ;;  %v98_v6 = vpop.f32.mrf.mxu1 }
  0x8d   :  { %v75_v7 = vadd.f32 %v6701_v4, %v74_v5  ;;  %v99_v8 = vadd.f32 %v6701_v4, %v98_v6 }
  0x8f   :  { %6161 = vtanh.f32 %v75_v7 }
  0x90   :  { %6163 = vtanh.f32 %v99_v8 }
  0x95   :  { %v6162_v9 = vpop.eup %6161 }
  0x96   :  { %v6164_v10 = vpop.eup %6163  ;;  %v106_v11 = vmul.f32 0.0125, %v6162_v9  ;;  %v158_v19 = vmul.f32 0.0046875, %v6162_v9  ;;  %v218_v20 = vmul.f32 0.06111111, %v6162_v9 }
  0x97   :  { %v132_v12 = vmul.f32 0.0125, %v6164_v10  ;;  %v186_v21 = vmul.f32 0.0046875, %v6164_v10  ;;  %v248_v22 = vmul.f32 0.06111111, %v6164_v10 }
  0x98   :  { %v107_v13 = vadd.f32 %v106_v11, %v6672_v2  ;;  %v282_v23 = vmul.f32 0.18453741, %v6162_v9  ;;  %v314_v25 = vmul.f32 0.18453741, %v6164_v10  ;;  %v350_v26 = vmul.f32 0.17789221, %v6162_v9 }
  0x99   :  { %v133_v14 = vadd.f32 %v132_v12, %v6674_v3  ;;  %v384_v27 = vmul.f32 0.17789221, %v6164_v10  ;;  %v102_v51 = vmul.f32 0.0056966147, %v6162_v9  ;;  %v104_v52 = vmul.f32 0.0056966147, %v6164_v10 }
  0x9a   :  { %5965 = vmatmul.msk.f32.vlgmr.msra.gmra.mxu2 %vm53_vm0, %v107_v13 }
  0x9b   :  { %5966 = vmatmul.msk.f32.vlgmr.msra.gmra.mxu3 %vm53_vm0, %v133_v14  ;;  %377 = vmatpush.msra.mxu2 %v6668_v1  ;;  %v103_v58 = vadd.f32 %v102_v51, %v6672_v2  ;;  %v105_v62 = vadd.f32 %v104_v52, %v6674_v3 }
  0x9c   :  { %411 = vmatpush.msra.mxu3 %v6668_v1 }
  0x9d   :  { %378 = vmatpush.msra.mxu2 %v6666_v0 }
  0x9e   :  { %412 = vmatpush.msra.mxu3 %v6666_v0 }
 0x11d   :  { %v128_v15 = vpop.f32.mrf.mxu2 }
 0x11e   :  { %v129_v16 = vadd.f32 %v6701_v4, %v128_v15  ;;  %v154_v17 = vpop.f32.mrf.mxu3 }
 0x11f   :  { %v155_v18 = vadd.f32 %v6701_v4, %v154_v17 }
 0x120   :  { %6165 = vtanh.f32 %v129_v16 }
 0x121   :  { %6167 = vtanh.f32 %v155_v18 }
 0x126   :  { %v6166_v24 = vpop.eup %6165 }
 0x127   :  { %v6168_v28 = vpop.eup %6167  ;;  %v159_v29 = vmul.f32 0.0140625, %v6166_v24  ;;  %v219_v30 = vmul.f32 -0.23333333, %v6166_v24  ;;  %v283_v31 = vmul.f32 -0.7247371, %v6166_v24 }
 0x128   :  { %v187_v32 = vmul.f32 0.0140625, %v6168_v28  ;;  %v249_v33 = vmul.f32 -0.23333333, %v6168_v28  ;;  %v315_v34 = vmul.f32 -0.7247371, %v6168_v28 }
 0x129   :  { %v160_v35 = vadd.f32 %v159_v29, %v158_v19  ;;  %v220_v36 = vadd.f32 %v219_v30, %v218_v20  ;;  %v284_v37 = vadd.f32 %v283_v31, %v282_v23  ;;  %v351_v38 = vmul.f32 -0.6723485, %v6166_v24 }
 0x12a   :  { %v188_v39 = vadd.f32 %v187_v32, %v186_v21  ;;  %v250_v40 = vadd.f32 %v249_v33, %v248_v22  ;;  %v316_v41 = vadd.f32 %v315_v34, %v314_v25  ;;  %v385_v42 = vmul.f32 -0.6723485, %v6168_v28 }
 0x12b   :  { %v161_v43 = vadd.f32 %v160_v35, %v6672_v2  ;;  %v352_v44 = vadd.f32 %v351_v38, %v350_v26 }
 0x12c   :  { %v189_v45 = vadd.f32 %v188_v39, %v6674_v3  ;;  %v386_v46 = vadd.f32 %v385_v42, %v384_v27 }
 0x12d   :  { %5967 = vmatmul.msk.f32.vlgmr.msrb.gmra.mxu0 %vm53_vm0, %v161_v43 }
 0x12e   :  { %5968 = vmatmul.msk.f32.vlgmr.msrb.gmra.mxu1 %vm53_vm0, %v189_v45  ;;  %439 = vmatpush.msrb.mxu0 %v6668_v1 }
 0x12f   :  { %463 = vmatpush.msrb.mxu1 %v6668_v1 }
 0x130   :  { %440 = vmatpush.msrb.mxu0 %v6666_v0 }
 0x131   :  { %464 = vmatpush.msrb.mxu1 %v6666_v0 }
 0x1aa   :  { %v182_v47 = vpop.f32.mrf.mxu0 }
 0x1ab   :  { %v183_v48 = vadd.f32 %v6701_v4, %v182_v47  ;;  %v210_v49 = vpop.f32.mrf.mxu1 }
 0x1ac   :  { %v211_v50 = vadd.f32 %v6701_v4, %v210_v49 }
 0x1ad   :  { %6169 = vtanh.f32 %v183_v48 }
 0x1ae   :  { %6171 = vtanh.f32 %v211_v50 }
 0x1b3   :  { %v6170_v53 = vpop.eup %6169 }
 0x1b4   :  { %v6172_v54 = vpop.eup %6171  ;;  %v221_v55 = vmul.f32 0.22222222, %v6170_v53  ;;  %v285_v56 = vmul.f32 0.6139308, %v6170_v53  ;;  %v353_v57 = vmul.f32 0.5566514, %v6170_v53 }
 0x1b5   :  { %v251_v59 = vmul.f32 0.22222222, %v6172_v54  ;;  %v317_v60 = vmul.f32 0.6139308, %v6172_v54  ;;  %v387_v61 = vmul.f32 0.5566514, %v6172_v54 }
 0x1b6   :  { %v222_v63 = vadd.f32 %v221_v55, %v220_v36  ;;  %v286_v5 = vadd.f32 %v285_v56, %v284_v37  ;;  %v354_v6 = vadd.f32 %v353_v57, %v352_v44  ;;  %v214_v7 = vmul.f32 0.028077269, %v6170_v53 }
 0x1b7   :  { %v252_v8 = vadd.f32 %v251_v59, %v250_v40  ;;  %v318_v11 = vadd.f32 %v317_v60, %v316_v41  ;;  %v388_v9 = vadd.f32 %v387_v61, %v386_v46  ;;  %v216_v10 = vmul.f32 0.028077269, %v6172_v54 }
 0x1b8   :  { %v223_v12 = vadd.f32 %v222_v63, %v6672_v2  ;;  %v215_v13 = vadd.f32 %v214_v7, %v103_v58 }
 0x1b9   :  { %v253_v14 = vadd.f32 %v252_v8, %v6674_v3  ;;  %v217_v15 = vadd.f32 %v216_v10, %v105_v62 }
 0x1ba   :  { %5969 = vmatmul.msk.f32.vlgmr.msrb.gmra.mxu2 %vm53_vm0, %v223_v12 }
 0x1bb   :  { %5970 = vmatmul.msk.f32.vlgmr.msrb.gmra.mxu3 %vm53_vm0, %v253_v14  ;;  %493 = vmatpush.msrb.mxu2 %v6668_v1 }
 0x1bc   :  { %519 = vmatpush.msrb.mxu3 %v6668_v1 }
 0x1bd   :  { %494 = vmatpush.msrb.mxu2 %v6666_v0 }
 0x1be   :  { %520 = vmatpush.msrb.mxu3 %v6666_v0 }
 0x23d   :  { %v244_v16 = vpop.f32.mrf.mxu2 }
 0x23e   :  { %v245_v17 = vadd.f32 %v6701_v4, %v244_v16  ;;  %v274_v18 = vpop.f32.mrf.mxu3 }
 0x23f   :  { %v275_v19 = vadd.f32 %v6701_v4, %v274_v18 }
 0x240   :  { %6173 = vtanh.f32 %v245_v17 }
 0x241   :  { %6175 = vtanh.f32 %v275_v19 }
 0x246   :  { %v6174_v20 = vpop.eup %6173 }
 0x247   :  { %v6176_v21 = vpop.eup %6175  ;;  %v287_v22 = vmul.f32 -0.018175583, %v6174_v20  ;;  %v355_v23 = vmul.f32 0.017400568, %v6174_v20  ;;  %v278_v24 = vmul.f32 0.040690105, %v6174_v20 }
 0x248   :  { %v319_v25 = vmul.f32 -0.018175583, %v6176_v21  ;;  %v389_v26 = vmul.f32 0.017400568, %v6176_v21  ;;  %v280_v27 = vmul.f32 0.040690105, %v6176_v21 }
 0x249   :  { %v288_v28 = vadd.f32 %v287_v22, %v286_v5  ;;  %v356_v29 = vadd.f32 %v355_v23, %v354_v6  ;;  %v279_v30 = vadd.f32 %v278_v24, %v215_v13 }
 0x24a   :  { %v320_v31 = vadd.f32 %v319_v25, %v318_v11  ;;  %v390_v32 = vadd.f32 %v389_v26, %v388_v9  ;;  %v281_v33 = vadd.f32 %v280_v27, %v217_v15 }
 0x24b   :  { %v289_v34 = vadd.f32 %v288_v28, %v6672_v2 }
 0x24c   :  { %v321_v35 = vadd.f32 %v320_v31, %v6674_v3 }
 0x24d   :  { %5971 = vmatmul.msk.f32.vlgmr.msra.gmra.mxu0 %vm53_vm0, %v289_v34 }
 0x24e   :  { %5972 = vmatmul.msk.f32.vlgmr.msra.gmra.mxu1 %vm53_vm0, %v321_v35  ;;  %547 = vmatpush.msra.mxu0 %v6668_v1 }
 0x24f   :  { %575 = vmatpush.msra.mxu1 %v6668_v1 }
 0x250   :  { %548 = vmatpush.msra.mxu0 %v6666_v0 }
 0x251   :  { %576 = vmatpush.msra.mxu1 %v6666_v0 }
 0x2ca   :  { %v310_v36 = vpop.f32.mrf.mxu0 }
 0x2cb   :  { %v311_v37 = vadd.f32 %v6701_v4, %v310_v36  ;;  %v342_v38 = vpop.f32.mrf.mxu1 }
 0x2cc   :  { %v343_v39 = vadd.f32 %v6701_v4, %v342_v38 }
 0x2cd   :  { %6177 = vtanh.f32 %v311_v37 }
 0x2ce   :  { %6179 = vtanh.f32 %v343_v39 }
 0x2d3   :  { %v6178_v40 = vpop.eup %6177 }
 0x2d4   :  { %v6180_v41 = vpop.eup %6179  ;;  %v346_v42 = vmul.f32 -0.020148512, %v6178_v40  ;;  %v357_v43 = vmul.f32 -0.017095707, %v6178_v40 }
 0x2d5   :  { %v348_v44 = vmul.f32 -0.020148512, %v6180_v41  ;;  %v391_v45 = vmul.f32 -0.017095707, %v6180_v41 }
 0x2d6   :  { %v358_v46 = vadd.f32 %v357_v43, %v356_v29  ;;  %v347_v47 = vadd.f32 %v346_v42, %v279_v30 }
 0x2d7   :  { %v392_v48 = vadd.f32 %v391_v45, %v390_v32  ;;  %v349_v49 = vadd.f32 %v348_v44, %v281_v33 }
 0x2d8   :  { %v359_v50 = vadd.f32 %v358_v46, %v6672_v2 }
 0x2d9   :  { %v393_v51 = vadd.f32 %v392_v48, %v6674_v3 }
 0x2da   :  { %5973 = vmatmul.msk.f32.vlgmr.msra.gmra.mxu2 %vm53_vm0, %v359_v50 }
 0x2db   :  { %5974 = vmatmul.msk.f32.vlgmr.msra.gmra.mxu3 %vm53_vm0, %v393_v51  ;;  %609 = vmatpush.msra.mxu2 %v6668_v1 }
 0x2dc   :  { %639 = vmatpush.msra.mxu3 %v6668_v1 }
 0x2dd   :  { %610 = vmatpush.msra.mxu2 %v6666_v0 }
 0x2de   :  { %640 = vmatpush.msra.mxu3 %v6666_v0 }
 0x35d   :  { %v380_v52 = vpop.f32.mrf.mxu2 }
 0x35e   :  { %v381_v53 = vadd.f32 %v6701_v4, %v380_v52  ;;  %v414_v54 = vpop.f32.mrf.mxu3 }
 0x35f   :  { %v415_v2 = vadd.f32 %v6701_v4, %v414_v54 }
 0x360   :  { %6181 = vtanh.f32 %v381_v53 }
 0x361   :  { %6183 = vtanh.f32 %v415_v2 }
 0x366   :  { %v6182_v3 = vpop.eup %6181 }
 0x367   :  { %v6184_v55 = vpop.eup %6183  ;;  %v418_v56 = vmul.f32 0.008184524, %v6182_v3 }
 0x368   :  { %v420_v57 = vmul.f32 0.008184524, %v6184_v55 }
 0x369   :  { %v6757_v58 = vadd.f32 %v418_v56, %v347_v47 }
 0x36a   :  { %v6759_v59 = vadd.f32 %v420_v57, %v349_v49 }
 0x36b   :  { %5975 = vmatmul.msk.f32.vlgmr.msrb.gmra.mxu0 %vm53_vm0, %v6757_v58 }
 0x36c   :  { %5976 = vmatmul.msk.f32.vlgmr.msrb.gmra.mxu1 %vm53_vm0, %v6759_v59  ;;  %675 = vmatpush.msrb.mxu0 %v6668_v1 }
 0x36d   :  { %707 = vmatpush.msrb.mxu1 %v6668_v1 }
 0x36e   :  { %676 = vmatpush.msrb.mxu0 %v6666_v0 }
 0x36f   :  { %708 = vmatpush.msrb.mxu1 %v6666_v0 }
 0x3e8   :  { %v442_v60 = vpop.f32.mrf.mxu0 }
 0x3e9   :  { %v443_v61 = vadd.f32 %v6701_v4, %v442_v60  ;;  %v466_v62 = vpop.f32.mrf.mxu1 }
 0x3ea   :  { %v467_v63 = vadd.f32 %v6701_v4, %v466_v62 }
 0x3eb   :  { %6185 = vtanh.f32 %v443_v61 }
 0x3ec   :  { %6187 = vtanh.f32 %v467_v63 }
 0x3f1   :  { %v6186_v5 = vpop.eup %6185 }
 0x3f2   :  { %v6188_v6 = vpop.eup %6187  ;;  %v474_v7 = vmul.f32 0.0125, %v6186_v5  ;;  %v526_v15 = vmul.f32 0.0046875, %v6186_v5  ;;  %v586_v16 = vmul.f32 0.06111111, %v6186_v5 }
 0x3f3   :  { %v500_v8 = vmul.f32 0.0125, %v6188_v6  ;;  %v554_v17 = vmul.f32 0.0046875, %v6188_v6  ;;  %v616_v18 = vmul.f32 0.06111111, %v6188_v6 }
 0x3f4   :  { %v475_v11 = vadd.f32 %v474_v7, %v6757_v58  ;;  %v650_v19 = vmul.f32 0.18453741, %v6186_v5  ;;  %v682_v21 = vmul.f32 0.18453741, %v6188_v6  ;;  %v718_v22 = vmul.f32 0.17789221, %v6186_v5 }
 0x3f5   :  { %v501_v9 = vadd.f32 %v500_v8, %v6759_v59  ;;  %v752_v23 = vmul.f32 0.17789221, %v6188_v6  ;;  %v470_v47 = vmul.f32 0.0056966147, %v6186_v5  ;;  %v472_v48 = vmul.f32 0.0056966147, %v6188_v6 }
 0x3f6   :  { %5977 = vmatmul.msk.f32.vlgmr.msrb.gmra.mxu2 %vm53_vm0, %v475_v11 }
 0x3f7   :  { %5978 = vmatmul.msk.f32.vlgmr.msrb.gmra.mxu3 %vm53_vm0, %v501_v9  ;;  %745 = vmatpush.msrb.mxu2 %v6668_v1  ;;  %v471_v54 = vadd.f32 %v470_v47, %v6757_v58  ;;  %v473_v56 = vadd.f32 %v472_v48, %v6759_v59 }
 0x3f8   :  { %779 = vmatpush.msrb.mxu3 %v6668_v1 }
 0x3f9   :  { %746 = vmatpush.msrb.mxu2 %v6666_v0 }
 0x3fa   :  { %780 = vmatpush.msrb.mxu3 %v6666_v0 }
 0x479   :  { %v496_v10 = vpop.f32.mrf.mxu2 }
 0x47a   :  { %v497_v12 = vadd.f32 %v6701_v4, %v496_v10  ;;  %v522_v13 = vpop.f32.mrf.mxu3 }
 0x47b   :  { %v523_v14 = vadd.f32 %v6701_v4, %v522_v13 }
 0x47c   :  { %6189 = vtanh.f32 %v497_v12 }
 0x47d   :  { %6191 = vtanh.f32 %v523_v14 }
 0x482   :  { %v6190_v20 = vpop.eup %6189 }
 0x483   :  { %v6192_v24 = vpop.eup %6191  ;;  %v527_v25 = vmul.f32 0.0140625, %v6190_v20  ;;  %v587_v26 = vmul.f32 -0.23333333, %v6190_v20  ;;  %v651_v27 = vmul.f32 -0.7247371, %v6190_v20 }
 0x484   :  { %v555_v28 = vmul.f32 0.0140625, %v6192_v24  ;;  %v617_v29 = vmul.f32 -0.23333333, %v6192_v24  ;;  %v683_v30 = vmul.f32 -0.7247371, %v6192_v24 }
 0x485   :  { %v528_v31 = vadd.f32 %v527_v25, %v526_v15  ;;  %v588_v32 = vadd.f32 %v587_v26, %v586_v16  ;;  %v652_v33 = vadd.f32 %v651_v27, %v650_v19  ;;  %v719_v34 = vmul.f32 -0.6723485, %v6190_v20 }
 0x486   :  { %v556_v35 = vadd.f32 %v555_v28, %v554_v17  ;;  %v618_v36 = vadd.f32 %v617_v29, %v616_v18  ;;  %v684_v37 = vadd.f32 %v683_v30, %v682_v21  ;;  %v753_v38 = vmul.f32 -0.6723485, %v6192_v24 }
 0x487   :  { %v529_v39 = vadd.f32 %v528_v31, %v6757_v58  ;;  %v720_v40 = vadd.f32 %v719_v34, %v718_v22 }
 0x488   :  { %v557_v41 = vadd.f32 %v556_v35, %v6759_v59  ;;  %v754_v42 = vadd.f32 %v753_v38, %v752_v23 }
 0x489   :  { %5979 = vmatmul.msk.f32.vlgmr.msra.gmra.mxu0 %vm53_vm0, %v529_v39 }
 0x48a   :  { %5980 = vmatmul.msk.f32.vlgmr.msra.gmra.mxu1 %vm53_vm0, %v557_v41  ;;  %807 = vmatpush.msra.mxu0 %v6668_v1 }
 0x48b   :  { %831 = vmatpush.msra.mxu1 %v6668_v1 }
 0x48c   :  { %808 = vmatpush.msra.mxu0 %v6666_v0 }
 0x48d   :  { %832 = vmatpush.msra.mxu1 %v6666_v0 }
 0x506   :  { %v550_v43 = vpop.f32.mrf.mxu0 }
 0x507   :  { %v551_v44 = vadd.f32 %v6701_v4, %v550_v43  ;;  %v578_v45 = vpop.f32.mrf.mxu1 }
 0x508   :  { %v579_v46 = vadd.f32 %v6701_v4, %v578_v45 }
 0x509   :  { %6193 = vtanh.f32 %v551_v44 }
 0x50a   :  { %6195 = vtanh.f32 %v579_v46 }
 0x50f   :  { %v6194_v49 = vpop.eup %6193 }
 0x510   :  { %v6196_v50 = vpop.eup %6195  ;;  %v589_v51 = vmul.f32 0.22222222, %v6194_v49  ;;  %v653_v52 = vmul.f32 0.6139308, %v6194_v49  ;;  %v721_v53 = vmul.f32 0.5566514, %v6194_v49 }
 0x511   :  { %v619_v2 = vmul.f32 0.22222222, %v6196_v50  ;;  %v685_v3 = vmul.f32 0.6139308, %v6196_v50  ;;  %v755_v55 = vmul.f32 0.5566514, %v6196_v50 }
 0x512   :  { %v590_v57 = vadd.f32 %v589_v51, %v588_v32  ;;  %v654_v60 = vadd.f32 %v653_v52, %v652_v33  ;;  %v722_v61 = vadd.f32 %v721_v53, %v720_v40  ;;  %v582_v62 = vmul.f32 0.028077269, %v6194_v49 }
 0x513   :  { %v620_v63 = vadd.f32 %v619_v2, %v618_v36  ;;  %v686_v7 = vadd.f32 %v685_v3, %v684_v37  ;;  %v756_v5 = vadd.f32 %v755_v55, %v754_v42  ;;  %v584_v6 = vmul.f32 0.028077269, %v6196_v50 }
 0x514   :  { %v591_v8 = vadd.f32 %v590_v57, %v6757_v58  ;;  %v583_v11 = vadd.f32 %v582_v62, %v471_v54 }
 0x515   :  { %v621_v9 = vadd.f32 %v620_v63, %v6759_v59  ;;  %v585_v10 = vadd.f32 %v584_v6, %v473_v56 }
 0x516   :  { %5981 = vmatmul.msk.f32.vlgmr.msra.gmra.mxu2 %vm53_vm0, %v591_v8 }
 0x517   :  { %5982 = vmatmul.msk.f32.vlgmr.msra.gmra.mxu3 %vm53_vm0, %v621_v9  ;;  %861 = vmatpush.msra.mxu2 %v6668_v1 }
 0x518   :  { %887 = vmatpush.msra.mxu3 %v6668_v1 }
 0x519   :  { %862 = vmatpush.msra.mxu2 %v6666_v0 }
 0x51a   :  { %888 = vmatpush.msra.mxu3 %v6666_v0 }
 0x599   :  { %v612_v12 = vpop.f32.mrf.mxu2 }
 0x59a   :  { %v613_v13 = vadd.f32 %v6701_v4, %v612_v12  ;;  %v642_v14 = vpop.f32.mrf.mxu3 }
 0x59b   :  { %v643_v15 = vadd.f32 %v6701_v4, %v642_v14 }
 0x59c   :  { %6197 = vtanh.f32 %v613_v13 }
 0x59d   :  { %6199 = vtanh.f32 %v643_v15 }
 0x5a2   :  { %v6198_v16 = vpop.eup %6197 }
 0x5a3   :  { %v6200_v17 = vpop.eup %6199  ;;  %v655_v18 = vmul.f32 -0.018175583, %v6198_v16  ;;  %v723_v19 = vmul.f32 0.017400568, %v6198_v16  ;;  %v646_v20 = vmul.f32 0.040690105, %v6198_v16 }
 0x5a4   :  { %v687_v21 = vmul.f32 -0.018175583, %v6200_v17  ;;  %v757_v22 = vmul.f32 0.017400568, %v6200_v17  ;;  %v648_v23 = vmul.f32 0.040690105, %v6200_v17 }
 0x5a5   :  { %v656_v24 = vadd.f32 %v655_v18, %v654_v60  ;;  %v724_v25 = vadd.f32 %v723_v19, %v722_v61  ;;  %v647_v26 = vadd.f32 %v646_v20, %v583_v11 }
 0x5a6   :  { %v688_v27 = vadd.f32 %v687_v21, %v686_v7  ;;  %v758_v28 = vadd.f32 %v757_v22, %v756_v5  ;;  %v649_v29 = vadd.f32 %v648_v23, %v585_v10 }
 0x5a7   :  { %v657_v30 = vadd.f32 %v656_v24, %v6757_v58 }
 0x5a8   :  { %v689_v31 = vadd.f32 %v688_v27, %v6759_v59 }
 0x5a9   :  { %5983 = vmatmul.msk.f32.vlgmr.msrb.gmra.mxu0 %vm53_vm0, %v657_v30 }
 0x5aa   :  { %5984 = vmatmul.msk.f32.vlgmr.msrb.gmra.mxu1 %vm53_vm0, %v689_v31  ;;  %915 = vmatpush.msrb.mxu0 %v6668_v1 }
 0x5ab   :  { %943 = vmatpush.msrb.mxu1 %v6668_v1 }
 0x5ac   :  { %916 = vmatpush.msrb.mxu0 %v6666_v0 }
 0x5ad   :  { %944 = vmatpush.msrb.mxu1 %v6666_v0 }
 0x626   :  { %v678_v32 = vpop.f32.mrf.mxu0 }
 0x627   :  { %v679_v33 = vadd.f32 %v6701_v4, %v678_v32  ;;  %v710_v34 = vpop.f32.mrf.mxu1 }
 0x628   :  { %v711_v35 = vadd.f32 %v6701_v4, %v710_v34 }
 0x629   :  { %6201 = vtanh.f32 %v679_v33 }
 0x62a   :  { %6203 = vtanh.f32 %v711_v35 }
 0x62f   :  { %v6202_v36 = vpop.eup %6201 }
 0x630   :  { %v6204_v37 = vpop.eup %6203  ;;  %v714_v38 = vmul.f32 -0.020148512, %v6202_v36  ;;  %v725_v39 = vmul.f32 -0.017095707, %v6202_v36 }
 0x631   :  { %v716_v40 = vmul.f32 -0.020148512, %v6204_v37  ;;  %v759_v41 = vmul.f32 -0.017095707, %v6204_v37 }
 0x632   :  { %v726_v42 = vadd.f32 %v725_v39, %v724_v25  ;;  %v715_v43 = vadd.f32 %v714_v38, %v647_v26 }
 0x633   :  { %v760_v44 = vadd.f32 %v759_v41, %v758_v28  ;;  %v717_v45 = vadd.f32 %v716_v40, %v649_v29 }
 0x634   :  { %v727_v46 = vadd.f32 %v726_v42, %v6757_v58 }
 0x635   :  { %v761_v47 = vadd.f32 %v760_v44, %v6759_v59 }
 0x636   :  { %5985 = vmatmul.msk.f32.vlgmr.msrb.gmra.mxu2 %vm53_vm0, %v727_v46 }
 0x637   :  { %5986 = vmatmul.msk.f32.vlgmr.msrb.gmra.mxu3 %vm53_vm0, %v761_v47  ;;  %977 = vmatpush.msrb.mxu2 %v6668_v1 }
 0x638   :  { %1007 = vmatpush.msrb.mxu3 %v6668_v1 }
 0x639   :  { %978 = vmatpush.msrb.mxu2 %v6666_v0 }
 0x63a   :  { %1008 = vmatpush.msrb.mxu3 %v6666_v0 }
 0x6b9   :  { %v748_v48 = vpop.f32.mrf.mxu2 }
 0x6ba   :  { %v749_v49 = vadd.f32 %v6701_v4, %v748_v48  ;;  %v782_v50 = vpop.f32.mrf.mxu3 }
 0x6bb   :  { %v783_v58 = vadd.f32 %v6701_v4, %v782_v50 }
 0x6bc   :  { %6205 = vtanh.f32 %v749_v49 }
 0x6bd   :  { %6207 = vtanh.f32 %v783_v58 }
 0x6c2   :  { %v6206_v59 = vpop.eup %6205 }
 0x6c3   :  { %v6208_v51 = vpop.eup %6207  ;;  %v786_v52 = vmul.f32 0.008184524, %v6206_v59 }
 0x6c4   :  { %v788_v53 = vmul.f32 0.008184524, %v6208_v51 }
 0x6c5   :  { %v6823_v54 = vadd.f32 %v786_v52, %v715_v43 }
 0x6c6   :  { %v6825_v2 = vadd.f32 %v788_v53, %v717_v45 }
 0x6c7   :  { %5987 = vmatmul.msk.f32.vlgmr.msra.gmra.mxu0 %vm53_vm0, %v6823_v54 }
 0x6c8   :  { %5988 = vmatmul.msk.f32.vlgmr.msra.gmra.mxu1 %vm53_vm0, %v6825_v2  ;;  %1043 = vmatpush.msra.mxu0 %v6668_v1 }
 0x6c9   :  { %1075 = vmatpush.msra.mxu1 %v6668_v1 }
 0x6ca   :  { %1044 = vmatpush.msra.mxu0 %v6666_v0 }
 0x6cb   :  { %1076 = vmatpush.msra.mxu1 %v6666_v0 }
 0x744   :  { %v810_v3 = vpop.f32.mrf.mxu0 }
 0x745   :  { %v811_v55 = vadd.f32 %v6701_v4, %v810_v3  ;;  %v834_v56 = vpop.f32.mrf.mxu1 }
 0x746   :  { %v835_v57 = vadd.f32 %v6701_v4, %v834_v56 }
 0x747   :  { %6209 = vtanh.f32 %v811_v55 }
 0x748   :  { %6211 = vtanh.f32 %v835_v57 }
 0x74d   :  { %v6210_v60 = vpop.eup %6209 }
 0x74e   :  { %v6212_v61 = vpop.eup %6211  ;;  %v842_v62 = vmul.f32 0.0125, %v6210_v60  ;;  %v894_v10 = vmul.f32 0.0046875, %v6210_v60  ;;  %v954_v12 = vmul.f32 0.06111111, %v6210_v60 }
 0x74f   :  { %v868_v63 = vmul.f32 0.0125, %v6212_v61  ;;  %v922_v13 = vmul.f32 0.0046875, %v6212_v61  ;;  %v984_v14 = vmul.f32 0.06111111, %v6212_v61 }
 0x750   :  { %v843_v7 = vadd.f32 %v842_v62, %v6823_v54  ;;  %v1018_v15 = vmul.f32 0.18453741, %v6210_v60  ;;  %v1050_v17 = vmul.f32 0.18453741, %v6212_v61  ;;  %v1086_v18 = vmul.f32 0.17789221, %v6210_v60 }
 0x751   :  { %v869_v5 = vadd.f32 %v868_v63, %v6825_v2  ;;  %v1120_v19 = vmul.f32 0.17789221, %v6212_v61  ;;  %v838_v43 = vmul.f32 0.0056966147, %v6210_v60  ;;  %v840_v44 = vmul.f32 0.0056966147, %v6212_v61 }
 0x752   :  { %5989 = vmatmul.msk.f32.vlgmr.msra.gmra.mxu2 %vm53_vm0, %v843_v7 }
 0x753   :  { %5990 = vmatmul.msk.f32.vlgmr.msra.gmra.mxu3 %vm53_vm0, %v869_v5  ;;  %1113 = vmatpush.msra.mxu2 %v6668_v1  ;;  %v839_v50 = vadd.f32 %v838_v43, %v6823_v54  ;;  %v841_v52 = vadd.f32 %v840_v44, %v6825_v2 }
 0x754   :  { %1147 = vmatpush.msra.mxu3 %v6668_v1 }
 0x755   :  { %1114 = vmatpush.msra.mxu2 %v6666_v0 }
 0x756   :  { %1148 = vmatpush.msra.mxu3 %v6666_v0 }
 0x7d5   :  { %v864_v6 = vpop.f32.mrf.mxu2 }
 0x7d6   :  { %v865_v8 = vadd.f32 %v6701_v4, %v864_v6  ;;  %v890_v11 = vpop.f32.mrf.mxu3 }
 0x7d7   :  { %v891_v9 = vadd.f32 %v6701_v4, %v890_v11 }
 0x7d8   :  { %6213 = vtanh.f32 %v865_v8 }
 0x7d9   :  { %6215 = vtanh.f32 %v891_v9 }
 0x7de   :  { %v6214_v16 = vpop.eup %6213 }
 0x7df   :  { %v6216_v20 = vpop.eup %6215  ;;  %v895_v21 = vmul.f32 0.0140625, %v6214_v16  ;;  %v955_v22 = vmul.f32 -0.23333333, %v6214_v16  ;;  %v1019_v23 = vmul.f32 -0.7247371, %v6214_v16 }
 0x7e0   :  { %v923_v24 = vmul.f32 0.0140625, %v6216_v20  ;;  %v985_v25 = vmul.f32 -0.23333333, %v6216_v20  ;;  %v1051_v26 = vmul.f32 -0.7247371, %v6216_v20 }
 0x7e1   :  { %v896_v27 = vadd.f32 %v895_v21, %v894_v10  ;;  %v956_v28 = vadd.f32 %v955_v22, %v954_v12  ;;  %v1020_v29 = vadd.f32 %v1019_v23, %v1018_v15  ;;  %v1087_v30 = vmul.f32 -0.6723485, %v6214_v16 }
 0x7e2   :  { %v924_v31 = vadd.f32 %v923_v24, %v922_v13  ;;  %v986_v32 = vadd.f32 %v985_v25, %v984_v14  ;;  %v1052_v33 = vadd.f32 %v1051_v26, %v1050_v17  ;;  %v1121_v34 = vmul.f32 -0.6723485, %v6216_v20 }
 0x7e3   :  { %v897_v35 = vadd.f32 %v896_v27, %v6823_v54  ;;  %v1088_v36 = vadd.f32 %v1087_v30, %v1086_v18 }
 0x7e4   :  { %v925_v37 = vadd.f32 %v924_v31, %v6825_v2  ;;  %v1122_v38 = vadd.f32 %v1121_v34, %v1120_v19 }
 0x7e5   :  { %5991 = vmatmul.msk.f32.vlgmr.msrb.gmra.mxu0 %vm53_vm0, %v897_v35 }
 0x7e6   :  { %5992 = vmatmul.msk.f32.vlgmr.msrb.gmra.mxu1 %vm53_vm0, %v925_v37  ;;  %1175 = vmatpush.msrb.mxu0 %v6668_v1 }
 0x7e7   :  { %1199 = vmatpush.msrb.mxu1 %v6668_v1 }
 0x7e8   :  { %1176 = vmatpush.msrb.mxu0 %v6666_v0 }
 0x7e9   :  { %1200 = vmatpush.msrb.mxu1 %v6666_v0 }
 0x862   :  { %v918_v39 = vpop.f32.mrf.mxu0 }
 0x863   :  { %v919_v40 = vadd.f32 %v6701_v4, %v918_v39  ;;  %v946_v41 = vpop.f32.mrf.mxu1 }
 0x864   :  { %v947_v42 = vadd.f32 %v6701_v4, %v946_v41 }
 0x865   :  { %6217 = vtanh.f32 %v919_v40 }
 0x866   :  { %6219 = vtanh.f32 %v947_v42 }
 0x86b   :  { %v6218_v45 = vpop.eup %6217 }
 0x86c   :  { %v6220_v46 = vpop.eup %6219  ;;  %v957_v47 = vmul.f32 0.22222222, %v6218_v45  ;;  %v1021_v48 = vmul.f32 0.6139308, %v6218_v45  ;;  %v1089_v49 = vmul.f32 0.5566514, %v6218_v45 }
 0x86d   :  { %v987_v58 = vmul.f32 0.22222222, %v6220_v46  ;;  %v1053_v59 = vmul.f32 0.6139308, %v6220_v46  ;;  %v1123_v51 = vmul.f32 0.5566514, %v6220_v46 }
 0x86e   :  { %v958_v53 = vadd.f32 %v957_v47, %v956_v28  ;;  %v1022_v3 = vadd.f32 %v1021_v48, %v1020_v29  ;;  %v1090_v55 = vadd.f32 %v1089_v49, %v1088_v36  ;;  %v950_v56 = vmul.f32 0.028077269, %v6218_v45 }
 0x86f   :  { %v988_v57 = vadd.f32 %v987_v58, %v986_v32  ;;  %v1054_v62 = vadd.f32 %v1053_v59, %v1052_v33  ;;  %v1124_v60 = vadd.f32 %v1123_v51, %v1122_v38  ;;  %v952_v61 = vmul.f32 0.028077269, %v6220_v46 }
 0x870   :  { %v959_v63 = vadd.f32 %v958_v53, %v6823_v54  ;;  %v951_v7 = vadd.f32 %v950_v56, %v839_v50 }
 0x871   :  { %v989_v5 = vadd.f32 %v988_v57, %v6825_v2  ;;  %v953_v6 = vadd.f32 %v952_v61, %v841_v52  ;;  %v6918_v61 = vld [vmem:[%s7772_s2] ss:$0 sm:$0xff] }
 0x872   :  { %5993 = vmatmul.msk.f32.vlgmr.msrb.gmra.mxu2 %vm53_vm0, %v959_v63 }
 0x873   :  { %5994 = vmatmul.msk.f32.vlgmr.msrb.gmra.mxu3 %vm53_vm0, %v989_v5  ;;  %1229 = vmatpush.msrb.mxu2 %v6668_v1 }
 0x874   :  { %1255 = vmatpush.msrb.mxu3 %v6668_v1 }
 0x875   :  { %1230 = vmatpush.msrb.mxu2 %v6666_v0 }
 0x876   :  { %1256 = vmatpush.msrb.mxu3 %v6666_v0 }
 0x8f5   :  { %v980_v8 = vpop.f32.mrf.mxu2 }
 0x8f6   :  { %v981_v11 = vadd.f32 %v6701_v4, %v980_v8  ;;  %v1010_v9 = vpop.f32.mrf.mxu3 }
 0x8f7   :  { %v1011_v10 = vadd.f32 %v6701_v4, %v1010_v9 }
 0x8f8   :  { %6221 = vtanh.f32 %v981_v11 }
 0x8f9   :  { %6223 = vtanh.f32 %v1011_v10 }
 0x8fe   :  { %v6222_v12 = vpop.eup %6221 }
 0x8ff   :  { %v6224_v13 = vpop.eup %6223  ;;  %v1023_v14 = vmul.f32 -0.018175583, %v6222_v12  ;;  %v1091_v15 = vmul.f32 0.017400568, %v6222_v12  ;;  %v1014_v16 = vmul.f32 0.040690105, %v6222_v12 }
 0x900   :  { %v1055_v17 = vmul.f32 -0.018175583, %v6224_v13  ;;  %v1125_v18 = vmul.f32 0.017400568, %v6224_v13  ;;  %v1016_v19 = vmul.f32 0.040690105, %v6224_v13 }
 0x901   :  { %v1024_v20 = vadd.f32 %v1023_v14, %v1022_v3  ;;  %v1092_v21 = vadd.f32 %v1091_v15, %v1090_v55  ;;  %v1015_v22 = vadd.f32 %v1014_v16, %v951_v7 }
 0x902   :  { %v1056_v23 = vadd.f32 %v1055_v17, %v1054_v62  ;;  %v1126_v24 = vadd.f32 %v1125_v18, %v1124_v60  ;;  %v1017_v25 = vadd.f32 %v1016_v19, %v953_v6 }
 0x903   :  { %v1025_v26 = vadd.f32 %v1024_v20, %v6823_v54 }
 0x904   :  { %v1057_v27 = vadd.f32 %v1056_v23, %v6825_v2 }
 0x905   :  { %5995 = vmatmul.msk.f32.vlgmr.msra.gmra.mxu0 %vm53_vm0, %v1025_v26 }
 0x906   :  { %5996 = vmatmul.msk.f32.vlgmr.msra.gmra.mxu1 %vm53_vm0, %v1057_v27  ;;  %1283 = vmatpush.msra.mxu0 %v6668_v1 }
 0x907   :  { %1311 = vmatpush.msra.mxu1 %v6668_v1 }
 0x908   :  { %1284 = vmatpush.msra.mxu0 %v6666_v0 }
 0x909   :  { %1312 = vmatpush.msra.mxu1 %v6666_v0 }
 0x982   :  { %v1046_v28 = vpop.f32.mrf.mxu0 }
 0x983   :  { %v1047_v29 = vadd.f32 %v6701_v4, %v1046_v28  ;;  %v1078_v30 = vpop.f32.mrf.mxu1 }
 0x984   :  { %v1079_v31 = vadd.f32 %v6701_v4, %v1078_v30 }
 0x985   :  { %6225 = vtanh.f32 %v1047_v29 }
 0x986   :  { %6227 = vtanh.f32 %v1079_v31 }
 0x98b   :  { %v6226_v32 = vpop.eup %6225 }
 0x98c   :  { %v6228_v33 = vpop.eup %6227  ;;  %v1082_v34 = vmul.f32 -0.020148512, %v6226_v32  ;;  %v1093_v35 = vmul.f32 -0.017095707, %v6226_v32 }
 0x98d   :  { %v1084_v36 = vmul.f32 -0.020148512, %v6228_v33  ;;  %v1127_v37 = vmul.f32 -0.017095707, %v6228_v33 }
 0x98e   :  { %v1094_v38 = vadd.f32 %v1093_v35, %v1092_v21  ;;  %v1083_v39 = vadd.f32 %v1082_v34, %v1015_v22 }
 0x98f   :  { %v1128_v40 = vadd.f32 %v1127_v37, %v1126_v24  ;;  %v1085_v41 = vadd.f32 %v1084_v36, %v1017_v25 }
 0x990   :  { %v1095_v42 = vadd.f32 %v1094_v38, %v6823_v54 }
 0x991   :  { %v1129_v43 = vadd.f32 %v1128_v40, %v6825_v2 }
 0x992   :  { %5997 = vmatmul.msk.f32.vlgmr.msra.gmra.mxu2 %vm53_vm0, %v1095_v42 }
 0x993   :  { %5998 = vmatmul.msk.f32.vlgmr.msra.gmra.mxu3 %vm53_vm0, %v1129_v43  ;;  %1345 = vmatpush.msra.mxu2 %v6668_v1 }
 0x994   :  { %1375 = vmatpush.msra.mxu3 %v6668_v1  ;;  %v6901_v1 = vld [vmem:[#allocation5] sm:$0xff] }
 0x995   :  { %1346 = vmatpush.msra.mxu2 %v6666_v0 }
 0x996   :  { %1376 = vmatpush.msra.mxu3 %v6666_v0  ;;  %v6897_v0 = vld [vmem:[#allocation5 + $0x8] sm:$0xff] }
 0xa15   :  { %v1116_v44 = vpop.f32.mrf.mxu2 }
 0xa16   :  { %v1117_v45 = vadd.f32 %v6701_v4, %v1116_v44  ;;  %v1150_v46 = vpop.f32.mrf.mxu3 }
 0xa17   :  { %v1151_v54 = vadd.f32 %v6701_v4, %v1150_v46 }
 0xa18   :  { %6229 = vtanh.f32 %v1117_v45 }
 0xa19   :  { %6231 = vtanh.f32 %v1151_v54 }
 0xa1e   :  { %v6230_v2 = vpop.eup %6229 }
 0xa1f   :  { %v6232_v47 = vpop.eup %6231  ;;  %v1154_v48 = vmul.f32 0.008184524, %v6230_v2 }
 0xa20   :  { %v1156_v49 = vmul.f32 0.008184524, %v6232_v47 }
 0xa21   :  { %v6889_v50 = vadd.f32 %v1154_v48, %v1083_v39 }
 0xa22   :  { %v6891_v58 = vadd.f32 %v1156_v49, %v1085_v41 }
 0xa23   :  { %5999 = vmatmul.msk.f32.vlgmr.msrb.gmra.mxu0 %vm53_vm0, %v6889_v50 }
 0xa24   :  { %6000 = vmatmul.msk.f32.vlgmr.msrb.gmra.mxu1 %vm53_vm0, %v6891_v58  ;;  %1411 = vmatpush.msrb.mxu0 %v6897_v0 }
 0xa25   :  { %1443 = vmatpush.msrb.mxu1 %v6897_v0 }
 0xa26   :  { %1412 = vmatpush.msrb.mxu0 %v6901_v1 }
 0xa27   :  { %1444 = vmatpush.msrb.mxu1 %v6901_v1 }
 0xaa0   :  { %v1178_v59 = vpop.f32.mrf.mxu0 }
 0xaa1   :  { %v1179_v51 = vadd.f32 %v6701_v4, %v1178_v59  ;;  %v1202_v52 = vpop.f32.mrf.mxu1 }
 0xaa2   :  { %v1203_v53 = vadd.f32 %v6701_v4, %v1202_v52 }
 0xaa3   :  { %6233 = vtanh.f32 %v1179_v51 }
 0xaa4   :  { %6235 = vtanh.f32 %v1203_v53 }
 0xaa9   :  { %v6234_v3 = vpop.eup %6233 }
 0xaaa   :  { %v6236_v55 = vpop.eup %6235  ;;  %v1210_v56 = vmul.f32 0.0125, %v6234_v3  ;;  %v1262_v6 = vmul.f32 0.0046875, %v6234_v3  ;;  %v1322_v8 = vmul.f32 0.06111111, %v6234_v3 }
 0xaab   :  { %v1236_v57 = vmul.f32 0.0125, %v6236_v55  ;;  %v1290_v11 = vmul.f32 0.0046875, %v6236_v55  ;;  %v1352_v9 = vmul.f32 0.06111111, %v6236_v55 }
 0xaac   :  { %v1211_v62 = vadd.f32 %v1210_v56, %v6889_v50  ;;  %v1386_v10 = vmul.f32 0.18453741, %v6234_v3  ;;  %v1418_v13 = vmul.f32 0.18453741, %v6236_v55  ;;  %v1454_v14 = vmul.f32 0.17789221, %v6234_v3 }
 0xaad   :  { %v1237_v60 = vadd.f32 %v1236_v57, %v6891_v58  ;;  %v1488_v15 = vmul.f32 0.17789221, %v6236_v55  ;;  %v1206_v39 = vmul.f32 0.0056966147, %v6234_v3  ;;  %v1208_v40 = vmul.f32 0.0056966147, %v6236_v55 }
 0xaae   :  { %6001 = vmatmul.msk.f32.vlgmr.msrb.gmra.mxu2 %vm53_vm0, %v1211_v62 }
 0xaaf   :  { %6002 = vmatmul.msk.f32.vlgmr.msrb.gmra.mxu3 %vm53_vm0, %v1237_v60  ;;  %1481 = vmatpush.msrb.mxu2 %v6897_v0  ;;  %v1207_v46 = vadd.f32 %v1206_v39, %v6889_v50  ;;  %v1209_v48 = vadd.f32 %v1208_v40, %v6891_v58 }
 0xab0   :  { %1515 = vmatpush.msrb.mxu3 %v6897_v0 }
 0xab1   :  { %1482 = vmatpush.msrb.mxu2 %v6901_v1 }
 0xab2   :  { %1516 = vmatpush.msrb.mxu3 %v6901_v1 }
 0xb31   :  { %v1232_v4 = vpop.f32.mrf.mxu2 }
 0xb32   :  { %v1233_v63 = vadd.f32 %v6918_v61, %v1232_v4  ;;  %v1258_v7 = vpop.f32.mrf.mxu3 }
 0xb33   :  { %v1259_v5 = vadd.f32 %v6918_v61, %v1258_v7 }
 0xb34   :  { %6237 = vtanh.f32 %v1233_v63 }
 0xb35   :  { %6239 = vtanh.f32 %v1259_v5 }
 0xb3a   :  { %v6238_v12 = vpop.eup %6237 }
 0xb3b   :  { %v6240_v16 = vpop.eup %6239  ;;  %v1263_v17 = vmul.f32 0.0140625, %v6238_v12  ;;  %v1323_v18 = vmul.f32 -0.23333333, %v6238_v12  ;;  %v1387_v19 = vmul.f32 -0.7247371, %v6238_v12 }
 0xb3c   :  { %v1291_v20 = vmul.f32 0.0140625, %v6240_v16  ;;  %v1353_v21 = vmul.f32 -0.23333333, %v6240_v16  ;;  %v1419_v22 = vmul.f32 -0.7247371, %v6240_v16 }
 0xb3d   :  { %v1264_v23 = vadd.f32 %v1263_v17, %v1262_v6  ;;  %v1324_v24 = vadd.f32 %v1323_v18, %v1322_v8  ;;  %v1388_v25 = vadd.f32 %v1387_v19, %v1386_v10  ;;  %v1455_v26 = vmul.f32 -0.6723485, %v6238_v12 }
 0xb3e   :  { %v1292_v27 = vadd.f32 %v1291_v20, %v1290_v11  ;;  %v1354_v28 = vadd.f32 %v1353_v21, %v1352_v9  ;;  %v1420_v29 = vadd.f32 %v1419_v22, %v1418_v13  ;;  %v1489_v30 = vmul.f32 -0.6723485, %v6240_v16 }
 0xb3f   :  { %v1265_v31 = vadd.f32 %v1264_v23, %v6889_v50  ;;  %v1456_v32 = vadd.f32 %v1455_v26, %v1454_v14 }
 0xb40   :  { %v1293_v33 = vadd.f32 %v1292_v27, %v6891_v58  ;;  %v1490_v34 = vadd.f32 %v1489_v30, %v1488_v15 }
 0xb41   :  { %6003 = vmatmul.msk.f32.vlgmr.msra.gmra.mxu0 %vm53_vm0, %v1265_v31 }
 0xb42   :  { %6004 = vmatmul.msk.f32.vlgmr.msra.gmra.mxu1 %vm53_vm0, %v1293_v33  ;;  %1543 = vmatpush.msra.mxu0 %v6897_v0 }
 0xb43   :  { %1567 = vmatpush.msra.mxu1 %v6897_v0 }
 0xb44   :  { %1544 = vmatpush.msra.mxu0 %v6901_v1 }
 0xb45   :  { %1568 = vmatpush.msra.mxu1 %v6901_v1 }
 0xbbe   :  { %v1286_v35 = vpop.f32.mrf.mxu0 }
 0xbbf   :  { %v1287_v36 = vadd.f32 %v6918_v61, %v1286_v35  ;;  %v1314_v37 = vpop.f32.mrf.mxu1 }
 0xbc0   :  { %v1315_v38 = vadd.f32 %v6918_v61, %v1314_v37 }
 0xbc1   :  { %6241 = vtanh.f32 %v1287_v36 }
 0xbc2   :  { %6243 = vtanh.f32 %v1315_v38 }
 0xbc7   :  { %v6242_v41 = vpop.eup %6241 }
 0xbc8   :  { %v6244_v42 = vpop.eup %6243  ;;  %v1325_v43 = vmul.f32 0.22222222, %v6242_v41  ;;  %v1389_v44 = vmul.f32 0.6139308, %v6242_v41  ;;  %v1457_v45 = vmul.f32 0.5566514, %v6242_v41 }
 0xbc9   :  { %v1355_v54 = vmul.f32 0.22222222, %v6244_v42  ;;  %v1421_v2 = vmul.f32 0.6139308, %v6244_v42  ;;  %v1491_v47 = vmul.f32 0.5566514, %v6244_v42 }
 0xbca   :  { %v1326_v49 = vadd.f32 %v1325_v43, %v1324_v24  ;;  %v1390_v59 = vadd.f32 %v1389_v44, %v1388_v25  ;;  %v1458_v51 = vadd.f32 %v1457_v45, %v1456_v32  ;;  %v1318_v52 = vmul.f32 0.028077269, %v6242_v41 }
 0xbcb   :  { %v1356_v53 = vadd.f32 %v1355_v54, %v1354_v28  ;;  %v1422_v56 = vadd.f32 %v1421_v2, %v1420_v29  ;;  %v1492_v3 = vadd.f32 %v1491_v47, %v1490_v34  ;;  %v1320_v55 = vmul.f32 0.028077269, %v6244_v42 }
 0xbcc   :  { %v1327_v57 = vadd.f32 %v1326_v49, %v6889_v50  ;;  %v1319_v62 = vadd.f32 %v1318_v52, %v1207_v46 }
 0xbcd   :  { %v1357_v60 = vadd.f32 %v1356_v53, %v6891_v58  ;;  %v1321_v4 = vadd.f32 %v1320_v55, %v1209_v48 }
 0xbce   :  { %6005 = vmatmul.msk.f32.vlgmr.msra.gmra.mxu2 %vm53_vm0, %v1327_v57 }
 0xbcf   :  { %6006 = vmatmul.msk.f32.vlgmr.msra.gmra.mxu3 %vm53_vm0, %v1357_v60  ;;  %1597 = vmatpush.msra.mxu2 %v6897_v0 }
 0xbd0   :  { %1623 = vmatpush.msra.mxu3 %v6897_v0 }
 0xbd1   :  { %1598 = vmatpush.msra.mxu2 %v6901_v1 }
 0xbd2   :  { %1624 = vmatpush.msra.mxu3 %v6901_v1 }
 0xc51   :  { %v1348_v63 = vpop.f32.mrf.mxu2 }
 0xc52   :  { %v1349_v7 = vadd.f32 %v6918_v61, %v1348_v63  ;;  %v1378_v5 = vpop.f32.mrf.mxu3 }
 0xc53   :  { %v1379_v6 = vadd.f32 %v6918_v61, %v1378_v5 }
 0xc54   :  { %6245 = vtanh.f32 %v1349_v7 }
 0xc55   :  { %6247 = vtanh.f32 %v1379_v6 }
 0xc5a   :  { %v6246_v8 = vpop.eup %6245 }
 0xc5b   :  { %v6248_v11 = vpop.eup %6247  ;;  %v1391_v9 = vmul.f32 -0.018175583, %v6246_v8  ;;  %v1459_v10 = vmul.f32 0.017400568, %v6246_v8  ;;  %v1382_v12 = vmul.f32 0.040690105, %v6246_v8 }
 0xc5c   :  { %v1423_v13 = vmul.f32 -0.018175583, %v6248_v11  ;;  %v1493_v14 = vmul.f32 0.017400568, %v6248_v11  ;;  %v1384_v15 = vmul.f32 0.040690105, %v6248_v11 }
 0xc5d   :  { %v1392_v16 = vadd.f32 %v1391_v9, %v1390_v59  ;;  %v1460_v17 = vadd.f32 %v1459_v10, %v1458_v51  ;;  %v1383_v18 = vadd.f32 %v1382_v12, %v1319_v62 }
 0xc5e   :  { %v1424_v19 = vadd.f32 %v1423_v13, %v1422_v56  ;;  %v1494_v20 = vadd.f32 %v1493_v14, %v1492_v3  ;;  %v1385_v21 = vadd.f32 %v1384_v15, %v1321_v4 }
 0xc5f   :  { %v1393_v22 = vadd.f32 %v1392_v16, %v6889_v50 }
 0xc60   :  { %v1425_v23 = vadd.f32 %v1424_v19, %v6891_v58 }
 0xc61   :  { %6007 = vmatmul.msk.f32.vlgmr.msrb.gmra.mxu0 %vm53_vm0, %v1393_v22 }
 0xc62   :  { %6008 = vmatmul.msk.f32.vlgmr.msrb.gmra.mxu1 %vm53_vm0, %v1425_v23  ;;  %1651 = vmatpush.msrb.mxu0 %v6897_v0 }
 0xc63   :  { %1679 = vmatpush.msrb.mxu1 %v6897_v0 }
 0xc64   :  { %1652 = vmatpush.msrb.mxu0 %v6901_v1 }
 0xc65   :  { %1680 = vmatpush.msrb.mxu1 %v6901_v1 }
 0xcde   :  { %v1414_v24 = vpop.f32.mrf.mxu0 }
 0xcdf   :  { %v1415_v25 = vadd.f32 %v6918_v61, %v1414_v24  ;;  %v1446_v26 = vpop.f32.mrf.mxu1 }
 0xce0   :  { %v1447_v27 = vadd.f32 %v6918_v61, %v1446_v26 }
 0xce1   :  { %6249 = vtanh.f32 %v1415_v25 }
 0xce2   :  { %6251 = vtanh.f32 %v1447_v27 }
 0xce7   :  { %v6250_v28 = vpop.eup %6249 }
 0xce8   :  { %v6252_v29 = vpop.eup %6251  ;;  %v1450_v30 = vmul.f32 -0.020148512, %v6250_v28  ;;  %v1461_v31 = vmul.f32 -0.017095707, %v6250_v28 }
 0xce9   :  { %v1452_v32 = vmul.f32 -0.020148512, %v6252_v29  ;;  %v1495_v33 = vmul.f32 -0.017095707, %v6252_v29 }
 0xcea   :  { %v1462_v34 = vadd.f32 %v1461_v31, %v1460_v17  ;;  %v1451_v35 = vadd.f32 %v1450_v30, %v1383_v18 }
 0xceb   :  { %v1496_v36 = vadd.f32 %v1495_v33, %v1494_v20  ;;  %v1453_v37 = vadd.f32 %v1452_v32, %v1385_v21 }
 0xcec   :  { %v1463_v38 = vadd.f32 %v1462_v34, %v6889_v50 }
 0xced   :  { %v1497_v39 = vadd.f32 %v1496_v36, %v6891_v58 }
 0xcee   :  { %6009 = vmatmul.msk.f32.vlgmr.msrb.gmra.mxu2 %vm53_vm0, %v1463_v38 }
 0xcef   :  { %6010 = vmatmul.msk.f32.vlgmr.msrb.gmra.mxu3 %vm53_vm0, %v1497_v39  ;;  %1713 = vmatpush.msrb.mxu2 %v6897_v0 }
 0xcf0   :  { %1743 = vmatpush.msrb.mxu3 %v6897_v0 }
 0xcf1   :  { %1714 = vmatpush.msrb.mxu2 %v6901_v1 }
 0xcf2   :  { %1744 = vmatpush.msrb.mxu3 %v6901_v1 }
 0xd71   :  { %v1484_v40 = vpop.f32.mrf.mxu2 }
 0xd72   :  { %v1485_v41 = vadd.f32 %v6918_v61, %v1484_v40  ;;  %v1518_v42 = vpop.f32.mrf.mxu3 }
 0xd73   :  { %v1519_v50 = vadd.f32 %v6918_v61, %v1518_v42 }
 0xd74   :  { %6253 = vtanh.f32 %v1485_v41 }
 0xd75   :  { %6255 = vtanh.f32 %v1519_v50 }
 0xd7a   :  { %v6254_v58 = vpop.eup %6253 }
 0xd7b   :  { %v6256_v43 = vpop.eup %6255  ;;  %v1522_v44 = vmul.f32 0.008184524, %v6254_v58 }
 0xd7c   :  { %v1524_v45 = vmul.f32 0.008184524, %v6256_v43 }
 0xd7d   :  { %v6964_v46 = vadd.f32 %v1522_v44, %v1451_v35 }
 0xd7e   :  { %v6966_v54 = vadd.f32 %v1524_v45, %v1453_v37 }
 0xd7f   :  { %6011 = vmatmul.msk.f32.vlgmr.msra.gmra.mxu0 %vm53_vm0, %v6964_v46 }
 0xd80   :  { %6012 = vmatmul.msk.f32.vlgmr.msra.gmra.mxu1 %vm53_vm0, %v6966_v54  ;;  %1779 = vmatpush.msra.mxu0 %v6897_v0 }
 0xd81   :  { %1811 = vmatpush.msra.mxu1 %v6897_v0 }
 0xd82   :  { %1780 = vmatpush.msra.mxu0 %v6901_v1 }
 0xd83   :  { %1812 = vmatpush.msra.mxu1 %v6901_v1 }
 0xdfc   :  { %v1546_v2 = vpop.f32.mrf.mxu0 }
 0xdfd   :  { %v1547_v47 = vadd.f32 %v6918_v61, %v1546_v2  ;;  %v1570_v48 = vpop.f32.mrf.mxu1 }
 0xdfe   :  { %v1571_v49 = vadd.f32 %v6918_v61, %v1570_v48 }
 0xdff   :  { %6257 = vtanh.f32 %v1547_v47 }
 0xe00   :  { %6259 = vtanh.f32 %v1571_v49 }
 0xe05   :  { %v6258_v59 = vpop.eup %6257 }
 0xe06   :  { %v6260_v51 = vpop.eup %6259  ;;  %v1578_v52 = vmul.f32 0.0125, %v6258_v59  ;;  %v1630_v4 = vmul.f32 0.0046875, %v6258_v59  ;;  %v1690_v63 = vmul.f32 0.06111111, %v6258_v59 }
 0xe07   :  { %v1604_v53 = vmul.f32 0.0125, %v6260_v51  ;;  %v1658_v7 = vmul.f32 0.0046875, %v6260_v51  ;;  %v1720_v5 = vmul.f32 0.06111111, %v6260_v51 }
 0xe08   :  { %v1579_v56 = vadd.f32 %v1578_v52, %v6964_v46  ;;  %v1754_v6 = vmul.f32 0.18453741, %v6258_v59  ;;  %v1786_v11 = vmul.f32 0.18453741, %v6260_v51  ;;  %v1822_v9 = vmul.f32 0.17789221, %v6258_v59 }
 0xe09   :  { %v1605_v3 = vadd.f32 %v1604_v53, %v6966_v54  ;;  %v1856_v10 = vmul.f32 0.17789221, %v6260_v51  ;;  %v1574_v35 = vmul.f32 0.0056966147, %v6258_v59  ;;  %v1576_v36 = vmul.f32 0.0056966147, %v6260_v51 }
 0xe0a   :  { %6013 = vmatmul.msk.f32.vlgmr.msra.gmra.mxu2 %vm53_vm0, %v1579_v56 }
 0xe0b   :  { %6014 = vmatmul.msk.f32.vlgmr.msra.gmra.mxu3 %vm53_vm0, %v1605_v3  ;;  %1849 = vmatpush.msra.mxu2 %v6897_v0  ;;  %v1575_v42 = vadd.f32 %v1574_v35, %v6964_v46  ;;  %v1577_v44 = vadd.f32 %v1576_v36, %v6966_v54 }
 0xe0c   :  { %1883 = vmatpush.msra.mxu3 %v6897_v0 }
 0xe0d   :  { %1850 = vmatpush.msra.mxu2 %v6901_v1 }
 0xe0e   :  { %1884 = vmatpush.msra.mxu3 %v6901_v1 }
 0xe8d   :  { %v1600_v55 = vpop.f32.mrf.mxu2 }
 0xe8e   :  { %v1601_v57 = vadd.f32 %v6918_v61, %v1600_v55  ;;  %v1626_v62 = vpop.f32.mrf.mxu3 }
 0xe8f   :  { %v1627_v60 = vadd.f32 %v6918_v61, %v1626_v62 }
 0xe90   :  { %6261 = vtanh.f32 %v1601_v57 }
 0xe91   :  { %6263 = vtanh.f32 %v1627_v60 }
 0xe96   :  { %v6262_v8 = vpop.eup %6261 }
 0xe97   :  { %v6264_v12 = vpop.eup %6263  ;;  %v1631_v13 = vmul.f32 0.0140625, %v6262_v8  ;;  %v1691_v14 = vmul.f32 -0.23333333, %v6262_v8  ;;  %v1755_v15 = vmul.f32 -0.7247371, %v6262_v8 }
 0xe98   :  { %v1659_v16 = vmul.f32 0.0140625, %v6264_v12  ;;  %v1721_v17 = vmul.f32 -0.23333333, %v6264_v12  ;;  %v1787_v18 = vmul.f32 -0.7247371, %v6264_v12 }
 0xe99   :  { %v1632_v19 = vadd.f32 %v1631_v13, %v1630_v4  ;;  %v1692_v20 = vadd.f32 %v1691_v14, %v1690_v63  ;;  %v1756_v21 = vadd.f32 %v1755_v15, %v1754_v6  ;;  %v1823_v22 = vmul.f32 -0.6723485, %v6262_v8 }
 0xe9a   :  { %v1660_v23 = vadd.f32 %v1659_v16, %v1658_v7  ;;  %v1722_v24 = vadd.f32 %v1721_v17, %v1720_v5  ;;  %v1788_v25 = vadd.f32 %v1787_v18, %v1786_v11  ;;  %v1857_v26 = vmul.f32 -0.6723485, %v6264_v12 }
 0xe9b   :  { %v1633_v27 = vadd.f32 %v1632_v19, %v6964_v46  ;;  %v1824_v28 = vadd.f32 %v1823_v22, %v1822_v9 }
 0xe9c   :  { %v1661_v29 = vadd.f32 %v1660_v23, %v6966_v54  ;;  %v1858_v30 = vadd.f32 %v1857_v26, %v1856_v10 }
 0xe9d   :  { %6015 = vmatmul.msk.f32.vlgmr.msrb.gmra.mxu0 %vm53_vm0, %v1633_v27 }
 0xe9e   :  { %6016 = vmatmul.msk.f32.vlgmr.msrb.gmra.mxu1 %vm53_vm0, %v1661_v29  ;;  %1911 = vmatpush.msrb.mxu0 %v6897_v0 }
 0xe9f   :  { %1935 = vmatpush.msrb.mxu1 %v6897_v0 }
 0xea0   :  { %1912 = vmatpush.msrb.mxu0 %v6901_v1 }
 0xea1   :  { %1936 = vmatpush.msrb.mxu1 %v6901_v1 }
 0xf1a   :  { %v1654_v31 = vpop.f32.mrf.mxu0 }
 0xf1b   :  { %v1655_v32 = vadd.f32 %v6918_v61, %v1654_v31  ;;  %v1682_v33 = vpop.f32.mrf.mxu1 }
 0xf1c   :  { %v1683_v34 = vadd.f32 %v6918_v61, %v1682_v33 }
 0xf1d   :  { %6265 = vtanh.f32 %v1655_v32 }
 0xf1e   :  { %6267 = vtanh.f32 %v1683_v34 }
 0xf23   :  { %v6266_v37 = vpop.eup %6265 }
 0xf24   :  { %v6268_v38 = vpop.eup %6267  ;;  %v1693_v39 = vmul.f32 0.22222222, %v6266_v37  ;;  %v1757_v40 = vmul.f32 0.6139308, %v6266_v37  ;;  %v1825_v41 = vmul.f32 0.5566514, %v6266_v37 }
 0xf25   :  { %v1723_v50 = vmul.f32 0.22222222, %v6268_v38  ;;  %v1789_v58 = vmul.f32 0.6139308, %v6268_v38  ;;  %v1859_v43 = vmul.f32 0.5566514, %v6268_v38 }
 0xf26   :  { %v1694_v45 = vadd.f32 %v1693_v39, %v1692_v20  ;;  %v1758_v2 = vadd.f32 %v1757_v40, %v1756_v21  ;;  %v1826_v47 = vadd.f32 %v1825_v41, %v1824_v28  ;;  %v1686_v48 = vmul.f32 0.028077269, %v6266_v37 }
 0xf27   :  { %v1724_v49 = vadd.f32 %v1723_v50, %v1722_v24  ;;  %v1790_v52 = vadd.f32 %v1789_v58, %v1788_v25  ;;  %v1860_v59 = vadd.f32 %v1859_v43, %v1858_v30  ;;  %v1688_v51 = vmul.f32 0.028077269, %v6268_v38 }
 0xf28   :  { %v1695_v53 = vadd.f32 %v1694_v45, %v6964_v46  ;;  %v1687_v56 = vadd.f32 %v1686_v48, %v1575_v42 }
 0xf29   :  { %v1725_v3 = vadd.f32 %v1724_v49, %v6966_v54  ;;  %v1689_v55 = vadd.f32 %v1688_v51, %v1577_v44 }
 0xf2a   :  { %6017 = vmatmul.msk.f32.vlgmr.msrb.gmra.mxu2 %vm53_vm0, %v1695_v53 }
 0xf2b   :  { %6018 = vmatmul.msk.f32.vlgmr.msrb.gmra.mxu3 %vm53_vm0, %v1725_v3  ;;  %1965 = vmatpush.msrb.mxu2 %v6897_v0 }
 0xf2c   :  { %1991 = vmatpush.msrb.mxu3 %v6897_v0 }
 0xf2d   :  { %1966 = vmatpush.msrb.mxu2 %v6901_v1 }
 0xf2e   :  { %1992 = vmatpush.msrb.mxu3 %v6901_v1 }
 0xfad   :  { %v1716_v57 = vpop.f32.mrf.mxu2 }
 0xfae   :  { %v1717_v62 = vadd.f32 %v6918_v61, %v1716_v57  ;;  %v1746_v60 = vpop.f32.mrf.mxu3 }
 0xfaf   :  { %v1747_v4 = vadd.f32 %v6918_v61, %v1746_v60 }
 0xfb0   :  { %6269 = vtanh.f32 %v1717_v62 }
 0xfb1   :  { %6271 = vtanh.f32 %v1747_v4 }
 0xfb6   :  { %v6270_v63 = vpop.eup %6269 }
 0xfb7   :  { %v6272_v7 = vpop.eup %6271  ;;  %v1759_v5 = vmul.f32 -0.018175583, %v6270_v63  ;;  %v1827_v6 = vmul.f32 0.017400568, %v6270_v63  ;;  %v1750_v8 = vmul.f32 0.040690105, %v6270_v63 }
 0xfb8   :  { %v1791_v11 = vmul.f32 -0.018175583, %v6272_v7  ;;  %v1861_v9 = vmul.f32 0.017400568, %v6272_v7  ;;  %v1752_v10 = vmul.f32 0.040690105, %v6272_v7 }
 0xfb9   :  { %v1760_v12 = vadd.f32 %v1759_v5, %v1758_v2  ;;  %v1828_v13 = vadd.f32 %v1827_v6, %v1826_v47  ;;  %v1751_v14 = vadd.f32 %v1750_v8, %v1687_v56 }
 0xfba   :  { %v1792_v15 = vadd.f32 %v1791_v11, %v1790_v52  ;;  %v1862_v16 = vadd.f32 %v1861_v9, %v1860_v59  ;;  %v1753_v17 = vadd.f32 %v1752_v10, %v1689_v55 }
 0xfbb   :  { %v1761_v18 = vadd.f32 %v1760_v12, %v6964_v46 }
 0xfbc   :  { %v1793_v19 = vadd.f32 %v1792_v15, %v6966_v54 }
 0xfbd   :  { %6019 = vmatmul.msk.f32.vlgmr.msra.gmra.mxu0 %vm53_vm0, %v1761_v18 }
 0xfbe   :  { %6020 = vmatmul.msk.f32.vlgmr.msra.gmra.mxu1 %vm53_vm0, %v1793_v19  ;;  %2019 = vmatpush.msra.mxu0 %v6897_v0 }
 0xfbf   :  { %2047 = vmatpush.msra.mxu1 %v6897_v0 }
 0xfc0   :  { %2020 = vmatpush.msra.mxu0 %v6901_v1 }
 0xfc1   :  { %2048 = vmatpush.msra.mxu1 %v6901_v1 }
0x103a   :  { %v1782_v20 = vpop.f32.mrf.mxu0 }
0x103b   :  { %v1783_v21 = vadd.f32 %v6918_v61, %v1782_v20  ;;  %v1814_v22 = vpop.f32.mrf.mxu1 }
0x103c   :  { %v1815_v23 = vadd.f32 %v6918_v61, %v1814_v22 }
0x103d   :  { %6273 = vtanh.f32 %v1783_v21 }
0x103e   :  { %6275 = vtanh.f32 %v1815_v23 }
0x1043   :  { %v6274_v24 = vpop.eup %6273 }
0x1044   :  { %v6276_v25 = vpop.eup %6275  ;;  %v1818_v26 = vmul.f32 -0.020148512, %v6274_v24  ;;  %v1829_v27 = vmul.f32 -0.017095707, %v6274_v24 }
0x1045   :  { %v1820_v28 = vmul.f32 -0.020148512, %v6276_v25  ;;  %v1863_v29 = vmul.f32 -0.017095707, %v6276_v25 }
0x1046   :  { %v1830_v30 = vadd.f32 %v1829_v27, %v1828_v13  ;;  %v1819_v31 = vadd.f32 %v1818_v26, %v1751_v14 }
0x1047   :  { %v1864_v32 = vadd.f32 %v1863_v29, %v1862_v16  ;;  %v1821_v33 = vadd.f32 %v1820_v28, %v1753_v17 }
0x1048   :  { %v1831_v34 = vadd.f32 %v1830_v30, %v6964_v46 }
0x1049   :  { %v1865_v35 = vadd.f32 %v1864_v32, %v6966_v54 }
0x104a   :  { %6021 = vmatmul.msk.f32.vlgmr.msra.gmra.mxu2 %vm53_vm0, %v1831_v34 }
0x104b   :  { %6022 = vmatmul.msk.f32.vlgmr.msra.gmra.mxu3 %vm53_vm0, %v1865_v35  ;;  %2081 = vmatpush.msra.mxu2 %v6897_v0 }
0x104c   :  { %2111 = vmatpush.msra.mxu3 %v6897_v0 }
0x104d   :  { %2082 = vmatpush.msra.mxu2 %v6901_v1 }
0x104e   :  { %2112 = vmatpush.msra.mxu3 %v6901_v1 }
0x10cd   :  { %v1852_v36 = vpop.f32.mrf.mxu2 }
0x10ce   :  { %v1853_v37 = vadd.f32 %v6918_v61, %v1852_v36  ;;  %v1886_v38 = vpop.f32.mrf.mxu3 }
0x10cf   :  { %v1887_v46 = vadd.f32 %v6918_v61, %v1886_v38 }
0x10d0   :  { %6277 = vtanh.f32 %v1853_v37 }
0x10d1   :  { %6279 = vtanh.f32 %v1887_v46 }
0x10d6   :  { %v6278_v54 = vpop.eup %6277 }
0x10d7   :  { %v6280_v39 = vpop.eup %6279  ;;  %v1890_v40 = vmul.f32 0.008184524, %v6278_v54 }
0x10d8   :  { %v1892_v41 = vmul.f32 0.008184524, %v6280_v39 }
0x10d9   :  { %v7030_v42 = vadd.f32 %v1890_v40, %v1819_v31 }
0x10da   :  { %v7032_v50 = vadd.f32 %v1892_v41, %v1821_v33 }
0x10db   :  { %6023 = vmatmul.msk.f32.vlgmr.msrb.gmra.mxu0 %vm53_vm0, %v7030_v42 }
0x10dc   :  { %6024 = vmatmul.msk.f32.vlgmr.msrb.gmra.mxu1 %vm53_vm0, %v7032_v50  ;;  %2147 = vmatpush.msrb.mxu0 %v6897_v0 }
0x10dd   :  { %2179 = vmatpush.msrb.mxu1 %v6897_v0 }
0x10de   :  { %2148 = vmatpush.msrb.mxu0 %v6901_v1 }
0x10df   :  { %2180 = vmatpush.msrb.mxu1 %v6901_v1 }
0x1158   :  { %v1914_v58 = vpop.f32.mrf.mxu0 }
0x1159   :  { %v1915_v43 = vadd.f32 %v6918_v61, %v1914_v58  ;;  %v1938_v44 = vpop.f32.mrf.mxu1 }
0x115a   :  { %v1939_v45 = vadd.f32 %v6918_v61, %v1938_v44 }
0x115b   :  { %6281 = vtanh.f32 %v1915_v43 }
0x115c   :  { %6283 = vtanh.f32 %v1939_v45 }
0x1161   :  { %v6282_v2 = vpop.eup %6281 }
0x1162   :  { %v6284_v47 = vpop.eup %6283  ;;  %v1946_v48 = vmul.f32 0.0125, %v6282_v2  ;;  %v1998_v55 = vmul.f32 0.0046875, %v6282_v2  ;;  %v2058_v57 = vmul.f32 0.06111111, %v6282_v2 }
0x1163   :  { %v1972_v49 = vmul.f32 0.0125, %v6284_v47  ;;  %v2026_v62 = vmul.f32 0.0046875, %v6284_v47  ;;  %v2088_v60 = vmul.f32 0.06111111, %v6284_v47 }
0x1164   :  { %v1947_v52 = vadd.f32 %v1946_v48, %v7030_v42  ;;  %v2122_v4 = vmul.f32 0.18453741, %v6282_v2  ;;  %v2154_v7 = vmul.f32 0.18453741, %v6284_v47  ;;  %v2190_v5 = vmul.f32 0.17789221, %v6282_v2 }
0x1165   :  { %v1973_v59 = vadd.f32 %v1972_v49, %v7032_v50  ;;  %v2224_v6 = vmul.f32 0.17789221, %v6284_v47  ;;  %v1942_v31 = vmul.f32 0.0056966147, %v6282_v2  ;;  %v1944_v32 = vmul.f32 0.0056966147, %v6284_v47 }
0x1166   :  { %6025 = vmatmul.msk.f32.vlgmr.msrb.gmra.mxu2 %vm53_vm0, %v1947_v52 }
0x1167   :  { %6026 = vmatmul.msk.f32.vlgmr.msrb.gmra.mxu3 %vm53_vm0, %v1973_v59  ;;  %2217 = vmatpush.msrb.mxu2 %v6897_v0  ;;  %v1943_v38 = vadd.f32 %v1942_v31, %v7030_v42  ;;  %v1945_v40 = vadd.f32 %v1944_v32, %v7032_v50 }
0x1168   :  { %2251 = vmatpush.msrb.mxu3 %v6897_v0 }
0x1169   :  { %2218 = vmatpush.msrb.mxu2 %v6901_v1 }
0x116a   :  { %2252 = vmatpush.msrb.mxu3 %v6901_v1 }
0x11e9   :  { %v1968_v51 = vpop.f32.mrf.mxu2 }
0x11ea   :  { %v1969_v53 = vadd.f32 %v6918_v61, %v1968_v51  ;;  %v1994_v56 = vpop.f32.mrf.mxu3 }
0x11eb   :  { %v1995_v3 = vadd.f32 %v6918_v61, %v1994_v56 }
0x11ec   :  { %6285 = vtanh.f32 %v1969_v53 }
0x11ed   :  { %6287 = vtanh.f32 %v1995_v3 }
0x11f2   :  { %v6286_v63 = vpop.eup %6285 }
0x11f3   :  { %v6288_v8 = vpop.eup %6287  ;;  %v1999_v11 = vmul.f32 0.0140625, %v6286_v63  ;;  %v2059_v9 = vmul.f32 -0.23333333, %v6286_v63  ;;  %v2123_v10 = vmul.f32 -0.7247371, %v6286_v63 }
0x11f4   :  { %v2027_v12 = vmul.f32 0.0140625, %v6288_v8  ;;  %v2089_v13 = vmul.f32 -0.23333333, %v6288_v8  ;;  %v2155_v14 = vmul.f32 -0.7247371, %v6288_v8 }
0x11f5   :  { %v2000_v15 = vadd.f32 %v1999_v11, %v1998_v55  ;;  %v2060_v16 = vadd.f32 %v2059_v9, %v2058_v57  ;;  %v2124_v17 = vadd.f32 %v2123_v10, %v2122_v4  ;;  %v2191_v18 = vmul.f32 -0.6723485, %v6286_v63 }
0x11f6   :  { %v2028_v19 = vadd.f32 %v2027_v12, %v2026_v62  ;;  %v2090_v20 = vadd.f32 %v2089_v13, %v2088_v60  ;;  %v2156_v21 = vadd.f32 %v2155_v14, %v2154_v7  ;;  %v2225_v22 = vmul.f32 -0.6723485, %v6288_v8 }
0x11f7   :  { %v2001_v23 = vadd.f32 %v2000_v15, %v7030_v42  ;;  %v2192_v24 = vadd.f32 %v2191_v18, %v2190_v5 }
0x11f8   :  { %v2029_v25 = vadd.f32 %v2028_v19, %v7032_v50  ;;  %v2226_v26 = vadd.f32 %v2225_v22, %v2224_v6 }
0x11f9   :  { %6027 = vmatmul.msk.f32.vlgmr.msra.gmra.mxu0 %vm53_vm0, %v2001_v23 }
0x11fa   :  { %6028 = vmatmul.msk.f32.vlgmr.msra.gmra.mxu1 %vm53_vm0, %v2029_v25  ;;  %2279 = vmatpush.msra.mxu0 %v6897_v0 }
0x11fb   :  { %2303 = vmatpush.msra.mxu1 %v6897_v0 }
0x11fc   :  { %2280 = vmatpush.msra.mxu0 %v6901_v1 }
0x11fd   :  { %2304 = vmatpush.msra.mxu1 %v6901_v1 }
0x1276   :  { %v2022_v27 = vpop.f32.mrf.mxu0 }
0x1277   :  { %v2023_v28 = vadd.f32 %v6918_v61, %v2022_v27  ;;  %v2050_v29 = vpop.f32.mrf.mxu1 }
0x1278   :  { %v2051_v30 = vadd.f32 %v6918_v61, %v2050_v29 }
0x1279   :  { %6289 = vtanh.f32 %v2023_v28 }
0x127a   :  { %6291 = vtanh.f32 %v2051_v30 }
0x127f   :  { %v6290_v33 = vpop.eup %6289 }
0x1280   :  { %v6292_v34 = vpop.eup %6291  ;;  %v2061_v35 = vmul.f32 0.22222222, %v6290_v33  ;;  %v2125_v36 = vmul.f32 0.6139308, %v6290_v33  ;;  %v2193_v37 = vmul.f32 0.5566514, %v6290_v33 }
0x1281   :  { %v2091_v46 = vmul.f32 0.22222222, %v6292_v34  ;;  %v2157_v54 = vmul.f32 0.6139308, %v6292_v34  ;;  %v2227_v39 = vmul.f32 0.5566514, %v6292_v34 }
0x1282   :  { %v2062_v41 = vadd.f32 %v2061_v35, %v2060_v16  ;;  %v2126_v58 = vadd.f32 %v2125_v36, %v2124_v17  ;;  %v2194_v43 = vadd.f32 %v2193_v37, %v2192_v24  ;;  %v2054_v44 = vmul.f32 0.028077269, %v6290_v33 }
0x1283   :  { %v2092_v45 = vadd.f32 %v2091_v46, %v2090_v20  ;;  %v2158_v48 = vadd.f32 %v2157_v54, %v2156_v21  ;;  %v2228_v2 = vadd.f32 %v2227_v39, %v2226_v26  ;;  %v2056_v47 = vmul.f32 0.028077269, %v6292_v34 }
0x1284   :  { %v2063_v49 = vadd.f32 %v2062_v41, %v7030_v42  ;;  %v2055_v52 = vadd.f32 %v2054_v44, %v1943_v38 }
0x1285   :  { %v2093_v59 = vadd.f32 %v2092_v45, %v7032_v50  ;;  %v2057_v51 = vadd.f32 %v2056_v47, %v1945_v40 }
0x1286   :  { %6029 = vmatmul.msk.f32.vlgmr.msra.gmra.mxu2 %vm53_vm0, %v2063_v49 }
0x1287   :  { %6030 = vmatmul.msk.f32.vlgmr.msra.gmra.mxu3 %vm53_vm0, %v2093_v59  ;;  %2333 = vmatpush.msra.mxu2 %v6897_v0 }
0x1288   :  { %2359 = vmatpush.msra.mxu3 %v6897_v0 }
0x1289   :  { %2334 = vmatpush.msra.mxu2 %v6901_v1 }
0x128a   :  { %2360 = vmatpush.msra.mxu3 %v6901_v1 }
0x1309   :  { %v2084_v53 = vpop.f32.mrf.mxu2 }
0x130a   :  { %v2085_v56 = vadd.f32 %v6918_v61, %v2084_v53  ;;  %v2114_v3 = vpop.f32.mrf.mxu3 }
0x130b   :  { %v2115_v55 = vadd.f32 %v6918_v61, %v2114_v3 }
0x130c   :  { %6293 = vtanh.f32 %v2085_v56 }
0x130d   :  { %6295 = vtanh.f32 %v2115_v55 }
0x1312   :  { %v6294_v57 = vpop.eup %6293 }
0x1313   :  { %v6296_v62 = vpop.eup %6295  ;;  %v2127_v60 = vmul.f32 -0.018175583, %v6294_v57  ;;  %v2195_v4 = vmul.f32 0.017400568, %v6294_v57  ;;  %v2118_v63 = vmul.f32 0.040690105, %v6294_v57 }
0x1314   :  { %v2159_v7 = vmul.f32 -0.018175583, %v6296_v62  ;;  %v2229_v5 = vmul.f32 0.017400568, %v6296_v62  ;;  %v2120_v6 = vmul.f32 0.040690105, %v6296_v62 }
0x1315   :  { %v2128_v8 = vadd.f32 %v2127_v60, %v2126_v58  ;;  %v2196_v11 = vadd.f32 %v2195_v4, %v2194_v43  ;;  %v2119_v9 = vadd.f32 %v2118_v63, %v2055_v52 }
0x1316   :  { %v2160_v10 = vadd.f32 %v2159_v7, %v2158_v48  ;;  %v2230_v12 = vadd.f32 %v2229_v5, %v2228_v2  ;;  %v2121_v13 = vadd.f32 %v2120_v6, %v2057_v51 }
0x1317   :  { %v2129_v14 = vadd.f32 %v2128_v8, %v7030_v42 }
0x1318   :  { %v2161_v15 = vadd.f32 %v2160_v10, %v7032_v50 }
0x1319   :  { %6031 = vmatmul.msk.f32.vlgmr.msrb.gmra.mxu0 %vm53_vm0, %v2129_v14 }
0x131a   :  { %6032 = vmatmul.msk.f32.vlgmr.msrb.gmra.mxu1 %vm53_vm0, %v2161_v15  ;;  %2387 = vmatpush.msrb.mxu0 %v6897_v0 }
0x131b   :  { %2415 = vmatpush.msrb.mxu1 %v6897_v0 }
0x131c   :  { %2388 = vmatpush.msrb.mxu0 %v6901_v1 }
0x131d   :  { %2416 = vmatpush.msrb.mxu1 %v6901_v1 }
0x1396   :  { %v2150_v16 = vpop.f32.mrf.mxu0 }
0x1397   :  { %v2151_v17 = vadd.f32 %v6918_v61, %v2150_v16  ;;  %v2182_v18 = vpop.f32.mrf.mxu1 }
0x1398   :  { %v2183_v19 = vadd.f32 %v6918_v61, %v2182_v18 }
0x1399   :  { %6297 = vtanh.f32 %v2151_v17 }
0x139a   :  { %6299 = vtanh.f32 %v2183_v19 }
0x139f   :  { %v6298_v20 = vpop.eup %6297 }
0x13a0   :  { %v6300_v21 = vpop.eup %6299  ;;  %v2186_v22 = vmul.f32 -0.020148512, %v6298_v20  ;;  %v2197_v23 = vmul.f32 -0.017095707, %v6298_v20  ;;  %v7124_v20 = vld [vmem:[#allocation5 + $0x8] sm:$0xff] }
0x13a1   :  { %v2188_v24 = vmul.f32 -0.020148512, %v6300_v21  ;;  %v2231_v25 = vmul.f32 -0.017095707, %v6300_v21  ;;  %v7128_v21 = vld [vmem:[#allocation5] sm:$0xff] }
0x13a2   :  { %v2198_v26 = vadd.f32 %v2197_v23, %v2196_v11  ;;  %v2187_v27 = vadd.f32 %v2186_v22, %v2119_v9  ;;  %v7135_v23 = vld [vmem:[%s7772_s2] ss:$0 sm:$0xff] }
0x13a3   :  { %v2232_v28 = vadd.f32 %v2231_v25, %v2230_v12  ;;  %v2189_v29 = vadd.f32 %v2188_v24, %v2121_v13 }
0x13a4   :  { %v2199_v30 = vadd.f32 %v2198_v26, %v7030_v42 }
0x13a5   :  { %v2233_v31 = vadd.f32 %v2232_v28, %v7032_v50 }
0x13a6   :  { %6033 = vmatmul.msk.f32.vlgmr.msrb.gmra.mxu2 %vm53_vm0, %v2199_v30 }
0x13a7   :  { %6034 = vmatmul.msk.f32.vlgmr.msrb.gmra.mxu3 %vm53_vm0, %v2233_v31  ;;  %2449 = vmatpush.msrb.mxu2 %v6897_v0 }
0x13a8   :  { %2479 = vmatpush.msrb.mxu3 %v6897_v0 }
0x13a9   :  { %2450 = vmatpush.msrb.mxu2 %v6901_v1 }
0x13aa   :  { %2480 = vmatpush.msrb.mxu3 %v6901_v1 }
0x1429   :  { %v2220_v32 = vpop.f32.mrf.mxu2 }
0x142a   :  { %v2221_v33 = vadd.f32 %v6918_v61, %v2220_v32  ;;  %v2254_v34 = vpop.f32.mrf.mxu3 }
0x142b   :  { %v2255_v42 = vadd.f32 %v6918_v61, %v2254_v34 }
0x142c   :  { %6301 = vtanh.f32 %v2221_v33 }
0x142d   :  { %6303 = vtanh.f32 %v2255_v42 }
0x1432   :  { %v6302_v50 = vpop.eup %6301 }
0x1433   :  { %v6304_v35 = vpop.eup %6303  ;;  %v2258_v36 = vmul.f32 0.008184524, %v6302_v50 }
0x1434   :  { %v2260_v37 = vmul.f32 0.008184524, %v6304_v35 }
0x1435   :  { %v7096_v38 = vadd.f32 %v2258_v36, %v2187_v27 }
0x1436   :  { %v7098_v46 = vadd.f32 %v2260_v37, %v2189_v29 }
0x1437   :  { %6035 = vmatmul.msk.f32.vlgmr.msra.gmra.mxu0 %vm53_vm0, %v7096_v38 }
0x1438   :  { %6036 = vmatmul.msk.f32.vlgmr.msra.gmra.mxu1 %vm53_vm0, %v7098_v46  ;;  %2515 = vmatpush.msra.mxu0 %v6897_v0 }
0x1439   :  { %2547 = vmatpush.msra.mxu1 %v6897_v0 }
0x143a   :  { %2516 = vmatpush.msra.mxu0 %v6901_v1 }
0x143b   :  { %2548 = vmatpush.msra.mxu1 %v6901_v1 }
0x14b4   :  { %v2282_v54 = vpop.f32.mrf.mxu0 }
0x14b5   :  { %v2283_v39 = vadd.f32 %v6918_v61, %v2282_v54  ;;  %v2306_v40 = vpop.f32.mrf.mxu1 }
0x14b6   :  { %v2307_v41 = vadd.f32 %v6918_v61, %v2306_v40 }
0x14b7   :  { %6305 = vtanh.f32 %v2283_v39 }
0x14b8   :  { %6307 = vtanh.f32 %v2307_v41 }
0x14bd   :  { %v6306_v58 = vpop.eup %6305 }
0x14be   :  { %v6308_v43 = vpop.eup %6307  ;;  %v2314_v44 = vmul.f32 0.0125, %v6306_v58  ;;  %v2366_v51 = vmul.f32 0.0046875, %v6306_v58  ;;  %v2426_v53 = vmul.f32 0.06111111, %v6306_v58 }
0x14bf   :  { %v2340_v45 = vmul.f32 0.0125, %v6308_v43  ;;  %v2394_v56 = vmul.f32 0.0046875, %v6308_v43  ;;  %v2456_v3 = vmul.f32 0.06111111, %v6308_v43 }
0x14c0   :  { %v2315_v48 = vadd.f32 %v2314_v44, %v7096_v38  ;;  %v2490_v55 = vmul.f32 0.18453741, %v6306_v58  ;;  %v2522_v62 = vmul.f32 0.18453741, %v6308_v43  ;;  %v2592_v60 = vmul.f32 0.17789221, %v6308_v43 }
0x14c1   :  { %v2341_v2 = vadd.f32 %v2340_v45, %v7098_v46  ;;  %v2310_v27 = vmul.f32 0.0056966147, %v6306_v58  ;;  %v2312_v28 = vmul.f32 0.0056966147, %v6308_v43 }
0x14c2   :  { %6037 = vmatmul.msk.f32.vlgmr.msra.gmra.mxu2 %vm53_vm0, %v2315_v48 }
0x14c3   :  { %6038 = vmatmul.msk.f32.vlgmr.msra.gmra.mxu3 %vm53_vm0, %v2341_v2  ;;  %2585 = vmatpush.msra.mxu2 %v6897_v0  ;;  %v2311_v34 = vadd.f32 %v2310_v27, %v7096_v38  ;;  %v2313_v36 = vadd.f32 %v2312_v28, %v7098_v46 }
0x14c4   :  { %2619 = vmatpush.msra.mxu3 %v6897_v0  ;;  %v2558_v0 = vmul.f32 0.17789221, %v6306_v58 }
0x14c5   :  { %2586 = vmatpush.msra.mxu2 %v6901_v1 }
0x14c6   :  { %2620 = vmatpush.msra.mxu3 %v6901_v1 }
0x1545   :  { %v2336_v47 = vpop.f32.mrf.mxu2 }
0x1546   :  { %v2337_v49 = vadd.f32 %v6918_v61, %v2336_v47  ;;  %v2362_v52 = vpop.f32.mrf.mxu3 }
0x1547   :  { %v2363_v59 = vadd.f32 %v6918_v61, %v2362_v52 }
0x1548   :  { %6309 = vtanh.f32 %v2337_v49 }
0x1549   :  { %6311 = vtanh.f32 %v2363_v59 }
0x154e   :  { %v6310_v57 = vpop.eup %6309 }
0x154f   :  { %v6312_v4 = vpop.eup %6311  ;;  %v2367_v63 = vmul.f32 0.0140625, %v6310_v57  ;;  %v2427_v1 = vmul.f32 -0.23333333, %v6310_v57  ;;  %v2491_v7 = vmul.f32 -0.7247371, %v6310_v57 }
0x1550   :  { %v2395_v5 = vmul.f32 0.0140625, %v6312_v4  ;;  %v2457_v6 = vmul.f32 -0.23333333, %v6312_v4  ;;  %v2523_v8 = vmul.f32 -0.7247371, %v6312_v4 }
0x1551   :  { %v2368_v11 = vadd.f32 %v2367_v63, %v2366_v51  ;;  %v2428_v61 = vadd.f32 %v2427_v1, %v2426_v53  ;;  %v2492_v9 = vadd.f32 %v2491_v7, %v2490_v55  ;;  %v2559_v10 = vmul.f32 -0.6723485, %v6310_v57 }
0x1552   :  { %v2396_v12 = vadd.f32 %v2395_v5, %v2394_v56  ;;  %v2458_v13 = vadd.f32 %v2457_v6, %v2456_v3  ;;  %v2524_v14 = vadd.f32 %v2523_v8, %v2522_v62  ;;  %v2593_v15 = vmul.f32 -0.6723485, %v6312_v4 }
0x1553   :  { %v2369_v16 = vadd.f32 %v2368_v11, %v7096_v38  ;;  %v2560_v17 = vadd.f32 %v2559_v10, %v2558_v0 }
0x1554   :  { %v2397_v18 = vadd.f32 %v2396_v12, %v7098_v46  ;;  %v2594_v19 = vadd.f32 %v2593_v15, %v2592_v60 }
0x1555   :  { %6039 = vmatmul.msk.f32.vlgmr.msrb.gmra.mxu0 %vm53_vm0, %v2369_v16 }
0x1556   :  { %6040 = vmatmul.msk.f32.vlgmr.msrb.gmra.mxu1 %vm53_vm0, %v2397_v18  ;;  %2647 = vmatpush.msrb.mxu0 %v7124_v20 }
0x1557   :  { %2671 = vmatpush.msrb.mxu1 %v7124_v20 }
0x1558   :  { %2648 = vmatpush.msrb.mxu0 %v7128_v21 }
0x1559   :  { %2672 = vmatpush.msrb.mxu1 %v7128_v21 }
0x15d2   :  { %v2390_v22 = vpop.f32.mrf.mxu0 }
0x15d3   :  { %v2391_v24 = vadd.f32 %v7135_v23, %v2390_v22  ;;  %v2418_v25 = vpop.f32.mrf.mxu1 }
0x15d4   :  { %v2419_v26 = vadd.f32 %v7135_v23, %v2418_v25 }
0x15d5   :  { %6313 = vtanh.f32 %v2391_v24 }
0x15d6   :  { %6315 = vtanh.f32 %v2419_v26 }
0x15db   :  { %v6314_v29 = vpop.eup %6313 }
0x15dc   :  { %v6316_v30 = vpop.eup %6315  ;;  %v2429_v31 = vmul.f32 0.22222222, %v6314_v29  ;;  %v2493_v32 = vmul.f32 0.6139308, %v6314_v29  ;;  %v2561_v33 = vmul.f32 0.5566514, %v6314_v29 }
0x15dd   :  { %v2459_v42 = vmul.f32 0.22222222, %v6316_v30  ;;  %v2525_v50 = vmul.f32 0.6139308, %v6316_v30  ;;  %v2595_v35 = vmul.f32 0.5566514, %v6316_v30 }
0x15de   :  { %v2430_v37 = vadd.f32 %v2429_v31, %v2428_v61  ;;  %v2494_v54 = vadd.f32 %v2493_v32, %v2492_v9  ;;  %v2562_v39 = vadd.f32 %v2561_v33, %v2560_v17  ;;  %v2422_v40 = vmul.f32 0.028077269, %v6314_v29 }
0x15df   :  { %v2460_v41 = vadd.f32 %v2459_v42, %v2458_v13  ;;  %v2526_v44 = vadd.f32 %v2525_v50, %v2524_v14  ;;  %v2596_v58 = vadd.f32 %v2595_v35, %v2594_v19  ;;  %v2424_v43 = vmul.f32 0.028077269, %v6316_v30 }
0x15e0   :  { %v2431_v45 = vadd.f32 %v2430_v37, %v7096_v38  ;;  %v2423_v48 = vadd.f32 %v2422_v40, %v2311_v34 }
0x15e1   :  { %v2461_v2 = vadd.f32 %v2460_v41, %v7098_v46  ;;  %v2425_v47 = vadd.f32 %v2424_v43, %v2313_v36 }
0x15e2   :  { %6041 = vmatmul.msk.f32.vlgmr.msrb.gmra.mxu2 %vm53_vm0, %v2431_v45 }
0x15e3   :  { %6042 = vmatmul.msk.f32.vlgmr.msrb.gmra.mxu3 %vm53_vm0, %v2461_v2  ;;  %2701 = vmatpush.msrb.mxu2 %v7124_v20 }
0x15e4   :  { %2727 = vmatpush.msrb.mxu3 %v7124_v20 }
0x15e5   :  { %2702 = vmatpush.msrb.mxu2 %v7128_v21 }
0x15e6   :  { %2728 = vmatpush.msrb.mxu3 %v7128_v21 }
0x1665   :  { %v2452_v49 = vpop.f32.mrf.mxu2 }
0x1666   :  { %v2453_v52 = vadd.f32 %v7135_v23, %v2452_v49  ;;  %v2482_v59 = vpop.f32.mrf.mxu3 }
0x1667   :  { %v2483_v51 = vadd.f32 %v7135_v23, %v2482_v59 }
0x1668   :  { %6317 = vtanh.f32 %v2453_v52 }
0x1669   :  { %6319 = vtanh.f32 %v2483_v51 }
0x166e   :  { %v6318_v53 = vpop.eup %6317 }
0x166f   :  { %v6320_v56 = vpop.eup %6319  ;;  %v2495_v3 = vmul.f32 -0.018175583, %v6318_v53  ;;  %v2563_v55 = vmul.f32 0.017400568, %v6318_v53  ;;  %v2486_v57 = vmul.f32 0.040690105, %v6318_v53 }
0x1670   :  { %v2527_v62 = vmul.f32 -0.018175583, %v6320_v56  ;;  %v2597_v0 = vmul.f32 0.017400568, %v6320_v56  ;;  %v2488_v60 = vmul.f32 0.040690105, %v6320_v56 }
0x1671   :  { %v2496_v4 = vadd.f32 %v2495_v3, %v2494_v54  ;;  %v2564_v63 = vadd.f32 %v2563_v55, %v2562_v39  ;;  %v2487_v1 = vadd.f32 %v2486_v57, %v2423_v48 }
0x1672   :  { %v2528_v7 = vadd.f32 %v2527_v62, %v2526_v44  ;;  %v2598_v5 = vadd.f32 %v2597_v0, %v2596_v58  ;;  %v2489_v6 = vadd.f32 %v2488_v60, %v2425_v47 }
0x1673   :  { %v2497_v8 = vadd.f32 %v2496_v4, %v7096_v38 }
0x1674   :  { %v2529_v11 = vadd.f32 %v2528_v7, %v7098_v46 }
0x1675   :  { %6043 = vmatmul.msk.f32.vlgmr.msra.gmra.mxu0 %vm53_vm0, %v2497_v8 }
0x1676   :  { %6044 = vmatmul.msk.f32.vlgmr.msra.gmra.mxu1 %vm53_vm0, %v2529_v11  ;;  %2755 = vmatpush.msra.mxu0 %v7124_v20 }
0x1677   :  { %2783 = vmatpush.msra.mxu1 %v7124_v20 }
0x1678   :  { %2756 = vmatpush.msra.mxu0 %v7128_v21 }
0x1679   :  { %2784 = vmatpush.msra.mxu1 %v7128_v21 }
0x16f2   :  { %v2518_v61 = vpop.f32.mrf.mxu0 }
0x16f3   :  { %v2519_v9 = vadd.f32 %v7135_v23, %v2518_v61  ;;  %v2550_v10 = vpop.f32.mrf.mxu1 }
0x16f4   :  { %v2551_v12 = vadd.f32 %v7135_v23, %v2550_v10 }
0x16f5   :  { %6321 = vtanh.f32 %v2519_v9 }
0x16f6   :  { %6323 = vtanh.f32 %v2551_v12 }
0x16fb   :  { %v6322_v13 = vpop.eup %6321 }
0x16fc   :  { %v6324_v14 = vpop.eup %6323  ;;  %v2554_v15 = vmul.f32 -0.020148512, %v6322_v13  ;;  %v2565_v16 = vmul.f32 -0.017095707, %v6322_v13 }
0x16fd   :  { %v2556_v17 = vmul.f32 -0.020148512, %v6324_v14  ;;  %v2599_v18 = vmul.f32 -0.017095707, %v6324_v14 }
0x16fe   :  { %v2566_v19 = vadd.f32 %v2565_v16, %v2564_v63  ;;  %v2555_v22 = vadd.f32 %v2554_v15, %v2487_v1 }
0x16ff   :  { %v2600_v24 = vadd.f32 %v2599_v18, %v2598_v5  ;;  %v2557_v25 = vadd.f32 %v2556_v17, %v2489_v6 }
0x1700   :  { %v2567_v26 = vadd.f32 %v2566_v19, %v7096_v38 }
0x1701   :  { %v2601_v27 = vadd.f32 %v2600_v24, %v7098_v46 }
0x1702   :  { %6045 = vmatmul.msk.f32.vlgmr.msra.gmra.mxu2 %vm53_vm0, %v2567_v26 }
0x1703   :  { %6046 = vmatmul.msk.f32.vlgmr.msra.gmra.mxu3 %vm53_vm0, %v2601_v27  ;;  %2817 = vmatpush.msra.mxu2 %v7124_v20 }
0x1704   :  { %2847 = vmatpush.msra.mxu3 %v7124_v20 }
0x1705   :  { %2818 = vmatpush.msra.mxu2 %v7128_v21 }
0x1706   :  { %2848 = vmatpush.msra.mxu3 %v7128_v21 }
0x1785   :  { %v2588_v28 = vpop.f32.mrf.mxu2 }
0x1786   :  { %v2589_v29 = vadd.f32 %v7135_v23, %v2588_v28  ;;  %v2622_v30 = vpop.f32.mrf.mxu3 }
0x1787   :  { %v2623_v38 = vadd.f32 %v7135_v23, %v2622_v30 }
0x1788   :  { %6325 = vtanh.f32 %v2589_v29 }
0x1789   :  { %6327 = vtanh.f32 %v2623_v38 }
0x178e   :  { %v6326_v46 = vpop.eup %6325 }
0x178f   :  { %v6328_v31 = vpop.eup %6327  ;;  %v2626_v32 = vmul.f32 0.008184524, %v6326_v46 }
0x1790   :  { %v2628_v33 = vmul.f32 0.008184524, %v6328_v31 }
0x1791   :  { %v7171_v34 = vadd.f32 %v2626_v32, %v2555_v22 }
0x1792   :  { %v7173_v42 = vadd.f32 %v2628_v33, %v2557_v25 }
0x1793   :  { %6047 = vmatmul.msk.f32.vlgmr.msrb.gmra.mxu0 %vm53_vm0, %v7171_v34 }
0x1794   :  { %6048 = vmatmul.msk.f32.vlgmr.msrb.gmra.mxu1 %vm53_vm0, %v7173_v42  ;;  %2883 = vmatpush.msrb.mxu0 %v7124_v20 }
0x1795   :  { %2915 = vmatpush.msrb.mxu1 %v7124_v20 }
0x1796   :  { %2884 = vmatpush.msrb.mxu0 %v7128_v21 }
0x1797   :  { %2916 = vmatpush.msrb.mxu1 %v7128_v21 }
0x1810   :  { %v2650_v50 = vpop.f32.mrf.mxu0 }
0x1811   :  { %v2651_v35 = vadd.f32 %v7135_v23, %v2650_v50  ;;  %v2674_v36 = vpop.f32.mrf.mxu1 }
0x1812   :  { %v2675_v37 = vadd.f32 %v7135_v23, %v2674_v36 }
0x1813   :  { %6329 = vtanh.f32 %v2651_v35 }
0x1814   :  { %6331 = vtanh.f32 %v2675_v37 }
0x1819   :  { %v6330_v54 = vpop.eup %6329 }
0x181a   :  { %v6332_v39 = vpop.eup %6331  ;;  %v2682_v40 = vmul.f32 0.0125, %v6330_v54  ;;  %v2734_v47 = vmul.f32 0.0046875, %v6330_v54  ;;  %v2794_v49 = vmul.f32 0.06111111, %v6330_v54 }
0x181b   :  { %v2708_v41 = vmul.f32 0.0125, %v6332_v39  ;;  %v2762_v52 = vmul.f32 0.0046875, %v6332_v39  ;;  %v2824_v59 = vmul.f32 0.06111111, %v6332_v39 }
0x181c   :  { %v2683_v44 = vadd.f32 %v2682_v40, %v7171_v34  ;;  %v2858_v51 = vmul.f32 0.18453741, %v6330_v54  ;;  %v2890_v56 = vmul.f32 0.18453741, %v6332_v39  ;;  %v2926_v3 = vmul.f32 0.17789221, %v6330_v54 }
0x181d   :  { %v2709_v58 = vadd.f32 %v2708_v41, %v7173_v42  ;;  %v2960_v55 = vmul.f32 0.17789221, %v6332_v39  ;;  %v2678_v22 = vmul.f32 0.0056966147, %v6330_v54  ;;  %v2680_v24 = vmul.f32 0.0056966147, %v6332_v39 }
0x181e   :  { %6049 = vmatmul.msk.f32.vlgmr.msrb.gmra.mxu2 %vm53_vm0, %v2683_v44 }
0x181f   :  { %6050 = vmatmul.msk.f32.vlgmr.msrb.gmra.mxu3 %vm53_vm0, %v2709_v58  ;;  %2953 = vmatpush.msrb.mxu2 %v7124_v20  ;;  %v2679_v30 = vadd.f32 %v2678_v22, %v7171_v34  ;;  %v2681_v32 = vadd.f32 %v2680_v24, %v7173_v42 }
0x1820   :  { %2987 = vmatpush.msrb.mxu3 %v7124_v20 }
0x1821   :  { %2954 = vmatpush.msrb.mxu2 %v7128_v21 }
0x1822   :  { %2988 = vmatpush.msrb.mxu3 %v7128_v21 }
0x18a1   :  { %v2704_v43 = vpop.f32.mrf.mxu2 }
0x18a2   :  { %v2705_v45 = vadd.f32 %v7135_v23, %v2704_v43  ;;  %v2730_v48 = vpop.f32.mrf.mxu3 }
0x18a3   :  { %v2731_v2 = vadd.f32 %v7135_v23, %v2730_v48 }
0x18a4   :  { %6333 = vtanh.f32 %v2705_v45 }
0x18a5   :  { %6335 = vtanh.f32 %v2731_v2 }
0x18aa   :  { %v6334_v53 = vpop.eup %6333 }
0x18ab   :  { %v6336_v57 = vpop.eup %6335  ;;  %v2735_v62 = vmul.f32 0.0140625, %v6334_v53  ;;  %v2795_v0 = vmul.f32 -0.23333333, %v6334_v53  ;;  %v2859_v60 = vmul.f32 -0.7247371, %v6334_v53 }
0x18ac   :  { %v2763_v4 = vmul.f32 0.0140625, %v6336_v57  ;;  %v2825_v63 = vmul.f32 -0.23333333, %v6336_v57  ;;  %v2891_v1 = vmul.f32 -0.7247371, %v6336_v57 }
0x18ad   :  { %v2736_v7 = vadd.f32 %v2735_v62, %v2734_v47  ;;  %v2796_v5 = vadd.f32 %v2795_v0, %v2794_v49  ;;  %v2860_v6 = vadd.f32 %v2859_v60, %v2858_v51  ;;  %v2927_v8 = vmul.f32 -0.6723485, %v6334_v53 }
0x18ae   :  { %v2764_v11 = vadd.f32 %v2763_v4, %v2762_v52  ;;  %v2826_v61 = vadd.f32 %v2825_v63, %v2824_v59  ;;  %v2892_v9 = vadd.f32 %v2891_v1, %v2890_v56  ;;  %v2961_v10 = vmul.f32 -0.6723485, %v6336_v57 }
0x18af   :  { %v2737_v12 = vadd.f32 %v2736_v7, %v7171_v34  ;;  %v2928_v13 = vadd.f32 %v2927_v8, %v2926_v3 }
0x18b0   :  { %v2765_v14 = vadd.f32 %v2764_v11, %v7173_v42  ;;  %v2962_v15 = vadd.f32 %v2961_v10, %v2960_v55 }
0x18b1   :  { %6051 = vmatmul.msk.f32.vlgmr.msra.gmra.mxu0 %vm53_vm0, %v2737_v12 }
0x18b2   :  { %6052 = vmatmul.msk.f32.vlgmr.msra.gmra.mxu1 %vm53_vm0, %v2765_v14  ;;  %3015 = vmatpush.msra.mxu0 %v7124_v20 }
0x18b3   :  { %3039 = vmatpush.msra.mxu1 %v7124_v20 }
0x18b4   :  { %3016 = vmatpush.msra.mxu0 %v7128_v21 }
0x18b5   :  { %3040 = vmatpush.msra.mxu1 %v7128_v21 }
0x192e   :  { %v2758_v16 = vpop.f32.mrf.mxu0 }
0x192f   :  { %v2759_v17 = vadd.f32 %v7135_v23, %v2758_v16  ;;  %v2786_v18 = vpop.f32.mrf.mxu1 }
0x1930   :  { %v2787_v19 = vadd.f32 %v7135_v23, %v2786_v18 }
0x1931   :  { %6337 = vtanh.f32 %v2759_v17 }
0x1932   :  { %6339 = vtanh.f32 %v2787_v19 }
0x1937   :  { %v6338_v25 = vpop.eup %6337 }
0x1938   :  { %v6340_v26 = vpop.eup %6339  ;;  %v2797_v27 = vmul.f32 0.22222222, %v6338_v25  ;;  %v2861_v28 = vmul.f32 0.6139308, %v6338_v25  ;;  %v2929_v29 = vmul.f32 0.5566514, %v6338_v25 }
0x1939   :  { %v2827_v38 = vmul.f32 0.22222222, %v6340_v26  ;;  %v2893_v46 = vmul.f32 0.6139308, %v6340_v26  ;;  %v2963_v31 = vmul.f32 0.5566514, %v6340_v26 }
0x193a   :  { %v2798_v33 = vadd.f32 %v2797_v27, %v2796_v5  ;;  %v2862_v50 = vadd.f32 %v2861_v28, %v2860_v6  ;;  %v2930_v35 = vadd.f32 %v2929_v29, %v2928_v13  ;;  %v2790_v36 = vmul.f32 0.028077269, %v6338_v25 }
0x193b   :  { %v2828_v37 = vadd.f32 %v2827_v38, %v2826_v61  ;;  %v2894_v40 = vadd.f32 %v2893_v46, %v2892_v9  ;;  %v2964_v54 = vadd.f32 %v2963_v31, %v2962_v15  ;;  %v2792_v39 = vmul.f32 0.028077269, %v6340_v26 }
0x193c   :  { %v2799_v41 = vadd.f32 %v2798_v33, %v7171_v34  ;;  %v2791_v44 = vadd.f32 %v2790_v36, %v2679_v30 }
0x193d   :  { %v2829_v58 = vadd.f32 %v2828_v37, %v7173_v42  ;;  %v2793_v43 = vadd.f32 %v2792_v39, %v2681_v32 }
0x193e   :  { %6053 = vmatmul.msk.f32.vlgmr.msra.gmra.mxu2 %vm53_vm0, %v2799_v41 }
0x193f   :  { %6054 = vmatmul.msk.f32.vlgmr.msra.gmra.mxu3 %vm53_vm0, %v2829_v58  ;;  %3069 = vmatpush.msra.mxu2 %v7124_v20 }
0x1940   :  { %3095 = vmatpush.msra.mxu3 %v7124_v20 }
0x1941   :  { %3070 = vmatpush.msra.mxu2 %v7128_v21 }
0x1942   :  { %3096 = vmatpush.msra.mxu3 %v7128_v21 }
0x19c1   :  { %v2820_v45 = vpop.f32.mrf.mxu2 }
0x19c2   :  { %v2821_v48 = vadd.f32 %v7135_v23, %v2820_v45  ;;  %v2850_v2 = vpop.f32.mrf.mxu3 }
0x19c3   :  { %v2851_v47 = vadd.f32 %v7135_v23, %v2850_v2 }
0x19c4   :  { %6341 = vtanh.f32 %v2821_v48 }
0x19c5   :  { %6343 = vtanh.f32 %v2851_v47 }
0x19ca   :  { %v6342_v49 = vpop.eup %6341 }
0x19cb   :  { %v6344_v52 = vpop.eup %6343  ;;  %v2863_v59 = vmul.f32 -0.018175583, %v6342_v49  ;;  %v2931_v51 = vmul.f32 0.017400568, %v6342_v49  ;;  %v2854_v53 = vmul.f32 0.040690105, %v6342_v49 }
0x19cc   :  { %v2895_v56 = vmul.f32 -0.018175583, %v6344_v52  ;;  %v2965_v3 = vmul.f32 0.017400568, %v6344_v52  ;;  %v2856_v55 = vmul.f32 0.040690105, %v6344_v52 }
0x19cd   :  { %v2864_v57 = vadd.f32 %v2863_v59, %v2862_v50  ;;  %v2932_v62 = vadd.f32 %v2931_v51, %v2930_v35  ;;  %v2855_v0 = vadd.f32 %v2854_v53, %v2791_v44 }
0x19ce   :  { %v2896_v60 = vadd.f32 %v2895_v56, %v2894_v40  ;;  %v2966_v4 = vadd.f32 %v2965_v3, %v2964_v54  ;;  %v2857_v63 = vadd.f32 %v2856_v55, %v2793_v43 }
0x19cf   :  { %v2865_v1 = vadd.f32 %v2864_v57, %v7171_v34 }
0x19d0   :  { %v2897_v7 = vadd.f32 %v2896_v60, %v7173_v42 }
0x19d1   :  { %6055 = vmatmul.msk.f32.vlgmr.msrb.gmra.mxu0 %vm53_vm0, %v2865_v1 }
0x19d2   :  { %6056 = vmatmul.msk.f32.vlgmr.msrb.gmra.mxu1 %vm53_vm0, %v2897_v7  ;;  %3123 = vmatpush.msrb.mxu0 %v7124_v20 }
0x19d3   :  { %3151 = vmatpush.msrb.mxu1 %v7124_v20 }
0x19d4   :  { %3124 = vmatpush.msrb.mxu0 %v7128_v21 }
0x19d5   :  { %3152 = vmatpush.msrb.mxu1 %v7128_v21 }
0x1a4e   :  { %v2886_v5 = vpop.f32.mrf.mxu0 }
0x1a4f   :  { %v2887_v6 = vadd.f32 %v7135_v23, %v2886_v5  ;;  %v2918_v8 = vpop.f32.mrf.mxu1 }
0x1a50   :  { %v2919_v11 = vadd.f32 %v7135_v23, %v2918_v8 }
0x1a51   :  { %6345 = vtanh.f32 %v2887_v6 }
0x1a52   :  { %6347 = vtanh.f32 %v2919_v11 }
0x1a57   :  { %v6346_v61 = vpop.eup %6345 }
0x1a58   :  { %v6348_v9 = vpop.eup %6347  ;;  %v2922_v10 = vmul.f32 -0.020148512, %v6346_v61  ;;  %v2933_v12 = vmul.f32 -0.017095707, %v6346_v61 }
0x1a59   :  { %v2924_v13 = vmul.f32 -0.020148512, %v6348_v9  ;;  %v2967_v14 = vmul.f32 -0.017095707, %v6348_v9 }
0x1a5a   :  { %v2934_v15 = vadd.f32 %v2933_v12, %v2932_v62  ;;  %v2923_v16 = vadd.f32 %v2922_v10, %v2855_v0 }
0x1a5b   :  { %v2968_v17 = vadd.f32 %v2967_v14, %v2966_v4  ;;  %v2925_v18 = vadd.f32 %v2924_v13, %v2857_v63 }
0x1a5c   :  { %v2935_v19 = vadd.f32 %v2934_v15, %v7171_v34 }
0x1a5d   :  { %v2969_v22 = vadd.f32 %v2968_v17, %v7173_v42 }
0x1a5e   :  { %6057 = vmatmul.msk.f32.vlgmr.msrb.gmra.mxu2 %vm53_vm0, %v2935_v19 }
0x1a5f   :  { %6058 = vmatmul.msk.f32.vlgmr.msrb.gmra.mxu3 %vm53_vm0, %v2969_v22  ;;  %3185 = vmatpush.msrb.mxu2 %v7124_v20 }
0x1a60   :  { %3215 = vmatpush.msrb.mxu3 %v7124_v20 }
0x1a61   :  { %3186 = vmatpush.msrb.mxu2 %v7128_v21 }
0x1a62   :  { %3216 = vmatpush.msrb.mxu3 %v7128_v21 }
0x1ae1   :  { %v2956_v24 = vpop.f32.mrf.mxu2 }
0x1ae2   :  { %v2957_v25 = vadd.f32 %v7135_v23, %v2956_v24  ;;  %v2990_v26 = vpop.f32.mrf.mxu3 }
0x1ae3   :  { %v2991_v34 = vadd.f32 %v7135_v23, %v2990_v26 }
0x1ae4   :  { %6349 = vtanh.f32 %v2957_v25 }
0x1ae5   :  { %6351 = vtanh.f32 %v2991_v34 }
0x1aea   :  { %v6350_v42 = vpop.eup %6349 }
0x1aeb   :  { %v6352_v27 = vpop.eup %6351  ;;  %v2994_v28 = vmul.f32 0.008184524, %v6350_v42 }
0x1aec   :  { %v2996_v29 = vmul.f32 0.008184524, %v6352_v27 }
0x1aed   :  { %v7237_v30 = vadd.f32 %v2994_v28, %v2923_v16 }
0x1aee   :  { %v7239_v38 = vadd.f32 %v2996_v29, %v2925_v18 }
0x1aef   :  { %6059 = vmatmul.msk.f32.vlgmr.msra.gmra.mxu0 %vm53_vm0, %v7237_v30 }
0x1af0   :  { %6060 = vmatmul.msk.f32.vlgmr.msra.gmra.mxu1 %vm53_vm0, %v7239_v38  ;;  %3251 = vmatpush.msra.mxu0 %v7124_v20 }
0x1af1   :  { %3283 = vmatpush.msra.mxu1 %v7124_v20 }
0x1af2   :  { %3252 = vmatpush.msra.mxu0 %v7128_v21 }
0x1af3   :  { %3284 = vmatpush.msra.mxu1 %v7128_v21 }
0x1b6c   :  { %v3018_v46 = vpop.f32.mrf.mxu0 }
0x1b6d   :  { %v3019_v31 = vadd.f32 %v7135_v23, %v3018_v46  ;;  %v3042_v32 = vpop.f32.mrf.mxu1 }
0x1b6e   :  { %v3043_v33 = vadd.f32 %v7135_v23, %v3042_v32 }
0x1b6f   :  { %6353 = vtanh.f32 %v3019_v31 }
0x1b70   :  { %6355 = vtanh.f32 %v3043_v33 }
0x1b75   :  { %v6354_v50 = vpop.eup %6353 }
0x1b76   :  { %v6356_v35 = vpop.eup %6355  ;;  %v3050_v36 = vmul.f32 0.0125, %v6354_v50  ;;  %v3102_v43 = vmul.f32 0.0046875, %v6354_v50  ;;  %v3162_v45 = vmul.f32 0.06111111, %v6354_v50 }
0x1b77   :  { %v3076_v37 = vmul.f32 0.0125, %v6356_v35  ;;  %v3130_v48 = vmul.f32 0.0046875, %v6356_v35  ;;  %v3192_v2 = vmul.f32 0.06111111, %v6356_v35 }
0x1b78   :  { %v3051_v40 = vadd.f32 %v3050_v36, %v7237_v30  ;;  %v3226_v47 = vmul.f32 0.18453741, %v6354_v50  ;;  %v3258_v52 = vmul.f32 0.18453741, %v6356_v35  ;;  %v3294_v59 = vmul.f32 0.17789221, %v6354_v50 }
0x1b79   :  { %v3077_v54 = vadd.f32 %v3076_v37, %v7239_v38  ;;  %v3328_v51 = vmul.f32 0.17789221, %v6356_v35  ;;  %v3046_v16 = vmul.f32 0.0056966147, %v6354_v50  ;;  %v3048_v17 = vmul.f32 0.0056966147, %v6356_v35 }
0x1b7a   :  { %6061 = vmatmul.msk.f32.vlgmr.msra.gmra.mxu2 %vm53_vm0, %v3051_v40 }
0x1b7b   :  { %6062 = vmatmul.msk.f32.vlgmr.msra.gmra.mxu3 %vm53_vm0, %v3077_v54  ;;  %3321 = vmatpush.msra.mxu2 %v7124_v20  ;;  %v3047_v26 = vadd.f32 %v3046_v16, %v7237_v30  ;;  %v3049_v28 = vadd.f32 %v3048_v17, %v7239_v38 }
0x1b7c   :  { %3355 = vmatpush.msra.mxu3 %v7124_v20 }
0x1b7d   :  { %3322 = vmatpush.msra.mxu2 %v7128_v21 }
0x1b7e   :  { %3356 = vmatpush.msra.mxu3 %v7128_v21 }
0x1bfd   :  { %v3072_v39 = vpop.f32.mrf.mxu2 }
0x1bfe   :  { %v3073_v41 = vadd.f32 %v7135_v23, %v3072_v39  ;;  %v3098_v44 = vpop.f32.mrf.mxu3 }
0x1bff   :  { %v3099_v58 = vadd.f32 %v7135_v23, %v3098_v44 }
0x1c00   :  { %6357 = vtanh.f32 %v3073_v41 }
0x1c01   :  { %6359 = vtanh.f32 %v3099_v58 }
0x1c06   :  { %v6358_v49 = vpop.eup %6357 }
0x1c07   :  { %v6360_v53 = vpop.eup %6359  ;;  %v3103_v56 = vmul.f32 0.0140625, %v6358_v49  ;;  %v3163_v3 = vmul.f32 -0.23333333, %v6358_v49  ;;  %v3227_v55 = vmul.f32 -0.7247371, %v6358_v49 }
0x1c08   :  { %v3131_v57 = vmul.f32 0.0140625, %v6360_v53  ;;  %v3193_v62 = vmul.f32 -0.23333333, %v6360_v53  ;;  %v3259_v0 = vmul.f32 -0.7247371, %v6360_v53 }
0x1c09   :  { %v3104_v60 = vadd.f32 %v3103_v56, %v3102_v43  ;;  %v3164_v4 = vadd.f32 %v3163_v3, %v3162_v45  ;;  %v3228_v63 = vadd.f32 %v3227_v55, %v3226_v47  ;;  %v3295_v1 = vmul.f32 -0.6723485, %v6358_v49 }
0x1c0a   :  { %v3132_v7 = vadd.f32 %v3131_v57, %v3130_v48  ;;  %v3194_v5 = vadd.f32 %v3193_v62, %v3192_v2  ;;  %v3260_v6 = vadd.f32 %v3259_v0, %v3258_v52  ;;  %v3329_v8 = vmul.f32 -0.6723485, %v6360_v53 }
0x1c0b   :  { %v3105_v11 = vadd.f32 %v3104_v60, %v7237_v30  ;;  %v3296_v61 = vadd.f32 %v3295_v1, %v3294_v59 }
0x1c0c   :  { %v3133_v9 = vadd.f32 %v3132_v7, %v7239_v38  ;;  %v3330_v10 = vadd.f32 %v3329_v8, %v3328_v51 }
0x1c0d   :  { %6063 = vmatmul.msk.f32.vlgmr.msrb.gmra.mxu0 %vm53_vm0, %v3105_v11 }
0x1c0e   :  { %6064 = vmatmul.msk.f32.vlgmr.msrb.gmra.mxu1 %vm53_vm0, %v3133_v9  ;;  %3383 = vmatpush.msrb.mxu0 %v7124_v20 }
0x1c0f   :  { %3407 = vmatpush.msrb.mxu1 %v7124_v20 }
0x1c10   :  { %3384 = vmatpush.msrb.mxu0 %v7128_v21 }
0x1c11   :  { %3408 = vmatpush.msrb.mxu1 %v7128_v21 }
0x1c8a   :  { %v3126_v12 = vpop.f32.mrf.mxu0 }
0x1c8b   :  { %v3127_v13 = vadd.f32 %v7135_v23, %v3126_v12  ;;  %v3154_v14 = vpop.f32.mrf.mxu1 }
0x1c8c   :  { %v3155_v15 = vadd.f32 %v7135_v23, %v3154_v14 }
0x1c8d   :  { %6361 = vtanh.f32 %v3127_v13 }
0x1c8e   :  { %6363 = vtanh.f32 %v3155_v15 }
0x1c93   :  { %v6362_v18 = vpop.eup %6361 }
0x1c94   :  { %v6364_v19 = vpop.eup %6363  ;;  %v3165_v22 = vmul.f32 0.22222222, %v6362_v18  ;;  %v3229_v24 = vmul.f32 0.6139308, %v6362_v18  ;;  %v3297_v25 = vmul.f32 0.5566514, %v6362_v18 }
0x1c95   :  { %v3195_v34 = vmul.f32 0.22222222, %v6364_v19  ;;  %v3261_v42 = vmul.f32 0.6139308, %v6364_v19  ;;  %v3331_v27 = vmul.f32 0.5566514, %v6364_v19 }
0x1c96   :  { %v3166_v29 = vadd.f32 %v3165_v22, %v3164_v4  ;;  %v3230_v46 = vadd.f32 %v3229_v24, %v3228_v63  ;;  %v3298_v31 = vadd.f32 %v3297_v25, %v3296_v61  ;;  %v3158_v32 = vmul.f32 0.028077269, %v6362_v18 }
0x1c97   :  { %v3196_v33 = vadd.f32 %v3195_v34, %v3194_v5  ;;  %v3262_v36 = vadd.f32 %v3261_v42, %v3260_v6  ;;  %v3332_v50 = vadd.f32 %v3331_v27, %v3330_v10  ;;  %v3160_v35 = vmul.f32 0.028077269, %v6364_v19 }
0x1c98   :  { %v3167_v37 = vadd.f32 %v3166_v29, %v7237_v30  ;;  %v3159_v40 = vadd.f32 %v3158_v32, %v3047_v26 }
0x1c99   :  { %v3197_v54 = vadd.f32 %v3196_v33, %v7239_v38  ;;  %v3161_v39 = vadd.f32 %v3160_v35, %v3049_v28 }
0x1c9a   :  { %6065 = vmatmul.msk.f32.vlgmr.msrb.gmra.mxu2 %vm53_vm0, %v3167_v37 }
0x1c9b   :  { %6066 = vmatmul.msk.f32.vlgmr.msrb.gmra.mxu3 %vm53_vm0, %v3197_v54  ;;  %3437 = vmatpush.msrb.mxu2 %v7124_v20 }
0x1c9c   :  { %3463 = vmatpush.msrb.mxu3 %v7124_v20 }
0x1c9d   :  { %3438 = vmatpush.msrb.mxu2 %v7128_v21 }
0x1c9e   :  { %3464 = vmatpush.msrb.mxu3 %v7128_v21 }
0x1d1d   :  { %v3188_v41 = vpop.f32.mrf.mxu2 }
0x1d1e   :  { %v3189_v44 = vadd.f32 %v7135_v23, %v3188_v41  ;;  %v3218_v58 = vpop.f32.mrf.mxu3 }
0x1d1f   :  { %v3219_v43 = vadd.f32 %v7135_v23, %v3218_v58 }
0x1d20   :  { %6365 = vtanh.f32 %v3189_v44 }
0x1d21   :  { %6367 = vtanh.f32 %v3219_v43 }
0x1d26   :  { %v6366_v45 = vpop.eup %6365 }
0x1d27   :  { %v6368_v48 = vpop.eup %6367  ;;  %v3231_v2 = vmul.f32 -0.018175583, %v6366_v45  ;;  %v3299_v47 = vmul.f32 0.017400568, %v6366_v45  ;;  %v3222_v49 = vmul.f32 0.040690105, %v6366_v45 }
0x1d28   :  { %v3263_v52 = vmul.f32 -0.018175583, %v6368_v48  ;;  %v3333_v59 = vmul.f32 0.017400568, %v6368_v48  ;;  %v3224_v51 = vmul.f32 0.040690105, %v6368_v48 }
0x1d29   :  { %v3232_v53 = vadd.f32 %v3231_v2, %v3230_v46  ;;  %v3300_v56 = vadd.f32 %v3299_v47, %v3298_v31  ;;  %v3223_v3 = vadd.f32 %v3222_v49, %v3159_v40 }
0x1d2a   :  { %v3264_v55 = vadd.f32 %v3263_v52, %v3262_v36  ;;  %v3334_v57 = vadd.f32 %v3333_v59, %v3332_v50  ;;  %v3225_v62 = vadd.f32 %v3224_v51, %v3161_v39 }
0x1d2b   :  { %v3233_v0 = vadd.f32 %v3232_v53, %v7237_v30 }
0x1d2c   :  { %v3265_v60 = vadd.f32 %v3264_v55, %v7239_v38 }
0x1d2d   :  { %6067 = vmatmul.msk.f32.vlgmr.msra.gmra.mxu0 %vm53_vm0, %v3233_v0 }
0x1d2e   :  { %6068 = vmatmul.msk.f32.vlgmr.msra.gmra.mxu1 %vm53_vm0, %v3265_v60  ;;  %3491 = vmatpush.msra.mxu0 %v7124_v20 }
0x1d2f   :  { %3519 = vmatpush.msra.mxu1 %v7124_v20 }
0x1d30   :  { %3492 = vmatpush.msra.mxu0 %v7128_v21 }
0x1d31   :  { %3520 = vmatpush.msra.mxu1 %v7128_v21 }
0x1daa   :  { %v3254_v4 = vpop.f32.mrf.mxu0 }
0x1dab   :  { %v3255_v63 = vadd.f32 %v7135_v23, %v3254_v4  ;;  %v3286_v1 = vpop.f32.mrf.mxu1 }
0x1dac   :  { %v3287_v7 = vadd.f32 %v7135_v23, %v3286_v1 }
0x1dad   :  { %6369 = vtanh.f32 %v3255_v63 }
0x1dae   :  { %6371 = vtanh.f32 %v3287_v7 }
0x1db3   :  { %v6370_v5 = vpop.eup %6369 }
0x1db4   :  { %v6372_v6 = vpop.eup %6371  ;;  %v3290_v8 = vmul.f32 -0.020148512, %v6370_v5  ;;  %v3301_v11 = vmul.f32 -0.017095707, %v6370_v5 }
0x1db5   :  { %v3292_v61 = vmul.f32 -0.020148512, %v6372_v6  ;;  %v3335_v9 = vmul.f32 -0.017095707, %v6372_v6 }
0x1db6   :  { %v3302_v10 = vadd.f32 %v3301_v11, %v3300_v56  ;;  %v3291_v12 = vadd.f32 %v3290_v8, %v3223_v3 }
0x1db7   :  { %v3336_v13 = vadd.f32 %v3335_v9, %v3334_v57  ;;  %v3293_v14 = vadd.f32 %v3292_v61, %v3225_v62 }
0x1db8   :  { %v3303_v15 = vadd.f32 %v3302_v10, %v7237_v30 }
0x1db9   :  { %v3337_v16 = vadd.f32 %v3336_v13, %v7239_v38 }
0x1dba   :  { %6069 = vmatmul.msk.f32.vlgmr.msra.gmra.mxu2 %vm53_vm0, %v3303_v15 }
0x1dbb   :  { %6070 = vmatmul.msk.f32.vlgmr.msra.gmra.mxu3 %vm53_vm0, %v3337_v16  ;;  %3553 = vmatpush.msra.mxu2 %v7124_v20 }
0x1dbc   :  { %3583 = vmatpush.msra.mxu3 %v7124_v20 }
0x1dbd   :  { %3554 = vmatpush.msra.mxu2 %v7128_v21 }
0x1dbe   :  { %3584 = vmatpush.msra.mxu3 %v7128_v21 }
0x1e3d   :  { %v3324_v17 = vpop.f32.mrf.mxu2 }
0x1e3e   :  { %v3325_v18 = vadd.f32 %v7135_v23, %v3324_v17  ;;  %v3358_v19 = vpop.f32.mrf.mxu3 }
0x1e3f   :  { %v3359_v30 = vadd.f32 %v7135_v23, %v3358_v19 }
0x1e40   :  { %6373 = vtanh.f32 %v3325_v18 }
0x1e41   :  { %6375 = vtanh.f32 %v3359_v30 }
0x1e46   :  { %v6374_v38 = vpop.eup %6373 }
0x1e47   :  { %v6376_v22 = vpop.eup %6375  ;;  %v3362_v24 = vmul.f32 0.008184524, %v6374_v38 }
0x1e48   :  { %v3364_v25 = vmul.f32 0.008184524, %v6376_v22 }
0x1e49   :  { %v7303_v26 = vadd.f32 %v3362_v24, %v3291_v12 }
0x1e4a   :  { %v7305_v34 = vadd.f32 %v3364_v25, %v3293_v14 }
0x1e4b   :  { %6071 = vmatmul.msk.f32.vlgmr.msrb.gmra.mxu0 %vm53_vm0, %v7303_v26 }
0x1e4c   :  { %6072 = vmatmul.msk.f32.vlgmr.msrb.gmra.mxu1 %vm53_vm0, %v7305_v34  ;;  %3619 = vmatpush.msrb.mxu0 %v7124_v20 }
0x1e4d   :  { %3651 = vmatpush.msrb.mxu1 %v7124_v20 }
0x1e4e   :  { %3620 = vmatpush.msrb.mxu0 %v7128_v21 }
0x1e4f   :  { %3652 = vmatpush.msrb.mxu1 %v7128_v21 }
0x1ec8   :  { %v3386_v42 = vpop.f32.mrf.mxu0 }
0x1ec9   :  { %v3387_v27 = vadd.f32 %v7135_v23, %v3386_v42  ;;  %v3410_v28 = vpop.f32.mrf.mxu1 }
0x1eca   :  { %v3411_v29 = vadd.f32 %v7135_v23, %v3410_v28 }
0x1ecb   :  { %6377 = vtanh.f32 %v3387_v27 }
0x1ecc   :  { %6379 = vtanh.f32 %v3411_v29 }
0x1ed1   :  { %v6378_v46 = vpop.eup %6377 }
0x1ed2   :  { %v6380_v31 = vpop.eup %6379  ;;  %v3418_v32 = vmul.f32 0.0125, %v6378_v46  ;;  %v3470_v39 = vmul.f32 0.0046875, %v6378_v46  ;;  %v3530_v41 = vmul.f32 0.06111111, %v6378_v46 }
0x1ed3   :  { %v3444_v33 = vmul.f32 0.0125, %v6380_v31  ;;  %v3498_v44 = vmul.f32 0.0046875, %v6380_v31  ;;  %v3560_v58 = vmul.f32 0.06111111, %v6380_v31 }
0x1ed4   :  { %v3419_v36 = vadd.f32 %v3418_v32, %v7303_v26  ;;  %v3594_v43 = vmul.f32 0.18453741, %v6378_v46  ;;  %v3626_v48 = vmul.f32 0.18453741, %v6380_v31  ;;  %v3662_v2 = vmul.f32 0.17789221, %v6378_v46 }
0x1ed5   :  { %v3445_v50 = vadd.f32 %v3444_v33, %v7305_v34  ;;  %v3696_v47 = vmul.f32 0.17789221, %v6380_v31  ;;  %v3414_v12 = vmul.f32 0.0056966147, %v6378_v46  ;;  %v3416_v13 = vmul.f32 0.0056966147, %v6380_v31 }
0x1ed6   :  { %6073 = vmatmul.msk.f32.vlgmr.msrb.gmra.mxu2 %vm53_vm0, %v3419_v36  ;;  %v7343_v36 = vld [vmem:[#allocation5 + $0x8] sm:$0xff] }
0x1ed7   :  { %6074 = vmatmul.msk.f32.vlgmr.msrb.gmra.mxu3 %vm53_vm0, %v3445_v50  ;;  %3689 = vmatpush.msrb.mxu2 %v7124_v20  ;;  %v3417_v38 = vadd.f32 %v3416_v13, %v7305_v34  ;;  %v7347_v50 = vld [vmem:[#allocation5] sm:$0xff] }
0x1ed8   :  { %3723 = vmatpush.msrb.mxu3 %v7124_v20 }
0x1ed9   :  { %3690 = vmatpush.msrb.mxu2 %v7128_v21 }
0x1eda   :  { %3724 = vmatpush.msrb.mxu3 %v7128_v21 }
0x1f59   :  { %v3440_v35 = vpop.f32.mrf.mxu2 }
0x1f5a   :  { %v3441_v37 = vadd.f32 %v7135_v23, %v3440_v35  ;;  %v3466_v40 = vpop.f32.mrf.mxu3 }
0x1f5b   :  { %v3467_v54 = vadd.f32 %v7135_v23, %v3466_v40 }
0x1f5c   :  { %6381 = vtanh.f32 %v3441_v37  ;;  %v7354_v37 = vld [vmem:[%s7772_s2] ss:$0 sm:$0xff] }
0x1f5d   :  { %6383 = vtanh.f32 %v3467_v54 }
0x1f62   :  { %v6382_v45 = vpop.eup %6381 }
0x1f63   :  { %v6384_v49 = vpop.eup %6383  ;;  %v3471_v52 = vmul.f32 0.0140625, %v6382_v45  ;;  %v3531_v59 = vmul.f32 -0.23333333, %v6382_v45  ;;  %v3595_v51 = vmul.f32 -0.7247371, %v6382_v45 }
0x1f64   :  { %v3499_v53 = vmul.f32 0.0140625, %v6384_v49  ;;  %v3561_v56 = vmul.f32 -0.23333333, %v6384_v49  ;;  %v3627_v3 = vmul.f32 -0.7247371, %v6384_v49 }
0x1f65   :  { %v3472_v55 = vadd.f32 %v3471_v52, %v3470_v39  ;;  %v3532_v57 = vadd.f32 %v3531_v59, %v3530_v41  ;;  %v3596_v62 = vadd.f32 %v3595_v51, %v3594_v43  ;;  %v3663_v0 = vmul.f32 -0.6723485, %v6382_v45 }
0x1f66   :  { %v3500_v60 = vadd.f32 %v3499_v53, %v3498_v44  ;;  %v3562_v4 = vadd.f32 %v3561_v56, %v3560_v58  ;;  %v3628_v63 = vadd.f32 %v3627_v3, %v3626_v48  ;;  %v3697_v1 = vmul.f32 -0.6723485, %v6384_v49 }
0x1f67   :  { %v3473_v7 = vadd.f32 %v3472_v55, %v7303_v26  ;;  %v3664_v5 = vadd.f32 %v3663_v0, %v3662_v2 }
0x1f68   :  { %v3501_v6 = vadd.f32 %v3500_v60, %v7305_v34  ;;  %v3698_v8 = vadd.f32 %v3697_v1, %v3696_v47 }
0x1f69   :  { %6075 = vmatmul.msk.f32.vlgmr.msra.gmra.mxu0 %vm53_vm0, %v3473_v7 }
0x1f6a   :  { %6076 = vmatmul.msk.f32.vlgmr.msra.gmra.mxu1 %vm53_vm0, %v3501_v6  ;;  %3751 = vmatpush.msra.mxu0 %v7124_v20 }
0x1f6b   :  { %3775 = vmatpush.msra.mxu1 %v7124_v20  ;;  %v3415_v20 = vadd.f32 %v3414_v12, %v7303_v26 }
0x1f6c   :  { %3752 = vmatpush.msra.mxu0 %v7128_v21 }
0x1f6d   :  { %3776 = vmatpush.msra.mxu1 %v7128_v21 }
0x1fe6   :  { %v3494_v11 = vpop.f32.mrf.mxu0 }
0x1fe7   :  { %v3495_v61 = vadd.f32 %v7135_v23, %v3494_v11  ;;  %v3522_v9 = vpop.f32.mrf.mxu1 }
0x1fe8   :  { %v3523_v10 = vadd.f32 %v7135_v23, %v3522_v9 }
0x1fe9   :  { %6385 = vtanh.f32 %v3495_v61 }
0x1fea   :  { %6387 = vtanh.f32 %v3523_v10 }
0x1fef   :  { %v6386_v14 = vpop.eup %6385 }
0x1ff0   :  { %v6388_v15 = vpop.eup %6387  ;;  %v3533_v16 = vmul.f32 0.22222222, %v6386_v14  ;;  %v3597_v17 = vmul.f32 0.6139308, %v6386_v14  ;;  %v3665_v18 = vmul.f32 0.5566514, %v6386_v14 }
0x1ff1   :  { %v3563_v19 = vmul.f32 0.22222222, %v6388_v15  ;;  %v3629_v30 = vmul.f32 0.6139308, %v6388_v15  ;;  %v3699_v21 = vmul.f32 0.5566514, %v6388_v15 }
0x1ff2   :  { %v3534_v22 = vadd.f32 %v3533_v16, %v3532_v57  ;;  %v3598_v24 = vadd.f32 %v3597_v17, %v3596_v62  ;;  %v3666_v25 = vadd.f32 %v3665_v18, %v3664_v5  ;;  %v3526_v23 = vmul.f32 0.028077269, %v6386_v14 }
0x1ff3   :  { %v3564_v42 = vadd.f32 %v3563_v19, %v3562_v4  ;;  %v3630_v27 = vadd.f32 %v3629_v30, %v3628_v63  ;;  %v3700_v28 = vadd.f32 %v3699_v21, %v3698_v8  ;;  %v3528_v29 = vmul.f32 0.028077269, %v6388_v15 }
0x1ff4   :  { %v3535_v46 = vadd.f32 %v3534_v22, %v7303_v26  ;;  %v3527_v31 = vadd.f32 %v3526_v23, %v3415_v20 }
0x1ff5   :  { %v3565_v32 = vadd.f32 %v3564_v42, %v7305_v34  ;;  %v3529_v33 = vadd.f32 %v3528_v29, %v3417_v38 }
0x1ff6   :  { %6077 = vmatmul.msk.f32.vlgmr.msra.gmra.mxu2 %vm53_vm0, %v3535_v46 }
0x1ff7   :  { %6078 = vmatmul.msk.f32.vlgmr.msra.gmra.mxu3 %vm53_vm0, %v3565_v32  ;;  %3805 = vmatpush.msra.mxu2 %v7343_v36 }
0x1ff8   :  { %3831 = vmatpush.msra.mxu3 %v7343_v36 }
0x1ff9   :  { %3806 = vmatpush.msra.mxu2 %v7347_v50 }
0x1ffa   :  { %3832 = vmatpush.msra.mxu3 %v7347_v50 }
0x2079   :  { %v3556_v35 = vpop.f32.mrf.mxu2 }
0x207a   :  { %v3557_v40 = vadd.f32 %v7354_v37, %v3556_v35  ;;  %v3586_v54 = vpop.f32.mrf.mxu3 }
0x207b   :  { %v3587_v39 = vadd.f32 %v7354_v37, %v3586_v54 }
0x207c   :  { %6389 = vtanh.f32 %v3557_v40 }
0x207d   :  { %6391 = vtanh.f32 %v3587_v39 }
0x2082   :  { %v6390_v41 = vpop.eup %6389 }
0x2083   :  { %v6392_v44 = vpop.eup %6391  ;;  %v3599_v58 = vmul.f32 -0.018175583, %v6390_v41  ;;  %v3667_v43 = vmul.f32 0.017400568, %v6390_v41  ;;  %v3590_v45 = vmul.f32 0.040690105, %v6390_v41 }
0x2084   :  { %v3631_v48 = vmul.f32 -0.018175583, %v6392_v44  ;;  %v3701_v2 = vmul.f32 0.017400568, %v6392_v44  ;;  %v3592_v47 = vmul.f32 0.040690105, %v6392_v44 }
0x2085   :  { %v3600_v49 = vadd.f32 %v3599_v58, %v3598_v24  ;;  %v3668_v52 = vadd.f32 %v3667_v43, %v3666_v25  ;;  %v3591_v59 = vadd.f32 %v3590_v45, %v3527_v31 }
0x2086   :  { %v3632_v51 = vadd.f32 %v3631_v48, %v3630_v27  ;;  %v3702_v53 = vadd.f32 %v3701_v2, %v3700_v28  ;;  %v3593_v56 = vadd.f32 %v3592_v47, %v3529_v33 }
0x2087   :  { %v3601_v3 = vadd.f32 %v3600_v49, %v7303_v26 }
0x2088   :  { %v3633_v55 = vadd.f32 %v3632_v51, %v7305_v34 }
0x2089   :  { %6079 = vmatmul.msk.f32.vlgmr.msrb.gmra.mxu0 %vm53_vm0, %v3601_v3 }
0x208a   :  { %6080 = vmatmul.msk.f32.vlgmr.msrb.gmra.mxu1 %vm53_vm0, %v3633_v55  ;;  %3859 = vmatpush.msrb.mxu0 %v7343_v36 }
0x208b   :  { %3887 = vmatpush.msrb.mxu1 %v7343_v36 }
0x208c   :  { %3860 = vmatpush.msrb.mxu0 %v7347_v50 }
0x208d   :  { %3888 = vmatpush.msrb.mxu1 %v7347_v50 }
0x2106   :  { %v3622_v57 = vpop.f32.mrf.mxu0 }
0x2107   :  { %v3623_v62 = vadd.f32 %v7354_v37, %v3622_v57  ;;  %v3654_v0 = vpop.f32.mrf.mxu1 }
0x2108   :  { %v3655_v60 = vadd.f32 %v7354_v37, %v3654_v0 }
0x2109   :  { %6393 = vtanh.f32 %v3623_v62 }
0x210a   :  { %6395 = vtanh.f32 %v3655_v60 }
0x210f   :  { %v6394_v4 = vpop.eup %6393 }
0x2110   :  { %v6396_v63 = vpop.eup %6395  ;;  %v3658_v1 = vmul.f32 -0.020148512, %v6394_v4  ;;  %v3669_v7 = vmul.f32 -0.017095707, %v6394_v4 }
0x2111   :  { %v3660_v5 = vmul.f32 -0.020148512, %v6396_v63  ;;  %v3703_v6 = vmul.f32 -0.017095707, %v6396_v63 }
0x2112   :  { %v3670_v8 = vadd.f32 %v3669_v7, %v3668_v52  ;;  %v3659_v11 = vadd.f32 %v3658_v1, %v3591_v59 }
0x2113   :  { %v3704_v61 = vadd.f32 %v3703_v6, %v3702_v53  ;;  %v3661_v9 = vadd.f32 %v3660_v5, %v3593_v56 }
0x2114   :  { %v3671_v10 = vadd.f32 %v3670_v8, %v7303_v26 }
0x2115   :  { %v3705_v12 = vadd.f32 %v3704_v61, %v7305_v34 }
0x2116   :  { %6081 = vmatmul.msk.f32.vlgmr.msrb.gmra.mxu2 %vm53_vm0, %v3671_v10 }
0x2117   :  { %6082 = vmatmul.msk.f32.vlgmr.msrb.gmra.mxu3 %vm53_vm0, %v3705_v12  ;;  %3921 = vmatpush.msrb.mxu2 %v7343_v36 }
0x2118   :  { %3951 = vmatpush.msrb.mxu3 %v7343_v36 }
0x2119   :  { %3922 = vmatpush.msrb.mxu2 %v7347_v50 }
0x211a   :  { %3952 = vmatpush.msrb.mxu3 %v7347_v50 }
0x2199   :  { %v3692_v13 = vpop.f32.mrf.mxu2 }
0x219a   :  { %v3693_v14 = vadd.f32 %v7354_v37, %v3692_v13  ;;  %v3726_v15 = vpop.f32.mrf.mxu3 }
0x219b   :  { %v3727_v26 = vadd.f32 %v7354_v37, %v3726_v15 }
0x219c   :  { %6397 = vtanh.f32 %v3693_v14 }
0x219d   :  { %6399 = vtanh.f32 %v3727_v26 }
0x21a2   :  { %v6398_v34 = vpop.eup %6397 }
0x21a3   :  { %v6400_v16 = vpop.eup %6399  ;;  %v3730_v17 = vmul.f32 0.008184524, %v6398_v34 }
0x21a4   :  { %v3732_v18 = vmul.f32 0.008184524, %v6400_v16 }
0x21a5   :  { %v7378_v20 = vadd.f32 %v3730_v17, %v3659_v11 }
0x21a6   :  { %v7380_v19 = vadd.f32 %v3732_v18, %v3661_v9 }
0x21a7   :  { %6083 = vmatmul.msk.f32.vlgmr.msra.gmra.mxu0 %vm53_vm0, %v7378_v20 }
0x21a8   :  { %6084 = vmatmul.msk.f32.vlgmr.msra.gmra.mxu1 %vm53_vm0, %v7380_v19  ;;  %3987 = vmatpush.msra.mxu0 %v7343_v36 }
0x21a9   :  { %4019 = vmatpush.msra.mxu1 %v7343_v36 }
0x21aa   :  { %3988 = vmatpush.msra.mxu0 %v7347_v50 }
0x21ab   :  { %4020 = vmatpush.msra.mxu1 %v7347_v50 }
0x2224   :  { %v3754_v30 = vpop.f32.mrf.mxu0 }
0x2225   :  { %v3755_v21 = vadd.f32 %v7354_v37, %v3754_v30  ;;  %v3778_v38 = vpop.f32.mrf.mxu1 }
0x2226   :  { %v3779_v22 = vadd.f32 %v7354_v37, %v3778_v38 }
0x2227   :  { %6401 = vtanh.f32 %v3755_v21 }
0x2228   :  { %6403 = vtanh.f32 %v3779_v22 }
0x222d   :  { %v6402_v24 = vpop.eup %6401 }
0x222e   :  { %v6404_v25 = vpop.eup %6403  ;;  %v3786_v23 = vmul.f32 0.0125, %v6402_v24  ;;  %v3838_v33 = vmul.f32 0.0046875, %v6402_v24  ;;  %v3898_v35 = vmul.f32 0.06111111, %v6402_v24 }
0x222f   :  { %v3812_v42 = vmul.f32 0.0125, %v6404_v25  ;;  %v3866_v40 = vmul.f32 0.0046875, %v6404_v25  ;;  %v3928_v54 = vmul.f32 0.06111111, %v6404_v25 }
0x2230   :  { %v3787_v27 = vadd.f32 %v3786_v23, %v7378_v20  ;;  %v3962_v39 = vmul.f32 0.18453741, %v6402_v24  ;;  %v3994_v44 = vmul.f32 0.18453741, %v6404_v25  ;;  %v4030_v58 = vmul.f32 0.17789221, %v6402_v24 }
0x2231   :  { %v3813_v28 = vadd.f32 %v3812_v42, %v7380_v19  ;;  %v4064_v43 = vmul.f32 0.17789221, %v6404_v25  ;;  %v3782_v11 = vmul.f32 0.0056966147, %v6402_v24  ;;  %v3784_v61 = vmul.f32 0.0056966147, %v6404_v25 }
0x2232   :  { %6085 = vmatmul.msk.f32.vlgmr.msra.gmra.mxu2 %vm53_vm0, %v3787_v27 }
0x2233   :  { %6086 = vmatmul.msk.f32.vlgmr.msra.gmra.mxu3 %vm53_vm0, %v3813_v28  ;;  %4057 = vmatpush.msra.mxu2 %v7343_v36  ;;  %v3783_v15 = vadd.f32 %v3782_v11, %v7378_v20  ;;  %v3785_v17 = vadd.f32 %v3784_v61, %v7380_v19 }
0x2234   :  { %4091 = vmatpush.msra.mxu3 %v7343_v36 }
0x2235   :  { %4058 = vmatpush.msra.mxu2 %v7347_v50 }
0x2236   :  { %4092 = vmatpush.msra.mxu3 %v7347_v50 }
0x22b5   :  { %v3808_v29 = vpop.f32.mrf.mxu2 }
0x22b6   :  { %v3809_v46 = vadd.f32 %v7354_v37, %v3808_v29  ;;  %v3834_v31 = vpop.f32.mrf.mxu3 }
0x22b7   :  { %v3835_v32 = vadd.f32 %v7354_v37, %v3834_v31 }
0x22b8   :  { %6405 = vtanh.f32 %v3809_v46 }
0x22b9   :  { %6407 = vtanh.f32 %v3835_v32 }
0x22be   :  { %v6406_v41 = vpop.eup %6405 }
0x22bf   :  { %v6408_v45 = vpop.eup %6407  ;;  %v3839_v48 = vmul.f32 0.0140625, %v6406_v41  ;;  %v3899_v2 = vmul.f32 -0.23333333, %v6406_v41  ;;  %v3963_v47 = vmul.f32 -0.7247371, %v6406_v41 }
0x22c0   :  { %v3867_v49 = vmul.f32 0.0140625, %v6408_v45  ;;  %v3929_v52 = vmul.f32 -0.23333333, %v6408_v45  ;;  %v3995_v59 = vmul.f32 -0.7247371, %v6408_v45 }
0x22c1   :  { %v3840_v51 = vadd.f32 %v3839_v48, %v3838_v33  ;;  %v3900_v53 = vadd.f32 %v3899_v2, %v3898_v35  ;;  %v3964_v56 = vadd.f32 %v3963_v47, %v3962_v39  ;;  %v4031_v3 = vmul.f32 -0.6723485, %v6406_v41 }
0x22c2   :  { %v3868_v55 = vadd.f32 %v3867_v49, %v3866_v40  ;;  %v3930_v57 = vadd.f32 %v3929_v52, %v3928_v54  ;;  %v3996_v62 = vadd.f32 %v3995_v59, %v3994_v44  ;;  %v4065_v0 = vmul.f32 -0.6723485, %v6408_v45 }
0x22c3   :  { %v3841_v60 = vadd.f32 %v3840_v51, %v7378_v20  ;;  %v4032_v4 = vadd.f32 %v4031_v3, %v4030_v58 }
0x22c4   :  { %v3869_v63 = vadd.f32 %v3868_v55, %v7380_v19  ;;  %v4066_v1 = vadd.f32 %v4065_v0, %v4064_v43 }
0x22c5   :  { %6087 = vmatmul.msk.f32.vlgmr.msrb.gmra.mxu0 %vm53_vm0, %v3841_v60 }
0x22c6   :  { %6088 = vmatmul.msk.f32.vlgmr.msrb.gmra.mxu1 %vm53_vm0, %v3869_v63  ;;  %4119 = vmatpush.msrb.mxu0 %v7343_v36 }
0x22c7   :  { %4143 = vmatpush.msrb.mxu1 %v7343_v36 }
0x22c8   :  { %4120 = vmatpush.msrb.mxu0 %v7347_v50 }
0x22c9   :  { %4144 = vmatpush.msrb.mxu1 %v7347_v50 }
0x2342   :  { %v3862_v7 = vpop.f32.mrf.mxu0 }
0x2343   :  { %v3863_v5 = vadd.f32 %v7354_v37, %v3862_v7  ;;  %v3890_v6 = vpop.f32.mrf.mxu1 }
0x2344   :  { %v3891_v8 = vadd.f32 %v7354_v37, %v3890_v6 }
0x2345   :  { %6409 = vtanh.f32 %v3863_v5 }
0x2346   :  { %6411 = vtanh.f32 %v3891_v8 }
0x234b   :  { %v6410_v9 = vpop.eup %6409 }
0x234c   :  { %v6412_v10 = vpop.eup %6411  ;;  %v3901_v12 = vmul.f32 0.22222222, %v6410_v9  ;;  %v3965_v13 = vmul.f32 0.6139308, %v6410_v9  ;;  %v4033_v14 = vmul.f32 0.5566514, %v6410_v9 }
0x234d   :  { %v3931_v26 = vmul.f32 0.22222222, %v6412_v10  ;;  %v3997_v34 = vmul.f32 0.6139308, %v6412_v10  ;;  %v4067_v16 = vmul.f32 0.5566514, %v6412_v10 }
0x234e   :  { %v3902_v18 = vadd.f32 %v3901_v12, %v3900_v53  ;;  %v3966_v30 = vadd.f32 %v3965_v13, %v3964_v56  ;;  %v4034_v21 = vadd.f32 %v4033_v14, %v4032_v4  ;;  %v3894_v38 = vmul.f32 0.028077269, %v6410_v9 }
0x234f   :  { %v3932_v22 = vadd.f32 %v3931_v26, %v3930_v57  ;;  %v3998_v23 = vadd.f32 %v3997_v34, %v3996_v62  ;;  %v4068_v24 = vadd.f32 %v4067_v16, %v4066_v1  ;;  %v3896_v25 = vmul.f32 0.028077269, %v6412_v10 }
0x2350   :  { %v3903_v42 = vadd.f32 %v3902_v18, %v7378_v20  ;;  %v3895_v27 = vadd.f32 %v3894_v38, %v3783_v15 }
0x2351   :  { %v3933_v28 = vadd.f32 %v3932_v22, %v7380_v19  ;;  %v3897_v29 = vadd.f32 %v3896_v25, %v3785_v17 }
0x2352   :  { %6089 = vmatmul.msk.f32.vlgmr.msrb.gmra.mxu2 %vm53_vm0, %v3903_v42 }
0x2353   :  { %6090 = vmatmul.msk.f32.vlgmr.msrb.gmra.mxu3 %vm53_vm0, %v3933_v28  ;;  %4173 = vmatpush.msrb.mxu2 %v7343_v36 }
0x2354   :  { %4199 = vmatpush.msrb.mxu3 %v7343_v36 }
0x2355   :  { %4174 = vmatpush.msrb.mxu2 %v7347_v50 }
0x2356   :  { %4200 = vmatpush.msrb.mxu3 %v7347_v50 }
0x23d5   :  { %v3924_v46 = vpop.f32.mrf.mxu2 }
0x23d6   :  { %v3925_v31 = vadd.f32 %v7354_v37, %v3924_v46  ;;  %v3954_v32 = vpop.f32.mrf.mxu3 }
0x23d7   :  { %v3955_v33 = vadd.f32 %v7354_v37, %v3954_v32 }
0x23d8   :  { %6413 = vtanh.f32 %v3925_v31 }
0x23d9   :  { %6415 = vtanh.f32 %v3955_v33 }
0x23de   :  { %v6414_v35 = vpop.eup %6413 }
0x23df   :  { %v6416_v40 = vpop.eup %6415  ;;  %v3967_v54 = vmul.f32 -0.018175583, %v6414_v35  ;;  %v4035_v39 = vmul.f32 0.017400568, %v6414_v35  ;;  %v3958_v41 = vmul.f32 0.040690105, %v6414_v35 }
0x23e0   :  { %v3999_v44 = vmul.f32 -0.018175583, %v6416_v40  ;;  %v4069_v58 = vmul.f32 0.017400568, %v6416_v40  ;;  %v3960_v43 = vmul.f32 0.040690105, %v6416_v40 }
0x23e1   :  { %v3968_v45 = vadd.f32 %v3967_v54, %v3966_v30  ;;  %v4036_v48 = vadd.f32 %v4035_v39, %v4034_v21  ;;  %v3959_v2 = vadd.f32 %v3958_v41, %v3895_v27 }
0x23e2   :  { %v4000_v47 = vadd.f32 %v3999_v44, %v3998_v23  ;;  %v4070_v49 = vadd.f32 %v4069_v58, %v4068_v24  ;;  %v3961_v52 = vadd.f32 %v3960_v43, %v3897_v29 }
0x23e3   :  { %v3969_v59 = vadd.f32 %v3968_v45, %v7378_v20 }
0x23e4   :  { %v4001_v51 = vadd.f32 %v4000_v47, %v7380_v19 }
0x23e5   :  { %6091 = vmatmul.msk.f32.vlgmr.msra.gmra.mxu0 %vm53_vm0, %v3969_v59 }
0x23e6   :  { %6092 = vmatmul.msk.f32.vlgmr.msra.gmra.mxu1 %vm53_vm0, %v4001_v51  ;;  %4227 = vmatpush.msra.mxu0 %v7343_v36 }
0x23e7   :  { %4255 = vmatpush.msra.mxu1 %v7343_v36 }
0x23e8   :  { %4228 = vmatpush.msra.mxu0 %v7347_v50 }
0x23e9   :  { %4256 = vmatpush.msra.mxu1 %v7347_v50 }
0x2462   :  { %v3990_v53 = vpop.f32.mrf.mxu0 }
0x2463   :  { %v3991_v56 = vadd.f32 %v7354_v37, %v3990_v53  ;;  %v4022_v3 = vpop.f32.mrf.mxu1 }
0x2464   :  { %v4023_v55 = vadd.f32 %v7354_v37, %v4022_v3 }
0x2465   :  { %6417 = vtanh.f32 %v3991_v56 }
0x2466   :  { %6419 = vtanh.f32 %v4023_v55 }
0x246b   :  { %v6418_v57 = vpop.eup %6417 }
0x246c   :  { %v6420_v62 = vpop.eup %6419  ;;  %v4026_v0 = vmul.f32 -0.020148512, %v6418_v57  ;;  %v4037_v60 = vmul.f32 -0.017095707, %v6418_v57 }
0x246d   :  { %v4028_v4 = vmul.f32 -0.020148512, %v6420_v62  ;;  %v4071_v63 = vmul.f32 -0.017095707, %v6420_v62 }
0x246e   :  { %v4038_v1 = vadd.f32 %v4037_v60, %v4036_v48  ;;  %v4027_v7 = vadd.f32 %v4026_v0, %v3959_v2 }
0x246f   :  { %v4072_v5 = vadd.f32 %v4071_v63, %v4070_v49  ;;  %v4029_v6 = vadd.f32 %v4028_v4, %v3961_v52 }
0x2470   :  { %v4039_v8 = vadd.f32 %v4038_v1, %v7378_v20 }
0x2471   :  { %v4073_v11 = vadd.f32 %v4072_v5, %v7380_v19 }
0x2472   :  { %6093 = vmatmul.msk.f32.vlgmr.msra.gmra.mxu2 %vm53_vm0, %v4039_v8 }
0x2473   :  { %6094 = vmatmul.msk.f32.vlgmr.msra.gmra.mxu3 %vm53_vm0, %v4073_v11  ;;  %4289 = vmatpush.msra.mxu2 %v7343_v36 }
0x2474   :  { %4319 = vmatpush.msra.mxu3 %v7343_v36 }
0x2475   :  { %4290 = vmatpush.msra.mxu2 %v7347_v50 }
0x2476   :  { %4320 = vmatpush.msra.mxu3 %v7347_v50 }
0x24f5   :  { %v4060_v61 = vpop.f32.mrf.mxu2 }
0x24f6   :  { %v4061_v9 = vadd.f32 %v7354_v37, %v4060_v61  ;;  %v4094_v10 = vpop.f32.mrf.mxu3 }
0x24f7   :  { %v4095_v20 = vadd.f32 %v7354_v37, %v4094_v10 }
0x24f8   :  { %6421 = vtanh.f32 %v4061_v9 }
0x24f9   :  { %6423 = vtanh.f32 %v4095_v20 }
0x24fe   :  { %v6422_v19 = vpop.eup %6421 }
0x24ff   :  { %v6424_v12 = vpop.eup %6423  ;;  %v4098_v13 = vmul.f32 0.008184524, %v6422_v19 }
0x2500   :  { %v4100_v14 = vmul.f32 0.008184524, %v6424_v12 }
0x2501   :  { %v7444_v15 = vadd.f32 %v4098_v13, %v4027_v7 }
0x2502   :  { %v7446_v26 = vadd.f32 %v4100_v14, %v4029_v6 }
0x2503   :  { %6095 = vmatmul.msk.f32.vlgmr.msrb.gmra.mxu0 %vm53_vm0, %v7444_v15 }
0x2504   :  { %6096 = vmatmul.msk.f32.vlgmr.msrb.gmra.mxu1 %vm53_vm0, %v7446_v26  ;;  %4355 = vmatpush.msrb.mxu0 %v7343_v36 }
0x2505   :  { %4387 = vmatpush.msrb.mxu1 %v7343_v36 }
0x2506   :  { %4356 = vmatpush.msrb.mxu0 %v7347_v50 }
0x2507   :  { %4388 = vmatpush.msrb.mxu1 %v7347_v50 }
0x2580   :  { %v4122_v34 = vpop.f32.mrf.mxu0 }
0x2581   :  { %v4123_v16 = vadd.f32 %v7354_v37, %v4122_v34  ;;  %v4146_v17 = vpop.f32.mrf.mxu1 }
0x2582   :  { %v4147_v18 = vadd.f32 %v7354_v37, %v4146_v17 }
0x2583   :  { %6425 = vtanh.f32 %v4123_v16 }
0x2584   :  { %6427 = vtanh.f32 %v4147_v18 }
0x2589   :  { %v6426_v30 = vpop.eup %6425 }
0x258a   :  { %v6428_v21 = vpop.eup %6427  ;;  %v4154_v38 = vmul.f32 0.0125, %v6426_v30  ;;  %v4206_v29 = vmul.f32 0.0046875, %v6426_v30  ;;  %v4266_v46 = vmul.f32 0.06111111, %v6426_v30 }
0x258b   :  { %v4180_v22 = vmul.f32 0.0125, %v6428_v21  ;;  %v4234_v31 = vmul.f32 0.0046875, %v6428_v21  ;;  %v4296_v32 = vmul.f32 0.06111111, %v6428_v21 }
0x258c   :  { %v4155_v23 = vadd.f32 %v4154_v38, %v7444_v15  ;;  %v4330_v33 = vmul.f32 0.18453741, %v6426_v30  ;;  %v4362_v40 = vmul.f32 0.18453741, %v6428_v21  ;;  %v4398_v54 = vmul.f32 0.17789221, %v6426_v30 }
0x258d   :  { %v4181_v24 = vadd.f32 %v4180_v22, %v7446_v26  ;;  %v4432_v39 = vmul.f32 0.17789221, %v6428_v21  ;;  %v4150_v7 = vmul.f32 0.0056966147, %v6426_v30  ;;  %v4152_v5 = vmul.f32 0.0056966147, %v6428_v21 }
0x258e   :  { %6097 = vmatmul.msk.f32.vlgmr.msrb.gmra.mxu2 %vm53_vm0, %v4155_v23 }
0x258f   :  { %6098 = vmatmul.msk.f32.vlgmr.msrb.gmra.mxu3 %vm53_vm0, %v4181_v24  ;;  %4425 = vmatpush.msrb.mxu2 %v7343_v36  ;;  %v4151_v10 = vadd.f32 %v4150_v7, %v7444_v15  ;;  %v4153_v13 = vadd.f32 %v4152_v5, %v7446_v26 }
0x2590   :  { %4459 = vmatpush.msrb.mxu3 %v7343_v36 }
0x2591   :  { %4426 = vmatpush.msrb.mxu2 %v7347_v50 }
0x2592   :  { %4460 = vmatpush.msrb.mxu3 %v7347_v50 }
0x2611   :  { %v4176_v25 = vpop.f32.mrf.mxu2 }
0x2612   :  { %v4177_v42 = vadd.f32 %v7354_v37, %v4176_v25  ;;  %v4202_v27 = vpop.f32.mrf.mxu3 }
0x2613   :  { %v4203_v28 = vadd.f32 %v7354_v37, %v4202_v27 }
0x2614   :  { %6429 = vtanh.f32 %v4177_v42 }
0x2615   :  { %6431 = vtanh.f32 %v4203_v28 }
0x261a   :  { %v6430_v35 = vpop.eup %6429 }
0x261b   :  { %v6432_v41 = vpop.eup %6431  ;;  %v4207_v44 = vmul.f32 0.0140625, %v6430_v35  ;;  %v4267_v58 = vmul.f32 -0.23333333, %v6430_v35  ;;  %v4331_v43 = vmul.f32 -0.7247371, %v6430_v35 }
0x261c   :  { %v4235_v45 = vmul.f32 0.0140625, %v6432_v41  ;;  %v4297_v48 = vmul.f32 -0.23333333, %v6432_v41  ;;  %v4363_v2 = vmul.f32 -0.7247371, %v6432_v41 }
0x261d   :  { %v4208_v47 = vadd.f32 %v4207_v44, %v4206_v29  ;;  %v4268_v49 = vadd.f32 %v4267_v58, %v4266_v46  ;;  %v4332_v52 = vadd.f32 %v4331_v43, %v4330_v33  ;;  %v4399_v59 = vmul.f32 -0.6723485, %v6430_v35 }
0x261e   :  { %v4236_v51 = vadd.f32 %v4235_v45, %v4234_v31  ;;  %v4298_v53 = vadd.f32 %v4297_v48, %v4296_v32  ;;  %v4364_v56 = vadd.f32 %v4363_v2, %v4362_v40  ;;  %v4433_v3 = vmul.f32 -0.6723485, %v6432_v41 }
0x261f   :  { %v4209_v55 = vadd.f32 %v4208_v47, %v7444_v15  ;;  %v4400_v57 = vadd.f32 %v4399_v59, %v4398_v54 }
0x2620   :  { %v4237_v62 = vadd.f32 %v4236_v51, %v7446_v26  ;;  %v4434_v0 = vadd.f32 %v4433_v3, %v4432_v39 }
0x2621   :  { %6099 = vmatmul.msk.f32.vlgmr.msra.gmra.mxu0 %vm53_vm0, %v4209_v55 }
0x2622   :  { %6100 = vmatmul.msk.f32.vlgmr.msra.gmra.mxu1 %vm53_vm0, %v4237_v62  ;;  %4487 = vmatpush.msra.mxu0 %v7343_v36 }
0x2623   :  { %4511 = vmatpush.msra.mxu1 %v7343_v36 }
0x2624   :  { %4488 = vmatpush.msra.mxu0 %v7347_v50 }
0x2625   :  { %4512 = vmatpush.msra.mxu1 %v7347_v50 }
0x269e   :  { %v4230_v60 = vpop.f32.mrf.mxu0 }
0x269f   :  { %v4231_v4 = vadd.f32 %v7354_v37, %v4230_v60  ;;  %v4258_v63 = vpop.f32.mrf.mxu1 }
0x26a0   :  { %v4259_v1 = vadd.f32 %v7354_v37, %v4258_v63 }
0x26a1   :  { %6433 = vtanh.f32 %v4231_v4 }
0x26a2   :  { %6435 = vtanh.f32 %v4259_v1 }
0x26a7   :  { %v6434_v6 = vpop.eup %6433 }
0x26a8   :  { %v6436_v8 = vpop.eup %6435  ;;  %v4269_v11 = vmul.f32 0.22222222, %v6434_v6  ;;  %v4333_v61 = vmul.f32 0.6139308, %v6434_v6  ;;  %v4401_v9 = vmul.f32 0.5566514, %v6434_v6 }
0x26a9   :  { %v4299_v20 = vmul.f32 0.22222222, %v6436_v8  ;;  %v4365_v19 = vmul.f32 0.6139308, %v6436_v8  ;;  %v4435_v12 = vmul.f32 0.5566514, %v6436_v8 }
0x26aa   :  { %v4270_v14 = vadd.f32 %v4269_v11, %v4268_v49  ;;  %v4334_v34 = vadd.f32 %v4333_v61, %v4332_v52  ;;  %v4402_v16 = vadd.f32 %v4401_v9, %v4400_v57  ;;  %v4262_v17 = vmul.f32 0.028077269, %v6434_v6 }
0x26ab   :  { %v4300_v18 = vadd.f32 %v4299_v20, %v4298_v53  ;;  %v4366_v38 = vadd.f32 %v4365_v19, %v4364_v56  ;;  %v4436_v30 = vadd.f32 %v4435_v12, %v4434_v0  ;;  %v4264_v21 = vmul.f32 0.028077269, %v6436_v8 }
0x26ac   :  { %v4271_v22 = vadd.f32 %v4270_v14, %v7444_v15  ;;  %v4263_v23 = vadd.f32 %v4262_v17, %v4151_v10 }
0x26ad   :  { %v4301_v24 = vadd.f32 %v4300_v18, %v7446_v26  ;;  %v4265_v25 = vadd.f32 %v4264_v21, %v4153_v13 }
0x26ae   :  { %6101 = vmatmul.msk.f32.vlgmr.msra.gmra.mxu2 %vm53_vm0, %v4271_v22 }
0x26af   :  { %6102 = vmatmul.msk.f32.vlgmr.msra.gmra.mxu3 %vm53_vm0, %v4301_v24  ;;  %4541 = vmatpush.msra.mxu2 %v7343_v36 }
0x26b0   :  { %4567 = vmatpush.msra.mxu3 %v7343_v36 }
0x26b1   :  { %4542 = vmatpush.msra.mxu2 %v7347_v50 }
0x26b2   :  { %4568 = vmatpush.msra.mxu3 %v7347_v50 }
0x2731   :  { %v4292_v42 = vpop.f32.mrf.mxu2 }
0x2732   :  { %v4293_v27 = vadd.f32 %v7354_v37, %v4292_v42  ;;  %v4322_v28 = vpop.f32.mrf.mxu3 }
0x2733   :  { %v4323_v29 = vadd.f32 %v7354_v37, %v4322_v28 }
0x2734   :  { %6437 = vtanh.f32 %v4293_v27 }
0x2735   :  { %6439 = vtanh.f32 %v4323_v29 }
0x273a   :  { %v6438_v46 = vpop.eup %6437 }
0x273b   :  { %v6440_v31 = vpop.eup %6439  ;;  %v4335_v32 = vmul.f32 -0.018175583, %v6438_v46  ;;  %v4403_v33 = vmul.f32 0.017400568, %v6438_v46  ;;  %v4326_v35 = vmul.f32 0.040690105, %v6438_v46 }
0x273c   :  { %v4367_v40 = vmul.f32 -0.018175583, %v6440_v31  ;;  %v4437_v54 = vmul.f32 0.017400568, %v6440_v31  ;;  %v4328_v39 = vmul.f32 0.040690105, %v6440_v31 }
0x273d   :  { %v4336_v41 = vadd.f32 %v4335_v32, %v4334_v34  ;;  %v4404_v44 = vadd.f32 %v4403_v33, %v4402_v16  ;;  %v4327_v58 = vadd.f32 %v4326_v35, %v4263_v23 }
0x273e   :  { %v4368_v43 = vadd.f32 %v4367_v40, %v4366_v38  ;;  %v4438_v45 = vadd.f32 %v4437_v54, %v4436_v30  ;;  %v4329_v48 = vadd.f32 %v4328_v39, %v4265_v25 }
0x273f   :  { %v4337_v2 = vadd.f32 %v4336_v41, %v7444_v15 }
0x2740   :  { %v4369_v47 = vadd.f32 %v4368_v43, %v7446_v26 }
0x2741   :  { %6103 = vmatmul.msk.f32.vlgmr.msrb.gmra.mxu0 %vm53_vm0, %v4337_v2 }
0x2742   :  { %6104 = vmatmul.msk.f32.vlgmr.msrb.gmra.mxu1 %vm53_vm0, %v4369_v47  ;;  %4595 = vmatpush.msrb.mxu0 %v7343_v36 }
0x2743   :  { %4623 = vmatpush.msrb.mxu1 %v7343_v36 }
0x2744   :  { %4596 = vmatpush.msrb.mxu0 %v7347_v50 }
0x2745   :  { %4624 = vmatpush.msrb.mxu1 %v7347_v50 }
0x27be   :  { %v4358_v49 = vpop.f32.mrf.mxu0 }
0x27bf   :  { %v4359_v52 = vadd.f32 %v7354_v37, %v4358_v49  ;;  %v4390_v59 = vpop.f32.mrf.mxu1 }
0x27c0   :  { %v4391_v51 = vadd.f32 %v7354_v37, %v4390_v59 }
0x27c1   :  { %6441 = vtanh.f32 %v4359_v52 }
0x27c2   :  { %6443 = vtanh.f32 %v4391_v51 }
0x27c7   :  { %v6442_v53 = vpop.eup %6441 }
0x27c8   :  { %v6444_v56 = vpop.eup %6443  ;;  %v4394_v3 = vmul.f32 -0.020148512, %v6442_v53  ;;  %v4405_v55 = vmul.f32 -0.017095707, %v6442_v53 }
0x27c9   :  { %v4396_v57 = vmul.f32 -0.020148512, %v6444_v56  ;;  %v4439_v62 = vmul.f32 -0.017095707, %v6444_v56 }
0x27ca   :  { %v4406_v0 = vadd.f32 %v4405_v55, %v4404_v44  ;;  %v4395_v60 = vadd.f32 %v4394_v3, %v4327_v58 }
0x27cb   :  { %v4440_v4 = vadd.f32 %v4439_v62, %v4438_v45  ;;  %v4397_v63 = vadd.f32 %v4396_v57, %v4329_v48 }
0x27cc   :  { %v4407_v1 = vadd.f32 %v4406_v0, %v7444_v15 }
0x27cd   :  { %v4441_v7 = vadd.f32 %v4440_v4, %v7446_v26 }
0x27ce   :  { %6105 = vmatmul.msk.f32.vlgmr.msrb.gmra.mxu2 %vm53_vm0, %v4407_v1 }
0x27cf   :  { %6106 = vmatmul.msk.f32.vlgmr.msrb.gmra.mxu3 %vm53_vm0, %v4441_v7  ;;  %4657 = vmatpush.msrb.mxu2 %v7343_v36 }
0x27d0   :  { %4687 = vmatpush.msrb.mxu3 %v7343_v36 }
0x27d1   :  { %4658 = vmatpush.msrb.mxu2 %v7347_v50 }
0x27d2   :  { %4688 = vmatpush.msrb.mxu3 %v7347_v50 }
0x2851   :  { %v4428_v5 = vpop.f32.mrf.mxu2 }
0x2852   :  { %v4429_v6 = vadd.f32 %v7354_v37, %v4428_v5  ;;  %v4462_v8 = vpop.f32.mrf.mxu3 }
0x2853   :  { %v4463_v15 = vadd.f32 %v7354_v37, %v4462_v8 }
0x2854   :  { %6445 = vtanh.f32 %v4429_v6 }
0x2855   :  { %6447 = vtanh.f32 %v4463_v15 }
0x285a   :  { %v6446_v26 = vpop.eup %6445 }
0x285b   :  { %v6448_v11 = vpop.eup %6447  ;;  %v4466_v61 = vmul.f32 0.008184524, %v6446_v26 }
0x285c   :  { %v4468_v9 = vmul.f32 0.008184524, %v6448_v11 }
0x285d   :  { %v7510_v10 = vadd.f32 %v4466_v61, %v4395_v60 }
0x285e   :  { %v7512_v20 = vadd.f32 %v4468_v9, %v4397_v63 }
0x285f   :  { %6107 = vmatmul.msk.f32.vlgmr.msra.gmra.mxu0 %vm53_vm0, %v7510_v10 }
0x2860   :  { %6108 = vmatmul.msk.f32.vlgmr.msra.gmra.mxu1 %vm53_vm0, %v7512_v20  ;;  %4723 = vmatpush.msra.mxu0 %v7343_v36 }
0x2861   :  { %4755 = vmatpush.msra.mxu1 %v7343_v36 }
0x2862   :  { %4724 = vmatpush.msra.mxu0 %v7347_v50 }
0x2863   :  { %4756 = vmatpush.msra.mxu1 %v7347_v50 }
0x28dc   :  { %v4490_v19 = vpop.f32.mrf.mxu0 }
0x28dd   :  { %v4491_v12 = vadd.f32 %v7354_v37, %v4490_v19  ;;  %v4514_v13 = vpop.f32.mrf.mxu1 }
0x28de   :  { %v4515_v14 = vadd.f32 %v7354_v37, %v4514_v13 }
0x28df   :  { %6449 = vtanh.f32 %v4491_v12 }
0x28e0   :  { %6451 = vtanh.f32 %v4515_v14 }
0x28e5   :  { %v6450_v34 = vpop.eup %6449 }
0x28e6   :  { %v6452_v16 = vpop.eup %6451  ;;  %v4522_v17 = vmul.f32 0.0125, %v6450_v34  ;;  %v4574_v25 = vmul.f32 0.0046875, %v6450_v34  ;;  %v4634_v42 = vmul.f32 0.06111111, %v6450_v34 }
0x28e7   :  { %v4548_v18 = vmul.f32 0.0125, %v6452_v16  ;;  %v4602_v27 = vmul.f32 0.0046875, %v6452_v16  ;;  %v4664_v28 = vmul.f32 0.06111111, %v6452_v16 }
0x28e8   :  { %v4523_v38 = vadd.f32 %v4522_v17, %v7510_v10  ;;  %v4698_v29 = vmul.f32 0.18453741, %v6450_v34  ;;  %v4730_v31 = vmul.f32 0.18453741, %v6452_v16  ;;  %v4766_v32 = vmul.f32 0.17789221, %v6450_v34 }
0x28e9   :  { %v4549_v30 = vadd.f32 %v4548_v18, %v7512_v20  ;;  %v4800_v33 = vmul.f32 0.17789221, %v6452_v16  ;;  %v4518_v60 = vmul.f32 0.0056966147, %v6450_v34  ;;  %v4520_v4 = vmul.f32 0.0056966147, %v6452_v16 }
0x28ea   :  { %6109 = vmatmul.msk.f32.vlgmr.msra.gmra.mxu2 %vm53_vm0, %v4523_v38 }
0x28eb   :  { %6110 = vmatmul.msk.f32.vlgmr.msra.gmra.mxu3 %vm53_vm0, %v4549_v30  ;;  %4793 = vmatpush.msra.mxu2 %v7343_v36  ;;  %v4519_v8 = vadd.f32 %v4518_v60, %v7510_v10  ;;  %v4521_v61 = vadd.f32 %v4520_v4, %v7512_v20 }
0x28ec   :  { %4827 = vmatpush.msra.mxu3 %v7343_v36 }
0x28ed   :  { %4794 = vmatpush.msra.mxu2 %v7347_v50 }
0x28ee   :  { %4828 = vmatpush.msra.mxu3 %v7347_v50 }
0x296d   :  { %v4544_v21 = vpop.f32.mrf.mxu2 }
0x296e   :  { %v4545_v22 = vadd.f32 %v7354_v37, %v4544_v21  ;;  %v4570_v23 = vpop.f32.mrf.mxu3 }
0x296f   :  { %v4571_v24 = vadd.f32 %v7354_v37, %v4570_v23 }
0x2970   :  { %6453 = vtanh.f32 %v4545_v22 }
0x2971   :  { %6455 = vtanh.f32 %v4571_v24 }
0x2976   :  { %v6454_v46 = vpop.eup %6453 }
0x2977   :  { %v6456_v35 = vpop.eup %6455  ;;  %v4575_v40 = vmul.f32 0.0140625, %v6454_v46  ;;  %v4635_v54 = vmul.f32 -0.23333333, %v6454_v46  ;;  %v4699_v39 = vmul.f32 -0.7247371, %v6454_v46 }
0x2978   :  { %v4603_v41 = vmul.f32 0.0140625, %v6456_v35  ;;  %v4665_v44 = vmul.f32 -0.23333333, %v6456_v35  ;;  %v4731_v58 = vmul.f32 -0.7247371, %v6456_v35 }
0x2979   :  { %v4576_v43 = vadd.f32 %v4575_v40, %v4574_v25  ;;  %v4636_v45 = vadd.f32 %v4635_v54, %v4634_v42  ;;  %v4700_v48 = vadd.f32 %v4699_v39, %v4698_v29  ;;  %v4767_v2 = vmul.f32 -0.6723485, %v6454_v46 }
0x297a   :  { %v4604_v47 = vadd.f32 %v4603_v41, %v4602_v27  ;;  %v4666_v49 = vadd.f32 %v4665_v44, %v4664_v28  ;;  %v4732_v52 = vadd.f32 %v4731_v58, %v4730_v31  ;;  %v4801_v59 = vmul.f32 -0.6723485, %v6456_v35  ;;  %v7560_v44 = vld [vmem:[#allocation5 + $0x8] sm:$0xff]  ;;  %v7564_v58 = vld [vmem:[#allocation5] sm:$0xff] }
0x297b   :  { %v4577_v51 = vadd.f32 %v4576_v43, %v7510_v10  ;;  %v4768_v53 = vadd.f32 %v4767_v2, %v4766_v32 }
0x297c   :  { %v4605_v56 = vadd.f32 %v4604_v47, %v7512_v20  ;;  %v4802_v3 = vadd.f32 %v4801_v59, %v4800_v33 }
0x297d   :  { %6111 = vmatmul.msk.f32.vlgmr.msrb.gmra.mxu0 %vm53_vm0, %v4577_v51 }
0x297e   :  { %6112 = vmatmul.msk.f32.vlgmr.msrb.gmra.mxu1 %vm53_vm0, %v4605_v56  ;;  %4855 = vmatpush.msrb.mxu0 %v7343_v36 }
0x297f   :  { %4879 = vmatpush.msrb.mxu1 %v7343_v36 }
0x2980   :  { %4856 = vmatpush.msrb.mxu0 %v7347_v50 }
0x2981   :  { %4880 = vmatpush.msrb.mxu1 %v7347_v50 }
0x29fa   :  { %v4598_v55 = vpop.f32.mrf.mxu0 }
0x29fb   :  { %v4599_v57 = vadd.f32 %v7354_v37, %v4598_v55  ;;  %v4626_v62 = vpop.f32.mrf.mxu1 }
0x29fc   :  { %v4627_v0 = vadd.f32 %v7354_v37, %v4626_v62 }
0x29fd   :  { %6457 = vtanh.f32 %v4599_v57 }
0x29fe   :  { %6459 = vtanh.f32 %v4627_v0 }
0x2a03   :  { %v6458_v63 = vpop.eup %6457 }
0x2a04   :  { %v6460_v1 = vpop.eup %6459  ;;  %v4637_v7 = vmul.f32 0.22222222, %v6458_v63  ;;  %v4701_v5 = vmul.f32 0.6139308, %v6458_v63  ;;  %v4769_v6 = vmul.f32 0.5566514, %v6458_v63 }
0x2a05   :  { %v4667_v15 = vmul.f32 0.22222222, %v6460_v1  ;;  %v4733_v26 = vmul.f32 0.6139308, %v6460_v1  ;;  %v4803_v11 = vmul.f32 0.5566514, %v6460_v1 }
0x2a06   :  { %v4638_v9 = vadd.f32 %v4637_v7, %v4636_v45  ;;  %v4702_v19 = vadd.f32 %v4701_v5, %v4700_v48  ;;  %v4770_v12 = vadd.f32 %v4769_v6, %v4768_v53  ;;  %v4630_v13 = vmul.f32 0.028077269, %v6458_v63  ;;  %v7571_v45 = vld [vmem:[%s7772_s2] ss:$0 sm:$0xff]  ;;  %s6639_s2 = smov [#allocation7]  }
0x2a07   :  { %v4668_v14 = vadd.f32 %v4667_v15, %v4666_v49  ;;  %v4734_v17 = vadd.f32 %v4733_v26, %v4732_v52  ;;  %v4804_v34 = vadd.f32 %v4803_v11, %v4802_v3  ;;  %v4632_v16 = vmul.f32 0.028077269, %v6460_v1  ;;  %s5950_s5 = sshll.u32 %s6639_s2, 4  ;;  %s5951_s5 = int_to_ptr.vmem [resolvable:$true] %s5950_s5 }
0x2a08   :  { %v4639_v18 = vadd.f32 %v4638_v9, %v7510_v10  ;;  %v4631_v38 = vadd.f32 %v4630_v13, %v4519_v8 }
0x2a09   :  { %v4669_v30 = vadd.f32 %v4668_v14, %v7512_v20  ;;  %v4633_v21 = vadd.f32 %v4632_v16, %v4521_v61 }
0x2a0a   :  { %6113 = vmatmul.msk.f32.vlgmr.msrb.gmra.mxu2 %vm53_vm0, %v4639_v18 }
0x2a0b   :  { %6114 = vmatmul.msk.f32.vlgmr.msrb.gmra.mxu3 %vm53_vm0, %v4669_v30  ;;  %4909 = vmatpush.msrb.mxu2 %v7343_v36 }
0x2a0c   :  { %4935 = vmatpush.msrb.mxu3 %v7343_v36 }
0x2a0d   :  { %4910 = vmatpush.msrb.mxu2 %v7347_v50 }
0x2a0e   :  { %4936 = vmatpush.msrb.mxu3 %v7347_v50 }
0x2a8d   :  { %v4660_v22 = vpop.f32.mrf.mxu2 }
0x2a8e   :  { %v4661_v23 = vadd.f32 %v7354_v37, %v4660_v22  ;;  %v4690_v24 = vpop.f32.mrf.mxu3 }
0x2a8f   :  { %v4691_v25 = vadd.f32 %v7354_v37, %v4690_v24 }
0x2a90   :  { %6461 = vtanh.f32 %v4661_v23 }
0x2a91   :  { %6463 = vtanh.f32 %v4691_v25 }
0x2a96   :  { %v6462_v42 = vpop.eup %6461 }
0x2a97   :  { %v6464_v27 = vpop.eup %6463  ;;  %v4703_v28 = vmul.f32 -0.018175583, %v6462_v42  ;;  %v4771_v29 = vmul.f32 0.017400568, %v6462_v42  ;;  %v4694_v46 = vmul.f32 0.040690105, %v6462_v42 }
0x2a98   :  { %v4735_v31 = vmul.f32 -0.018175583, %v6464_v27  ;;  %v4805_v32 = vmul.f32 0.017400568, %v6464_v27  ;;  %v4696_v36 = vmul.f32 0.040690105, %v6464_v27 }
0x2a99   :  { %v4704_v33 = vadd.f32 %v4703_v28, %v4702_v19  ;;  %v4772_v35 = vadd.f32 %v4771_v29, %v4770_v12  ;;  %v4695_v40 = vadd.f32 %v4694_v46, %v4631_v38 }
0x2a9a   :  { %v4736_v50 = vadd.f32 %v4735_v31, %v4734_v17  ;;  %v4806_v54 = vadd.f32 %v4805_v32, %v4804_v34  ;;  %v4697_v39 = vadd.f32 %v4696_v36, %v4633_v21 }
0x2a9b   :  { %v4705_v41 = vadd.f32 %v4704_v33, %v7510_v10 }
0x2a9c   :  { %v4737_v37 = vadd.f32 %v4736_v50, %v7512_v20 }
0x2a9d   :  { %6115 = vmatmul.msk.f32.vlgmr.msra.gmra.mxu0 %vm53_vm0, %v4705_v41 }
0x2a9e   :  { %6116 = vmatmul.msk.f32.vlgmr.msra.gmra.mxu1 %vm53_vm0, %v4737_v37  ;;  %4963 = vmatpush.msra.mxu0 %v7560_v44 }
0x2a9f   :  { %4991 = vmatpush.msra.mxu1 %v7560_v44 }
0x2aa0   :  { %4964 = vmatpush.msra.mxu0 %v7564_v58 }
0x2aa1   :  { %4992 = vmatpush.msra.mxu1 %v7564_v58 }
0x2b1a   :  { %v4726_v43 = vpop.f32.mrf.mxu0 }
0x2b1b   :  { %v4727_v48 = vadd.f32 %v7571_v45, %v4726_v43  ;;  %v4758_v2 = vpop.f32.mrf.mxu1 }
0x2b1c   :  { %v4759_v47 = vadd.f32 %v7571_v45, %v4758_v2 }
0x2b1d   :  { %6465 = vtanh.f32 %v4727_v48 }
0x2b1e   :  { %6467 = vtanh.f32 %v4759_v47 }
0x2b23   :  { %v6466_v49 = vpop.eup %6465 }
0x2b24   :  { %v6468_v52 = vpop.eup %6467  ;;  %v4762_v59 = vmul.f32 -0.020148512, %v6466_v49  ;;  %v4773_v51 = vmul.f32 -0.017095707, %v6466_v49 }
0x2b25   :  { %v4764_v53 = vmul.f32 -0.020148512, %v6468_v52  ;;  %v4807_v56 = vmul.f32 -0.017095707, %v6468_v52 }
0x2b26   :  { %v4774_v3 = vadd.f32 %v4773_v51, %v4772_v35  ;;  %v4763_v55 = vadd.f32 %v4762_v59, %v4695_v40 }
0x2b27   :  { %v4808_v57 = vadd.f32 %v4807_v56, %v4806_v54  ;;  %v4765_v62 = vadd.f32 %v4764_v53, %v4697_v39 }
0x2b28   :  { %v4775_v0 = vadd.f32 %v4774_v3, %v7510_v10 }
0x2b29   :  { %v4809_v60 = vadd.f32 %v4808_v57, %v7512_v20 }
0x2b2a   :  { %6117 = vmatmul.msk.f32.vlgmr.msra.gmra.mxu2 %vm53_vm0, %v4775_v0 }
0x2b2b   :  { %6118 = vmatmul.msk.f32.vlgmr.msra.gmra.mxu3 %vm53_vm0, %v4809_v60  ;;  %5025 = vmatpush.msra.mxu2 %v7560_v44 }
0x2b2c   :  { %5055 = vmatpush.msra.mxu3 %v7560_v44 }
0x2b2d   :  { %5026 = vmatpush.msra.mxu2 %v7564_v58 }
0x2b2e   :  { %5056 = vmatpush.msra.mxu3 %v7564_v58 }
0x2bad   :  { %v4796_v4 = vpop.f32.mrf.mxu2 }
0x2bae   :  { %v4797_v63 = vadd.f32 %v7571_v45, %v4796_v4  ;;  %v4830_v1 = vpop.f32.mrf.mxu3 }
0x2baf   :  { %v4831_v10 = vadd.f32 %v7571_v45, %v4830_v1 }
0x2bb0   :  { %6469 = vtanh.f32 %v4797_v63 }
0x2bb1   :  { %6471 = vtanh.f32 %v4831_v10 }
0x2bb6   :  { %v6470_v20 = vpop.eup %6469 }
0x2bb7   :  { %v6472_v7 = vpop.eup %6471  ;;  %v4834_v5 = vmul.f32 0.008184524, %v6470_v20 }
0x2bb8   :  { %v4836_v6 = vmul.f32 0.008184524, %v6472_v7 }
0x2bb9   :  { %v7585_v8 = vadd.f32 %v4834_v5, %v4763_v55 }
0x2bba   :  { %v7587_v15 = vadd.f32 %v4836_v6, %v4765_v62 }
0x2bbb   :  { %6119 = vmatmul.msk.f32.vlgmr.msrb.gmra.mxu0 %vm53_vm0, %v7585_v8 }
0x2bbc   :  { %6120 = vmatmul.msk.f32.vlgmr.msrb.gmra.mxu1 %vm53_vm0, %v7587_v15  ;;  %5091 = vmatpush.msrb.mxu0 %v7560_v44 }
0x2bbd   :  { %5123 = vmatpush.msrb.mxu1 %v7560_v44 }
0x2bbe   :  { %5092 = vmatpush.msrb.mxu0 %v7564_v58 }
0x2bbf   :  { %5124 = vmatpush.msrb.mxu1 %v7564_v58 }
0x2c38   :  { %v4858_v26 = vpop.f32.mrf.mxu0 }
0x2c39   :  { %v4859_v11 = vadd.f32 %v7571_v45, %v4858_v26  ;;  %v4882_v61 = vpop.f32.mrf.mxu1 }
0x2c3a   :  { %v4883_v9 = vadd.f32 %v7571_v45, %v4882_v61 }
0x2c3b   :  { %6473 = vtanh.f32 %v4859_v11 }
0x2c3c   :  { %6475 = vtanh.f32 %v4883_v9 }
0x2c41   :  { %v6474_v19 = vpop.eup %6473 }
0x2c42   :  { %v6476_v12 = vpop.eup %6475  ;;  %v4890_v13 = vmul.f32 0.0125, %v6474_v19  ;;  %v4942_v21 = vmul.f32 0.0046875, %v6474_v19  ;;  %v5002_v22 = vmul.f32 0.06111111, %v6474_v19 }
0x2c43   :  { %v4916_v14 = vmul.f32 0.0125, %v6476_v12  ;;  %v4970_v23 = vmul.f32 0.0046875, %v6476_v12  ;;  %v5032_v24 = vmul.f32 0.06111111, %v6476_v12 }
0x2c44   :  { %v4891_v17 = vadd.f32 %v4890_v13, %v7585_v8  ;;  %v5066_v25 = vmul.f32 0.18453741, %v6474_v19  ;;  %v5098_v27 = vmul.f32 0.18453741, %v6476_v12  ;;  %v5134_v28 = vmul.f32 0.17789221, %v6474_v19 }
0x2c45   :  { %v4917_v34 = vadd.f32 %v4916_v14, %v7587_v15  ;;  %v5168_v29 = vmul.f32 0.17789221, %v6476_v12  ;;  %v4886_v55 = vmul.f32 0.0056966147, %v6474_v19  ;;  %v4888_v57 = vmul.f32 0.0056966147, %v6476_v12 }
0x2c46   :  { %6121 = vmatmul.msk.f32.vlgmr.msrb.gmra.mxu2 %vm53_vm0, %v4891_v17 }
0x2c47   :  { %6122 = vmatmul.msk.f32.vlgmr.msrb.gmra.mxu3 %vm53_vm0, %v4917_v34  ;;  %5161 = vmatpush.msrb.mxu2 %v7560_v44  ;;  %v4887_v1 = vadd.f32 %v4886_v55, %v7585_v8  ;;  %v4889_v5 = vadd.f32 %v4888_v57, %v7587_v15 }
0x2c48   :  { %5195 = vmatpush.msrb.mxu3 %v7560_v44 }
0x2c49   :  { %5162 = vmatpush.msrb.mxu2 %v7564_v58 }
0x2c4a   :  { %5196 = vmatpush.msrb.mxu3 %v7564_v58 }
0x2cc9   :  { %v4912_v16 = vpop.f32.mrf.mxu2 }
0x2cca   :  { %v4913_v18 = vadd.f32 %v7571_v45, %v4912_v16  ;;  %v4938_v38 = vpop.f32.mrf.mxu3 }
0x2ccb   :  { %v4939_v30 = vadd.f32 %v7571_v45, %v4938_v38 }
0x2ccc   :  { %6477 = vtanh.f32 %v4913_v18 }
0x2ccd   :  { %6479 = vtanh.f32 %v4939_v30 }
0x2cd2   :  { %v6478_v42 = vpop.eup %6477 }
0x2cd3   :  { %v6480_v46 = vpop.eup %6479  ;;  %v4943_v31 = vmul.f32 0.0140625, %v6478_v42  ;;  %v5003_v32 = vmul.f32 -0.23333333, %v6478_v42  ;;  %v5067_v36 = vmul.f32 -0.7247371, %v6478_v42 }
0x2cd4   :  { %v4971_v33 = vmul.f32 0.0140625, %v6480_v46  ;;  %v5033_v35 = vmul.f32 -0.23333333, %v6480_v46  ;;  %v5099_v40 = vmul.f32 -0.7247371, %v6480_v46 }
0x2cd5   :  { %v4944_v50 = vadd.f32 %v4943_v31, %v4942_v21  ;;  %v5004_v54 = vadd.f32 %v5003_v32, %v5002_v22  ;;  %v5068_v39 = vadd.f32 %v5067_v36, %v5066_v25  ;;  %v5135_v41 = vmul.f32 -0.6723485, %v6478_v42 }
0x2cd6   :  { %v4972_v37 = vadd.f32 %v4971_v33, %v4970_v23  ;;  %v5034_v43 = vadd.f32 %v5033_v35, %v5032_v24  ;;  %v5100_v48 = vadd.f32 %v5099_v40, %v5098_v27  ;;  %v5169_v2 = vmul.f32 -0.6723485, %v6480_v46 }
0x2cd7   :  { %v4945_v47 = vadd.f32 %v4944_v50, %v7585_v8  ;;  %v5136_v49 = vadd.f32 %v5135_v41, %v5134_v28 }
0x2cd8   :  { %v4973_v52 = vadd.f32 %v4972_v37, %v7587_v15  ;;  %v5170_v59 = vadd.f32 %v5169_v2, %v5168_v29 }
0x2cd9   :  { %6123 = vmatmul.msk.f32.vlgmr.msra.gmra.mxu0 %vm53_vm0, %v4945_v47 }
0x2cda   :  { %6124 = vmatmul.msk.f32.vlgmr.msra.gmra.mxu1 %vm53_vm0, %v4973_v52  ;;  %5223 = vmatpush.msra.mxu0 %v7560_v44 }
0x2cdb   :  { %5247 = vmatpush.msra.mxu1 %v7560_v44 }
0x2cdc   :  { %5224 = vmatpush.msra.mxu0 %v7564_v58 }
0x2cdd   :  { %5248 = vmatpush.msra.mxu1 %v7564_v58 }
0x2d56   :  { %v4966_v51 = vpop.f32.mrf.mxu0 }
0x2d57   :  { %v4967_v53 = vadd.f32 %v7571_v45, %v4966_v51  ;;  %v4994_v56 = vpop.f32.mrf.mxu1 }
0x2d58   :  { %v4995_v3 = vadd.f32 %v7571_v45, %v4994_v56 }
0x2d59   :  { %6481 = vtanh.f32 %v4967_v53 }
0x2d5a   :  { %6483 = vtanh.f32 %v4995_v3 }
0x2d5f   :  { %v6482_v62 = vpop.eup %6481 }
0x2d60   :  { %v6484_v0 = vpop.eup %6483  ;;  %v5005_v60 = vmul.f32 0.22222222, %v6482_v62  ;;  %v5069_v4 = vmul.f32 0.6139308, %v6482_v62  ;;  %v5137_v63 = vmul.f32 0.5566514, %v6482_v62 }
0x2d61   :  { %v5035_v10 = vmul.f32 0.22222222, %v6484_v0  ;;  %v5101_v20 = vmul.f32 0.6139308, %v6484_v0  ;;  %v5171_v7 = vmul.f32 0.5566514, %v6484_v0 }
0x2d62   :  { %v5006_v6 = vadd.f32 %v5005_v60, %v5004_v54  ;;  %v5070_v26 = vadd.f32 %v5069_v4, %v5068_v39  ;;  %v5138_v11 = vadd.f32 %v5137_v63, %v5136_v49  ;;  %v4998_v61 = vmul.f32 0.028077269, %v6482_v62 }
0x2d63   :  { %v5036_v9 = vadd.f32 %v5035_v10, %v5034_v43  ;;  %v5102_v13 = vadd.f32 %v5101_v20, %v5100_v48  ;;  %v5172_v19 = vadd.f32 %v5171_v7, %v5170_v59  ;;  %v5000_v12 = vmul.f32 0.028077269, %v6484_v0 }
0x2d64   :  { %v5007_v14 = vadd.f32 %v5006_v6, %v7585_v8  ;;  %v4999_v17 = vadd.f32 %v4998_v61, %v4887_v1 }
0x2d65   :  { %v5037_v34 = vadd.f32 %v5036_v9, %v7587_v15  ;;  %v5001_v16 = vadd.f32 %v5000_v12, %v4889_v5 }
0x2d66   :  { %6125 = vmatmul.msk.f32.vlgmr.msra.gmra.mxu2 %vm53_vm0, %v5007_v14 }
0x2d67   :  { %6126 = vmatmul.msk.f32.vlgmr.msra.gmra.mxu3 %vm53_vm0, %v5037_v34  ;;  %5277 = vmatpush.msra.mxu2 %v7560_v44 }
0x2d68   :  { %5303 = vmatpush.msra.mxu3 %v7560_v44 }
0x2d69   :  { %5278 = vmatpush.msra.mxu2 %v7564_v58 }
0x2d6a   :  { %5304 = vmatpush.msra.mxu3 %v7564_v58 }
0x2de9   :  { %v5028_v18 = vpop.f32.mrf.mxu2 }
0x2dea   :  { %v5029_v38 = vadd.f32 %v7571_v45, %v5028_v18  ;;  %v5058_v30 = vpop.f32.mrf.mxu3 }
0x2deb   :  { %v5059_v21 = vadd.f32 %v7571_v45, %v5058_v30 }
0x2dec   :  { %6485 = vtanh.f32 %v5029_v38 }
0x2ded   :  { %6487 = vtanh.f32 %v5059_v21 }
0x2df2   :  { %v6486_v22 = vpop.eup %6485 }
0x2df3   :  { %v6488_v23 = vpop.eup %6487  ;;  %v5071_v24 = vmul.f32 -0.018175583, %v6486_v22  ;;  %v5139_v25 = vmul.f32 0.017400568, %v6486_v22  ;;  %v5062_v42 = vmul.f32 0.040690105, %v6486_v22 }
0x2df4   :  { %v5103_v27 = vmul.f32 -0.018175583, %v6488_v23  ;;  %v5173_v28 = vmul.f32 0.017400568, %v6488_v23  ;;  %v5064_v29 = vmul.f32 0.040690105, %v6488_v23 }
0x2df5   :  { %v5072_v46 = vadd.f32 %v5071_v24, %v5070_v26  ;;  %v5140_v31 = vadd.f32 %v5139_v25, %v5138_v11  ;;  %v5063_v32 = vadd.f32 %v5062_v42, %v4999_v17 }
0x2df6   :  { %v5104_v36 = vadd.f32 %v5103_v27, %v5102_v13  ;;  %v5174_v33 = vadd.f32 %v5173_v28, %v5172_v19  ;;  %v5065_v35 = vadd.f32 %v5064_v29, %v5001_v16 }
0x2df7   :  { %v5073_v40 = vadd.f32 %v5072_v46, %v7585_v8 }
0x2df8   :  { %v5105_v50 = vadd.f32 %v5104_v36, %v7587_v15 }
0x2df9   :  { %6127 = vmatmul.msk.f32.vlgmr.msrb.gmra.mxu0 %vm53_vm0, %v5073_v40 }
0x2dfa   :  { %6128 = vmatmul.msk.f32.vlgmr.msrb.gmra.mxu1 %vm53_vm0, %v5105_v50  ;;  %5331 = vmatpush.msrb.mxu0 %v7560_v44 }
0x2dfb   :  { %5359 = vmatpush.msrb.mxu1 %v7560_v44 }
0x2dfc   :  { %5332 = vmatpush.msrb.mxu0 %v7564_v58 }
0x2dfd   :  { %5360 = vmatpush.msrb.mxu1 %v7564_v58 }
0x2e76   :  { %v5094_v54 = vpop.f32.mrf.mxu0 }
0x2e77   :  { %v5095_v39 = vadd.f32 %v7571_v45, %v5094_v54  ;;  %v5126_v41 = vpop.f32.mrf.mxu1 }
0x2e78   :  { %v5127_v37 = vadd.f32 %v7571_v45, %v5126_v41 }
0x2e79   :  { %6489 = vtanh.f32 %v5095_v39 }
0x2e7a   :  { %6491 = vtanh.f32 %v5127_v37 }
0x2e7f   :  { %v6490_v43 = vpop.eup %6489 }
0x2e80   :  { %v6492_v48 = vpop.eup %6491  ;;  %v5130_v2 = vmul.f32 -0.020148512, %v6490_v43  ;;  %v5141_v47 = vmul.f32 -0.017095707, %v6490_v43 }
0x2e81   :  { %v5132_v49 = vmul.f32 -0.020148512, %v6492_v48  ;;  %v5175_v52 = vmul.f32 -0.017095707, %v6492_v48 }
0x2e82   :  { %v5142_v59 = vadd.f32 %v5141_v47, %v5140_v31  ;;  %v5131_v51 = vadd.f32 %v5130_v2, %v5063_v32 }
0x2e83   :  { %v5176_v53 = vadd.f32 %v5175_v52, %v5174_v33  ;;  %v5133_v56 = vadd.f32 %v5132_v49, %v5065_v35 }
0x2e84   :  { %v5143_v3 = vadd.f32 %v5142_v59, %v7585_v8 }
0x2e85   :  { %v5177_v55 = vadd.f32 %v5176_v53, %v7587_v15 }
0x2e86   :  { %6129 = vmatmul.msk.f32.vlgmr.msrb.gmra.mxu2 %vm53_vm0, %v5143_v3 }
0x2e87   :  { %6130 = vmatmul.msk.f32.vlgmr.msrb.gmra.mxu3 %vm53_vm0, %v5177_v55  ;;  %5393 = vmatpush.msrb.mxu2 %v7560_v44 }
0x2e88   :  { %5423 = vmatpush.msrb.mxu3 %v7560_v44 }
0x2e89   :  { %5394 = vmatpush.msrb.mxu2 %v7564_v58 }
0x2e8a   :  { %5424 = vmatpush.msrb.mxu3 %v7564_v58 }
0x2f09   :  { %v5164_v57 = vpop.f32.mrf.mxu2 }
0x2f0a   :  { %v5165_v62 = vadd.f32 %v7571_v45, %v5164_v57  ;;  %v5198_v0 = vpop.f32.mrf.mxu3 }
0x2f0b   :  { %v5199_v8 = vadd.f32 %v7571_v45, %v5198_v0 }
0x2f0c   :  { %6493 = vtanh.f32 %v5165_v62 }
0x2f0d   :  { %6495 = vtanh.f32 %v5199_v8 }
0x2f12   :  { %v6494_v15 = vpop.eup %6493 }
0x2f13   :  { %v6496_v60 = vpop.eup %6495  ;;  %v5202_v4 = vmul.f32 0.008184524, %v6494_v15 }
0x2f14   :  { %v5204_v63 = vmul.f32 0.008184524, %v6496_v60 }
0x2f15   :  { %v7651_v1 = vadd.f32 %v5202_v4, %v5131_v51 }
0x2f16   :  { %v7653_v10 = vadd.f32 %v5204_v63, %v5133_v56 }
0x2f17   :  { %6131 = vmatmul.msk.f32.vlgmr.msra.gmra.mxu0 %vm53_vm0, %v7651_v1 }
0x2f18   :  { %6132 = vmatmul.msk.f32.vlgmr.msra.gmra.mxu1 %vm53_vm0, %v7653_v10  ;;  %5459 = vmatpush.msra.mxu0 %v7560_v44 }
0x2f19   :  { %5491 = vmatpush.msra.mxu1 %v7560_v44 }
0x2f1a   :  { %5460 = vmatpush.msra.mxu0 %v7564_v58 }
0x2f1b   :  { %5492 = vmatpush.msra.mxu1 %v7564_v58 }
0x2f94   :  { %v5226_v20 = vpop.f32.mrf.mxu0 }
0x2f95   :  { %v5227_v7 = vadd.f32 %v7571_v45, %v5226_v20  ;;  %v5250_v5 = vpop.f32.mrf.mxu1 }
0x2f96   :  { %v5251_v6 = vadd.f32 %v7571_v45, %v5250_v5 }
0x2f97   :  { %6497 = vtanh.f32 %v5227_v7 }
0x2f98   :  { %6499 = vtanh.f32 %v5251_v6 }
0x2f9d   :  { %v6498_v26 = vpop.eup %6497 }
0x2f9e   :  { %v6500_v11 = vpop.eup %6499  ;;  %v5258_v61 = vmul.f32 0.0125, %v6498_v26  ;;  %v5310_v16 = vmul.f32 0.0046875, %v6498_v26  ;;  %v5370_v18 = vmul.f32 0.06111111, %v6498_v26 }
0x2f9f   :  { %v5284_v9 = vmul.f32 0.0125, %v6500_v11  ;;  %v5338_v38 = vmul.f32 0.0046875, %v6500_v11  ;;  %v5400_v30 = vmul.f32 0.06111111, %v6500_v11 }
0x2fa0   :  { %v5259_v13 = vadd.f32 %v5258_v61, %v7651_v1  ;;  %v5434_v21 = vmul.f32 0.18453741, %v6498_v26  ;;  %v5466_v23 = vmul.f32 0.18453741, %v6500_v11  ;;  %v5502_v24 = vmul.f32 0.17789221, %v6498_v26 }
0x2fa1   :  { %v5285_v19 = vadd.f32 %v5284_v9, %v7653_v10  ;;  %v5536_v25 = vmul.f32 0.17789221, %v6500_v11  ;;  %v5254_v51 = vmul.f32 0.0056966147, %v6498_v26  ;;  %v5256_v53 = vmul.f32 0.0056966147, %v6500_v11 }
0x2fa2   :  { %6133 = vmatmul.msk.f32.vlgmr.msra.gmra.mxu2 %vm53_vm0, %v5259_v13 }
0x2fa3   :  { %6134 = vmatmul.msk.f32.vlgmr.msra.gmra.mxu3 %vm53_vm0, %v5285_v19  ;;  %5529 = vmatpush.msra.mxu2 %v7560_v44  ;;  %v5255_v0 = vadd.f32 %v5254_v51, %v7651_v1  ;;  %v5257_v4 = vadd.f32 %v5256_v53, %v7653_v10 }
0x2fa4   :  { %5563 = vmatpush.msra.mxu3 %v7560_v44 }
0x2fa5   :  { %5530 = vmatpush.msra.mxu2 %v7564_v58 }
0x2fa6   :  { %5564 = vmatpush.msra.mxu3 %v7564_v58 }
0x3025   :  { %v5280_v12 = vpop.f32.mrf.mxu2 }
0x3026   :  { %v5281_v14 = vadd.f32 %v7571_v45, %v5280_v12  ;;  %v5306_v17 = vpop.f32.mrf.mxu3 }
0x3027   :  { %v5307_v34 = vadd.f32 %v7571_v45, %v5306_v17 }
0x3028   :  { %6501 = vtanh.f32 %v5281_v14 }
0x3029   :  { %6503 = vtanh.f32 %v5307_v34 }
0x302e   :  { %v6502_v22 = vpop.eup %6501 }
0x302f   :  { %v6504_v42 = vpop.eup %6503  ;;  %v5311_v27 = vmul.f32 0.0140625, %v6502_v22  ;;  %v5371_v28 = vmul.f32 -0.23333333, %v6502_v22  ;;  %v5435_v29 = vmul.f32 -0.7247371, %v6502_v22 }
0x3030   :  { %v5339_v46 = vmul.f32 0.0140625, %v6504_v42  ;;  %v5401_v31 = vmul.f32 -0.23333333, %v6504_v42  ;;  %v5467_v32 = vmul.f32 -0.7247371, %v6504_v42 }
0x3031   :  { %v5312_v36 = vadd.f32 %v5311_v27, %v5310_v16  ;;  %v5372_v33 = vadd.f32 %v5371_v28, %v5370_v18  ;;  %v5436_v35 = vadd.f32 %v5435_v29, %v5434_v21  ;;  %v5503_v40 = vmul.f32 -0.6723485, %v6502_v22 }
0x3032   :  { %v5340_v50 = vadd.f32 %v5339_v46, %v5338_v38  ;;  %v5402_v54 = vadd.f32 %v5401_v31, %v5400_v30  ;;  %v5468_v39 = vadd.f32 %v5467_v32, %v5466_v23  ;;  %v5537_v41 = vmul.f32 -0.6723485, %v6504_v42 }
0x3033   :  { %v5313_v37 = vadd.f32 %v5312_v36, %v7651_v1  ;;  %v5504_v43 = vadd.f32 %v5503_v40, %v5502_v24 }
0x3034   :  { %v5341_v48 = vadd.f32 %v5340_v50, %v7653_v10  ;;  %v5538_v2 = vadd.f32 %v5537_v41, %v5536_v25 }
0x3035   :  { %6135 = vmatmul.msk.f32.vlgmr.msrb.gmra.mxu0 %vm53_vm0, %v5313_v37 }
0x3036   :  { %6136 = vmatmul.msk.f32.vlgmr.msrb.gmra.mxu1 %vm53_vm0, %v5341_v48  ;;  %5591 = vmatpush.msrb.mxu0 %v7560_v44 }
0x3037   :  { %5615 = vmatpush.msrb.mxu1 %v7560_v44 }
0x3038   :  { %5592 = vmatpush.msrb.mxu0 %v7564_v58 }
0x3039   :  { %5616 = vmatpush.msrb.mxu1 %v7564_v58 }
0x30b2   :  { %v5334_v47 = vpop.f32.mrf.mxu0 }
0x30b3   :  { %v5335_v49 = vadd.f32 %v7571_v45, %v5334_v47  ;;  %v5362_v52 = vpop.f32.mrf.mxu1 }
0x30b4   :  { %v5363_v59 = vadd.f32 %v7571_v45, %v5362_v52 }
0x30b5   :  { %6505 = vtanh.f32 %v5335_v49 }
0x30b6   :  { %6507 = vtanh.f32 %v5363_v59 }
0x30bb   :  { %v6506_v56 = vpop.eup %6505 }
0x30bc   :  { %v6508_v3 = vpop.eup %6507  ;;  %v5373_v55 = vmul.f32 0.22222222, %v6506_v56  ;;  %v5437_v57 = vmul.f32 0.6139308, %v6506_v56  ;;  %v5505_v62 = vmul.f32 0.5566514, %v6506_v56 }
0x30bd   :  { %v5403_v8 = vmul.f32 0.22222222, %v6508_v3  ;;  %v5469_v15 = vmul.f32 0.6139308, %v6508_v3  ;;  %v5539_v60 = vmul.f32 0.5566514, %v6508_v3 }
0x30be   :  { %v5374_v63 = vadd.f32 %v5373_v55, %v5372_v33  ;;  %v5438_v20 = vadd.f32 %v5437_v57, %v5436_v35  ;;  %v5506_v7 = vadd.f32 %v5505_v62, %v5504_v43  ;;  %v5366_v5 = vmul.f32 0.028077269, %v6506_v56 }
0x30bf   :  { %v5404_v6 = vadd.f32 %v5403_v8, %v5402_v54  ;;  %v5470_v61 = vadd.f32 %v5469_v15, %v5468_v39  ;;  %v5540_v26 = vadd.f32 %v5539_v60, %v5538_v2  ;;  %v5368_v11 = vmul.f32 0.028077269, %v6508_v3 }
0x30c0   :  { %v5375_v9 = vadd.f32 %v5374_v63, %v7651_v1  ;;  %v5367_v13 = vadd.f32 %v5366_v5, %v5255_v0 }
0x30c1   :  { %v5405_v19 = vadd.f32 %v5404_v6, %v7653_v10  ;;  %v5369_v12 = vadd.f32 %v5368_v11, %v5257_v4 }
0x30c2   :  { %6137 = vmatmul.msk.f32.vlgmr.msrb.gmra.mxu2 %vm53_vm0, %v5375_v9 }
0x30c3   :  { %6138 = vmatmul.msk.f32.vlgmr.msrb.gmra.mxu3 %vm53_vm0, %v5405_v19  ;;  %5645 = vmatpush.msrb.mxu2 %v7560_v44 }
0x30c4   :  { %5671 = vmatpush.msrb.mxu3 %v7560_v44 }
0x30c5   :  { %5646 = vmatpush.msrb.mxu2 %v7564_v58 }
0x30c6   :  { %5672 = vmatpush.msrb.mxu3 %v7564_v58 }
0x3145   :  { %v5396_v14 = vpop.f32.mrf.mxu2 }
0x3146   :  { %v5397_v17 = vadd.f32 %v7571_v45, %v5396_v14  ;;  %v5426_v34 = vpop.f32.mrf.mxu3 }
0x3147   :  { %v5427_v16 = vadd.f32 %v7571_v45, %v5426_v34 }
0x3148   :  { %6509 = vtanh.f32 %v5397_v17 }
0x3149   :  { %6511 = vtanh.f32 %v5427_v16 }
0x314e   :  { %v6510_v18 = vpop.eup %6509 }
0x314f   :  { %v6512_v38 = vpop.eup %6511  ;;  %v5439_v30 = vmul.f32 -0.018175583, %v6510_v18  ;;  %v5507_v21 = vmul.f32 0.017400568, %v6510_v18  ;;  %v5430_v22 = vmul.f32 0.040690105, %v6510_v18 }
0x3150   :  { %v5471_v23 = vmul.f32 -0.018175583, %v6512_v38  ;;  %v5541_v24 = vmul.f32 0.017400568, %v6512_v38  ;;  %v5432_v25 = vmul.f32 0.040690105, %v6512_v38 }
0x3151   :  { %v5440_v42 = vadd.f32 %v5439_v30, %v5438_v20  ;;  %v5508_v27 = vadd.f32 %v5507_v21, %v5506_v7  ;;  %v5431_v28 = vadd.f32 %v5430_v22, %v5367_v13 }
0x3152   :  { %v5472_v29 = vadd.f32 %v5471_v23, %v5470_v61  ;;  %v5542_v46 = vadd.f32 %v5541_v24, %v5540_v26  ;;  %v5433_v31 = vadd.f32 %v5432_v25, %v5369_v12 }
0x3153   :  { %v5441_v32 = vadd.f32 %v5440_v42, %v7651_v1 }
0x3154   :  { %v5473_v36 = vadd.f32 %v5472_v29, %v7653_v10 }
0x3155   :  { %6139 = vmatmul.msk.f32.vlgmr.msra.gmra.mxu0 %vm53_vm0, %v5441_v32 }
0x3156   :  { %6140 = vmatmul.msk.f32.vlgmr.msra.gmra.mxu1 %vm53_vm0, %v5473_v36  ;;  %5699 = vmatpush.msra.mxu0 %v7560_v44 }
0x3157   :  { %5727 = vmatpush.msra.mxu1 %v7560_v44 }
0x3158   :  { %5700 = vmatpush.msra.mxu0 %v7564_v58 }
0x3159   :  { %5728 = vmatpush.msra.mxu1 %v7564_v58 }
0x31d2   :  { %v5462_v33 = vpop.f32.mrf.mxu0 }
0x31d3   :  { %v5463_v35 = vadd.f32 %v7571_v45, %v5462_v33  ;;  %v5494_v40 = vpop.f32.mrf.mxu1 }
0x31d4   :  { %v5495_v50 = vadd.f32 %v7571_v45, %v5494_v40 }
0x31d5   :  { %6513 = vtanh.f32 %v5463_v35 }
0x31d6   :  { %6515 = vtanh.f32 %v5495_v50 }
0x31db   :  { %v6514_v54 = vpop.eup %6513 }
0x31dc   :  { %v6516_v39 = vpop.eup %6515  ;;  %v5498_v41 = vmul.f32 -0.020148512, %v6514_v54  ;;  %v5509_v37 = vmul.f32 -0.017095707, %v6514_v54 }
0x31dd   :  { %v5500_v43 = vmul.f32 -0.020148512, %v6516_v39  ;;  %v5543_v48 = vmul.f32 -0.017095707, %v6516_v39 }
0x31de   :  { %v5510_v2 = vadd.f32 %v5509_v37, %v5508_v27  ;;  %v5499_v47 = vadd.f32 %v5498_v41, %v5431_v28 }
0x31df   :  { %v5544_v49 = vadd.f32 %v5543_v48, %v5542_v46  ;;  %v5501_v52 = vadd.f32 %v5500_v43, %v5433_v31 }
0x31e0   :  { %v5511_v59 = vadd.f32 %v5510_v2, %v7651_v1 }
0x31e1   :  { %v5545_v51 = vadd.f32 %v5544_v49, %v7653_v10 }
0x31e2   :  { %6141 = vmatmul.msk.f32.vlgmr.msra.gmra.mxu2 %vm53_vm0, %v5511_v59 }
0x31e3   :  { %6142 = vmatmul.msk.f32.vlgmr.msra.gmra.mxu3 %vm53_vm0, %v5545_v51  ;;  %5761 = vmatpush.msra.mxu2 %v7560_v44 }
0x31e4   :  { %5791 = vmatpush.msra.mxu3 %v7560_v44 }
0x31e5   :  { %5762 = vmatpush.msra.mxu2 %v7564_v58 }
0x31e6   :  { %5792 = vmatpush.msra.mxu3 %v7564_v58 }
0x3265   :  { %v5532_v53 = vpop.f32.mrf.mxu2 }
0x3266   :  { %v5533_v56 = vadd.f32 %v7571_v45, %v5532_v53  ;;  %v5566_v3 = vpop.f32.mrf.mxu3 }
0x3267   :  { %v5567_v1 = vadd.f32 %v7571_v45, %v5566_v3 }
0x3268   :  { %6517 = vtanh.f32 %v5533_v56 }
0x3269   :  { %6519 = vtanh.f32 %v5567_v1 }
0x326e   :  { %v6518_v10 = vpop.eup %6517 }
0x326f   :  { %v6520_v55 = vpop.eup %6519  ;;  %v5570_v57 = vmul.f32 0.008184524, %v6518_v10 }
0x3270   :  { %v5572_v62 = vmul.f32 0.008184524, %v6520_v55 }
0x3271   :  { %v7717_v0 = vadd.f32 %v5570_v57, %v5499_v47 }
0x3272   :  { %v7719_v8 = vadd.f32 %v5572_v62, %v5501_v52 }
0x3273   :  { %6143 = vmatmul.msk.f32.vlgmr.msrb.gmra.mxu0 %vm53_vm0, %v7717_v0 }
0x3274   :  { %6144 = vmatmul.msk.f32.vlgmr.msrb.gmra.mxu1 %vm53_vm0, %v7719_v8  ;;  %5827 = vmatpush.msrb.mxu0 %v7560_v44 }
0x3275   :  { %5859 = vmatpush.msrb.mxu1 %v7560_v44 }
0x3276   :  { %5828 = vmatpush.msrb.mxu0 %v7564_v58 }
0x3277   :  { %5860 = vmatpush.msrb.mxu1 %v7564_v58 }
0x32f0   :  { %v5594_v15 = vpop.f32.mrf.mxu0 }
0x32f1   :  { %v5595_v60 = vadd.f32 %v7571_v45, %v5594_v15  ;;  %v5618_v4 = vpop.f32.mrf.mxu1 }
0x32f2   :  { %v5619_v63 = vadd.f32 %v7571_v45, %v5618_v4 }
0x32f3   :  { %6521 = vtanh.f32 %v5595_v60 }
0x32f4   :  { %6523 = vtanh.f32 %v5619_v63 }
0x32f9   :  { %v6522_v20 = vpop.eup %6521 }
0x32fa   :  { %v6524_v7 = vpop.eup %6523  ;;  %v5626_v5 = vmul.f32 0.0125, %v6522_v20  ;;  %v5678_v12 = vmul.f32 0.0046875, %v6522_v20  ;;  %v5738_v14 = vmul.f32 0.06111111, %v6522_v20 }
0x32fb   :  { %v5652_v6 = vmul.f32 0.0125, %v6524_v7  ;;  %v5706_v17 = vmul.f32 0.0046875, %v6524_v7  ;;  %v5768_v34 = vmul.f32 0.06111111, %v6524_v7 }
0x32fc   :  { %v5627_v61 = vadd.f32 %v5626_v5, %v7717_v0  ;;  %v5802_v16 = vmul.f32 0.18453741, %v6522_v20  ;;  %v5834_v38 = vmul.f32 0.18453741, %v6524_v7  ;;  %v5904_v30 = vmul.f32 0.17789221, %v6524_v7 }
0x32fd   :  { %v5653_v26 = vadd.f32 %v5652_v6, %v7719_v8  ;;  %v5622_v48 = vmul.f32 0.0056966147, %v6522_v20  ;;  %v5624_v2 = vmul.f32 0.0056966147, %v6524_v7 }
0x32fe   :  { %6145 = vmatmul.msk.f32.vlgmr.msrb.gmra.mxu2 %vm53_vm0, %v5627_v61 }
0x32ff   :  { %6146 = vmatmul.msk.f32.vlgmr.msrb.gmra.mxu3 %vm53_vm0, %v5653_v26  ;;  %5897 = vmatpush.msrb.mxu2 %v7560_v44  ;;  %v5623_v53 = vadd.f32 %v5622_v48, %v7717_v0  ;;  %v5625_v10 = vadd.f32 %v5624_v2, %v7719_v8 }
0x3300   :  { %5931 = vmatpush.msrb.mxu3 %v7560_v44  ;;  %v5870_v44 = vmul.f32 0.17789221, %v6522_v20 }
0x3301   :  { %5898 = vmatpush.msrb.mxu2 %v7564_v58 }
0x3302   :  { %5932 = vmatpush.msrb.mxu3 %v7564_v58 }
0x3381   :  { %v5648_v11 = vpop.f32.mrf.mxu2 }
0x3382   :  { %v5649_v9 = vadd.f32 %v7571_v45, %v5648_v11  ;;  %v5674_v13 = vpop.f32.mrf.mxu3 }
0x3383   :  { %v5675_v19 = vadd.f32 %v7571_v45, %v5674_v13 }
0x3384   :  { %6525 = vtanh.f32 %v5649_v9 }
0x3385   :  { %6527 = vtanh.f32 %v5675_v19 }
0x338a   :  { %v6526_v18 = vpop.eup %6525 }
0x338b   :  { %v6528_v21 = vpop.eup %6527  ;;  %v5679_v22 = vmul.f32 0.0140625, %v6526_v18  ;;  %v5739_v58 = vmul.f32 -0.23333333, %v6526_v18  ;;  %v5803_v23 = vmul.f32 -0.7247371, %v6526_v18 }
0x338c   :  { %v5707_v24 = vmul.f32 0.0140625, %v6528_v21  ;;  %v5769_v25 = vmul.f32 -0.23333333, %v6528_v21  ;;  %v5835_v42 = vmul.f32 -0.7247371, %v6528_v21 }
0x338d   :  { %v5680_v27 = vadd.f32 %v5679_v22, %v5678_v12  ;;  %v5740_v28 = vadd.f32 %v5739_v58, %v5738_v14  ;;  %v5804_v29 = vadd.f32 %v5803_v23, %v5802_v16  ;;  %v5871_v46 = vmul.f32 -0.6723485, %v6526_v18 }
0x338e   :  { %v5708_v31 = vadd.f32 %v5707_v24, %v5706_v17  ;;  %v5770_v32 = vadd.f32 %v5769_v25, %v5768_v34  ;;  %v5836_v36 = vadd.f32 %v5835_v42, %v5834_v38  ;;  %v5905_v33 = vmul.f32 -0.6723485, %v6528_v21 }
0x338f   :  { %v5681_v35 = vadd.f32 %v5680_v27, %v7717_v0  ;;  %v5872_v40 = vadd.f32 %v5871_v46, %v5870_v44 }
0x3390   :  { %v5709_v50 = vadd.f32 %v5708_v31, %v7719_v8  ;;  %v5906_v54 = vadd.f32 %v5905_v33, %v5904_v30 }
0x3391   :  { %6147 = vmatmul.msk.f32.vlgmr.msra.gmra.mxu0 %vm53_vm0, %v5681_v35 }
0x3392   :  { %6148 = vmatmul.msk.f32.vlgmr.msra.gmra.mxu1 %vm53_vm0, %v5709_v50 }
0x340e   :  { %v5702_v39 = vpop.f32.mrf.mxu0 }
0x340f   :  { %v5703_v41 = vadd.f32 %v7571_v45, %v5702_v39  ;;  %v5730_v37 = vpop.f32.mrf.mxu1 }
0x3410   :  { %v5731_v43 = vadd.f32 %v7571_v45, %v5730_v37 }
0x3411   :  { %6529 = vtanh.f32 %v5703_v41 }
0x3412   :  { %6531 = vtanh.f32 %v5731_v43 }
0x3417   :  { %v6530_v47 = vpop.eup %6529 }
0x3418   :  { %v6532_v49 = vpop.eup %6531  ;;  %v5741_v52 = vmul.f32 0.22222222, %v6530_v47  ;;  %v5805_v59 = vmul.f32 0.6139308, %v6530_v47  ;;  %v5873_v51 = vmul.f32 0.5566514, %v6530_v47 }
0x3419   :  { %v5771_v56 = vmul.f32 0.22222222, %v6532_v49  ;;  %v5837_v3 = vmul.f32 0.6139308, %v6532_v49  ;;  %v5907_v1 = vmul.f32 0.5566514, %v6532_v49 }
0x341a   :  { %v5742_v55 = vadd.f32 %v5741_v52, %v5740_v28  ;;  %v5806_v57 = vadd.f32 %v5805_v59, %v5804_v29  ;;  %v5874_v62 = vadd.f32 %v5873_v51, %v5872_v40  ;;  %v5734_v15 = vmul.f32 0.028077269, %v6530_v47 }
0x341b   :  { %v5772_v60 = vadd.f32 %v5771_v56, %v5770_v32  ;;  %v5838_v4 = vadd.f32 %v5837_v3, %v5836_v36  ;;  %v5908_v63 = vadd.f32 %v5907_v1, %v5906_v54  ;;  %v5736_v20 = vmul.f32 0.028077269, %v6532_v49 }
0x341c   :  { %v5743_v7 = vadd.f32 %v5742_v55, %v7717_v0  ;;  %v5735_v5 = vadd.f32 %v5734_v15, %v5623_v53 }
0x341d   :  { %v5773_v6 = vadd.f32 %v5772_v60, %v7719_v8  ;;  %v5737_v61 = vadd.f32 %v5736_v20, %v5625_v10 }
0x341e   :  { %6149 = vmatmul.msk.f32.vlgmr.msra.gmra.mxu2 %vm53_vm0, %v5743_v7 }
0x341f   :  { %6150 = vmatmul.msk.f32.vlgmr.msra.gmra.mxu3 %vm53_vm0, %v5773_v6 }
0x34a1   :  { %v5764_v26 = vpop.f32.mrf.mxu2 }
0x34a2   :  { %v5765_v11 = vadd.f32 %v7571_v45, %v5764_v26  ;;  %v5794_v9 = vpop.f32.mrf.mxu3 }
0x34a3   :  { %v5795_v13 = vadd.f32 %v7571_v45, %v5794_v9 }
0x34a4   :  { %6533 = vtanh.f32 %v5765_v11 }
0x34a5   :  { %6535 = vtanh.f32 %v5795_v13 }
0x34aa   :  { %v6534_v19 = vpop.eup %6533 }
0x34ab   :  { %v6536_v12 = vpop.eup %6535  ;;  %v5807_v14 = vmul.f32 -0.018175583, %v6534_v19  ;;  %v5875_v17 = vmul.f32 0.017400568, %v6534_v19  ;;  %v5798_v34 = vmul.f32 0.040690105, %v6534_v19 }
0x34ac   :  { %v5839_v16 = vmul.f32 -0.018175583, %v6536_v12  ;;  %v5909_v18 = vmul.f32 0.017400568, %v6536_v12  ;;  %v5800_v38 = vmul.f32 0.040690105, %v6536_v12 }
0x34ad   :  { %v5808_v44 = vadd.f32 %v5807_v14, %v5806_v57  ;;  %v5876_v30 = vadd.f32 %v5875_v17, %v5874_v62  ;;  %v5799_v21 = vadd.f32 %v5798_v34, %v5735_v5 }
0x34ae   :  { %v5840_v22 = vadd.f32 %v5839_v16, %v5838_v4  ;;  %v5910_v58 = vadd.f32 %v5909_v18, %v5908_v63  ;;  %v5801_v23 = vadd.f32 %v5800_v38, %v5737_v61 }
0x34af   :  { %v5809_v24 = vadd.f32 %v5808_v44, %v7717_v0 }
0x34b0   :  { %v5841_v25 = vadd.f32 %v5840_v22, %v7719_v8 }
0x34b1   :  { %6151 = vmatmul.msk.f32.vlgmr.msrb.gmra.mxu0 %vm53_vm0, %v5809_v24 }
0x34b2   :  { %6152 = vmatmul.msk.f32.vlgmr.msrb.gmra.mxu1 %vm53_vm0, %v5841_v25 }
0x352e   :  { %v5830_v42 = vpop.f32.mrf.mxu0 }
0x352f   :  { %v5831_v27 = vadd.f32 %v7571_v45, %v5830_v42  ;;  %v5862_v28 = vpop.f32.mrf.mxu1 }
0x3530   :  { %v5863_v29 = vadd.f32 %v7571_v45, %v5862_v28 }
0x3531   :  { %6537 = vtanh.f32 %v5831_v27 }
0x3532   :  { %6539 = vtanh.f32 %v5863_v29 }
0x3537   :  { %v6538_v46 = vpop.eup %6537 }
0x3538   :  { %v6540_v31 = vpop.eup %6539  ;;  %v5866_v32 = vmul.f32 -0.020148512, %v6538_v46  ;;  %v5877_v36 = vmul.f32 -0.017095707, %v6538_v46 }
0x3539   :  { %v5868_v33 = vmul.f32 -0.020148512, %v6540_v31  ;;  %v5911_v35 = vmul.f32 -0.017095707, %v6540_v31 }
0x353a   :  { %v5878_v40 = vadd.f32 %v5877_v36, %v5876_v30  ;;  %v5867_v50 = vadd.f32 %v5866_v32, %v5799_v21 }
0x353b   :  { %v5912_v54 = vadd.f32 %v5911_v35, %v5910_v58  ;;  %v5869_v39 = vadd.f32 %v5868_v33, %v5801_v23 }
0x353c   :  { %v5879_v41 = vadd.f32 %v5878_v40, %v7717_v0 }
0x353d   :  { %v5913_v37 = vadd.f32 %v5912_v54, %v7719_v8 }
0x353e   :  { %6153 = vmatmul.msk.f32.vlgmr.msrb.gmra.mxu2 %vm53_vm0, %v5879_v41 }
0x353f   :  { %6154 = vmatmul.msk.f32.vlgmr.msrb.gmra.mxu3 %vm53_vm0, %v5913_v37 }
0x35c1   :  { %v5900_v43 = vpop.f32.mrf.mxu2 }
0x35c2   :  { %v5901_v48 = vadd.f32 %v7571_v45, %v5900_v43  ;;  %v5934_v2 = vpop.f32.mrf.mxu3 }
0x35c3   :  { %v5935_v47 = vadd.f32 %v7571_v45, %v5934_v2 }
0x35c4   :  { %6541 = vtanh.f32 %v5901_v48 }
0x35c5   :  { %6543 = vtanh.f32 %v5935_v47 }
0x35ca   :  { %v6542_v49 = vpop.eup %6541 }
0x35cb   :  { %v6544_v52 = vpop.eup %6543  ;;  %v5938_v59 = vmul.f32 0.008184524, %v6542_v49 }
0x35cc   :  { %v5940_v0 = vmul.f32 0.008184524, %v6544_v52 }
0x35cd   :  { %v5939_v8 = vadd.f32 %v5938_v59, %v5867_v50 }
0x35ce   :  { %v5941_v51 = vadd.f32 %v5940_v0, %v5869_v39 }
0x35cf   :  { %5943 = vst.msk [vmem:[#allocation7] sm:$0xf] %vm5942_vm1, %v5939_v8 }
0x35d0   :  { %5944 = vst.msk [vmem:[#allocation7 + $0x4] sm:$0xf] %vm5942_vm1, %v5941_v51 }
0x35d1   :  { %5955 = dma.vmem_to_hbm [thread:$0]  %s5951_s5, 128, %s5953_s8, [#allocation4]  }
0x35d2   :  { %6633 = dma.done.wait [#allocation4], 128  }
0x35d3   :  { %6634 = vsyncadd [#allocation4], 4294967168 }
0x35d4   :  { %5960 = vsyncpa [#allocation3], 1 }
0x35d5   :  { %5961 = vsyncpa [#allocation6], 1 }
0x35d6   :  { %5962 = vsyncpa [#allocation4], 1 }

</bundles_post_ra>
